<compile_context>
chip_gen: v6e
topology: v6e:2x2x1
jax: 0.10.0
libtpu: 0.0.40
codegen_flags: <defaults>
</compile_context>

<pallas_src>
import jax
import jax.numpy as jnp
from jax import lax
from jax.experimental import pallas as pl
from jax.experimental.pallas import tpu as pltpu

KH = KW = 3          # kernel_size = 3
PAD = 1              # padding = 1
STRIDE = 1           # stride = 1 (shifted-tap conv assumes stride 1)
BN_EPS = 1e-5


def _convlstm_kernel(xh_ref, c_ref, w_ref, gamma_ref, beta_ref,
                     h_out_ref, c_out_ref):
    """Conv (fused x||h), fused BatchNorm, LSTM gates and state update in VMEM."""
    B, Hp, Wp, _ = xh_ref.shape
    Chid = c_ref.shape[-1]
    H, W = Hp - 2 * PAD, Wp - 2 * PAD
    C4 = 4 * Chid

    # 3x3 conv on the fused [x ; h] input: 9 shifted-tap matmuls on the MXU
    # with contraction depth Cin + Chid, accumulated in f32.
    acc = jnp.zeros((B, H, W, C4), jnp.float32)
    for dy in range(KH):
        for dx in range(KW):
            tap = xh_ref[:, dy:dy + H, dx:dx + W, :]            # (B,H,W,Cin+Chid)
            acc = acc + jnp.einsum('bhwc,co->bhwo', tap, w_ref[dy, dx],
                                   preferred_element_type=jnp.float32)
    # Conv biases intentionally omitted: training-mode BN mean-subtraction
    # cancels per-channel constants exactly.

    # BatchNorm2d (training mode) fused to a per-channel scale/shift FMA.
    inv_n = 1.0 / (B * H * W)
    s1 = jnp.sum(acc, axis=(0, 1, 2), keepdims=True)            # (1,1,1,C4)
    s2 = jnp.sum(acc * acc, axis=(0, 1, 2), keepdims=True)      # (1,1,1,C4)
    mean = s1 * inv_n
    var = s2 * inv_n - mean * mean                              # biased variance
    scale = gamma_ref[...] * lax.rsqrt(var + BN_EPS)            # (1,1,1,C4)
    shift = beta_ref[...] - mean * scale
    gated = acc * scale + shift                                 # single big pass

    # chunk(4, dim=channel) -> i, f, c, o gates.
    i_g = jax.nn.sigmoid(gated[..., 0 * Chid:1 * Chid])
    f_g = jax.nn.sigmoid(gated[..., 1 * Chid:2 * Chid])
    g_g = jnp.tanh(gated[..., 2 * Chid:3 * Chid])
    o_g = jax.nn.sigmoid(gated[..., 3 * Chid:4 * Chid])

    c_new = f_g * c_ref[...] + i_g * g_g
    h_new = o_g * jnp.tanh(c_new)

    c_out_ref[...] = c_new
    h_out_ref[...] = h_new


def fuse_convgate_params(wx, wh, bx, bh, gamma, beta):
    """Fold ConvGate params for the fused kernel (do this once per sequence).

    The conv biases bx/bh are dropped: training-mode BatchNorm subtracts the
    per-channel batch mean, which cancels them exactly.
    """
    del bx, bh
    w = jnp.concatenate([wx, wh], axis=2)      # (KH, KW, Cin+Chid, 4*Chid) HWIO
    return (w.astype(jnp.float32),
            gamma.astype(jnp.float32),
            beta.astype(jnp.float32))


def conv_lstm_cell(x_nchw, h_nchw, c_nchw, fused_params):
    """x: (B,Cin,H,W), h/c: (B,Chid,H,W) -> (hidden_state, cell_state), NCHW."""
    w, gamma, beta = fused_params
    B, _, H, W = x_nchw.shape
    Chid = h_nchw.shape[1]
    C4 = 4 * Chid

    # NCHW -> NHWC, concat x||h along channels, spatial pad (glue only).
    x = jnp.transpose(x_nchw, (0, 2, 3, 1)).astype(jnp.float32)
    h = jnp.transpose(h_nchw, (0, 2, 3, 1)).astype(jnp.float32)
    c = jnp.transpose(c_nchw, (0, 2, 3, 1)).astype(jnp.float32)
    xh = jnp.concatenate([x, h], axis=-1)
    xh_pad = jnp.pad(xh, ((0, 0), (PAD, PAD), (PAD, PAD), (0, 0)))

    vmem = pl.BlockSpec(memory_space=pltpu.MemorySpace.VMEM)
    h_out, c_out = pl.pallas_call(
        _convlstm_kernel,
        out_shape=(jax.ShapeDtypeStruct((B, H, W, Chid), jnp.float32),
                   jax.ShapeDtypeStruct((B, H, W, Chid), jnp.float32)),
        in_specs=[vmem] * 5,
        out_specs=(vmem, vmem),
    )(xh_pad, c, w, gamma.reshape(1, C4), beta.reshape(1, C4))

    # NHWC -> NCHW
    return (jnp.transpose(h_out, (0, 3, 1, 2)),
            jnp.transpose(c_out, (0, 3, 1, 2)))


def _reference(x_nchw, h_nchw, c_nchw, params):
    """Pure-JAX reference of the original module math (incl. conv biases)."""
    wx, wh, bx, bh, gamma, beta = params
    x = jnp.transpose(x_nchw, (0, 2, 3, 1))
    h = jnp.transpose(h_nchw, (0, 2, 3, 1))
    c = jnp.transpose(c_nchw, (0, 2, 3, 1))
    dn = ('NHWC', 'HWIO', 'NHWC')
    g = (lax.conv_general_dilated(x, wx, (1, 1), 'SAME', dimension_numbers=dn)
         + lax.conv_general_dilated(h, wh, (1, 1), 'SAME', dimension_numbers=dn)
         + bx.reshape(1, 1, 1, -1) + bh.reshape(1, 1, 1, -1))
    mean = jnp.mean(g, axis=(0, 1, 2), keepdims=True)
    var = jnp.mean((g - mean) ** 2, axis=(0, 1, 2), keepdims=True)
    g = (g - mean) * lax.rsqrt(var + BN_EPS) * gamma.reshape(1, 1, 1, -1) \
        + beta.reshape(1, 1, 1, -1)
    Chid = c.shape[-1]
    i_g = jax.nn.sigmoid(g[..., :Chid])
    f_g = jax.nn.sigmoid(g[..., Chid:2 * Chid])
    c_g = jnp.tanh(g[..., 2 * Chid:3 * Chid])
    o_g = jax.nn.sigmoid(g[..., 3 * Chid:])
    c_new = f_g * c + i_g * c_g
    h_new = o_g * jnp.tanh(c_new)
    return (jnp.transpose(h_new, (0, 3, 1, 2)),
            jnp.transpose(c_new, (0, 3, 1, 2)))


if __name__ == "__main__":
    B, Cin, Chid, H, W = 2, 4, 32, 16, 16
    key = jax.random.PRNGKey(0)
    ks = jax.random.split(key, 9)

    # Deterministic synthetic parameters (ConvGate: conv_x, conv_h, BatchNorm2d).
    # Conv weights stored HWIO (kh, kw, in, out) to match the NHWC kernel layout.
    wx = jax.random.normal(ks[0], (KH, KW, Cin, 4 * Chid), jnp.float32) * 0.1
    wh = jax.random.normal(ks[1], (KH, KW, Chid, 4 * Chid), jnp.float32) * 0.1
    bx = jax.random.normal(ks[2], (4 * Chid,), jnp.float32) * 0.1
    bh = jax.random.normal(ks[3], (4 * Chid,), jnp.float32) * 0.1
    gamma = 1.0 + 0.1 * jax.random.normal(ks[4], (4 * Chid,), jnp.float32)
    beta = 0.1 * jax.random.normal(ks[5], (4 * Chid,), jnp.float32)
    params = (wx, wh, bx, bh, gamma, beta)
    fused_params = fuse_convgate_params(*params)

    # Inputs (NCHW, PyTorch convention).
    x = jax.random.normal(ks[6], (B, Cin, H, W), jnp.float32)
    h0 = jax.random.normal(ks[7], (B, Chid, H, W), jnp.float32)
    c0 = jax.random.normal(ks[8], (B, Chid, H, W), jnp.float32)

    h1, c1 = jax.jit(conv_lstm_cell)(x, h0, c0, fused_params)
    jax.block_until_ready((h1, c1))

    h_ref, c_ref = _reference(x, h0, c0, params)
    assert h1.shape == (B, Chid, H, W) and c1.shape == (B, Chid, H, W)
    assert jnp.allclose(h1, h_ref, atol=1e-4, rtol=1e-4)
    assert jnp.allclose(c1, c_ref, atol=1e-4, rtol=1e-4)

    print("KERNEL_OK")
</pallas_src>

<mosaic_0001>
module attributes {stable_mosaic.version = 11 : i64} {
  func.func @_convlstm_kernel(%arg0: memref<2x18x18x36xf32, #tpu.memory_space<vmem>>, %arg1: memref<2x16x16x32xf32, #tpu.memory_space<vmem>>, %arg2: memref<3x3x36x128xf32, #tpu.memory_space<vmem>>, %arg3: memref<1x128xf32, #tpu.memory_space<vmem>>, %arg4: memref<1x128xf32, #tpu.memory_space<vmem>>, %arg5: memref<2x16x16x32xf32, #tpu.memory_space<vmem>>, %arg6: memref<2x16x16x32xf32, #tpu.memory_space<vmem>>) attributes {dimension_semantics = [], scalar_prefetch = 0 : i64, scratch_operands = 0 : i64, tpu.core_type = #tpu.core_type<tc>} {
    %cst = arith.constant 0.000000e+00 : f32
    %0 = vector.broadcast %cst : f32 to vector<2x16x16x128xf32>
    %c0 = arith.constant 0 : index
    %c0_0 = arith.constant 0 : index
    %c0_1 = arith.constant 0 : index
    %c0_2 = arith.constant 0 : index
    %1 = vector.load %arg0[%c0, %c0_0, %c0_1, %c0_2] : memref<2x18x18x36xf32, #tpu.memory_space<vmem>>, vector<2x16x16x36xf32>
    %c0_3 = arith.constant 0 : index
    %c0_4 = arith.constant 0 : index
    %c0_5 = arith.constant 0 : index
    %c0_6 = arith.constant 0 : index
    %2 = vector.load %arg2[%c0_3, %c0_4, %c0_5, %c0_6] : memref<3x3x36x128xf32, #tpu.memory_space<vmem>>, vector<1x1x36x128xf32>
    %3 = vector.shape_cast %2 : vector<1x1x36x128xf32> to vector<36x128xf32>
    "tpu.trace_start"() <{level = 10 : i32, message = "bhwc,co->bhwo"}> : () -> ()
    %cst_7 = arith.constant dense<0.000000e+00> : vector<2x16x16x128xf32>
    %4 = tpu.matmul %1, %3, %cst_7 {dimension_numbers = #tpu.dot_dimension_numbers<[3], [0], [0, 1, 2], [1], [0, 0, 0, 1, 0, 2, 1, 1], [], []>} : vector<2x16x16x36xf32>, vector<36x128xf32>, vector<2x16x16x128xf32> -> vector<2x16x16x128xf32>
    "tpu.trace_stop"() : () -> ()
    %5 = arith.addf %0, %4 : vector<2x16x16x128xf32>
    %c0_8 = arith.constant 0 : index
    %c0_9 = arith.constant 0 : index
    %c1 = arith.constant 1 : index
    %c0_10 = arith.constant 0 : index
    %6 = vector.load %arg0[%c0_8, %c0_9, %c1, %c0_10] : memref<2x18x18x36xf32, #tpu.memory_space<vmem>>, vector<2x16x16x36xf32>
    %c0_11 = arith.constant 0 : index
    %c1_12 = arith.constant 1 : index
    %c0_13 = arith.constant 0 : index
    %c0_14 = arith.constant 0 : index
    %7 = vector.load %arg2[%c0_11, %c1_12, %c0_13, %c0_14] : memref<3x3x36x128xf32, #tpu.memory_space<vmem>>, vector<1x1x36x128xf32>
    %8 = vector.shape_cast %7 : vector<1x1x36x128xf32> to vector<36x128xf32>
    "tpu.trace_start"() <{level = 10 : i32, message = "bhwc,co->bhwo"}> : () -> ()
    %cst_15 = arith.constant dense<0.000000e+00> : vector<2x16x16x128xf32>
    %9 = tpu.matmul %6, %8, %cst_15 {dimension_numbers = #tpu.dot_dimension_numbers<[3], [0], [0, 1, 2], [1], [0, 0, 0, 1, 0, 2, 1, 1], [], []>} : vector<2x16x16x36xf32>, vector<36x128xf32>, vector<2x16x16x128xf32> -> vector<2x16x16x128xf32>
    "tpu.trace_stop"() : () -> ()
    %10 = arith.addf %5, %9 : vector<2x16x16x128xf32>
    %c0_16 = arith.constant 0 : index
    %c0_17 = arith.constant 0 : index
    %c2 = arith.constant 2 : index
    %c0_18 = arith.constant 0 : index
    %11 = vector.load %arg0[%c0_16, %c0_17, %c2, %c0_18] : memref<2x18x18x36xf32, #tpu.memory_space<vmem>>, vector<2x16x16x36xf32>
    %c0_19 = arith.constant 0 : index
    %c2_20 = arith.constant 2 : index
    %c0_21 = arith.constant 0 : index
    %c0_22 = arith.constant 0 : index
    %12 = vector.load %arg2[%c0_19, %c2_20, %c0_21, %c0_22] : memref<3x3x36x128xf32, #tpu.memory_space<vmem>>, vector<1x1x36x128xf32>
    %13 = vector.shape_cast %12 : vector<1x1x36x128xf32> to vector<36x128xf32>
    "tpu.trace_start"() <{level = 10 : i32, message = "bhwc,co->bhwo"}> : () -> ()
    %cst_23 = arith.constant dense<0.000000e+00> : vector<2x16x16x128xf32>
    %14 = tpu.matmul %11, %13, %cst_23 {dimension_numbers = #tpu.dot_dimension_numbers<[3], [0], [0, 1, 2], [1], [0, 0, 0, 1, 0, 2, 1, 1], [], []>} : vector<2x16x16x36xf32>, vector<36x128xf32>, vector<2x16x16x128xf32> -> vector<2x16x16x128xf32>
    "tpu.trace_stop"() : () -> ()
    %15 = arith.addf %10, %14 : vector<2x16x16x128xf32>
    %c0_24 = arith.constant 0 : index
    %c1_25 = arith.constant 1 : index
    %c0_26 = arith.constant 0 : index
    %c0_27 = arith.constant 0 : index
    %16 = vector.load %arg0[%c0_24, %c1_25, %c0_26, %c0_27] : memref<2x18x18x36xf32, #tpu.memory_space<vmem>>, vector<2x16x16x36xf32>
    %c1_28 = arith.constant 1 : index
    %c0_29 = arith.constant 0 : index
    %c0_30 = arith.constant 0 : index
    %c0_31 = arith.constant 0 : index
    %17 = vector.load %arg2[%c1_28, %c0_29, %c0_30, %c0_31] : memref<3x3x36x128xf32, #tpu.memory_space<vmem>>, vector<1x1x36x128xf32>
    %18 = vector.shape_cast %17 : vector<1x1x36x128xf32> to vector<36x128xf32>
    "tpu.trace_start"() <{level = 10 : i32, message = "bhwc,co->bhwo"}> : () -> ()
    %cst_32 = arith.constant dense<0.000000e+00> : vector<2x16x16x128xf32>
    %19 = tpu.matmul %16, %18, %cst_32 {dimension_numbers = #tpu.dot_dimension_numbers<[3], [0], [0, 1, 2], [1], [0, 0, 0, 1, 0, 2, 1, 1], [], []>} : vector<2x16x16x36xf32>, vector<36x128xf32>, vector<2x16x16x128xf32> -> vector<2x16x16x128xf32>
    "tpu.trace_stop"() : () -> ()
    %20 = arith.addf %15, %19 : vector<2x16x16x128xf32>
    %c0_33 = arith.constant 0 : index
    %c1_34 = arith.constant 1 : index
    %c1_35 = arith.constant 1 : index
    %c0_36 = arith.constant 0 : index
    %21 = vector.load %arg0[%c0_33, %c1_34, %c1_35, %c0_36] : memref<2x18x18x36xf32, #tpu.memory_space<vmem>>, vector<2x16x16x36xf32>
    %c1_37 = arith.constant 1 : index
    %c1_38 = arith.constant 1 : index
    %c0_39 = arith.constant 0 : index
    %c0_40 = arith.constant 0 : index
    %22 = vector.load %arg2[%c1_37, %c1_38, %c0_39, %c0_40] : memref<3x3x36x128xf32, #tpu.memory_space<vmem>>, vector<1x1x36x128xf32>
    %23 = vector.shape_cast %22 : vector<1x1x36x128xf32> to vector<36x128xf32>
    "tpu.trace_start"() <{level = 10 : i32, message = "bhwc,co->bhwo"}> : () -> ()
    %cst_41 = arith.constant dense<0.000000e+00> : vector<2x16x16x128xf32>
    %24 = tpu.matmul %21, %23, %cst_41 {dimension_numbers = #tpu.dot_dimension_numbers<[3], [0], [0, 1, 2], [1], [0, 0, 0, 1, 0, 2, 1, 1], [], []>} : vector<2x16x16x36xf32>, vector<36x128xf32>, vector<2x16x16x128xf32> -> vector<2x16x16x128xf32>
    "tpu.trace_stop"() : () -> ()
    %25 = arith.addf %20, %24 : vector<2x16x16x128xf32>
    %c0_42 = arith.constant 0 : index
    %c1_43 = arith.constant 1 : index
    %c2_44 = arith.constant 2 : index
    %c0_45 = arith.constant 0 : index
    %26 = vector.load %arg0[%c0_42, %c1_43, %c2_44, %c0_45] : memref<2x18x18x36xf32, #tpu.memory_space<vmem>>, vector<2x16x16x36xf32>
    %c1_46 = arith.constant 1 : index
    %c2_47 = arith.constant 2 : index
    %c0_48 = arith.constant 0 : index
    %c0_49 = arith.constant 0 : index
    %27 = vector.load %arg2[%c1_46, %c2_47, %c0_48, %c0_49] : memref<3x3x36x128xf32, #tpu.memory_space<vmem>>, vector<1x1x36x128xf32>
    %28 = vector.shape_cast %27 : vector<1x1x36x128xf32> to vector<36x128xf32>
    "tpu.trace_start"() <{level = 10 : i32, message = "bhwc,co->bhwo"}> : () -> ()
    %cst_50 = arith.constant dense<0.000000e+00> : vector<2x16x16x128xf32>
    %29 = tpu.matmul %26, %28, %cst_50 {dimension_numbers = #tpu.dot_dimension_numbers<[3], [0], [0, 1, 2], [1], [0, 0, 0, 1, 0, 2, 1, 1], [], []>} : vector<2x16x16x36xf32>, vector<36x128xf32>, vector<2x16x16x128xf32> -> vector<2x16x16x128xf32>
    "tpu.trace_stop"() : () -> ()
    %30 = arith.addf %25, %29 : vector<2x16x16x128xf32>
    %c0_51 = arith.constant 0 : index
    %c2_52 = arith.constant 2 : index
    %c0_53 = arith.constant 0 : index
    %c0_54 = arith.constant 0 : index
    %31 = vector.load %arg0[%c0_51, %c2_52, %c0_53, %c0_54] : memref<2x18x18x36xf32, #tpu.memory_space<vmem>>, vector<2x16x16x36xf32>
    %c2_55 = arith.constant 2 : index
    %c0_56 = arith.constant 0 : index
    %c0_57 = arith.constant 0 : index
    %c0_58 = arith.constant 0 : index
    %32 = vector.load %arg2[%c2_55, %c0_56, %c0_57, %c0_58] : memref<3x3x36x128xf32, #tpu.memory_space<vmem>>, vector<1x1x36x128xf32>
    %33 = vector.shape_cast %32 : vector<1x1x36x128xf32> to vector<36x128xf32>
    "tpu.trace_start"() <{level = 10 : i32, message = "bhwc,co->bhwo"}> : () -> ()
    %cst_59 = arith.constant dense<0.000000e+00> : vector<2x16x16x128xf32>
    %34 = tpu.matmul %31, %33, %cst_59 {dimension_numbers = #tpu.dot_dimension_numbers<[3], [0], [0, 1, 2], [1], [0, 0, 0, 1, 0, 2, 1, 1], [], []>} : vector<2x16x16x36xf32>, vector<36x128xf32>, vector<2x16x16x128xf32> -> vector<2x16x16x128xf32>
    "tpu.trace_stop"() : () -> ()
    %35 = arith.addf %30, %34 : vector<2x16x16x128xf32>
    %c0_60 = arith.constant 0 : index
    %c2_61 = arith.constant 2 : index
    %c1_62 = arith.constant 1 : index
    %c0_63 = arith.constant 0 : index
    %36 = vector.load %arg0[%c0_60, %c2_61, %c1_62, %c0_63] : memref<2x18x18x36xf32, #tpu.memory_space<vmem>>, vector<2x16x16x36xf32>
    %c2_64 = arith.constant 2 : index
    %c1_65 = arith.constant 1 : index
    %c0_66 = arith.constant 0 : index
    %c0_67 = arith.constant 0 : index
    %37 = vector.load %arg2[%c2_64, %c1_65, %c0_66, %c0_67] : memref<3x3x36x128xf32, #tpu.memory_space<vmem>>, vector<1x1x36x128xf32>
    %38 = vector.shape_cast %37 : vector<1x1x36x128xf32> to vector<36x128xf32>
    "tpu.trace_start"() <{level = 10 : i32, message = "bhwc,co->bhwo"}> : () -> ()
    %cst_68 = arith.constant dense<0.000000e+00> : vector<2x16x16x128xf32>
    %39 = tpu.matmul %36, %38, %cst_68 {dimension_numbers = #tpu.dot_dimension_numbers<[3], [0], [0, 1, 2], [1], [0, 0, 0, 1, 0, 2, 1, 1], [], []>} : vector<2x16x16x36xf32>, vector<36x128xf32>, vector<2x16x16x128xf32> -> vector<2x16x16x128xf32>
    "tpu.trace_stop"() : () -> ()
    %40 = arith.addf %35, %39 : vector<2x16x16x128xf32>
    %c0_69 = arith.constant 0 : index
    %c2_70 = arith.constant 2 : index
    %c2_71 = arith.constant 2 : index
    %c0_72 = arith.constant 0 : index
    %41 = vector.load %arg0[%c0_69, %c2_70, %c2_71, %c0_72] : memref<2x18x18x36xf32, #tpu.memory_space<vmem>>, vector<2x16x16x36xf32>
    %c2_73 = arith.constant 2 : index
    %c2_74 = arith.constant 2 : index
    %c0_75 = arith.constant 0 : index
    %c0_76 = arith.constant 0 : index
    %42 = vector.load %arg2[%c2_73, %c2_74, %c0_75, %c0_76] : memref<3x3x36x128xf32, #tpu.memory_space<vmem>>, vector<1x1x36x128xf32>
    %43 = vector.shape_cast %42 : vector<1x1x36x128xf32> to vector<36x128xf32>
    "tpu.trace_start"() <{level = 10 : i32, message = "bhwc,co->bhwo"}> : () -> ()
    %cst_77 = arith.constant dense<0.000000e+00> : vector<2x16x16x128xf32>
    %44 = tpu.matmul %41, %43, %cst_77 {dimension_numbers = #tpu.dot_dimension_numbers<[3], [0], [0, 1, 2], [1], [0, 0, 0, 1, 0, 2, 1, 1], [], []>} : vector<2x16x16x36xf32>, vector<36x128xf32>, vector<2x16x16x128xf32> -> vector<2x16x16x128xf32>
    "tpu.trace_stop"() : () -> ()
    %45 = arith.addf %40, %44 : vector<2x16x16x128xf32>
    %cst_78 = arith.constant dense<0.000000e+00> : vector<128xf32>
    %46 = vector.multi_reduction <add>, %45, %cst_78 [0, 1, 2] : vector<2x16x16x128xf32> to vector<128xf32>
    %47 = vector.shape_cast %46 : vector<128xf32> to vector<1x1x1x128xf32>
    %48 = arith.mulf %45, %45 : vector<2x16x16x128xf32>
    %cst_79 = arith.constant dense<0.000000e+00> : vector<128xf32>
    %49 = vector.multi_reduction <add>, %48, %cst_79 [0, 1, 2] : vector<2x16x16x128xf32> to vector<128xf32>
    %50 = vector.shape_cast %49 : vector<128xf32> to vector<1x1x1x128xf32>
    %cst_80 = arith.constant 0.001953125 : f32
    %51 = vector.broadcast %cst_80 : f32 to vector<1x1x1x128xf32>
    %52 = arith.mulf %47, %51 : vector<1x1x1x128xf32>
    %cst_81 = arith.constant 0.001953125 : f32
    %53 = vector.broadcast %cst_81 : f32 to vector<1x1x1x128xf32>
    %54 = arith.mulf %50, %53 : vector<1x1x1x128xf32>
    %55 = arith.mulf %52, %52 : vector<1x1x1x128xf32>
    %56 = arith.subf %54, %55 : vector<1x1x1x128xf32>
    %c0_82 = arith.constant 0 : index
    %c0_83 = arith.constant 0 : index
    %57 = vector.load %arg3[%c0_82, %c0_83] : memref<1x128xf32, #tpu.memory_space<vmem>>, vector<1x128xf32>
    %cst_84 = arith.constant 9.99999974E-6 : f32
    %58 = vector.broadcast %cst_84 : f32 to vector<1x1x1x128xf32>
    %59 = arith.addf %56, %58 : vector<1x1x1x128xf32>
    %60 = math.rsqrt %59 : vector<1x1x1x128xf32>
    %61 = vector.shape_cast %57 : vector<1x128xf32> to vector<1x1x1x128xf32>
    %62 = arith.mulf %61, %60 : vector<1x1x1x128xf32>
    %c0_85 = arith.constant 0 : index
    %c0_86 = arith.constant 0 : index
    %63 = vector.load %arg4[%c0_85, %c0_86] : memref<1x128xf32, #tpu.memory_space<vmem>>, vector<1x128xf32>
    %64 = arith.mulf %52, %62 : vector<1x1x1x128xf32>
    %65 = vector.shape_cast %63 : vector<1x128xf32> to vector<1x1x1x128xf32>
    %66 = arith.subf %65, %64 : vector<1x1x1x128xf32>
    %67 = vector.broadcast %62 : vector<1x1x1x128xf32> to vector<2x16x16x128xf32>
    %68 = arith.mulf %45, %67 : vector<2x16x16x128xf32>
    %69 = vector.broadcast %66 : vector<1x1x1x128xf32> to vector<2x16x16x128xf32>
    %70 = arith.addf %68, %69 : vector<2x16x16x128xf32>
    %71 = vector.extract_strided_slice %70 {offsets = [0, 0, 0, 0], sizes = [2, 16, 16, 32], strides = [1, 1, 1, 1]} : vector<2x16x16x128xf32> to vector<2x16x16x32xf32>
    %72 = arith.negf %71 : vector<2x16x16x32xf32>
    %73 = math.exp %72 : vector<2x16x16x32xf32>
    %cst_87 = arith.constant 1.000000e+00 : f32
    %74 = vector.broadcast %cst_87 : f32 to vector<2x16x16x32xf32>
    %75 = arith.addf %74, %73 : vector<2x16x16x32xf32>
    %76 = arith.divf %74, %75 : vector<2x16x16x32xf32>
    %77 = vector.extract_strided_slice %70 {offsets = [0, 0, 0, 32], sizes = [2, 16, 16, 32], strides = [1, 1, 1, 1]} : vector<2x16x16x128xf32> to vector<2x16x16x32xf32>
    %78 = arith.negf %77 : vector<2x16x16x32xf32>
    %79 = math.exp %78 : vector<2x16x16x32xf32>
    %cst_88 = arith.constant 1.000000e+00 : f32
    %80 = vector.broadcast %cst_88 : f32 to vector<2x16x16x32xf32>
    %81 = arith.addf %80, %79 : vector<2x16x16x32xf32>
    %82 = arith.divf %80, %81 : vector<2x16x16x32xf32>
    %83 = vector.extract_strided_slice %70 {offsets = [0, 0, 0, 64], sizes = [2, 16, 16, 32], strides = [1, 1, 1, 1]} : vector<2x16x16x128xf32> to vector<2x16x16x32xf32>
    %84 = math.tanh %83 : vector<2x16x16x32xf32>
    %85 = vector.extract_strided_slice %70 {offsets = [0, 0, 0, 96], sizes = [2, 16, 16, 32], strides = [1, 1, 1, 1]} : vector<2x16x16x128xf32> to vector<2x16x16x32xf32>
    %86 = arith.negf %85 : vector<2x16x16x32xf32>
    %87 = math.exp %86 : vector<2x16x16x32xf32>
    %cst_89 = arith.constant 1.000000e+00 : f32
    %88 = vector.broadcast %cst_89 : f32 to vector<2x16x16x32xf32>
    %89 = arith.addf %88, %87 : vector<2x16x16x32xf32>
    %90 = arith.divf %88, %89 : vector<2x16x16x32xf32>
    %c0_90 = arith.constant 0 : index
    %c0_91 = arith.constant 0 : index
    %c0_92 = arith.constant 0 : index
    %c0_93 = arith.constant 0 : index
    %91 = vector.load %arg1[%c0_90, %c0_91, %c0_92, %c0_93] : memref<2x16x16x32xf32, #tpu.memory_space<vmem>>, vector<2x16x16x32xf32>
    %92 = arith.mulf %82, %91 : vector<2x16x16x32xf32>
    %93 = arith.mulf %76, %84 : vector<2x16x16x32xf32>
    %94 = arith.addf %92, %93 : vector<2x16x16x32xf32>
    %95 = math.tanh %94 : vector<2x16x16x32xf32>
    %96 = arith.mulf %90, %95 : vector<2x16x16x32xf32>
    %c0_94 = arith.constant 0 : index
    %c0_95 = arith.constant 0 : index
    %c0_96 = arith.constant 0 : index
    %c0_97 = arith.constant 0 : index
    %97 = vector.load %arg6[%c0_94, %c0_95, %c0_96, %c0_97] : memref<2x16x16x32xf32, #tpu.memory_space<vmem>>, vector<2x16x16x32xf32>
    tpu.vector_store %arg6[%c0_94, %c0_95, %c0_96, %c0_97], %94 {strides = array<i32>} : memref<2x16x16x32xf32, #tpu.memory_space<vmem>>, vector<2x16x16x32xf32>,
    %c0_98 = arith.constant 0 : index
    %c0_99 = arith.constant 0 : index
    %c0_100 = arith.constant 0 : index
    %c0_101 = arith.constant 0 : index
    %98 = vector.load %arg5[%c0_98, %c0_99, %c0_100, %c0_101] : memref<2x16x16x32xf32, #tpu.memory_space<vmem>>, vector<2x16x16x32xf32>
    tpu.vector_store %arg5[%c0_98, %c0_99, %c0_100, %c0_101], %96 {strides = array<i32>} : memref<2x16x16x32xf32, #tpu.memory_space<vmem>>, vector<2x16x16x32xf32>,
    return
  }
}

</mosaic_0001>

<bundles_post_ra>
// kernel: conv_lstm_cell.1
= control target key start
LH: loop header
LB: loop body
LE: loop exit
PB: predicated region body
PF: predicated region fallthrough
CT: control target
= control target key end

     0   :  { %12 = vsyncpa [#allocation3], 0  ;;  %vm356_vm0 = vcmask 1043456   ;;  %vm163_vm1 = vcmask 293888   ;;  %s18270_s0 = inlined_call_operand.vmem [shape: f32[2,18,18,36], index: 0, kind: input, shape index: {}]   ;;  %s18271_s1 = inlined_call_operand.vmem [shape: f32[2,16,16,32], index: 1, kind: input, shape index: {}]   ;;  %s18272_s2 = inlined_call_operand.vmem [shape: f32[3,3,36,128], index: 2, kind: input, shape index: {}]   ;;  %s18273_s3 = inlined_call_operand.vmem [shape: f32[1,128], index: 3, kind: input, shape index: {}]   ;;  %s18274_s4 = inlined_call_operand.vmem [shape: f32[1,128], index: 4, kind: input, shape index: {}]   ;;  %s18275_s5 = inlined_call_operand.hbm [shape: f32[2,16,16,32], index: 5, kind: output, shape index: {0}]   ;;  %s18276_s6 = inlined_call_operand.hbm [shape: f32[2,16,16,32], index: 6, kind: output, shape index: {1}]  }
   0x1   :  { %v9211_v0 = vld [vmem:[%s18272_s2 + $0x48] sm:$0xf]  ;;  %v9210_v1 = vld [vmem:[%s18272_s2 + $0x40] sm:$0xff]  ;;  %v9209_v2 = vld [vmem:[%s18272_s2 + $0x38] sm:$0xff] }
   0x2   :  { %11855 = vmatprep.subr.msk.mxu1 %vm356_vm0, %v9211_v0  ;;  %10901 = vmatprep.subr.msk.mxu0 %vm356_vm0, %v9211_v0  ;;  %v9208_v3 = vld [vmem:[%s18272_s2 + $0x30] sm:$0xff]  ;;  %v9207_v4 = vld [vmem:[%s18272_s2 + $0x28] sm:$0xff]  ;;  %v126_v7 = vld [vmem:[%s18270_s0 + $0x1b9] sm:$0xff] }
   0x3   :  { %11860 = vmatpush3.msk.msra.mxu1 %vm356_vm0, %v9211_v0  ;;  %10902 = vmatpush3.msk.msra.mxu0 %vm356_vm0, %v9211_v0  ;;  %v125_v5 = vld [vmem:[%s18270_s0 + $0x1b1] sm:$0xff]  ;;  %v93_v6 = vld [vmem:[%s18270_s0 + $0x1] sm:$0xff]  ;;  %v94_v9 = vld [vmem:[%s18270_s0 + $0x9] sm:$0xff] }
   0x4   :  { %11856 = vmatprep.subr.mxu1 %v9210_v1  ;;  %10903 = vmatprep.subr.mxu0 %v9210_v1  ;;  %v92_v8 = vld [vmem:[%s18272_s2 + $0x20] sm:$0xf]  ;;  %v9346_v10 = vld [vmem:[%s18272_s2 + $0x70] sm:$0xf]  ;;  %v91_v14 = vld [vmem:[%s18272_s2 + $0x18] sm:$0xff] }
   0x5   :  { %11861 = vmatpush3.msra.mxu1 %v9210_v1  ;;  %10904 = vmatpush3.msra.mxu0 %v9210_v1  ;;  %v127_v11 = vld [vmem:[%s18270_s0 + $0x1c9] sm:$0xff]  ;;  %v12543_v12 = vld [vmem:[%s18270_s0 + $0x19] sm:$0xff]  ;;  %v128_v13 = vld [vmem:[%s18270_s0 + $0x1d1] sm:$0xff] }
   0x6   :  { %11857 = vmatprep.subr.mxu1 %v9209_v2  ;;  %10905 = vmatprep.subr.mxu0 %v9209_v2  ;;  %v12558_v15 = vld [vmem:[%s18270_s0 + $0x21] sm:$0xff]  ;;  %v12569_v17 = vld [vmem:[%s18270_s0 + $0x31] sm:$0xff]  ;;  %v130_v20 = vld [vmem:[%s18270_s0 + $0x1e9] sm:$0xff] }
   0x7   :  { %11862 = vmatpush3.msra.mxu1 %v9209_v2  ;;  %10906 = vmatpush3.msra.mxu0 %v9209_v2  ;;  %v129_v16 = vld [vmem:[%s18270_s0 + $0x1e1] sm:$0xff]  ;;  %v90_v19 = vld [vmem:[%s18272_s2 + $0x10] sm:$0xff]  ;;  %v12589_v21 = vld [vmem:[%s18270_s0 + $0x39] sm:$0xff] }
   0x8   :  { %11858 = vmatprep.subr.mxu1 %v9208_v3  ;;  %10907 = vmatprep.subr.mxu0 %v9208_v3  ;;  %v9345_v18 = vld [vmem:[%s18272_s2 + $0x68] sm:$0xff]  ;;  %v131_v22 = vld [vmem:[%s18270_s0 + $0x1f9] sm:$0xff]  ;;  %v12617_v27 = vld [vmem:[%s18270_s0 + $0x51] sm:$0xff] }
   0x9   :  { %11863 = vmatpush3.msra.mxu1 %v9208_v3  ;;  %10908 = vmatpush3.msra.mxu0 %v9208_v3  ;;  %v12597_v23 = vld [vmem:[%s18270_s0 + $0x49] sm:$0xff]  ;;  %v9344_v24 = vld [vmem:[%s18272_s2 + $0x60] sm:$0xff]  ;;  %v133_v28 = vld [vmem:[%s18270_s0 + $0x211] sm:$0xff] }
   0xa   :  { %11859 = vmatprep.subr.mxu1 %v9207_v4  ;;  %10909 = vmatprep.subr.mxu0 %v9207_v4  ;;  %v89_v25 = vld [vmem:[%s18272_s2 + $0x8] sm:$0xff]  ;;  %v9343_v30 = vld [vmem:[%s18272_s2 + $0x58] sm:$0xff]  ;;  %v88_v31 = vld [vmem:[%s18272_s2] sm:$0xff] }
   0xb   :  { %11864 = vmatpush3.msra.mxu1 %v9207_v4  ;;  %10959 = vmatprep.mubr.msk.f32.mxu1 %vm163_vm1, %v125_v5  ;;  %v132_v26 = vld [vmem:[%s18270_s0 + $0x201] sm:$0xff]  ;;  %v134_v32 = vld [vmem:[%s18270_s0 + $0x219] sm:$0xff]  ;;  %v12645_v33 = vld [vmem:[%s18270_s0 + $0x69] sm:$0xff] }
   0xc   :  { %10910 = vmatpush3.msra.mxu0 %v9207_v4  ;;  %10911 = vmatprep.mubr.msk.f32.mxu0 %vm163_vm1, %v93_v6  ;;  %v12625_v29 = vld [vmem:[%s18270_s0 + $0x61] sm:$0xff]  ;;  %v135_v34 = vld [vmem:[%s18270_s0 + $0x229] sm:$0xff]  ;;  %v12653_v35 = vld [vmem:[%s18270_s0 + $0x79] sm:$0xff] }
   0xd   :  { %10960 = vmatmul.mubr.msk.f32.vlgmr.msra.gmra.mxu1 %vm163_vm1, %v126_v7  ;;  %11007 = vmatprep.subr.msk.mxu1 %vm356_vm0, %v92_v8  ;;  %v9342_v36 = vld [vmem:[%s18272_s2 + $0x50] sm:$0xff]  ;;  %v12662_v37 = vld [vmem:[%s18272_s2 + $0x98] sm:$0xf]  ;;  %v12675_v39 = vld [vmem:[%s18270_s0 + $0x81] sm:$0xff] }
   0xe   :  { %10912 = vmatmul.mubr.msk.f32.vlgmr.msra.gmra.mxu0 %vm163_vm1, %v94_v9  ;;  %11008 = vmatpush3.msk.msra.mxu1 %vm356_vm0, %v92_v8  ;;  %v136_v38 = vld [vmem:[%s18270_s0 + $0x231] sm:$0xff]  ;;  %v137_v40 = vld [vmem:[%s18270_s0 + $0x241] sm:$0xff]  ;;  %v138_v43 = vld [vmem:[%s18270_s0 + $0x249] sm:$0xff] }
   0xf   :  { %11113 = vmatprep.subr.msk.mxu0 %vm356_vm0, %v9346_v10  ;;  %10962 = vmatprep.mubr.msk.f32.mxu1 %vm163_vm1, %v127_v11  ;;  %v12683_v41 = vld [vmem:[%s18270_s0 + $0x91] sm:$0xff]  ;;  %v12690_v42 = vld [vmem:[%s18272_s2 + $0xc0] sm:$0xf]  ;;  %v12714_v46 = vld [vmem:[%s18270_s0 + $0xa9] sm:$0xff] }
  0x10   :  { %11114 = vmatpush3.msk.msra.mxu0 %vm356_vm0, %v9346_v10  ;;  %10914 = vmatprep.mubr.msk.f32.mxu0 %vm163_vm1, %v12543_v12  ;;  %v12704_v44 = vld [vmem:[%s18270_s0 + $0x99] sm:$0xff]  ;;  %v140_v47 = vld [vmem:[%s18270_s0 + $0x261] sm:$0xff]  ;;  %v12728_v48 = vld [vmem:[%s18270_s0 + $0xb1] sm:$0xff] }
  0x11   :  { %10963 = vmatmul.mubr.msk.f32.gmra.mxu1 %vm163_vm1, %v128_v13  ;;  %11009 = vmatprep.subr.mxu1 %v91_v14  ;;  %v139_v45 = vld [vmem:[%s18270_s0 + $0x259] sm:$0xff]  ;;  %v141_v49 = vld [vmem:[%s18270_s0 + $0x271] sm:$0xff]  ;;  %v12736_v50 = vld [vmem:[%s18270_s0 + $0xc1] sm:$0xff] }
  0x12   :  { %10915 = vmatmul.mubr.msk.f32.gmra.mxu0 %vm163_vm1, %v12558_v15  ;;  %10965 = vmatprep.mubr.msk.f32.mxu1 %vm163_vm1, %v129_v16  ;;  %v142_v51 = vld [vmem:[%s18270_s0 + $0x279] sm:$0xff]  ;;  %v12750_v52 = vld [vmem:[%s18270_s0 + $0xc9] sm:$0xff]  ;;  %v144_v55 = vld [vmem:[%s18270_s0 + $0x291] sm:$0xff] }
  0x13   :  { %10917 = vmatprep.mubr.msk.f32.mxu0 %vm163_vm1, %v12569_v17  ;;  %11010 = vmatpush3.msra.mxu1 %v91_v14  ;;  %v143_v53 = vld [vmem:[%s18270_s0 + $0x289] sm:$0xff]  ;;  %v12758_v54 = vld [vmem:[%s18270_s0 + $0xd9] sm:$0xff]  ;;  %v12772_v56 = vld [vmem:[%s18270_s0 + $0xe1] sm:$0xff] }
  0x14   :  { %11115 = vmatprep.subr.mxu0 %v9345_v18  ;;  %11011 = vmatprep.subr.mxu1 %v90_v19  ;;  %v145_v57 = vld [vmem:[%s18270_s0 + $0x2a1] sm:$0xff]  ;;  %v12780_v58 = vld [vmem:[%s18270_s0 + $0xf1] sm:$0xff]  ;;  %v146_v59 = vld [vmem:[%s18270_s0 + $0x2a9] sm:$0xff] }
  0x15   :  { %10966 = vmatmul.mubr.msk.f32.gmra.mxu1 %vm163_vm1, %v130_v20  ;;  %11116 = vmatpush3.msra.mxu0 %v9345_v18  ;;  %v12794_v60 = vld [vmem:[%s18270_s0 + $0xf9] sm:$0xff]  ;;  %v12802_v62 = vld [vmem:[%s18270_s0 + $0x109] sm:$0xff]  ;;  %v148_v63 = vld [vmem:[%s18270_s0 + $0x2c1] sm:$0xff] }
  0x16   :  { %10918 = vmatmul.mubr.msk.f32.gmra.mxu0 %vm163_vm1, %v12589_v21  ;;  %10968 = vmatprep.mubr.msk.f32.mxu1 %vm163_vm1, %v131_v22  ;;  %v147_v61 = vld [vmem:[%s18270_s0 + $0x2b9] sm:$0xff]  ;;  %v12816_v0 = vld [vmem:[%s18270_s0 + $0x111] sm:$0xff]  ;;  %v12824_v2 = vld [vmem:[%s18270_s0 + $0x121] sm:$0xff] }
  0x17   :  { %10920 = vmatprep.mubr.msk.f32.mxu0 %vm163_vm1, %v12597_v23  ;;  %11012 = vmatpush3.msra.mxu1 %v90_v19  ;;  %v149_v1 = vld [vmem:[%s18270_s0 + $0x2d1] sm:$0xff]  ;;  %v150_v3 = vld [vmem:[%s18270_s0 + $0x2d9] sm:$0xff]  ;;  %v12838_v4 = vld [vmem:[%s18270_s0 + $0x129] sm:$0xff] }
  0x18   :  { %11117 = vmatprep.subr.mxu0 %v9344_v24  ;;  %11013 = vmatprep.subr.mxu1 %v89_v25  ;;  %v151_v5 = vld [vmem:[%s18270_s0 + $0x2e9] sm:$0xff]  ;;  %v12846_v6 = vld [vmem:[%s18270_s0 + $0x139] sm:$0xff]  ;;  %v152_v7 = vld [vmem:[%s18270_s0 + $0x2f1] sm:$0xff] }
  0x19   :  { %10969 = vmatmul.mubr.msk.f32.gmra.mxu1 %vm163_vm1, %v132_v26  ;;  %11118 = vmatpush3.msra.mxu0 %v9344_v24  ;;  %v12860_v8 = vld [vmem:[%s18270_s0 + $0x141] sm:$0xff]  ;;  %v12868_v10 = vld [vmem:[%s18270_s0 + $0x151] sm:$0xff]  ;;  %v154_v11 = vld [vmem:[%s18270_s0 + $0x309] sm:$0xff] }
  0x1a   :  { %10921 = vmatmul.mubr.msk.f32.gmra.mxu0 %vm163_vm1, %v12617_v27  ;;  %10971 = vmatprep.mubr.msk.f32.mxu1 %vm163_vm1, %v133_v28  ;;  %v153_v9 = vld [vmem:[%s18270_s0 + $0x301] sm:$0xff]  ;;  %v12882_v13 = vld [vmem:[%s18270_s0 + $0x159] sm:$0xff]  ;;  %v12890_v16 = vld [vmem:[%s18270_s0 + $0x169] sm:$0xff] }
  0x1b   :  { %10923 = vmatprep.mubr.msk.f32.mxu0 %vm163_vm1, %v12625_v29  ;;  %11014 = vmatpush3.msra.mxu1 %v89_v25  ;;  %18444 = vst [vmem:[#allocation8_spill] sm:$0xff] %v12882_v13  ;;  %v155_v14 = vld [vmem:[%s18270_s0 + $0x319] sm:$0xff]  ;;  %18445 = vst [vmem:[#allocation9_spill] sm:$0xff] %v12890_v16  ;;  %v156_v18 = vld [vmem:[%s18270_s0 + $0x321] sm:$0xff] }
  0x1c   :  { %11119 = vmatprep.subr.mxu0 %v9343_v30  ;;  %11015 = vmatprep.subr.mxu1 %v88_v31  ;;  %v12904_v19 = vld [vmem:[%s18270_s0 + $0x171] sm:$0xff]  ;;  %v24_v20 = vld [vmem:[%s18270_s0] sm:$0xff] }
  0x1d   :  { %10972 = vmatmul.mubr.msk.f32.gmra.mxu1 %vm163_vm1, %v134_v32  ;;  %11120 = vmatpush3.msra.mxu0 %v9343_v30  ;;  %18446 = vst [vmem:[#allocation10_spill] sm:$0xff] %v12904_v19  ;;  %v1325_v22 = vld [vmem:[%s18270_s0 + $0x2] sm:$0xff] }
  0x1e   :  { %10924 = vmatmul.mubr.msk.f32.gmra.mxu0 %vm163_vm1, %v12645_v33  ;;  %10974 = vmatprep.mubr.msk.f32.mxu1 %vm163_vm1, %v135_v34 }
  0x1f   :  { %10926 = vmatprep.mubr.msk.f32.mxu0 %vm163_vm1, %v12653_v35  ;;  %11016 = vmatpush3.msra.mxu1 %v88_v31 }
  0x20   :  { %11121 = vmatprep.subr.mxu0 %v9342_v36  ;;  %11219 = vmatprep.subr.msk.mxu1 %vm356_vm0, %v12662_v37 }
  0x21   :  { %10975 = vmatmul.mubr.msk.f32.gmra.mxu1 %vm163_vm1, %v136_v38  ;;  %11122 = vmatpush3.msra.mxu0 %v9342_v36 }
  0x22   :  { %10927 = vmatmul.mubr.msk.f32.gmra.mxu0 %vm163_vm1, %v12675_v39  ;;  %10977 = vmatprep.mubr.msk.f32.mxu1 %vm163_vm1, %v137_v40 }
  0x23   :  { %10929 = vmatprep.mubr.msk.f32.mxu0 %vm163_vm1, %v12683_v41  ;;  %11325 = vmatprep.subr.msk.mxu0 %vm356_vm0, %v12690_v42 }
  0x25   :  { %10978 = vmatmul.mubr.msk.f32.gmra.mxu1 %vm163_vm1, %v138_v43 }
  0x26   :  { %10930 = vmatmul.mubr.msk.f32.gmra.mxu0 %vm163_vm1, %v12704_v44  ;;  %10980 = vmatprep.mubr.msk.f32.mxu1 %vm163_vm1, %v139_v45 }
  0x27   :  { %10932 = vmatprep.mubr.msk.f32.mxu0 %vm163_vm1, %v12714_v46 }
  0x29   :  { %10981 = vmatmul.mubr.msk.f32.gmra.mxu1 %vm163_vm1, %v140_v47 }
  0x2a   :  { %10933 = vmatmul.mubr.msk.f32.gmra.mxu0 %vm163_vm1, %v12728_v48  ;;  %10983 = vmatprep.mubr.msk.f32.mxu1 %vm163_vm1, %v141_v49 }
  0x2b   :  { %10935 = vmatprep.mubr.msk.f32.mxu0 %vm163_vm1, %v12736_v50 }
  0x2d   :  { %10984 = vmatmul.mubr.msk.f32.gmra.mxu1 %vm163_vm1, %v142_v51 }
  0x2e   :  { %10936 = vmatmul.mubr.msk.f32.gmra.mxu0 %vm163_vm1, %v12750_v52  ;;  %10986 = vmatprep.mubr.msk.f32.mxu1 %vm163_vm1, %v143_v53 }
  0x2f   :  { %10938 = vmatprep.mubr.msk.f32.mxu0 %vm163_vm1, %v12758_v54 }
  0x31   :  { %10987 = vmatmul.mubr.msk.f32.gmra.mxu1 %vm163_vm1, %v144_v55 }
  0x32   :  { %10939 = vmatmul.mubr.msk.f32.gmra.mxu0 %vm163_vm1, %v12772_v56  ;;  %10989 = vmatprep.mubr.msk.f32.mxu1 %vm163_vm1, %v145_v57 }
  0x33   :  { %10941 = vmatprep.mubr.msk.f32.mxu0 %vm163_vm1, %v12780_v58 }
  0x35   :  { %10990 = vmatmul.mubr.msk.f32.gmra.mxu1 %vm163_vm1, %v146_v59 }
  0x36   :  { %10942 = vmatmul.mubr.msk.f32.gmra.mxu0 %vm163_vm1, %v12794_v60  ;;  %10992 = vmatprep.mubr.msk.f32.mxu1 %vm163_vm1, %v147_v61 }
  0x37   :  { %10944 = vmatprep.mubr.msk.f32.mxu0 %vm163_vm1, %v12802_v62 }
  0x39   :  { %10993 = vmatmul.mubr.msk.f32.gmra.mxu1 %vm163_vm1, %v148_v63 }
  0x3a   :  { %10945 = vmatmul.mubr.msk.f32.gmra.mxu0 %vm163_vm1, %v12816_v0  ;;  %10995 = vmatprep.mubr.msk.f32.mxu1 %vm163_vm1, %v149_v1 }
  0x3b   :  { %10947 = vmatprep.mubr.msk.f32.mxu0 %vm163_vm1, %v12824_v2 }
  0x3d   :  { %10996 = vmatmul.mubr.msk.f32.gmra.mxu1 %vm163_vm1, %v150_v3 }
  0x3e   :  { %10948 = vmatmul.mubr.msk.f32.gmra.mxu0 %vm163_vm1, %v12838_v4  ;;  %10998 = vmatprep.mubr.msk.f32.mxu1 %vm163_vm1, %v151_v5 }
  0x3f   :  { %10950 = vmatprep.mubr.msk.f32.mxu0 %vm163_vm1, %v12846_v6 }
  0x41   :  { %10999 = vmatmul.mubr.msk.f32.gmra.mxu1 %vm163_vm1, %v152_v7 }
  0x42   :  { %10951 = vmatmul.mubr.msk.f32.gmra.mxu0 %vm163_vm1, %v12860_v8  ;;  %11001 = vmatprep.mubr.msk.f32.mxu1 %vm163_vm1, %v153_v9 }
  0x43   :  { %10953 = vmatprep.mubr.msk.f32.mxu0 %vm163_vm1, %v12868_v10 }
  0x45   :  { %11002 = vmatmul.mubr.msk.f32.gmra.mxu1 %vm163_vm1, %v154_v11 }
  0x46   :  { %10954 = vmatmul.mubr.msk.f32.gmra.mxu0 %vm163_vm1, %v12882_v13  ;;  %11004 = vmatprep.mubr.msk.f32.mxu1 %vm163_vm1, %v155_v14 }
  0x47   :  { %10956 = vmatprep.mubr.msk.f32.mxu0 %vm163_vm1, %v12890_v16 }
  0x49   :  { %11005 = vmatmul.mubr.msk.f32.gmra.mxu1 %vm163_vm1, %v156_v18 }
  0x4a   :  { %13 = vsyncpa [#allocation5], 0  ;;  %10957 = vmatmul.mubr.msk.f32.gmra.mxu0 %vm163_vm1, %v12904_v19  ;;  %11017 = vmatprep.mubr.msk.f32.mxu1 %vm163_vm1, %v24_v20  ;;  %v25_v24 = vld [vmem:[%s18270_s0 + $0x8] sm:$0xff]  ;;  %v12926_v26 = vld [vmem:[%s18270_s0 + $0x18] sm:$0xff]  ;;  %s12454_s20 = smov 32   ;;  %vm8790_vm2 = vcmask 261120  }
  0x4b   :  { %11123 = vmatprep.mubr.msk.f32.mxu0 %vm163_vm1, %v1325_v22  ;;  %v1326_v25 = vld [vmem:[%s18270_s0 + $0xa] sm:$0xff]  ;;  %v1327_v28 = vld [vmem:[%s18270_s0 + $0x1a] sm:$0xff]  ;;  %v1328_v34 = vld [vmem:[%s18270_s0 + $0x22] sm:$0xff]  ;;  %s12457_s24 = smov [#allocation4]  }
  0x4c   :  { %v9479_v30 = vld [vmem:[%s18272_s2 + $0x90] sm:$0xff]  ;;  %v12941_v31 = vld [vmem:[%s18270_s0 + $0x20] sm:$0xff]  ;;  %v9613_v32 = vld [vmem:[%s18272_s2 + $0xb8] sm:$0xff]  ;;  %s9192_s25 = sshll.u32 %s12457_s24, 4  ;;  %s9193_s25 = int_to_ptr.vmem [resolvable:$true] %s9192_s25 }
  0x4d   :  { %11018 = vmatmul.mubr.msk.f32.vlgmr.msra.gmra.mxu1 %vm163_vm1, %v25_v24  ;;  %v12956_v36 = vld [vmem:[%s18270_s0 + $0x30] sm:$0xff]  ;;  %v9478_v38 = vld [vmem:[%s18272_s2 + $0x88] sm:$0xff]  ;;  %v12973_v40 = vld [vmem:[%s18270_s0 + $0x38] sm:$0xff]  ;;  %s12410_s26 = scalar_lea.vmem %s9193_s25, 8192  ;;  %p12415_p1 = scmp.lt.s32.totalorder %s9193_s25, %s9193_s25 }
  0x4e   :  { %11124 = vmatmul.mubr.msk.f32.vlgmr.msra.gmra.mxu0 %vm163_vm1, %v1326_v25  ;;  %11220 = vmatpush3.msk.msra.mxu1 %vm356_vm0, %v12662_v37  ;;  %v1329_v37 = vld [vmem:[%s18270_s0 + $0x32] sm:$0xff]  ;;  %v1330_v43 = vld [vmem:[%s18270_s0 + $0x3a] sm:$0xff]  ;;  %v12985_v45 = vld [vmem:[%s18270_s0 + $0x48] sm:$0xff]  ;;  %p12411_p0 = scmp.ne.s32.totalorder %s9193_s25, %s12410_s26  ;;  %p12416_p2 = scmp.lt.s32.totalorder %s12410_s26, %s12410_s26 }
  0x4f   :  { %11020 = vmatprep.mubr.msk.f32.mxu1 %vm163_vm1, %v12926_v26  ;;  %11326 = vmatpush3.msk.msra.mxu0 %vm356_vm0, %v12690_v42  ;;  %v9612_v42 = vld [vmem:[%s18272_s2 + $0xb0] sm:$0xff]  ;;  %v9477_v49 = vld [vmem:[%s18272_s2 + $0x80] sm:$0xff]  ;;  %v9611_v53 = vld [vmem:[%s18272_s2 + $0xa8] sm:$0xff] }
  0x50   :  { %11126 = vmatprep.mubr.msk.f32.mxu0 %vm163_vm1, %v1327_v28  ;;  %11221 = vmatprep.subr.mxu1 %v9479_v30  ;;  %v1331_v47 = vld [vmem:[%s18270_s0 + $0x4a] sm:$0xff]  ;;  %v1332_v55 = vld [vmem:[%s18270_s0 + $0x52] sm:$0xff]  ;;  %v13013_v57 = vld [vmem:[%s18270_s0 + $0x60] sm:$0xff]  ;;  %p12417_p3 = por %p12416_p2, %p12415_p1 }
  0x51   :  { %11021 = vmatmul.mubr.msk.f32.gmra.mxu1 %vm163_vm1, %v12941_v31  ;;  %11327 = vmatprep.subr.mxu0 %v9613_v32  ;;  %v13001_v51 = vld [vmem:[%s18270_s0 + $0x50] sm:$0xff]  ;;  %v1333_v59 = vld [vmem:[%s18270_s0 + $0x62] sm:$0xff]  ;;  %v9476_v61 = vld [vmem:[%s18272_s2 + $0x78] sm:$0xff] }
  0x52   :  { %11127 = vmatmul.mubr.msk.f32.gmra.mxu0 %vm163_vm1, %v1328_v34  ;;  %11023 = vmatprep.mubr.msk.f32.mxu1 %vm163_vm1, %v12956_v36  ;;  %v13029_v63 = vld [vmem:[%s18270_s0 + $0x68] sm:$0xff]  ;;  %v9610_v1 = vld [vmem:[%s18272_s2 + $0xa0] sm:$0xff]  ;;  %v13041_v5 = vld [vmem:[%s18270_s0 + $0x78] sm:$0xff]  ;;  %p12418_p4 = pnand %p12417_p3, %p12411_p0 }
  0x53   :  { %11129 = vmatprep.mubr.msk.f32.mxu0 %vm163_vm1, %v1329_v37  ;;  %11222 = vmatpush3.msra.mxu1 %v9479_v30  ;;  %v1334_v3 = vld [vmem:[%s18270_s0 + $0x6a] sm:$0xff]  ;;  %v1335_v7 = vld [vmem:[%s18270_s0 + $0x7a] sm:$0xff]  ;;  %v1336_v18 = vld [vmem:[%s18270_s0 + $0x82] sm:$0xff] }
  0x54   :  { %11328 = vmatpush3.msra.mxu0 %v9613_v32  ;;  %11223 = vmatprep.subr.mxu1 %v9478_v38  ;;  %v13051_v9 = vld [vmem:[%s18272_s2 + $0xe8] sm:$0xf]  ;;  %v13059_v11 = vld [vmem:[%s18270_s0 + $0x80] sm:$0xff]  ;;  %v13064_v14 = vld [vmem:[%s18272_s2 + $0x110] sm:$0xf] }
  0x55   :  { %11024 = vmatmul.mubr.msk.f32.gmra.mxu1 %vm163_vm1, %v12973_v40  ;;  %11329 = vmatprep.subr.mxu0 %v9612_v42  ;;  %v13073_v20 = vld [vmem:[%s18270_s0 + $0x90] sm:$0xff]  ;;  %v13090_v24 = vld [vmem:[%s18270_s0 + $0x98] sm:$0xff]  ;;  %v13099_v28 = vld [vmem:[%s18270_s0 + $0xa8] sm:$0xff] }
  0x56   :  { %11130 = vmatmul.mubr.msk.f32.gmra.mxu0 %vm163_vm1, %v1330_v43  ;;  %11026 = vmatprep.mubr.msk.f32.mxu1 %vm163_vm1, %v12985_v45  ;;  %v1337_v22 = vld [vmem:[%s18270_s0 + $0x92] sm:$0xff]  ;;  %v1338_v25 = vld [vmem:[%s18270_s0 + $0x9a] sm:$0xff]  ;;  %v1339_v30 = vld [vmem:[%s18270_s0 + $0xaa] sm:$0xff] }
  0x57   :  { %11132 = vmatprep.mubr.msk.f32.mxu0 %vm163_vm1, %v1331_v47  ;;  %11224 = vmatpush3.msra.mxu1 %v9478_v38  ;;  %v13112_v32 = vld [vmem:[%s18270_s0 + $0xb0] sm:$0xff]  ;;  %v13121_v37 = vld [vmem:[%s18270_s0 + $0xc0] sm:$0xff]  ;;  %v13143_v47 = vld [vmem:[%s18270_s0 + $0xd8] sm:$0xff] }
  0x58   :  { %11330 = vmatpush3.msra.mxu0 %v9612_v42  ;;  %11225 = vmatprep.subr.mxu1 %v9477_v49  ;;  %v1340_v34 = vld [vmem:[%s18270_s0 + $0xb2] sm:$0xff]  ;;  %v1341_v38 = vld [vmem:[%s18270_s0 + $0xc2] sm:$0xff]  ;;  %v1342_v43 = vld [vmem:[%s18270_s0 + $0xca] sm:$0xff] }
  0x59   :  { %11027 = vmatmul.mubr.msk.f32.gmra.mxu1 %vm163_vm1, %v13001_v51  ;;  %11331 = vmatprep.subr.mxu0 %v9611_v53  ;;  %v13134_v42 = vld [vmem:[%s18270_s0 + $0xc8] sm:$0xff]  ;;  %v1356_v19 = vld [vmem:[%s18270_s0 + $0x172] sm:$0xff] }
  0x5a   :  { %11133 = vmatmul.mubr.msk.f32.gmra.mxu0 %vm163_vm1, %v1332_v55  ;;  %11029 = vmatprep.mubr.msk.f32.mxu1 %vm163_vm1, %v13013_v57  ;;  %v1344_v55 = vld [vmem:[%s18270_s0 + $0xe2] sm:$0xff]  ;;  %v56_v16 = vld [vmem:[%s18270_s0 + $0x1b0] sm:$0xff] }
  0x5b   :  { %11135 = vmatprep.mubr.msk.f32.mxu0 %vm163_vm1, %v1333_v59  ;;  %11226 = vmatpush3.msra.mxu1 %v9477_v49  ;;  %v1343_v49 = vld [vmem:[%s18270_s0 + $0xda] sm:$0xff]  ;;  %v13165_v59 = vld [vmem:[%s18270_s0 + $0xf0] sm:$0xff]  ;;  %v13314_v13 = vld [vmem:[%s18270_s0 + $0x1c8] sm:$0xff] }
  0x5c   :  { %11332 = vmatpush3.msra.mxu0 %v9611_v53  ;;  %11227 = vmatprep.subr.mxu1 %v9476_v61  ;;  %v13156_v53 = vld [vmem:[%s18270_s0 + $0xe0] sm:$0xff]  ;;  %18448 = vst [vmem:[#allocation12_spill] sm:$0xff] %v13314_v13 }
  0x5d   :  { %11030 = vmatmul.mubr.msk.f32.gmra.mxu1 %vm163_vm1, %v13029_v63  ;;  %11333 = vmatprep.subr.mxu0 %v9610_v1 }
  0x5e   :  { %11136 = vmatmul.mubr.msk.f32.gmra.mxu0 %vm163_vm1, %v1334_v3  ;;  %11032 = vmatprep.mubr.msk.f32.mxu1 %vm163_vm1, %v13041_v5  ;;  %v1346_v3 = vld [vmem:[%s18270_s0 + $0xfa] sm:$0xff] }
  0x5f   :  { %11138 = vmatprep.mubr.msk.f32.mxu0 %vm163_vm1, %v1335_v7  ;;  %11228 = vmatpush3.msra.mxu1 %v9476_v61  ;;  %v1345_v61 = vld [vmem:[%s18270_s0 + $0xf2] sm:$0xff]  ;;  %v13187_v7 = vld [vmem:[%s18270_s0 + $0x108] sm:$0xff] }
  0x60   :  { %11334 = vmatpush3.msra.mxu0 %v9610_v1  ;;  %11431 = vmatprep.subr.msk.mxu1 %vm356_vm0, %v13051_v9  ;;  %v13178_v1 = vld [vmem:[%s18270_s0 + $0xf8] sm:$0xff] }
  0x61   :  { %11033 = vmatmul.mubr.msk.f32.gmra.mxu1 %vm163_vm1, %v13059_v11  ;;  %11537 = vmatprep.subr.msk.mxu0 %vm356_vm0, %v13064_v14 }
  0x62   :  { %11139 = vmatmul.mubr.msk.f32.gmra.mxu0 %vm163_vm1, %v1336_v18  ;;  %11035 = vmatprep.mubr.msk.f32.mxu1 %vm163_vm1, %v13073_v20  ;;  %v1347_v18 = vld [vmem:[%s18270_s0 + $0x10a] sm:$0xff] }
  0x63   :  { %11141 = vmatprep.mubr.msk.f32.mxu0 %vm163_vm1, %v1337_v22  ;;  %v13200_v22 = vld [vmem:[%s18270_s0 + $0x110] sm:$0xff] }
  0x65   :  { %11036 = vmatmul.mubr.msk.f32.gmra.mxu1 %vm163_vm1, %v13090_v24 }
  0x66   :  { %11142 = vmatmul.mubr.msk.f32.gmra.mxu0 %vm163_vm1, %v1338_v25  ;;  %11038 = vmatprep.mubr.msk.f32.mxu1 %vm163_vm1, %v13099_v28  ;;  %v1348_v25 = vld [vmem:[%s18270_s0 + $0x112] sm:$0xff] }
  0x67   :  { %11144 = vmatprep.mubr.msk.f32.mxu0 %vm163_vm1, %v1339_v30  ;;  %v13209_v30 = vld [vmem:[%s18270_s0 + $0x120] sm:$0xff] }
  0x69   :  { %11039 = vmatmul.mubr.msk.f32.gmra.mxu1 %vm163_vm1, %v13112_v32 }
  0x6a   :  { %11145 = vmatmul.mubr.msk.f32.gmra.mxu0 %vm163_vm1, %v1340_v34  ;;  %11041 = vmatprep.mubr.msk.f32.mxu1 %vm163_vm1, %v13121_v37  ;;  %v1349_v34 = vld [vmem:[%s18270_s0 + $0x122] sm:$0xff] }
  0x6b   :  { %11147 = vmatprep.mubr.msk.f32.mxu0 %vm163_vm1, %v1341_v38  ;;  %v13222_v38 = vld [vmem:[%s18270_s0 + $0x128] sm:$0xff] }
  0x6d   :  { %11042 = vmatmul.mubr.msk.f32.gmra.mxu1 %vm163_vm1, %v13134_v42 }
  0x6e   :  { %11148 = vmatmul.mubr.msk.f32.gmra.mxu0 %vm163_vm1, %v1342_v43  ;;  %11044 = vmatprep.mubr.msk.f32.mxu1 %vm163_vm1, %v13143_v47  ;;  %v1350_v43 = vld [vmem:[%s18270_s0 + $0x12a] sm:$0xff] }
  0x6f   :  { %11150 = vmatprep.mubr.msk.f32.mxu0 %vm163_vm1, %v1343_v49  ;;  %v13231_v49 = vld [vmem:[%s18270_s0 + $0x138] sm:$0xff] }
  0x71   :  { %11045 = vmatmul.mubr.msk.f32.gmra.mxu1 %vm163_vm1, %v13156_v53 }
  0x72   :  { %11151 = vmatmul.mubr.msk.f32.gmra.mxu0 %vm163_vm1, %v1344_v55  ;;  %11047 = vmatprep.mubr.msk.f32.mxu1 %vm163_vm1, %v13165_v59  ;;  %v1351_v55 = vld [vmem:[%s18270_s0 + $0x13a] sm:$0xff] }
  0x73   :  { %11153 = vmatprep.mubr.msk.f32.mxu0 %vm163_vm1, %v1345_v61  ;;  %v13244_v61 = vld [vmem:[%s18270_s0 + $0x140] sm:$0xff] }
  0x75   :  { %11048 = vmatmul.mubr.msk.f32.gmra.mxu1 %vm163_vm1, %v13178_v1 }
  0x76   :  { %11154 = vmatmul.mubr.msk.f32.gmra.mxu0 %vm163_vm1, %v1346_v3  ;;  %11050 = vmatprep.mubr.msk.f32.mxu1 %vm163_vm1, %v13187_v7  ;;  %v1352_v3 = vld [vmem:[%s18270_s0 + $0x142] sm:$0xff] }
  0x77   :  { %11156 = vmatprep.mubr.msk.f32.mxu0 %vm163_vm1, %v1347_v18  ;;  %v13253_v18 = vld [vmem:[%s18270_s0 + $0x150] sm:$0xff] }
  0x79   :  { %11051 = vmatmul.mubr.msk.f32.gmra.mxu1 %vm163_vm1, %v13200_v22 }
  0x7a   :  { %11157 = vmatmul.mubr.msk.f32.gmra.mxu0 %vm163_vm1, %v1348_v25  ;;  %11053 = vmatprep.mubr.msk.f32.mxu1 %vm163_vm1, %v13209_v30  ;;  %v1353_v25 = vld [vmem:[%s18270_s0 + $0x152] sm:$0xff] }
  0x7b   :  { %11159 = vmatprep.mubr.msk.f32.mxu0 %vm163_vm1, %v1349_v34  ;;  %v13266_v34 = vld [vmem:[%s18270_s0 + $0x158] sm:$0xff] }
  0x7d   :  { %11054 = vmatmul.mubr.msk.f32.gmra.mxu1 %vm163_vm1, %v13222_v38 }
  0x7e   :  { %11160 = vmatmul.mubr.msk.f32.gmra.mxu0 %vm163_vm1, %v1350_v43  ;;  %11056 = vmatprep.mubr.msk.f32.mxu1 %vm163_vm1, %v13231_v49  ;;  %v1354_v43 = vld [vmem:[%s18270_s0 + $0x15a] sm:$0xff] }
  0x7f   :  { %11162 = vmatprep.mubr.msk.f32.mxu0 %vm163_vm1, %v1351_v55  ;;  %v13275_v55 = vld [vmem:[%s18270_s0 + $0x168] sm:$0xff] }
  0x80   :  { %18447 = vst [vmem:[#allocation11_spill] sm:$0xff] %v13275_v55 }
  0x81   :  { %11057 = vmatmul.mubr.msk.f32.gmra.mxu1 %vm163_vm1, %v13244_v61 }
  0x82   :  { %11163 = vmatmul.mubr.msk.f32.gmra.mxu0 %vm163_vm1, %v1352_v3  ;;  %11059 = vmatprep.mubr.msk.f32.mxu1 %vm163_vm1, %v13253_v18  ;;  %v1355_v3 = vld [vmem:[%s18270_s0 + $0x16a] sm:$0xff] }
  0x83   :  { %11165 = vmatprep.mubr.msk.f32.mxu0 %vm163_vm1, %v1353_v25  ;;  %v13288_v25 = vld [vmem:[%s18270_s0 + $0x170] sm:$0xff] }
  0x85   :  { %11060 = vmatmul.mubr.msk.f32.gmra.mxu1 %vm163_vm1, %v13266_v34 }
  0x86   :  { %11166 = vmatmul.mubr.msk.f32.gmra.mxu0 %vm163_vm1, %v1354_v43  ;;  %11062 = vmatprep.mubr.msk.f32.mxu1 %vm163_vm1, %v13275_v55  ;;  %v1357_v43 = vld [vmem:[%s18270_s0 + $0x1b2] sm:$0xff]  ;;  %v1358_v55 = vld [vmem:[%s18270_s0 + $0x1ba] sm:$0xff] }
  0x87   :  { %11168 = vmatprep.mubr.msk.f32.mxu0 %vm163_vm1, %v1355_v3  ;;  %v57_v3 = vld [vmem:[%s18270_s0 + $0x1b8] sm:$0xff] }
  0x89   :  { %11063 = vmatmul.mubr.msk.f32.gmra.mxu1 %vm163_vm1, %v13288_v25 }
  0x8a   :  { %11169 = vmatmul.mubr.msk.f32.gmra.mxu0 %vm163_vm1, %v1356_v19  ;;  %11065 = vmatprep.mubr.msk.f32.mxu1 %vm163_vm1, %v56_v16  ;;  %v1359_v19 = vld [vmem:[%s18270_s0 + $0x1ca] sm:$0xff] }
  0x8b   :  { %11171 = vmatprep.mubr.msk.f32.mxu0 %vm163_vm1, %v1357_v43  ;;  %v13326_v16 = vld [vmem:[%s18270_s0 + $0x1d0] sm:$0xff] }
  0x8c   :  { %18449 = vst [vmem:[#allocation13_spill] sm:$0xff] %v13326_v16  ;;  %v1360_v43 = vld [vmem:[%s18270_s0 + $0x1d2] sm:$0xff] }
  0x8d   :  { %11066 = vmatmul.mubr.msk.f32.gmra.mxu1 %vm163_vm1, %v57_v3  ;;  %v13335_v3 = vld [vmem:[%s18270_s0 + $0x1e0] sm:$0xff] }
  0x8e   :  { %11172 = vmatmul.mubr.msk.f32.gmra.mxu0 %vm163_vm1, %v1358_v55  ;;  %11068 = vmatprep.mubr.msk.f32.mxu1 %vm163_vm1, %v13314_v13  ;;  %18450 = vst [vmem:[#allocation14_spill] sm:$0xff] %v13335_v3  ;;  %v1361_v55 = vld [vmem:[%s18270_s0 + $0x1e2] sm:$0xff]  ;;  %v1362_v13 = vld [vmem:[%s18270_s0 + $0x1ea] sm:$0xff] }
  0x8f   :  { %11174 = vmatprep.mubr.msk.f32.mxu0 %vm163_vm1, %v1359_v19  ;;  %v13348_v19 = vld [vmem:[%s18270_s0 + $0x1e8] sm:$0xff] }
  0x90   :  { %18451 = vst [vmem:[#allocation15_spill] sm:$0xff] %v13348_v19 }
  0x91   :  { %11069 = vmatmul.mubr.msk.f32.gmra.mxu1 %vm163_vm1, %v13326_v16  ;;  %v13357_v16 = vld [vmem:[%s18270_s0 + $0x1f8] sm:$0xff] }
  0x92   :  { %11175 = vmatmul.mubr.msk.f32.gmra.mxu0 %vm163_vm1, %v1360_v43  ;;  %11071 = vmatprep.mubr.msk.f32.mxu1 %vm163_vm1, %v13335_v3  ;;  %18452 = vst [vmem:[#allocation16_spill] sm:$0xff] %v13357_v16  ;;  %v1363_v43 = vld [vmem:[%s18270_s0 + $0x1fa] sm:$0xff]  ;;  %v1364_v3 = vld [vmem:[%s18270_s0 + $0x202] sm:$0xff] }
  0x93   :  { %11177 = vmatprep.mubr.msk.f32.mxu0 %vm163_vm1, %v1361_v55  ;;  %v13370_v55 = vld [vmem:[%s18270_s0 + $0x200] sm:$0xff] }
  0x94   :  { %18453 = vst [vmem:[#allocation17_spill] sm:$0xff] %v13370_v55 }
  0x95   :  { %11072 = vmatmul.mubr.msk.f32.gmra.mxu1 %vm163_vm1, %v13348_v19  ;;  %v13379_v19 = vld [vmem:[%s18270_s0 + $0x210] sm:$0xff] }
  0x96   :  { %11178 = vmatmul.mubr.msk.f32.gmra.mxu0 %vm163_vm1, %v1362_v13  ;;  %11074 = vmatprep.mubr.msk.f32.mxu1 %vm163_vm1, %v13357_v16  ;;  %18454 = vst [vmem:[#allocation18_spill] sm:$0xff] %v13379_v19  ;;  %v1365_v13 = vld [vmem:[%s18270_s0 + $0x212] sm:$0xff]  ;;  %v1366_v16 = vld [vmem:[%s18270_s0 + $0x21a] sm:$0xff] }
  0x97   :  { %11180 = vmatprep.mubr.msk.f32.mxu0 %vm163_vm1, %v1363_v43  ;;  %v13392_v43 = vld [vmem:[%s18270_s0 + $0x218] sm:$0xff] }
  0x98   :  { %18455 = vst [vmem:[#allocation19_spill] sm:$0xff] %v13392_v43 }
  0x99   :  { %11075 = vmatmul.mubr.msk.f32.gmra.mxu1 %vm163_vm1, %v13370_v55  ;;  %v13401_v55 = vld [vmem:[%s18270_s0 + $0x228] sm:$0xff] }
  0x9a   :  { %11181 = vmatmul.mubr.msk.f32.gmra.mxu0 %vm163_vm1, %v1364_v3  ;;  %11077 = vmatprep.mubr.msk.f32.mxu1 %vm163_vm1, %v13379_v19  ;;  %18456 = vst [vmem:[#allocation20_spill] sm:$0xff] %v13401_v55  ;;  %v1367_v3 = vld [vmem:[%s18270_s0 + $0x22a] sm:$0xff]  ;;  %v1368_v19 = vld [vmem:[%s18270_s0 + $0x232] sm:$0xff] }
  0x9b   :  { %11183 = vmatprep.mubr.msk.f32.mxu0 %vm163_vm1, %v1365_v13  ;;  %v13414_v13 = vld [vmem:[%s18270_s0 + $0x230] sm:$0xff] }
  0x9c   :  { %18457 = vst [vmem:[#allocation21_spill] sm:$0xff] %v13414_v13 }
  0x9d   :  { %11078 = vmatmul.mubr.msk.f32.gmra.mxu1 %vm163_vm1, %v13392_v43  ;;  %v13423_v43 = vld [vmem:[%s18270_s0 + $0x240] sm:$0xff] }
  0x9e   :  { %11184 = vmatmul.mubr.msk.f32.gmra.mxu0 %vm163_vm1, %v1366_v16  ;;  %11080 = vmatprep.mubr.msk.f32.mxu1 %vm163_vm1, %v13401_v55  ;;  %18458 = vst [vmem:[#allocation22_spill] sm:$0xff] %v13423_v43  ;;  %v1369_v16 = vld [vmem:[%s18270_s0 + $0x242] sm:$0xff]  ;;  %v1370_v55 = vld [vmem:[%s18270_s0 + $0x24a] sm:$0xff] }
  0x9f   :  { %11186 = vmatprep.mubr.msk.f32.mxu0 %vm163_vm1, %v1367_v3  ;;  %v13436_v3 = vld [vmem:[%s18270_s0 + $0x248] sm:$0xff] }
  0xa0   :  { %18459 = vst [vmem:[#allocation23_spill] sm:$0xff] %v13436_v3 }
  0xa1   :  { %11081 = vmatmul.mubr.msk.f32.gmra.mxu1 %vm163_vm1, %v13414_v13  ;;  %v13445_v13 = vld [vmem:[%s18270_s0 + $0x258] sm:$0xff] }
  0xa2   :  { %11187 = vmatmul.mubr.msk.f32.gmra.mxu0 %vm163_vm1, %v1368_v19  ;;  %11083 = vmatprep.mubr.msk.f32.mxu1 %vm163_vm1, %v13423_v43  ;;  %18460 = vst [vmem:[#allocation24_spill] sm:$0xff] %v13445_v13  ;;  %v1371_v19 = vld [vmem:[%s18270_s0 + $0x25a] sm:$0xff]  ;;  %v1372_v43 = vld [vmem:[%s18270_s0 + $0x262] sm:$0xff] }
  0xa3   :  { %11189 = vmatprep.mubr.msk.f32.mxu0 %vm163_vm1, %v1369_v16  ;;  %v13458_v16 = vld [vmem:[%s18270_s0 + $0x260] sm:$0xff] }
  0xa4   :  { %18461 = vst [vmem:[#allocation25_spill] sm:$0xff] %v13458_v16 }
  0xa5   :  { %11084 = vmatmul.mubr.msk.f32.gmra.mxu1 %vm163_vm1, %v13436_v3  ;;  %v13467_v3 = vld [vmem:[%s18270_s0 + $0x270] sm:$0xff] }
  0xa6   :  { %11190 = vmatmul.mubr.msk.f32.gmra.mxu0 %vm163_vm1, %v1370_v55  ;;  %11086 = vmatprep.mubr.msk.f32.mxu1 %vm163_vm1, %v13445_v13  ;;  %18462 = vst [vmem:[#allocation26_spill] sm:$0xff] %v13467_v3  ;;  %v1373_v55 = vld [vmem:[%s18270_s0 + $0x272] sm:$0xff]  ;;  %v1374_v13 = vld [vmem:[%s18270_s0 + $0x27a] sm:$0xff] }
  0xa7   :  { %11192 = vmatprep.mubr.msk.f32.mxu0 %vm163_vm1, %v1371_v19  ;;  %v13480_v19 = vld [vmem:[%s18270_s0 + $0x278] sm:$0xff] }
  0xa8   :  { %18463 = vst [vmem:[#allocation27_spill] sm:$0xff] %v13480_v19 }
  0xa9   :  { %11087 = vmatmul.mubr.msk.f32.gmra.mxu1 %vm163_vm1, %v13458_v16  ;;  %v13489_v16 = vld [vmem:[%s18270_s0 + $0x288] sm:$0xff] }
  0xaa   :  { %11193 = vmatmul.mubr.msk.f32.gmra.mxu0 %vm163_vm1, %v1372_v43  ;;  %11089 = vmatprep.mubr.msk.f32.mxu1 %vm163_vm1, %v13467_v3  ;;  %18464 = vst [vmem:[#allocation28_spill] sm:$0xff] %v13489_v16  ;;  %v1375_v43 = vld [vmem:[%s18270_s0 + $0x28a] sm:$0xff]  ;;  %v1376_v3 = vld [vmem:[%s18270_s0 + $0x292] sm:$0xff] }
  0xab   :  { %11195 = vmatprep.mubr.msk.f32.mxu0 %vm163_vm1, %v1373_v55  ;;  %v13502_v55 = vld [vmem:[%s18270_s0 + $0x290] sm:$0xff] }
  0xac   :  { %18465 = vst [vmem:[#allocation29_spill] sm:$0xff] %v13502_v55 }
  0xad   :  { %11090 = vmatmul.mubr.msk.f32.gmra.mxu1 %vm163_vm1, %v13480_v19  ;;  %v13511_v19 = vld [vmem:[%s18270_s0 + $0x2a0] sm:$0xff] }
  0xae   :  { %11196 = vmatmul.mubr.msk.f32.gmra.mxu0 %vm163_vm1, %v1374_v13  ;;  %11092 = vmatprep.mubr.msk.f32.mxu1 %vm163_vm1, %v13489_v16  ;;  %18466 = vst [vmem:[#allocation30_spill] sm:$0xff] %v13511_v19  ;;  %v1377_v13 = vld [vmem:[%s18270_s0 + $0x2a2] sm:$0xff]  ;;  %v1378_v16 = vld [vmem:[%s18270_s0 + $0x2aa] sm:$0xff] }
  0xaf   :  { %11198 = vmatprep.mubr.msk.f32.mxu0 %vm163_vm1, %v1375_v43  ;;  %v13524_v43 = vld [vmem:[%s18270_s0 + $0x2a8] sm:$0xff] }
  0xb0   :  { %18467 = vst [vmem:[#allocation31_spill] sm:$0xff] %v13524_v43 }
  0xb1   :  { %11093 = vmatmul.mubr.msk.f32.gmra.mxu1 %vm163_vm1, %v13502_v55  ;;  %v13533_v55 = vld [vmem:[%s18270_s0 + $0x2b8] sm:$0xff] }
  0xb2   :  { %11199 = vmatmul.mubr.msk.f32.gmra.mxu0 %vm163_vm1, %v1376_v3  ;;  %11095 = vmatprep.mubr.msk.f32.mxu1 %vm163_vm1, %v13511_v19  ;;  %18468 = vst [vmem:[#allocation32_spill] sm:$0xff] %v13533_v55  ;;  %v1379_v3 = vld [vmem:[%s18270_s0 + $0x2ba] sm:$0xff]  ;;  %v1380_v19 = vld [vmem:[%s18270_s0 + $0x2c2] sm:$0xff] }
  0xb3   :  { %11201 = vmatprep.mubr.msk.f32.mxu0 %vm163_vm1, %v1377_v13  ;;  %v13546_v13 = vld [vmem:[%s18270_s0 + $0x2c0] sm:$0xff] }
  0xb4   :  { %18469 = vst [vmem:[#allocation33_spill] sm:$0xff] %v13546_v13 }
  0xb5   :  { %11096 = vmatmul.mubr.msk.f32.gmra.mxu1 %vm163_vm1, %v13524_v43  ;;  %v13555_v43 = vld [vmem:[%s18270_s0 + $0x2d0] sm:$0xff] }
  0xb6   :  { %11202 = vmatmul.mubr.msk.f32.gmra.mxu0 %vm163_vm1, %v1378_v16  ;;  %11098 = vmatprep.mubr.msk.f32.mxu1 %vm163_vm1, %v13533_v55  ;;  %18470 = vst [vmem:[#allocation34_spill] sm:$0xff] %v13555_v43  ;;  %v1381_v16 = vld [vmem:[%s18270_s0 + $0x2d2] sm:$0xff]  ;;  %v1382_v55 = vld [vmem:[%s18270_s0 + $0x2da] sm:$0xff] }
  0xb7   :  { %11204 = vmatprep.mubr.msk.f32.mxu0 %vm163_vm1, %v1379_v3  ;;  %v13568_v3 = vld [vmem:[%s18270_s0 + $0x2d8] sm:$0xff] }
  0xb8   :  { %18471 = vst [vmem:[#allocation35_spill] sm:$0xff] %v13568_v3 }
  0xb9   :  { %11099 = vmatmul.mubr.msk.f32.gmra.mxu1 %vm163_vm1, %v13546_v13  ;;  %v13577_v13 = vld [vmem:[%s18270_s0 + $0x2e8] sm:$0xff] }
  0xba   :  { %11205 = vmatmul.mubr.msk.f32.gmra.mxu0 %vm163_vm1, %v1380_v19  ;;  %11101 = vmatprep.mubr.msk.f32.mxu1 %vm163_vm1, %v13555_v43  ;;  %18472 = vst [vmem:[#allocation36_spill] sm:$0xff] %v13577_v13  ;;  %v1383_v19 = vld [vmem:[%s18270_s0 + $0x2ea] sm:$0xff]  ;;  %v1384_v43 = vld [vmem:[%s18270_s0 + $0x2f2] sm:$0xff] }
  0xbb   :  { %11207 = vmatprep.mubr.msk.f32.mxu0 %vm163_vm1, %v1381_v16  ;;  %v13590_v16 = vld [vmem:[%s18270_s0 + $0x2f0] sm:$0xff] }
  0xbc   :  { %18473 = vst [vmem:[#allocation37_spill] sm:$0xff] %v13590_v16 }
  0xbd   :  { %11102 = vmatmul.mubr.msk.f32.gmra.mxu1 %vm163_vm1, %v13568_v3  ;;  %v13599_v3 = vld [vmem:[%s18270_s0 + $0x300] sm:$0xff] }
  0xbe   :  { %11208 = vmatmul.mubr.msk.f32.gmra.mxu0 %vm163_vm1, %v1382_v55  ;;  %11104 = vmatprep.mubr.msk.f32.mxu1 %vm163_vm1, %v13577_v13  ;;  %18474 = vst [vmem:[#allocation38_spill] sm:$0xff] %v13599_v3  ;;  %v1385_v55 = vld [vmem:[%s18270_s0 + $0x302] sm:$0xff]  ;;  %v1386_v13 = vld [vmem:[%s18270_s0 + $0x30a] sm:$0xff] }
  0xbf   :  { %11210 = vmatprep.mubr.msk.f32.mxu0 %vm163_vm1, %v1383_v19  ;;  %v13612_v19 = vld [vmem:[%s18270_s0 + $0x308] sm:$0xff] }
  0xc1   :  { %11105 = vmatmul.mubr.msk.f32.gmra.mxu1 %vm163_vm1, %v13590_v16  ;;  %v13621_v16 = vld [vmem:[%s18270_s0 + $0x318] sm:$0xff] }
  0xc2   :  { %11211 = vmatmul.mubr.msk.f32.gmra.mxu0 %vm163_vm1, %v1384_v43  ;;  %11107 = vmatprep.mubr.msk.f32.mxu1 %vm163_vm1, %v13599_v3  ;;  %18475 = vst [vmem:[#allocation39_spill] sm:$0xff] %v13621_v16  ;;  %v1387_v43 = vld [vmem:[%s18270_s0 + $0x31a] sm:$0xff]  ;;  %v1388_v3 = vld [vmem:[%s18270_s0 + $0x322] sm:$0xff] }
  0xc3   :  { %11213 = vmatprep.mubr.msk.f32.mxu0 %vm163_vm1, %v1385_v55  ;;  %v13634_v55 = vld [vmem:[%s18270_s0 + $0x320] sm:$0xff] }
  0xc5   :  { %11108 = vmatmul.mubr.msk.f32.gmra.mxu1 %vm163_vm1, %v13612_v19 }
  0xc6   :  { %11214 = vmatmul.mubr.msk.f32.gmra.mxu0 %vm163_vm1, %v1386_v13  ;;  %11110 = vmatprep.mubr.msk.f32.mxu1 %vm163_vm1, %v13621_v16 }
  0xc7   :  { %11216 = vmatprep.mubr.msk.f32.mxu0 %vm163_vm1, %v1387_v43  ;;  %v9747_v43 = vld [vmem:[%s18272_s2 + $0xe0] sm:$0xff] }
  0xc9   :  { %11111 = vmatmul.mubr.msk.f32.gmra.mxu1 %vm163_vm1, %v13634_v55 }
  0xca   :  { %11217 = vmatmul.mubr.msk.f32.gmra.mxu0 %vm163_vm1, %v1388_v3  ;;  %11229 = vmatprep.mubr.msk.f32.mxu1 %vm163_vm1, %v12926_v26 }
  0xcb   :  { %11335 = vmatprep.mubr.msk.f32.mxu0 %vm163_vm1, %v12543_v12  ;;  %v9881_v12 = vld [vmem:[%s18272_s2 + $0x108] sm:$0xff] }
  0xcd   :  { %v13647_v13 = vpop.f32.mrf.mxu1  ;;  %11230 = vmatmul.mubr.msk.f32.vlgmr.msra.gmra.mxu1 %vm163_vm1, %v12941_v31 }
  0xce   :  { %v13654_v16 = vpop.f32.mrf.mxu0  ;;  %11336 = vmatmul.mubr.msk.f32.vlgmr.msra.gmra.mxu0 %vm163_vm1, %v12558_v15  ;;  %11432 = vmatpush3.msk.msra.mxu1 %vm356_vm0, %v13051_v9  ;;  %v9746_v9 = vld [vmem:[%s18272_s2 + $0xd8] sm:$0xff] }
  0xcf   :  { %v13663_v26 = vpop.f32.mrf.mxu1  ;;  %11232 = vmatprep.mubr.msk.f32.mxu1 %vm163_vm1, %v12956_v36  ;;  %11538 = vmatpush3.msk.msra.mxu0 %vm356_vm0, %v13064_v14 }
  0xd0   :  { %v13669_v31 = vpop.f32.mrf.mxu0  ;;  %11338 = vmatprep.mubr.msk.f32.mxu0 %vm163_vm1, %v12569_v17  ;;  %11433 = vmatprep.subr.mxu1 %v9747_v43  ;;  %v9880_v17 = vld [vmem:[%s18272_s2 + $0x100] sm:$0xff] }
  0xd1   :  { %v13673_v15 = vpop.f32.mrf.mxu1  ;;  %11233 = vmatmul.mubr.msk.f32.gmra.mxu1 %vm163_vm1, %v12973_v40  ;;  %11539 = vmatprep.subr.mxu0 %v9881_v12 }
  0xd2   :  { %v13680_v36 = vpop.f32.mrf.mxu0  ;;  %11339 = vmatmul.mubr.msk.f32.gmra.mxu0 %vm163_vm1, %v12589_v21  ;;  %11235 = vmatprep.mubr.msk.f32.mxu1 %vm163_vm1, %v12985_v45  ;;  %v9745_v21 = vld [vmem:[%s18272_s2 + $0xd0] sm:$0xff] }
  0xd3   :  { %v13689_v14 = vpop.f32.mrf.mxu1  ;;  %11341 = vmatprep.mubr.msk.f32.mxu0 %vm163_vm1, %v12597_v23  ;;  %11434 = vmatpush3.msra.mxu1 %v9747_v43  ;;  %v9879_v23 = vld [vmem:[%s18272_s2 + $0xf8] sm:$0xff] }
  0xd4   :  { %v13693_v40 = vpop.f32.mrf.mxu0  ;;  %11540 = vmatpush3.msra.mxu0 %v9881_v12  ;;  %11435 = vmatprep.subr.mxu1 %v9746_v9 }
  0xd5   :  { %v13695_v3 = vpop.f32.mrf.mxu1  ;;  %11236 = vmatmul.mubr.msk.f32.gmra.mxu1 %vm163_vm1, %v13001_v51  ;;  %11541 = vmatprep.subr.mxu0 %v9880_v17 }
  0xd6   :  { %v13702_v45 = vpop.f32.mrf.mxu0  ;;  %11342 = vmatmul.mubr.msk.f32.gmra.mxu0 %vm163_vm1, %v12617_v27  ;;  %11238 = vmatprep.mubr.msk.f32.mxu1 %vm163_vm1, %v13013_v57  ;;  %v9744_v27 = vld [vmem:[%s18272_s2 + $0xc8] sm:$0xff] }
  0xd7   :  { %v13711_v43 = vpop.f32.mrf.mxu1  ;;  %11344 = vmatprep.mubr.msk.f32.mxu0 %vm163_vm1, %v12625_v29  ;;  %11436 = vmatpush3.msra.mxu1 %v9746_v9  ;;  %v9878_v29 = vld [vmem:[%s18272_s2 + $0xf0] sm:$0xff] }
  0xd8   :  { %v13715_v51 = vpop.f32.mrf.mxu0  ;;  %11542 = vmatpush3.msra.mxu0 %v9880_v17  ;;  %11437 = vmatprep.subr.mxu1 %v9745_v21 }
  0xd9   :  { %v13717_v12 = vpop.f32.mrf.mxu1  ;;  %11239 = vmatmul.mubr.msk.f32.gmra.mxu1 %vm163_vm1, %v13029_v63  ;;  %11543 = vmatprep.subr.mxu0 %v9879_v23 }
  0xda   :  { %v13724_v57 = vpop.f32.mrf.mxu0  ;;  %11345 = vmatmul.mubr.msk.f32.gmra.mxu0 %vm163_vm1, %v12645_v33  ;;  %11241 = vmatprep.mubr.msk.f32.mxu1 %vm163_vm1, %v13041_v5  ;;  %v13746_v33 = vld [vmem:[%s18272_s2 + $0x138] sm:$0xf] }
  0xdb   :  { %v13733_v9 = vpop.f32.mrf.mxu1  ;;  %11347 = vmatprep.mubr.msk.f32.mxu0 %vm163_vm1, %v12653_v35  ;;  %11438 = vmatpush3.msra.mxu1 %v9745_v21  ;;  %v13757_v35 = vld [vmem:[%s18272_s2 + $0x160] sm:$0xf] }
  0xdc   :  { %v13737_v63 = vpop.f32.mrf.mxu0  ;;  %11544 = vmatpush3.msra.mxu0 %v9879_v23  ;;  %11439 = vmatprep.subr.mxu1 %v9744_v27 }
  0xdd   :  { %v13739_v17 = vpop.f32.mrf.mxu1  ;;  %11242 = vmatmul.mubr.msk.f32.gmra.mxu1 %vm163_vm1, %v13059_v11  ;;  %11545 = vmatprep.subr.mxu0 %v9878_v29 }
  0xde   :  { %v13748_v5 = vpop.f32.mrf.mxu0  ;;  %11348 = vmatmul.mubr.msk.f32.gmra.mxu0 %vm163_vm1, %v12675_v39  ;;  %11244 = vmatprep.mubr.msk.f32.mxu1 %vm163_vm1, %v13073_v20 }
  0xdf   :  { %v13759_v11 = vpop.f32.mrf.mxu1  ;;  %11350 = vmatprep.mubr.msk.f32.mxu0 %vm163_vm1, %v12683_v41  ;;  %11440 = vmatpush3.msra.mxu1 %v9744_v27 }
  0xe0   :  { %v13763_v21 = vpop.f32.mrf.mxu0  ;;  %11546 = vmatpush3.msra.mxu0 %v9878_v29  ;;  %11643 = vmatprep.subr.msk.mxu1 %vm356_vm0, %v13746_v33  ;;  %v18487_v29 = vld [vmem:[#allocation8_spill] sm:$0xff] }
  0xe1   :  { %v13767_v39 = vpop.f32.mrf.mxu1  ;;  %11245 = vmatmul.mubr.msk.f32.gmra.mxu1 %vm163_vm1, %v13090_v24  ;;  %11749 = vmatprep.subr.msk.mxu0 %vm356_vm0, %v13757_v35 }
  0xe2   :  { %v13773_v20 = vpop.f32.mrf.mxu0  ;;  %11351 = vmatmul.mubr.msk.f32.gmra.mxu0 %vm163_vm1, %v12704_v44  ;;  %11247 = vmatprep.mubr.msk.f32.mxu1 %vm163_vm1, %v13099_v28 }
  0xe3   :  { %v13779_v41 = vpop.f32.mrf.mxu1  ;;  %11353 = vmatprep.mubr.msk.f32.mxu0 %vm163_vm1, %v12714_v46 }
  0xe4   :  { %v13783_v23 = vpop.f32.mrf.mxu0 }
  0xe5   :  { %v13785_v27 = vpop.f32.mrf.mxu1  ;;  %11248 = vmatmul.mubr.msk.f32.gmra.mxu1 %vm163_vm1, %v13112_v32 }
  0xe6   :  { %v13789_v24 = vpop.f32.mrf.mxu0  ;;  %11354 = vmatmul.mubr.msk.f32.gmra.mxu0 %vm163_vm1, %v12728_v48  ;;  %11250 = vmatprep.mubr.msk.f32.mxu1 %vm163_vm1, %v13121_v37 }
  0xe7   :  { %v13795_v44 = vpop.f32.mrf.mxu1  ;;  %11356 = vmatprep.mubr.msk.f32.mxu0 %vm163_vm1, %v12736_v50 }
  0xe8   :  { %v13799_v46 = vpop.f32.mrf.mxu0 }
  0xe9   :  { %v13801_v28 = vpop.f32.mrf.mxu1  ;;  %11251 = vmatmul.mubr.msk.f32.gmra.mxu1 %vm163_vm1, %v13134_v42 }
  0xea   :  { %v13805_v32 = vpop.f32.mrf.mxu0  ;;  %11357 = vmatmul.mubr.msk.f32.gmra.mxu0 %vm163_vm1, %v12750_v52  ;;  %11253 = vmatprep.mubr.msk.f32.mxu1 %vm163_vm1, %v13143_v47 }
  0xeb   :  { %v13811_v48 = vpop.f32.mrf.mxu1  ;;  %11359 = vmatprep.mubr.msk.f32.mxu0 %vm163_vm1, %v12758_v54 }
  0xec   :  { %v13815_v50 = vpop.f32.mrf.mxu0 }
  0xed   :  { %v13817_v37 = vpop.f32.mrf.mxu1  ;;  %11254 = vmatmul.mubr.msk.f32.gmra.mxu1 %vm163_vm1, %v13156_v53 }
  0xee   :  { %18476 = vst [vmem:[#allocation40_spill] sm:$0xff] %v13817_v37  ;;  %v13821_v42 = vpop.f32.mrf.mxu0  ;;  %11360 = vmatmul.mubr.msk.f32.gmra.mxu0 %vm163_vm1, %v12772_v56  ;;  %11256 = vmatprep.mubr.msk.f32.mxu1 %vm163_vm1, %v13165_v59 }
  0xef   :  { %v13827_v52 = vpop.f32.mrf.mxu1  ;;  %11362 = vmatprep.mubr.msk.f32.mxu0 %vm163_vm1, %v12780_v58 }
  0xf0   :  { %18477 = vst [vmem:[#allocation41_spill] sm:$0xff] %v13827_v52  ;;  %v13831_v54 = vpop.f32.mrf.mxu0 }
  0xf1   :  { %v13833_v47 = vpop.f32.mrf.mxu1  ;;  %11257 = vmatmul.mubr.msk.f32.gmra.mxu1 %vm163_vm1, %v13178_v1 }
  0xf2   :  { %18478 = vst [vmem:[#allocation42_spill] sm:$0xff] %v13833_v47  ;;  %v13837_v53 = vpop.f32.mrf.mxu0  ;;  %11363 = vmatmul.mubr.msk.f32.gmra.mxu0 %vm163_vm1, %v12794_v60  ;;  %11259 = vmatprep.mubr.msk.f32.mxu1 %vm163_vm1, %v13187_v7 }
  0xf3   :  { %v13843_v56 = vpop.f32.mrf.mxu1  ;;  %11365 = vmatprep.mubr.msk.f32.mxu0 %vm163_vm1, %v12802_v62 }
  0xf4   :  { %18479 = vst [vmem:[#allocation43_spill] sm:$0xff] %v13843_v56  ;;  %v13847_v58 = vpop.f32.mrf.mxu0  ;;  %v9581_v56 = vld [vmem:[%s18270_s0 + $0x1e9] sm:$0xff] }
  0xf5   :  { %v13849_v59 = vpop.f32.mrf.mxu1  ;;  %11260 = vmatmul.mubr.msk.f32.gmra.mxu1 %vm163_vm1, %v13200_v22 }
  0xf6   :  { %18480 = vst [vmem:[#allocation44_spill] sm:$0xff] %v13849_v59  ;;  %v13853_v1 = vpop.f32.mrf.mxu0  ;;  %11366 = vmatmul.mubr.msk.f32.gmra.mxu0 %vm163_vm1, %v12816_v0  ;;  %11262 = vmatprep.mubr.msk.f32.mxu1 %vm163_vm1, %v13209_v30  ;;  %v18497_v59 = vld [vmem:[#allocation13_spill] sm:$0xff] }
  0xf7   :  { %v13859_v60 = vpop.f32.mrf.mxu1  ;;  %11368 = vmatprep.mubr.msk.f32.mxu0 %vm163_vm1, %v12824_v2 }
  0xf8   :  { %18481 = vst [vmem:[#allocation45_spill] sm:$0xff] %v13859_v60  ;;  %v13863_v62 = vpop.f32.mrf.mxu0 }
  0xf9   :  { %v13865_v7 = vpop.f32.mrf.mxu1  ;;  %11263 = vmatmul.mubr.msk.f32.gmra.mxu1 %vm163_vm1, %v13222_v38 }
  0xfa   :  { %18482 = vst [vmem:[#allocation46_spill] sm:$0xff] %v13865_v7  ;;  %v13869_v22 = vpop.f32.mrf.mxu0  ;;  %11369 = vmatmul.mubr.msk.f32.gmra.mxu0 %vm163_vm1, %v12838_v4  ;;  %11265 = vmatprep.mubr.msk.f32.mxu1 %vm163_vm1, %v13231_v49  ;;  %v9579_v7 = vld [vmem:[%s18270_s0 + $0x1d1] sm:$0xff] }
  0xfb   :  { %v13875_v0 = vpop.f32.mrf.mxu1  ;;  %11371 = vmatprep.mubr.msk.f32.mxu0 %vm163_vm1, %v12846_v6 }
  0xfc   :  { %18483 = vst [vmem:[#allocation47_spill] sm:$0xff] %v13875_v0  ;;  %v13879_v2 = vpop.f32.mrf.mxu0 }
  0xfd   :  { %v13881_v30 = vpop.f32.mrf.mxu1  ;;  %11266 = vmatmul.mubr.msk.f32.gmra.mxu1 %vm163_vm1, %v13244_v61 }
  0xfe   :  { %18484 = vst [vmem:[#allocation48_spill] sm:$0xff] %v13881_v30  ;;  %v13885_v38 = vpop.f32.mrf.mxu0  ;;  %11372 = vmatmul.mubr.msk.f32.gmra.mxu0 %vm163_vm1, %v12860_v8  ;;  %11268 = vmatprep.mubr.msk.f32.mxu1 %vm163_vm1, %v13253_v18  ;;  %v18488_v8 = vld [vmem:[#allocation11_spill] sm:$0xff] }
  0xff   :  { %v13891_v4 = vpop.f32.mrf.mxu1  ;;  %11374 = vmatprep.mubr.msk.f32.mxu0 %vm163_vm1, %v12868_v10  ;;  %v9442_v10 = vld [vmem:[%s18270_s0 + $0x180] sm:$0xff] }
 0x100   :  { %18485 = vst [vmem:[#allocation49_spill] sm:$0xff] %v13891_v4  ;;  %v13895_v6 = vpop.f32.mrf.mxu0  ;;  %v18490_v4 = vld [vmem:[#allocation9_spill] sm:$0xff] }
 0x101   :  { %v13897_v49 = vpop.f32.mrf.mxu1  ;;  %11269 = vmatmul.mubr.msk.f32.gmra.mxu1 %vm163_vm1, %v13266_v34  ;;  %v9576_v34 = vld [vmem:[%s18270_s0 + $0x181] sm:$0xff] }
 0x102   :  { %18486 = vst [vmem:[#allocation50_spill] sm:$0xff] %v13897_v49  ;;  %v13901_v61 = vpop.f32.mrf.mxu0  ;;  %11375 = vmatmul.mubr.msk.f32.gmra.mxu0 %vm163_vm1, %v18487_v29  ;;  %11271 = vmatprep.mubr.msk.f32.mxu1 %vm163_vm1, %v18488_v8  ;;  %v18492_v8 = vld [vmem:[#allocation10_spill] sm:$0xff] }
 0x103   :  { %v13907_v18 = vpop.f32.mrf.mxu1  ;;  %11377 = vmatprep.mubr.msk.f32.mxu0 %vm163_vm1, %v18490_v4  ;;  %v9443_v4 = vld [vmem:[%s18270_s0 + $0x188] sm:$0xff] }
 0x104   :  { %18489 = vst [vmem:[#allocation8_spill] sm:$0xff] %v13907_v18  ;;  %v13914_v49 = vpop.f32.mrf.mxu0 }
 0x105   :  { %v13919_v30 = vpop.f32.mrf.mxu1  ;;  %11272 = vmatmul.mubr.msk.f32.gmra.mxu1 %vm163_vm1, %v13288_v25 }
 0x106   :  { %18491 = vst [vmem:[#allocation11_spill] sm:$0xff] %v13919_v30  ;;  %v13923_v29 = vpop.f32.mrf.mxu0  ;;  %11378 = vmatmul.mubr.msk.f32.gmra.mxu0 %vm163_vm1, %v18492_v8  ;;  %11274 = vmatprep.mubr.msk.f32.mxu1 %vm163_vm1, %v9442_v10  ;;  %v9577_v30 = vld [vmem:[%s18270_s0 + $0x189] sm:$0xff] }
 0x107   :  { %v13931_v18 = vpop.f32.mrf.mxu1  ;;  %11380 = vmatprep.mubr.msk.f32.mxu0 %vm163_vm1, %v9576_v34  ;;  %v9578_v8 = vld [vmem:[%s18270_s0 + $0x1c9] sm:$0xff] }
 0x108   :  { %18493 = vst [vmem:[#allocation9_spill] sm:$0xff] %v13931_v18  ;;  %v13937_v25 = vpop.f32.mrf.mxu0  ;;  %v18495_v18 = vld [vmem:[#allocation12_spill] sm:$0xff] }
 0x109   :  { %v13942_v0 = vpop.f32.mrf.mxu1  ;;  %11275 = vmatmul.mubr.msk.f32.gmra.mxu1 %vm163_vm1, %v9443_v4  ;;  %v9580_v4 = vld [vmem:[%s18270_s0 + $0x1e1] sm:$0xff] }
 0x10a   :  { %18494 = vst [vmem:[#allocation10_spill] sm:$0xff] %v13942_v0  ;;  %v13945_v10 = vpop.f32.mrf.mxu0  ;;  %11381 = vmatmul.mubr.msk.f32.gmra.mxu0 %vm163_vm1, %v9577_v30  ;;  %11277 = vmatprep.mubr.msk.f32.mxu1 %vm163_vm1, %v18495_v18 }
 0x10b   :  { %v13950_v34 = vpop.f32.mrf.mxu1  ;;  %11383 = vmatprep.mubr.msk.f32.mxu0 %vm163_vm1, %v9578_v8  ;;  %v18498_v8 = vld [vmem:[#allocation14_spill] sm:$0xff] }
 0x10c   :  { %18496 = vst [vmem:[#allocation12_spill] sm:$0xff] %v13950_v34  ;;  %v13956_v60 = vpop.f32.mrf.mxu0 }
 0x10d   :  { %v11019_v0 = vpop.f32.mrf.mxu1  ;;  %11278 = vmatmul.mubr.msk.f32.gmra.mxu1 %vm163_vm1, %v18497_v59 }
 0x10e   :  { %v1012_v30 = vadd.f32 %v11019_v0, %v13654_v16  ;;  %v11125_v18 = vpop.f32.mrf.mxu0  ;;  %11384 = vmatmul.mubr.msk.f32.gmra.mxu0 %vm163_vm1, %v9579_v7  ;;  %11280 = vmatprep.mubr.msk.f32.mxu1 %vm163_vm1, %v18498_v8  ;;  %v9582_v16 = vld [vmem:[%s18270_s0 + $0x1f9] sm:$0xff] }
 0x10f   :  { %v1006_v34 = vpop.f32.mrf.mxu1  ;;  %11386 = vmatprep.mubr.msk.f32.mxu0 %vm163_vm1, %v9580_v4  ;;  %v18499_v0 = vld [vmem:[#allocation15_spill] sm:$0xff] }
 0x110   :  { %v13971_v47 = vadd.f32 %v11125_v18, %v1012_v30  ;;  %v1007_v52 = vadd.f32 %v1006_v34, %v13669_v31  ;;  %v1656_v59 = vpop.f32.mrf.mxu0  ;;  %v18500_v30 = vld [vmem:[#allocation16_spill] sm:$0xff] }
 0x111   :  { %v11022_v7 = vpop.f32.mrf.mxu1  ;;  %11281 = vmatmul.mubr.msk.f32.gmra.mxu1 %vm163_vm1, %v18499_v0  ;;  %v9583_v34 = vld [vmem:[%s18270_s0 + $0x201] sm:$0xff] }
 0x112   :  { %v13979_v8 = vadd.f32 %v1656_v59, %v1007_v52  ;;  %v1022_v4 = vadd.f32 %v11022_v7, %v13680_v36  ;;  %v11128_v37 = vpop.f32.mrf.mxu0  ;;  %11387 = vmatmul.mubr.msk.f32.gmra.mxu0 %vm163_vm1, %v9581_v56  ;;  %11283 = vmatprep.mubr.msk.f32.mxu1 %vm163_vm1, %v18500_v30  ;;  %v9584_v36 = vld [vmem:[%s18270_s0 + $0x211] sm:$0xff]  ;;  %v18501_v7 = vld [vmem:[#allocation17_spill] sm:$0xff] }
 0x113   :  { %v1016_v31 = vpop.f32.mrf.mxu1  ;;  %11389 = vmatprep.mubr.msk.f32.mxu0 %vm163_vm1, %v9582_v16 }
 0x114   :  { %v13989_v18 = vadd.f32 %v11128_v37, %v1022_v4  ;;  %v1017_v52 = vadd.f32 %v1016_v31, %v13693_v40  ;;  %v1666_v59 = vpop.f32.mrf.mxu0  ;;  %v18502_v37 = vld [vmem:[#allocation18_spill] sm:$0xff]  ;;  %v9585_v4 = vld [vmem:[%s18270_s0 + $0x219] sm:$0xff] }
 0x115   :  { %v11025_v56 = vpop.f32.mrf.mxu1  ;;  %11284 = vmatmul.mubr.msk.f32.gmra.mxu1 %vm163_vm1, %v18501_v7 }
 0x116   :  { %v13997_v0 = vadd.f32 %v1666_v59, %v1017_v52  ;;  %v1032_v16 = vadd.f32 %v11025_v56, %v13702_v45  ;;  %v11131_v30 = vpop.f32.mrf.mxu0  ;;  %11390 = vmatmul.mubr.msk.f32.gmra.mxu0 %vm163_vm1, %v9583_v34  ;;  %11286 = vmatprep.mubr.msk.f32.mxu1 %vm163_vm1, %v18502_v37  ;;  %v9586_v45 = vld [vmem:[%s18270_s0 + $0x229] sm:$0xff]  ;;  %v18503_v56 = vld [vmem:[#allocation19_spill] sm:$0xff] }
 0x117   :  { %v1026_v40 = vpop.f32.mrf.mxu1  ;;  %11392 = vmatprep.mubr.msk.f32.mxu0 %vm163_vm1, %v9584_v36 }
 0x118   :  { %v14007_v31 = vadd.f32 %v11131_v30, %v1032_v16  ;;  %v1027_v52 = vadd.f32 %v1026_v40, %v13715_v51  ;;  %v1676_v59 = vpop.f32.mrf.mxu0  ;;  %v18504_v16 = vld [vmem:[#allocation20_spill] sm:$0xff]  ;;  %v9587_v30 = vld [vmem:[%s18270_s0 + $0x231] sm:$0xff] }
 0x119   :  { %v11028_v34 = vpop.f32.mrf.mxu1  ;;  %11287 = vmatmul.mubr.msk.f32.gmra.mxu1 %vm163_vm1, %v18503_v56 }
 0x11a   :  { %v14015_v7 = vadd.f32 %v1676_v59, %v1027_v52  ;;  %v1042_v36 = vadd.f32 %v11028_v34, %v13724_v57  ;;  %v11134_v37 = vpop.f32.mrf.mxu0  ;;  %11393 = vmatmul.mubr.msk.f32.gmra.mxu0 %vm163_vm1, %v9585_v4  ;;  %11289 = vmatprep.mubr.msk.f32.mxu1 %vm163_vm1, %v18504_v16  ;;  %v9588_v57 = vld [vmem:[%s18270_s0 + $0x241] sm:$0xff] }
 0x11b   :  { %v1036_v51 = vpop.f32.mrf.mxu1  ;;  %11395 = vmatprep.mubr.msk.f32.mxu0 %vm163_vm1, %v9586_v45  ;;  %v18505_v34 = vld [vmem:[#allocation21_spill] sm:$0xff] }
 0x11c   :  { %v14025_v40 = vadd.f32 %v11134_v37, %v1042_v36  ;;  %v1037_v52 = vadd.f32 %v1036_v51, %v13737_v63  ;;  %v1686_v59 = vpop.f32.mrf.mxu0  ;;  %v18506_v36 = vld [vmem:[#allocation22_spill] sm:$0xff] }
 0x11d   :  { %v11031_v4 = vpop.f32.mrf.mxu1  ;;  %11290 = vmatmul.mubr.msk.f32.gmra.mxu1 %vm163_vm1, %v18505_v34  ;;  %v9589_v37 = vld [vmem:[%s18270_s0 + $0x249] sm:$0xff] }
 0x11e   :  { %v14033_v56 = vadd.f32 %v1686_v59, %v1037_v52  ;;  %v1052_v45 = vadd.f32 %v11031_v4, %v13748_v5  ;;  %v11137_v16 = vpop.f32.mrf.mxu0  ;;  %11396 = vmatmul.mubr.msk.f32.gmra.mxu0 %vm163_vm1, %v9587_v30  ;;  %11292 = vmatprep.mubr.msk.f32.mxu1 %vm163_vm1, %v18506_v36  ;;  %v9590_v5 = vld [vmem:[%s18270_s0 + $0x259] sm:$0xff] }
 0x11f   :  { %v1046_v63 = vpop.f32.mrf.mxu1  ;;  %11398 = vmatprep.mubr.msk.f32.mxu0 %vm163_vm1, %v9588_v57  ;;  %v18507_v4 = vld [vmem:[#allocation23_spill] sm:$0xff] }
 0x120   :  { %v14043_v51 = vadd.f32 %v11137_v16, %v1052_v45  ;;  %v1047_v52 = vadd.f32 %v1046_v63, %v13763_v21  ;;  %v1696_v59 = vpop.f32.mrf.mxu0  ;;  %v18508_v45 = vld [vmem:[#allocation24_spill] sm:$0xff] }
 0x121   :  { %v11034_v30 = vpop.f32.mrf.mxu1  ;;  %11293 = vmatmul.mubr.msk.f32.gmra.mxu1 %vm163_vm1, %v18507_v4  ;;  %v9591_v16 = vld [vmem:[%s18270_s0 + $0x261] sm:$0xff] }
 0x122   :  { %v14051_v34 = vadd.f32 %v1696_v59, %v1047_v52  ;;  %v1062_v57 = vadd.f32 %v11034_v30, %v13773_v20  ;;  %v11140_v36 = vpop.f32.mrf.mxu0  ;;  %11399 = vmatmul.mubr.msk.f32.gmra.mxu0 %vm163_vm1, %v9589_v37  ;;  %11295 = vmatprep.mubr.msk.f32.mxu1 %vm163_vm1, %v18508_v45  ;;  %v9592_v20 = vld [vmem:[%s18270_s0 + $0x271] sm:$0xff]  ;;  %v18509_v30 = vld [vmem:[#allocation25_spill] sm:$0xff] }
 0x123   :  { %v1056_v21 = vpop.f32.mrf.mxu1  ;;  %11401 = vmatprep.mubr.msk.f32.mxu0 %vm163_vm1, %v9590_v5 }
 0x124   :  { %v14061_v63 = vadd.f32 %v11140_v36, %v1062_v57  ;;  %v1057_v52 = vadd.f32 %v1056_v21, %v13783_v23  ;;  %v1706_v59 = vpop.f32.mrf.mxu0  ;;  %v18510_v57 = vld [vmem:[#allocation26_spill] sm:$0xff]  ;;  %v9593_v36 = vld [vmem:[%s18270_s0 + $0x279] sm:$0xff] }
 0x125   :  { %v11037_v37 = vpop.f32.mrf.mxu1  ;;  %11296 = vmatmul.mubr.msk.f32.gmra.mxu1 %vm163_vm1, %v18509_v30 }
 0x126   :  { %v14069_v4 = vadd.f32 %v1706_v59, %v1057_v52  ;;  %v1072_v5 = vadd.f32 %v11037_v37, %v13789_v24  ;;  %v11143_v45 = vpop.f32.mrf.mxu0  ;;  %11402 = vmatmul.mubr.msk.f32.gmra.mxu0 %vm163_vm1, %v9591_v16  ;;  %11298 = vmatprep.mubr.msk.f32.mxu1 %vm163_vm1, %v18510_v57  ;;  %v9594_v24 = vld [vmem:[%s18270_s0 + $0x289] sm:$0xff]  ;;  %v18511_v37 = vld [vmem:[#allocation27_spill] sm:$0xff] }
 0x127   :  { %v1066_v23 = vpop.f32.mrf.mxu1  ;;  %11404 = vmatprep.mubr.msk.f32.mxu0 %vm163_vm1, %v9592_v20 }
 0x128   :  { %v14079_v21 = vadd.f32 %v11143_v45, %v1072_v5  ;;  %v1067_v52 = vadd.f32 %v1066_v23, %v13799_v46  ;;  %v1716_v59 = vpop.f32.mrf.mxu0  ;;  %v18512_v5 = vld [vmem:[#allocation28_spill] sm:$0xff]  ;;  %v9595_v45 = vld [vmem:[%s18270_s0 + $0x291] sm:$0xff] }
 0x129   :  { %v11040_v16 = vpop.f32.mrf.mxu1  ;;  %11299 = vmatmul.mubr.msk.f32.gmra.mxu1 %vm163_vm1, %v18511_v37 }
 0x12a   :  { %v14087_v30 = vadd.f32 %v1716_v59, %v1067_v52  ;;  %v1082_v20 = vadd.f32 %v11040_v16, %v13805_v32  ;;  %v11146_v57 = vpop.f32.mrf.mxu0  ;;  %11405 = vmatmul.mubr.msk.f32.gmra.mxu0 %vm163_vm1, %v9593_v36  ;;  %11301 = vmatprep.mubr.msk.f32.mxu1 %vm163_vm1, %v18512_v5  ;;  %v9596_v32 = vld [vmem:[%s18270_s0 + $0x2a1] sm:$0xff] }
 0x12b   :  { %v1076_v46 = vpop.f32.mrf.mxu1  ;;  %11407 = vmatprep.mubr.msk.f32.mxu0 %vm163_vm1, %v9594_v24  ;;  %v18513_v16 = vld [vmem:[#allocation29_spill] sm:$0xff] }
 0x12c   :  { %v14097_v23 = vadd.f32 %v11146_v57, %v1082_v20  ;;  %v1077_v52 = vadd.f32 %v1076_v46, %v13815_v50  ;;  %v1726_v59 = vpop.f32.mrf.mxu0  ;;  %v18514_v20 = vld [vmem:[#allocation30_spill] sm:$0xff] }
 0x12d   :  { %v11043_v36 = vpop.f32.mrf.mxu1  ;;  %11302 = vmatmul.mubr.msk.f32.gmra.mxu1 %vm163_vm1, %v18513_v16  ;;  %v9597_v57 = vld [vmem:[%s18270_s0 + $0x2a9] sm:$0xff] }
 0x12e   :  { %v14105_v37 = vadd.f32 %v1726_v59, %v1077_v52  ;;  %v1092_v24 = vadd.f32 %v11043_v36, %v13821_v42  ;;  %v11149_v5 = vpop.f32.mrf.mxu0  ;;  %11408 = vmatmul.mubr.msk.f32.gmra.mxu0 %vm163_vm1, %v9595_v45  ;;  %11304 = vmatprep.mubr.msk.f32.mxu1 %vm163_vm1, %v18514_v20  ;;  %v9598_v42 = vld [vmem:[%s18270_s0 + $0x2b9] sm:$0xff] }
 0x12f   :  { %v1086_v50 = vpop.f32.mrf.mxu1  ;;  %11410 = vmatprep.mubr.msk.f32.mxu0 %vm163_vm1, %v9596_v32  ;;  %v18515_v36 = vld [vmem:[#allocation31_spill] sm:$0xff] }
 0x130   :  { %v14115_v46 = vadd.f32 %v11149_v5, %v1092_v24  ;;  %v1087_v52 = vadd.f32 %v1086_v50, %v13831_v54  ;;  %v1736_v59 = vpop.f32.mrf.mxu0  ;;  %v18516_v24 = vld [vmem:[#allocation32_spill] sm:$0xff] }
 0x131   :  { %v11046_v45 = vpop.f32.mrf.mxu1  ;;  %11305 = vmatmul.mubr.msk.f32.gmra.mxu1 %vm163_vm1, %v18515_v36  ;;  %v9599_v5 = vld [vmem:[%s18270_s0 + $0x2c1] sm:$0xff] }
 0x132   :  { %v14123_v16 = vadd.f32 %v1736_v59, %v1087_v52  ;;  %v1102_v32 = vadd.f32 %v11046_v45, %v13837_v53  ;;  %v11152_v20 = vpop.f32.mrf.mxu0  ;;  %11411 = vmatmul.mubr.msk.f32.gmra.mxu0 %vm163_vm1, %v9597_v57  ;;  %11307 = vmatprep.mubr.msk.f32.mxu1 %vm163_vm1, %v18516_v24  ;;  %v9600_v53 = vld [vmem:[%s18270_s0 + $0x2d1] sm:$0xff]  ;;  %v18517_v45 = vld [vmem:[#allocation33_spill] sm:$0xff] }
 0x133   :  { %v1096_v54 = vpop.f32.mrf.mxu1  ;;  %11413 = vmatprep.mubr.msk.f32.mxu0 %vm163_vm1, %v9598_v42 }
 0x134   :  { %v14133_v50 = vadd.f32 %v11152_v20, %v1102_v32  ;;  %v1097_v52 = vadd.f32 %v1096_v54, %v13847_v58  ;;  %v1746_v59 = vpop.f32.mrf.mxu0  ;;  %v18518_v32 = vld [vmem:[#allocation34_spill] sm:$0xff]  ;;  %v9601_v20 = vld [vmem:[%s18270_s0 + $0x2d9] sm:$0xff] }
 0x135   :  { %v11049_v57 = vpop.f32.mrf.mxu1  ;;  %11308 = vmatmul.mubr.msk.f32.gmra.mxu1 %vm163_vm1, %v18517_v45 }
 0x136   :  { %v14141_v36 = vadd.f32 %v1746_v59, %v1097_v52  ;;  %v1112_v42 = vadd.f32 %v11049_v57, %v13853_v1  ;;  %v11155_v24 = vpop.f32.mrf.mxu0  ;;  %11414 = vmatmul.mubr.msk.f32.gmra.mxu0 %vm163_vm1, %v9599_v5  ;;  %11310 = vmatprep.mubr.msk.f32.mxu1 %vm163_vm1, %v18518_v32  ;;  %v9602_v1 = vld [vmem:[%s18270_s0 + $0x2e9] sm:$0xff]  ;;  %v18519_v57 = vld [vmem:[#allocation35_spill] sm:$0xff] }
 0x137   :  { %v1106_v58 = vpop.f32.mrf.mxu1  ;;  %11416 = vmatprep.mubr.msk.f32.mxu0 %vm163_vm1, %v9600_v53 }
 0x138   :  { %v14151_v54 = vadd.f32 %v11155_v24, %v1112_v42  ;;  %v1107_v52 = vadd.f32 %v1106_v58, %v13863_v62  ;;  %v1756_v59 = vpop.f32.mrf.mxu0  ;;  %v18520_v42 = vld [vmem:[#allocation36_spill] sm:$0xff]  ;;  %v9603_v24 = vld [vmem:[%s18270_s0 + $0x2f1] sm:$0xff] }
 0x139   :  { %v11052_v5 = vpop.f32.mrf.mxu1  ;;  %11311 = vmatmul.mubr.msk.f32.gmra.mxu1 %vm163_vm1, %v18519_v57 }
 0x13a   :  { %v14159_v45 = vadd.f32 %v1756_v59, %v1107_v52  ;;  %v1122_v53 = vadd.f32 %v11052_v5, %v13869_v22  ;;  %v11158_v32 = vpop.f32.mrf.mxu0  ;;  %11417 = vmatmul.mubr.msk.f32.gmra.mxu0 %vm163_vm1, %v9601_v20  ;;  %11313 = vmatprep.mubr.msk.f32.mxu1 %vm163_vm1, %v18520_v42  ;;  %v9604_v22 = vld [vmem:[%s18270_s0 + $0x301] sm:$0xff] }
 0x13b   :  { %v1116_v62 = vpop.f32.mrf.mxu1  ;;  %11419 = vmatprep.mubr.msk.f32.mxu0 %vm163_vm1, %v9602_v1  ;;  %v18521_v5 = vld [vmem:[#allocation37_spill] sm:$0xff] }
 0x13c   :  { %v14169_v58 = vadd.f32 %v11158_v32, %v1122_v53  ;;  %v1117_v52 = vadd.f32 %v1116_v62, %v13879_v2  ;;  %v1766_v59 = vpop.f32.mrf.mxu0  ;;  %v18522_v53 = vld [vmem:[#allocation38_spill] sm:$0xff] }
 0x13d   :  { %v11055_v20 = vpop.f32.mrf.mxu1  ;;  %11314 = vmatmul.mubr.msk.f32.gmra.mxu1 %vm163_vm1, %v18521_v5  ;;  %v9605_v32 = vld [vmem:[%s18270_s0 + $0x309] sm:$0xff] }
 0x13e   :  { %v14177_v57 = vadd.f32 %v1766_v59, %v1117_v52  ;;  %v1132_v1 = vadd.f32 %v11055_v20, %v13885_v38  ;;  %v11161_v42 = vpop.f32.mrf.mxu0  ;;  %11420 = vmatmul.mubr.msk.f32.gmra.mxu0 %vm163_vm1, %v9603_v24  ;;  %11316 = vmatprep.mubr.msk.f32.mxu1 %vm163_vm1, %v18522_v53  ;;  %v9606_v38 = vld [vmem:[%s18270_s0 + $0x319] sm:$0xff] }
 0x13f   :  { %v1126_v2 = vpop.f32.mrf.mxu1  ;;  %11422 = vmatprep.mubr.msk.f32.mxu0 %vm163_vm1, %v9604_v22 }
 0x140   :  { %v14187_v62 = vadd.f32 %v11161_v42, %v1132_v1  ;;  %v1127_v52 = vadd.f32 %v1126_v2, %v13895_v6  ;;  %v1776_v59 = vpop.f32.mrf.mxu0  ;;  %v18523_v1 = vld [vmem:[#allocation39_spill] sm:$0xff]  ;;  %v9607_v42 = vld [vmem:[%s18270_s0 + $0x321] sm:$0xff] }
 0x141   :  { %v11058_v24 = vpop.f32.mrf.mxu1  ;;  %11317 = vmatmul.mubr.msk.f32.gmra.mxu1 %vm163_vm1, %v13612_v19  ;;  %v9474_v19 = vld [vmem:[%s18270_s0 + $0x330] sm:$0xff] }
 0x142   :  { %v14195_v20 = vadd.f32 %v1776_v59, %v1127_v52  ;;  %v1142_v22 = vadd.f32 %v11058_v24, %v13901_v61  ;;  %v11164_v5 = vpop.f32.mrf.mxu0  ;;  %11423 = vmatmul.mubr.msk.f32.gmra.mxu0 %vm163_vm1, %v9605_v32  ;;  %11319 = vmatprep.mubr.msk.f32.mxu1 %vm163_vm1, %v18523_v1  ;;  %v9608_v32 = vld [vmem:[%s18270_s0 + $0x331] sm:$0xff] }
 0x143   :  { %v1136_v6 = vpop.f32.mrf.mxu1  ;;  %11425 = vmatprep.mubr.msk.f32.mxu0 %vm163_vm1, %v9606_v38 }
 0x144   :  { %v14208_v53 = vadd.f32 %v11164_v5, %v1142_v22  ;;  %v1137_v61 = vadd.f32 %v1136_v6, %v13914_v49  ;;  %v1786_v2 = vpop.f32.mrf.mxu0  ;;  %v9475_v49 = vld [vmem:[%s18270_s0 + $0x338] sm:$0xff] }
 0x145   :  { %v11061_v52 = vpop.f32.mrf.mxu1  ;;  %11320 = vmatmul.mubr.msk.f32.gmra.mxu1 %vm163_vm1, %v13634_v55  ;;  %v9609_v55 = vld [vmem:[%s18270_s0 + $0x339] sm:$0xff] }
 0x146   :  { %v14216_v59 = vadd.f32 %v1786_v2, %v1137_v61  ;;  %v1152_v38 = vadd.f32 %v11061_v52, %v13923_v29  ;;  %v11167_v24 = vpop.f32.mrf.mxu0  ;;  %11426 = vmatmul.mubr.msk.f32.gmra.mxu0 %vm163_vm1, %v9607_v42  ;;  %11322 = vmatprep.mubr.msk.f32.mxu1 %vm163_vm1, %v9474_v19  ;;  %v9680_v29 = vld [vmem:[%s18270_s0 + $0x1a] sm:$0xff]  ;;  %v9814_v42 = vld [vmem:[%s18270_s0 + $0x30] sm:$0xff] }
 0x147   :  { %v1146_v22 = vpop.f32.mrf.mxu1  ;;  %11428 = vmatprep.mubr.msk.f32.mxu0 %vm163_vm1, %v9608_v32 }
 0x148   :  { %v14231_v5 = vadd.f32 %v11167_v24, %v1152_v38  ;;  %v1147_v1 = vadd.f32 %v1146_v22, %v13937_v25  ;;  %v1796_v6 = vpop.f32.mrf.mxu0  ;;  %v9681_v25 = vld [vmem:[%s18270_s0 + $0x22] sm:$0xff]  ;;  %v9815_v38 = vld [vmem:[%s18270_s0 + $0x38] sm:$0xff] }
 0x149   :  { %v11064_v19 = vpop.f32.mrf.mxu1  ;;  %11323 = vmatmul.mubr.msk.f32.gmra.mxu1 %vm163_vm1, %v9475_v49  ;;  %v9682_v22 = vld [vmem:[%s18270_s0 + $0x32] sm:$0xff] }
 0x14a   :  { %v14238_v61 = vadd.f32 %v1796_v6, %v1147_v1  ;;  %v1162_v2 = vadd.f32 %v11064_v19, %v13945_v10  ;;  %v11170_v32 = vpop.f32.mrf.mxu0  ;;  %11429 = vmatmul.mubr.msk.f32.gmra.mxu0 %vm163_vm1, %v9609_v55  ;;  %11441 = vmatprep.mubr.msk.f32.mxu1 %vm163_vm1, %v9680_v29  ;;  %v9816_v29 = vld [vmem:[%s18270_s0 + $0x48] sm:$0xff]  ;;  %v10015_v1 = vld [vmem:[%s18272_s2 + $0x130] sm:$0xff]  ;;  %v9683_v19 = vld [vmem:[%s18270_s0 + $0x3a] sm:$0xff] }
 0x14b   :  { %v1156_v52 = vpop.f32.mrf.mxu1  ;;  %11547 = vmatprep.mubr.msk.f32.mxu0 %vm163_vm1, %v9814_v42 }
 0x14c   :  { %v14250_v24 = vadd.f32 %v11170_v32, %v1162_v2  ;;  %v1157_v10 = vadd.f32 %v1156_v52, %v13956_v60  ;;  %v1806_v49 = vpop.f32.mrf.mxu0  ;;  %v10149_v2 = vld [vmem:[%s18272_s2 + $0x158] sm:$0xff] }
 0x14d   :  { %v11067_v55 = vpop.f32.mrf.mxu1  ;;  %11442 = vmatmul.mubr.msk.f32.vlgmr.msra.gmra.mxu1 %vm163_vm1, %v9681_v25 }
 0x14e   :  { %v14263_v6 = vadd.f32 %v1806_v49, %v1157_v10  ;;  %v1172_v60 = vadd.f32 %v11067_v55, %v13647_v13  ;;  %v11173_v42 = vpop.f32.mrf.mxu0  ;;  %11548 = vmatmul.mubr.msk.f32.vlgmr.msra.gmra.mxu0 %vm163_vm1, %v9815_v38  ;;  %11644 = vmatpush3.msk.msra.mxu1 %vm356_vm0, %v13746_v33  ;;  %v9817_v13 = vld [vmem:[%s18270_s0 + $0x50] sm:$0xff]  ;;  %v9818_v10 = vld [vmem:[%s18270_s0 + $0x60] sm:$0xff]  ;;  %v10014_v49 = vld [vmem:[%s18272_s2 + $0x128] sm:$0xff] }
 0x14f   :  { %v1166_v32 = vpop.f32.mrf.mxu1  ;;  %11444 = vmatprep.mubr.msk.f32.mxu1 %vm163_vm1, %v9682_v22  ;;  %11750 = vmatpush3.msk.msra.mxu0 %vm356_vm0, %v13757_v35  ;;  %v9684_v33 = vld [vmem:[%s18270_s0 + $0x4a] sm:$0xff] }
 0x150   :  { %v14284_v25 = vadd.f32 %v11173_v42, %v1172_v60  ;;  %v1167_v52 = vadd.f32 %v1166_v32, %v13663_v26  ;;  %v1816_v38 = vpop.f32.mrf.mxu0  ;;  %11550 = vmatprep.mubr.msk.f32.mxu0 %vm163_vm1, %v9816_v29  ;;  %11645 = vmatprep.subr.mxu1 %v10015_v1  ;;  %v9685_v29 = vld [vmem:[%s18270_s0 + $0x52] sm:$0xff] }
 0x151   :  { %v11070_v35 = vpop.f32.mrf.mxu1  ;;  %11445 = vmatmul.mubr.msk.f32.gmra.mxu1 %vm163_vm1, %v9683_v19  ;;  %11751 = vmatprep.subr.mxu0 %v10149_v2  ;;  %v10148_v60 = vld [vmem:[%s18272_s2 + $0x150] sm:$0xff]  ;;  %v9686_v19 = vld [vmem:[%s18270_s0 + $0x62] sm:$0xff] }
 0x152   :  { %v14295_v22 = vadd.f32 %v1816_v38, %v1167_v52  ;;  %v1182_v26 = vadd.f32 %v11070_v35, %v13673_v15  ;;  %v11176_v55 = vpop.f32.mrf.mxu0  ;;  %11551 = vmatmul.mubr.msk.f32.gmra.mxu0 %vm163_vm1, %v9817_v13  ;;  %11447 = vmatprep.mubr.msk.f32.mxu1 %vm163_vm1, %v9684_v33  ;;  %v9819_v15 = vld [vmem:[%s18270_s0 + $0x68] sm:$0xff]  ;;  %v9820_v52 = vld [vmem:[%s18270_s0 + $0x78] sm:$0xff] }
 0x153   :  { %v1176_v42 = vpop.f32.mrf.mxu1  ;;  %11553 = vmatprep.mubr.msk.f32.mxu0 %vm163_vm1, %v9818_v10  ;;  %11646 = vmatpush3.msra.mxu1 %v10015_v1  ;;  %v10013_v10 = vld [vmem:[%s18272_s2 + $0x120] sm:$0xff] }
 0x154   :  { %v14313_v32 = vadd.f32 %v11176_v55, %v1182_v26  ;;  %v1177_v13 = vadd.f32 %v1176_v42, %v13689_v14  ;;  %v1826_v33 = vpop.f32.mrf.mxu0  ;;  %11752 = vmatpush3.msra.mxu0 %v10149_v2  ;;  %11647 = vmatprep.subr.mxu1 %v10014_v49  ;;  %v9687_v2 = vld [vmem:[%s18270_s0 + $0x6a] sm:$0xff] }
 0x155   :  { %v11073_v38 = vpop.f32.mrf.mxu1  ;;  %11448 = vmatmul.mubr.msk.f32.gmra.mxu1 %vm163_vm1, %v9685_v29  ;;  %11753 = vmatprep.subr.mxu0 %v10148_v60  ;;  %v10147_v26 = vld [vmem:[%s18272_s2 + $0x148] sm:$0xff]  ;;  %v9688_v29 = vld [vmem:[%s18270_s0 + $0x7a] sm:$0xff] }
 0x156   :  { %v14323_v1 = vadd.f32 %v1826_v33, %v1177_v13  ;;  %v1192_v35 = vadd.f32 %v11073_v38, %v13695_v3  ;;  %v11179_v14 = vpop.f32.mrf.mxu0  ;;  %11554 = vmatmul.mubr.msk.f32.gmra.mxu0 %vm163_vm1, %v9819_v15  ;;  %11450 = vmatprep.mubr.msk.f32.mxu1 %vm163_vm1, %v9686_v19  ;;  %v9821_v3 = vld [vmem:[%s18270_s0 + $0x80] sm:$0xff]  ;;  %v9822_v13 = vld [vmem:[%s18270_s0 + $0x90] sm:$0xff] }
 0x157   :  { %v1186_v55 = vpop.f32.mrf.mxu1  ;;  %11556 = vmatprep.mubr.msk.f32.mxu0 %vm163_vm1, %v9820_v52  ;;  %11648 = vmatpush3.msra.mxu1 %v10014_v49  ;;  %v10012_v52 = vld [vmem:[%s18272_s2 + $0x118] sm:$0xff] }
 0x158   :  { %v14341_v42 = vadd.f32 %v11179_v14, %v1192_v35  ;;  %v1187_v15 = vadd.f32 %v1186_v55, %v13711_v43  ;;  %v1836_v19 = vpop.f32.mrf.mxu0  ;;  %11754 = vmatpush3.msra.mxu0 %v10148_v60  ;;  %11649 = vmatprep.subr.mxu1 %v10013_v10  ;;  %v9689_v60 = vld [vmem:[%s18270_s0 + $0x82] sm:$0xff] }
 0x159   :  { %v11076_v33 = vpop.f32.mrf.mxu1  ;;  %11451 = vmatmul.mubr.msk.f32.gmra.mxu1 %vm163_vm1, %v9687_v2  ;;  %11755 = vmatprep.subr.mxu0 %v10147_v26  ;;  %v10146_v35 = vld [vmem:[%s18272_s2 + $0x140] sm:$0xff]  ;;  %v9690_v2 = vld [vmem:[%s18270_s0 + $0x92] sm:$0xff] }
 0x15a   :  { %v14351_v49 = vadd.f32 %v1836_v19, %v1187_v15  ;;  %v1202_v38 = vadd.f32 %v11076_v33, %v13717_v12  ;;  %v11182_v43 = vpop.f32.mrf.mxu0  ;;  %11557 = vmatmul.mubr.msk.f32.gmra.mxu0 %vm163_vm1, %v9821_v3  ;;  %11453 = vmatprep.mubr.msk.f32.mxu1 %vm163_vm1, %v9688_v29  ;;  %v9823_v12 = vld [vmem:[%s18270_s0 + $0x98] sm:$0xff]  ;;  %v9824_v15 = vld [vmem:[%s18270_s0 + $0xa8] sm:$0xff] }
 0x15b   :  { %v1196_v14 = vpop.f32.mrf.mxu1  ;;  %11559 = vmatprep.mubr.msk.f32.mxu0 %vm163_vm1, %v9822_v13  ;;  %11650 = vmatpush3.msra.mxu1 %v10013_v10 }
 0x15c   :  { %v14369_v55 = vadd.f32 %v11182_v43, %v1202_v38  ;;  %v1197_v3 = vadd.f32 %v1196_v14, %v13733_v9  ;;  %v1846_v29 = vpop.f32.mrf.mxu0  ;;  %11756 = vmatpush3.msra.mxu0 %v10147_v26  ;;  %11651 = vmatprep.subr.mxu1 %v10012_v52  ;;  %v9691_v9 = vld [vmem:[%s18270_s0 + $0x9a] sm:$0xff]  ;;  %v9825_v26 = vld [vmem:[%s18270_s0 + $0xb0] sm:$0xff] }
 0x15d   :  { %v11079_v19 = vpop.f32.mrf.mxu1  ;;  %11454 = vmatmul.mubr.msk.f32.gmra.mxu1 %vm163_vm1, %v9689_v60  ;;  %11757 = vmatprep.subr.mxu0 %v10146_v35 }
 0x15e   :  { %v14376_v13 = vadd.f32 %v1846_v29, %v1197_v3  ;;  %v1212_v33 = vadd.f32 %v11079_v19, %v13739_v17  ;;  %v11185_v10 = vpop.f32.mrf.mxu0  ;;  %11560 = vmatmul.mubr.msk.f32.gmra.mxu0 %vm163_vm1, %v9823_v12  ;;  %11456 = vmatprep.mubr.msk.f32.mxu1 %vm163_vm1, %v9690_v2  ;;  %v9692_v17 = vld [vmem:[%s18270_s0 + $0xaa] sm:$0xff]  ;;  %v9826_v12 = vld [vmem:[%s18270_s0 + $0xc0] sm:$0xff] }
 0x15f   :  { %v1206_v38 = vpop.f32.mrf.mxu1  ;;  %11562 = vmatprep.mubr.msk.f32.mxu0 %vm163_vm1, %v9824_v15  ;;  %11652 = vmatpush3.msra.mxu1 %v10012_v52 }
 0x160   :  { %v14391_v43 = vadd.f32 %v11185_v10, %v1212_v33  ;;  %v1207_v60 = vadd.f32 %v1206_v38, %v13759_v11  ;;  %v1856_v14 = vpop.f32.mrf.mxu0  ;;  %11758 = vmatpush3.msra.mxu0 %v10146_v35  ;;  %v9693_v11 = vld [vmem:[%s18270_s0 + $0xb2] sm:$0xff]  ;;  %v9827_v35 = vld [vmem:[%s18270_s0 + $0xc8] sm:$0xff] }
 0x161   :  { %v11082_v2 = vpop.f32.mrf.mxu1  ;;  %11457 = vmatmul.mubr.msk.f32.gmra.mxu1 %vm163_vm1, %v9691_v9  ;;  %v9828_v9 = vld [vmem:[%s18270_s0 + $0xd8] sm:$0xff] }
 0x162   :  { %v14398_v3 = vadd.f32 %v1856_v14, %v1207_v60  ;;  %v1222_v29 = vadd.f32 %v11082_v2, %v13767_v39  ;;  %v11188_v15 = vpop.f32.mrf.mxu0  ;;  %11563 = vmatmul.mubr.msk.f32.gmra.mxu0 %vm163_vm1, %v9825_v26  ;;  %11459 = vmatprep.mubr.msk.f32.mxu1 %vm163_vm1, %v9692_v17  ;;  %v9694_v39 = vld [vmem:[%s18270_s0 + $0xc2] sm:$0xff] }
 0x163   :  { %v1216_v52 = vpop.f32.mrf.mxu1  ;;  %11565 = vmatprep.mubr.msk.f32.mxu0 %vm163_vm1, %v9826_v12  ;;  %v9829_v12 = vld [vmem:[%s18270_s0 + $0xe0] sm:$0xff] }
 0x164   :  { %v14413_v19 = vadd.f32 %v11188_v15, %v1222_v29  ;;  %v1217_v33 = vadd.f32 %v1216_v52, %v13779_v41  ;;  %v1866_v10 = vpop.f32.mrf.mxu0  ;;  %v9695_v41 = vld [vmem:[%s18270_s0 + $0xca] sm:$0xff] }
 0x165   :  { %v11085_v38 = vpop.f32.mrf.mxu1  ;;  %11460 = vmatmul.mubr.msk.f32.gmra.mxu1 %vm163_vm1, %v9693_v11  ;;  %v9830_v11 = vld [vmem:[%s18270_s0 + $0xf0] sm:$0xff] }
 0x166   :  { %v14420_v26 = vadd.f32 %v1866_v10, %v1217_v33  ;;  %v1232_v17 = vadd.f32 %v11085_v38, %v13785_v27  ;;  %v11191_v60 = vpop.f32.mrf.mxu0  ;;  %11566 = vmatmul.mubr.msk.f32.gmra.mxu0 %vm163_vm1, %v9827_v35  ;;  %11462 = vmatprep.mubr.msk.f32.mxu1 %vm163_vm1, %v9694_v39  ;;  %v9696_v27 = vld [vmem:[%s18270_s0 + $0xda] sm:$0xff] }
 0x167   :  { %v1226_v14 = vpop.f32.mrf.mxu1  ;;  %11568 = vmatprep.mubr.msk.f32.mxu0 %vm163_vm1, %v9828_v9  ;;  %v9831_v9 = vld [vmem:[%s18270_s0 + $0xf8] sm:$0xff] }
 0x168   :  { %v14435_v2 = vadd.f32 %v11191_v60, %v1232_v17  ;;  %v1227_v29 = vadd.f32 %v1226_v14, %v13795_v44  ;;  %v1876_v15 = vpop.f32.mrf.mxu0  ;;  %v9697_v44 = vld [vmem:[%s18270_s0 + $0xe2] sm:$0xff] }
 0x169   :  { %v11088_v52 = vpop.f32.mrf.mxu1  ;;  %11463 = vmatmul.mubr.msk.f32.gmra.mxu1 %vm163_vm1, %v9695_v41  ;;  %v9832_v41 = vld [vmem:[%s18270_s0 + $0x108] sm:$0xff] }
 0x16a   :  { %v14442_v35 = vadd.f32 %v1876_v15, %v1227_v29  ;;  %v1242_v39 = vadd.f32 %v11088_v52, %v13801_v28  ;;  %v11194_v33 = vpop.f32.mrf.mxu0  ;;  %11569 = vmatmul.mubr.msk.f32.gmra.mxu0 %vm163_vm1, %v9829_v12  ;;  %11465 = vmatprep.mubr.msk.f32.mxu1 %vm163_vm1, %v9696_v27  ;;  %v9698_v28 = vld [vmem:[%s18270_s0 + $0xf2] sm:$0xff]  ;;  %v18524_v27 = vld [vmem:[#allocation40_spill] sm:$0xff] }
 0x16b   :  { %v1236_v10 = vpop.f32.mrf.mxu1  ;;  %11571 = vmatprep.mubr.msk.f32.mxu0 %vm163_vm1, %v9830_v11  ;;  %v9833_v52 = vld [vmem:[%s18270_s0 + $0x110] sm:$0xff] }
 0x16c   :  { %v14457_v38 = vadd.f32 %v11194_v33, %v1242_v39  ;;  %v1237_v17 = vadd.f32 %v1236_v10, %v13811_v48  ;;  %v1886_v60 = vpop.f32.mrf.mxu0  ;;  %v9699_v48 = vld [vmem:[%s18270_s0 + $0xfa] sm:$0xff]  ;;  %v9700_v39 = vld [vmem:[%s18270_s0 + $0x10a] sm:$0xff] }
 0x16d   :  { %v11091_v14 = vpop.f32.mrf.mxu1  ;;  %11466 = vmatmul.mubr.msk.f32.gmra.mxu1 %vm163_vm1, %v9697_v44  ;;  %v18526_v44 = vld [vmem:[#allocation41_spill] sm:$0xff] }
 0x16e   :  { %v14464_v12 = vadd.f32 %v1886_v60, %v1237_v17  ;;  %v1252_v29 = vadd.f32 %v11091_v14, %v18524_v27  ;;  %v11197_v15 = vpop.f32.mrf.mxu0  ;;  %11572 = vmatmul.mubr.msk.f32.gmra.mxu0 %vm163_vm1, %v9831_v9  ;;  %11468 = vmatprep.mubr.msk.f32.mxu1 %vm163_vm1, %v9698_v28  ;;  %v9834_v28 = vld [vmem:[%s18270_s0 + $0x120] sm:$0xff] }
 0x16f   :  { %v1246_v11 = vpop.f32.mrf.mxu1  ;;  %11574 = vmatprep.mubr.msk.f32.mxu0 %vm163_vm1, %v9832_v41  ;;  %v18528_v41 = vld [vmem:[#allocation42_spill] sm:$0xff] }
 0x170   :  { %v14479_v33 = vadd.f32 %v11197_v15, %v1252_v29  ;;  %v1247_v10 = vadd.f32 %v1246_v11, %v18526_v44  ;;  %v1896_v9 = vpop.f32.mrf.mxu0  ;;  %v9701_v29 = vld [vmem:[%s18270_s0 + $0x112] sm:$0xff]  ;;  %v9702_v11 = vld [vmem:[%s18270_s0 + $0x122] sm:$0xff] }
 0x171   :  { %v11094_v17 = vpop.f32.mrf.mxu1  ;;  %11469 = vmatmul.mubr.msk.f32.gmra.mxu1 %vm163_vm1, %v9699_v48  ;;  %v9835_v48 = vld [vmem:[%s18270_s0 + $0x128] sm:$0xff] }
 0x172   :  { %18525 = vst [vmem:[#allocation13_spill] sm:$0xff] %v14479_v33  ;;  %v14486_v60 = vadd.f32 %v1896_v9, %v1247_v10  ;;  %v1262_v14 = vadd.f32 %v11094_v17, %v18528_v41  ;;  %v11200_v27 = vpop.f32.mrf.mxu0  ;;  %11575 = vmatmul.mubr.msk.f32.gmra.mxu0 %vm163_vm1, %v9833_v52  ;;  %11471 = vmatprep.mubr.msk.f32.mxu1 %vm163_vm1, %v9700_v39  ;;  %v18530_v52 = vld [vmem:[#allocation43_spill] sm:$0xff]  ;;  %v18532_v41 = vld [vmem:[#allocation44_spill] sm:$0xff] }
 0x173   :  { %v1256_v15 = vpop.f32.mrf.mxu1  ;;  %11577 = vmatprep.mubr.msk.f32.mxu0 %vm163_vm1, %v9834_v28  ;;  %v9836_v9 = vld [vmem:[%s18270_s0 + $0x138] sm:$0xff] }
 0x174   :  { %18527 = vst [vmem:[#allocation14_spill] sm:$0xff] %v14486_v60  ;;  %v14501_v44 = vadd.f32 %v11200_v27, %v1262_v14  ;;  %v1257_v10 = vadd.f32 %v1256_v15, %v18530_v52  ;;  %v1906_v39 = vpop.f32.mrf.mxu0  ;;  %v9703_v14 = vld [vmem:[%s18270_s0 + $0x12a] sm:$0xff]  ;;  %v9704_v15 = vld [vmem:[%s18270_s0 + $0x13a] sm:$0xff] }
 0x175   :  { %v11097_v17 = vpop.f32.mrf.mxu1  ;;  %11472 = vmatmul.mubr.msk.f32.gmra.mxu1 %vm163_vm1, %v9701_v29  ;;  %v9837_v29 = vld [vmem:[%s18270_s0 + $0x140] sm:$0xff] }
 0x176   :  { %18529 = vst [vmem:[#allocation15_spill] sm:$0xff] %v14501_v44  ;;  %v14508_v28 = vadd.f32 %v1906_v39, %v1257_v10  ;;  %v1272_v60 = vadd.f32 %v11097_v17, %v18532_v41  ;;  %v11203_v33 = vpop.f32.mrf.mxu0  ;;  %11578 = vmatmul.mubr.msk.f32.gmra.mxu0 %vm163_vm1, %v9835_v48  ;;  %11474 = vmatprep.mubr.msk.f32.mxu1 %vm163_vm1, %v9702_v11  ;;  %v18534_v48 = vld [vmem:[#allocation45_spill] sm:$0xff]  ;;  %v9838_v39 = vld [vmem:[%s18270_s0 + $0x150] sm:$0xff] }
 0x177   :  { %v1266_v27 = vpop.f32.mrf.mxu1  ;;  %11580 = vmatprep.mubr.msk.f32.mxu0 %vm163_vm1, %v9836_v9  ;;  %v18536_v41 = vld [vmem:[#allocation46_spill] sm:$0xff] }
 0x178   :  { %18531 = vst [vmem:[#allocation16_spill] sm:$0xff] %v14508_v28  ;;  %v14523_v52 = vadd.f32 %v11203_v33, %v1272_v60  ;;  %v1267_v10 = vadd.f32 %v1266_v27, %v18534_v48  ;;  %v1916_v11 = vpop.f32.mrf.mxu0  ;;  %v9705_v33 = vld [vmem:[%s18270_s0 + $0x142] sm:$0xff]  ;;  %v9706_v27 = vld [vmem:[%s18270_s0 + $0x152] sm:$0xff] }
 0x179   :  { %v11100_v17 = vpop.f32.mrf.mxu1  ;;  %11475 = vmatmul.mubr.msk.f32.gmra.mxu1 %vm163_vm1, %v9703_v14  ;;  %v9839_v14 = vld [vmem:[%s18270_s0 + $0x158] sm:$0xff] }
 0x17a   :  { %18533 = vst [vmem:[#allocation17_spill] sm:$0xff] %v14523_v52  ;;  %v14530_v9 = vadd.f32 %v1916_v11, %v1267_v10  ;;  %v1282_v28 = vadd.f32 %v11100_v17, %v18536_v41  ;;  %v11206_v44 = vpop.f32.mrf.mxu0  ;;  %11581 = vmatmul.mubr.msk.f32.gmra.mxu0 %vm163_vm1, %v9837_v29  ;;  %11477 = vmatprep.mubr.msk.f32.mxu1 %vm163_vm1, %v9704_v15  ;;  %v18538_v29 = vld [vmem:[#allocation47_spill] sm:$0xff]  ;;  %v9840_v11 = vld [vmem:[%s18270_s0 + $0x168] sm:$0xff]  ;;  %v18540_v41 = vld [vmem:[#allocation48_spill] sm:$0xff] }
 0x17b   :  { %v1276_v60 = vpop.f32.mrf.mxu1  ;;  %11583 = vmatprep.mubr.msk.f32.mxu0 %vm163_vm1, %v9838_v39 }
 0x17c   :  { %18535 = vst [vmem:[#allocation18_spill] sm:$0xff] %v14530_v9  ;;  %v14545_v48 = vadd.f32 %v11206_v44, %v1282_v28  ;;  %v1277_v10 = vadd.f32 %v1276_v60, %v18538_v29  ;;  %v1926_v15 = vpop.f32.mrf.mxu0  ;;  %v9707_v44 = vld [vmem:[%s18270_s0 + $0x15a] sm:$0xff]  ;;  %v9708_v60 = vld [vmem:[%s18270_s0 + $0x16a] sm:$0xff] }
 0x17d   :  { %v11103_v17 = vpop.f32.mrf.mxu1  ;;  %11478 = vmatmul.mubr.msk.f32.gmra.mxu1 %vm163_vm1, %v9705_v33  ;;  %v9841_v33 = vld [vmem:[%s18270_s0 + $0x170] sm:$0xff] }
 0x17e   :  { %18537 = vst [vmem:[#allocation19_spill] sm:$0xff] %v14545_v48  ;;  %v14552_v39 = vadd.f32 %v1926_v15, %v1277_v10  ;;  %v1292_v9 = vadd.f32 %v11103_v17, %v18540_v41  ;;  %v11209_v52 = vpop.f32.mrf.mxu0  ;;  %11584 = vmatmul.mubr.msk.f32.gmra.mxu0 %vm163_vm1, %v9839_v14  ;;  %11480 = vmatprep.mubr.msk.f32.mxu1 %vm163_vm1, %v9706_v27  ;;  %v18542_v14 = vld [vmem:[#allocation49_spill] sm:$0xff]  ;;  %v9842_v15 = vld [vmem:[%s18270_s0 + $0x180] sm:$0xff]  ;;  %v18544_v41 = vld [vmem:[#allocation50_spill] sm:$0xff] }
 0x17f   :  { %v1286_v28 = vpop.f32.mrf.mxu1  ;;  %11586 = vmatprep.mubr.msk.f32.mxu0 %vm163_vm1, %v9840_v11 }
 0x180   :  { %18539 = vst [vmem:[#allocation20_spill] sm:$0xff] %v14552_v39  ;;  %v14567_v29 = vadd.f32 %v11209_v52, %v1292_v9  ;;  %v1287_v10 = vadd.f32 %v1286_v28, %v18542_v14  ;;  %v1936_v27 = vpop.f32.mrf.mxu0  ;;  %v9709_v52 = vld [vmem:[%s18270_s0 + $0x172] sm:$0xff]  ;;  %v9710_v28 = vld [vmem:[%s18270_s0 + $0x182] sm:$0xff] }
 0x181   :  { %v11106_v17 = vpop.f32.mrf.mxu1  ;;  %11481 = vmatmul.mubr.msk.f32.gmra.mxu1 %vm163_vm1, %v9707_v44  ;;  %v9843_v44 = vld [vmem:[%s18270_s0 + $0x188] sm:$0xff] }
 0x182   :  { %18541 = vst [vmem:[#allocation21_spill] sm:$0xff] %v14567_v29  ;;  %v14574_v11 = vadd.f32 %v1936_v27, %v1287_v10  ;;  %v1302_v39 = vadd.f32 %v11106_v17, %v18544_v41  ;;  %v11212_v48 = vpop.f32.mrf.mxu0  ;;  %11587 = vmatmul.mubr.msk.f32.gmra.mxu0 %vm163_vm1, %v9841_v33  ;;  %11483 = vmatprep.mubr.msk.f32.mxu1 %vm163_vm1, %v9708_v60  ;;  %v18546_v33 = vld [vmem:[#allocation8_spill] sm:$0xff]  ;;  %v9844_v27 = vld [vmem:[%s18270_s0 + $0x198] sm:$0xff] }
 0x183   :  { %v1296_v9 = vpop.f32.mrf.mxu1  ;;  %11589 = vmatprep.mubr.msk.f32.mxu0 %vm163_vm1, %v9842_v15  ;;  %v18548_v41 = vld [vmem:[#allocation11_spill] sm:$0xff] }
 0x184   :  { %18543 = vst [vmem:[#allocation22_spill] sm:$0xff] %v14574_v11  ;;  %v14589_v14 = vadd.f32 %v11212_v48, %v1302_v39  ;;  %v1297_v10 = vadd.f32 %v1296_v9, %v18546_v33  ;;  %v1946_v60 = vpop.f32.mrf.mxu0  ;;  %v9711_v48 = vld [vmem:[%s18270_s0 + $0x18a] sm:$0xff] }
 0x185   :  { %v11109_v17 = vpop.f32.mrf.mxu1  ;;  %11484 = vmatmul.mubr.msk.f32.gmra.mxu1 %vm163_vm1, %v9709_v52  ;;  %v9845_v52 = vld [vmem:[%s18270_s0 + $0x1a0] sm:$0xff]  ;;  %v9712_v9 = vld [vmem:[%s18270_s0 + $0x1ca] sm:$0xff] }
 0x186   :  { %18545 = vst [vmem:[#allocation23_spill] sm:$0xff] %v14589_v14  ;;  %v14596_v15 = vadd.f32 %v1946_v60, %v1297_v10  ;;  %v1312_v11 = vadd.f32 %v11109_v17, %v18548_v41  ;;  %v11215_v29 = vpop.f32.mrf.mxu0  ;;  %11590 = vmatmul.mubr.msk.f32.gmra.mxu0 %vm163_vm1, %v9843_v44  ;;  %11486 = vmatprep.mubr.msk.f32.mxu1 %vm163_vm1, %v9710_v28  ;;  %v18549_v44 = vld [vmem:[#allocation9_spill] sm:$0xff]  ;;  %v9846_v60 = vld [vmem:[%s18270_s0 + $0x1e0] sm:$0xff]  ;;  %v18551_v41 = vld [vmem:[#allocation10_spill] sm:$0xff] }
 0x187   :  { %v1306_v39 = vpop.f32.mrf.mxu1  ;;  %11592 = vmatprep.mubr.msk.f32.mxu0 %vm163_vm1, %v9844_v27 }
 0x188   :  { %18547 = vst [vmem:[#allocation24_spill] sm:$0xff] %v14596_v15  ;;  %v14611_v33 = vadd.f32 %v11215_v29, %v1312_v11  ;;  %v1307_v10 = vadd.f32 %v1306_v39, %v18549_v44  ;;  %v1956_v28 = vpop.f32.mrf.mxu0  ;;  %v9713_v29 = vld [vmem:[%s18270_s0 + $0x1d2] sm:$0xff]  ;;  %v9714_v39 = vld [vmem:[%s18270_s0 + $0x1e2] sm:$0xff] }
 0x189   :  { %v11112_v17 = vpop.f32.mrf.mxu1  ;;  %11487 = vmatmul.mubr.msk.f32.gmra.mxu1 %vm163_vm1, %v9711_v48  ;;  %v9847_v48 = vld [vmem:[%s18270_s0 + $0x1e8] sm:$0xff] }
 0x18a   :  { %v14618_v27 = vadd.f32 %v1956_v28, %v1307_v10  ;;  %v1322_v15 = vadd.f32 %v11112_v17, %v18551_v41  ;;  %v11218_v14 = vpop.f32.mrf.mxu0  ;;  %11593 = vmatmul.mubr.msk.f32.gmra.mxu0 %vm163_vm1, %v9845_v52  ;;  %11489 = vmatprep.mubr.msk.f32.mxu1 %vm163_vm1, %v9712_v9  ;;  %v18552_v52 = vld [vmem:[#allocation12_spill] sm:$0xff]  ;;  %v9848_v28 = vld [vmem:[%s18270_s0 + $0x1f8] sm:$0xff] }
 0x18b   :  { %v1316_v11 = vpop.f32.mrf.mxu1  ;;  %11595 = vmatprep.mubr.msk.f32.mxu0 %vm163_vm1, %v9846_v60 }
 0x18c   :  { %18550 = vst [vmem:[#allocation25_spill] sm:$0xff] %v14618_v27  ;;  %v14633_v44 = vadd.f32 %v11218_v14, %v1322_v15  ;;  %v1317_v10 = vadd.f32 %v1316_v11, %v18552_v52  ;;  %v1966_v9 = vpop.f32.mrf.mxu0  ;;  %v9715_v14 = vld [vmem:[%s18270_s0 + $0x1ea] sm:$0xff] }
 0x18d   :  { %v11231_v17 = vpop.f32.mrf.mxu1  ;;  %11490 = vmatmul.mubr.msk.f32.gmra.mxu1 %vm163_vm1, %v9713_v29  ;;  %v9849_v29 = vld [vmem:[%s18270_s0 + $0x200] sm:$0xff]  ;;  %v9850_v52 = vld [vmem:[%s18270_s0 + $0x210] sm:$0xff] }
 0x18e   :  { %v14640_v60 = vadd.f32 %v1966_v9, %v1317_v10  ;;  %v2691_v41 = vadd.f32 %v11231_v17, %v13971_v47  ;;  %v11337_v27 = vpop.f32.mrf.mxu0  ;;  %11596 = vmatmul.mubr.msk.f32.gmra.mxu0 %vm163_vm1, %v9847_v48  ;;  %11492 = vmatprep.mubr.msk.f32.mxu1 %vm163_vm1, %v9714_v39  ;;  %v9716_v47 = vld [vmem:[%s18270_s0 + $0x1fa] sm:$0xff] }
 0x18f   :  { %v2371_v15 = vpop.f32.mrf.mxu1  ;;  %11598 = vmatprep.mubr.msk.f32.mxu0 %vm163_vm1, %v9848_v28 }
 0x190   :  { %v14655_v11 = vadd.f32 %v11337_v27, %v2691_v41  ;;  %v2690_v48 = vadd.f32 %v2371_v15, %v13979_v8  ;;  %v3085_v39 = vpop.f32.mrf.mxu0  ;;  %v9717_v8 = vld [vmem:[%s18270_s0 + $0x202] sm:$0xff]  ;;  %v9851_v41 = vld [vmem:[%s18270_s0 + $0x218] sm:$0xff] }
 0x191   :  { %v11234_v10 = vpop.f32.mrf.mxu1  ;;  %11493 = vmatmul.mubr.msk.f32.gmra.mxu1 %vm163_vm1, %v9715_v14 }
 0x192   :  { %v14662_v9 = vadd.f32 %v3085_v39, %v2690_v48  ;;  %v2693_v28 = vadd.f32 %v11234_v10, %v13989_v18  ;;  %v11340_v17 = vpop.f32.mrf.mxu0  ;;  %11599 = vmatmul.mubr.msk.f32.gmra.mxu0 %vm163_vm1, %v9849_v29  ;;  %11495 = vmatprep.mubr.msk.f32.mxu1 %vm163_vm1, %v9716_v47  ;;  %v9718_v18 = vld [vmem:[%s18270_s0 + $0x212] sm:$0xff]  ;;  %v9852_v47 = vld [vmem:[%s18270_s0 + $0x228] sm:$0xff] }
 0x193   :  { %v2381_v27 = vpop.f32.mrf.mxu1  ;;  %11601 = vmatprep.mubr.msk.f32.mxu0 %vm163_vm1, %v9850_v52 }
 0x194   :  { %v14677_v14 = vadd.f32 %v11340_v17, %v2693_v28  ;;  %v2692_v15 = vadd.f32 %v2381_v27, %v13997_v0  ;;  %v3095_v29 = vpop.f32.mrf.mxu0  ;;  %v9719_v0 = vld [vmem:[%s18270_s0 + $0x21a] sm:$0xff]  ;;  %v9853_v17 = vld [vmem:[%s18270_s0 + $0x230] sm:$0xff] }
 0x195   :  { %v11237_v48 = vpop.f32.mrf.mxu1  ;;  %11496 = vmatmul.mubr.msk.f32.gmra.mxu1 %vm163_vm1, %v9717_v8 }
 0x196   :  { %v14684_v39 = vadd.f32 %v3095_v29, %v2692_v15  ;;  %v2695_v52 = vadd.f32 %v11237_v48, %v14007_v31  ;;  %v11343_v10 = vpop.f32.mrf.mxu0  ;;  %11602 = vmatmul.mubr.msk.f32.gmra.mxu0 %vm163_vm1, %v9851_v41  ;;  %11498 = vmatprep.mubr.msk.f32.mxu1 %vm163_vm1, %v9718_v18  ;;  %v9720_v31 = vld [vmem:[%s18270_s0 + $0x22a] sm:$0xff]  ;;  %v9854_v18 = vld [vmem:[%s18270_s0 + $0x240] sm:$0xff] }
 0x197   :  { %v2391_v28 = vpop.f32.mrf.mxu1  ;;  %11604 = vmatprep.mubr.msk.f32.mxu0 %vm163_vm1, %v9852_v47 }
 0x198   :  { %v14699_v8 = vadd.f32 %v11343_v10, %v2695_v52  ;;  %v2694_v27 = vadd.f32 %v2391_v28, %v14015_v7  ;;  %v3105_v41 = vpop.f32.mrf.mxu0  ;;  %v9721_v7 = vld [vmem:[%s18270_s0 + $0x232] sm:$0xff]  ;;  %v9855_v10 = vld [vmem:[%s18270_s0 + $0x248] sm:$0xff] }
 0x199   :  { %v11240_v15 = vpop.f32.mrf.mxu1  ;;  %11499 = vmatmul.mubr.msk.f32.gmra.mxu1 %vm163_vm1, %v9719_v0 }
 0x19a   :  { %v14706_v29 = vadd.f32 %v3105_v41, %v2694_v27  ;;  %v2697_v47 = vadd.f32 %v11240_v15, %v14025_v40  ;;  %v11346_v48 = vpop.f32.mrf.mxu0  ;;  %11605 = vmatmul.mubr.msk.f32.gmra.mxu0 %vm163_vm1, %v9853_v17  ;;  %11501 = vmatprep.mubr.msk.f32.mxu1 %vm163_vm1, %v9720_v31  ;;  %v9722_v40 = vld [vmem:[%s18270_s0 + $0x242] sm:$0xff]  ;;  %v9856_v31 = vld [vmem:[%s18270_s0 + $0x258] sm:$0xff] }
 0x19b   :  { %v2401_v52 = vpop.f32.mrf.mxu1  ;;  %11607 = vmatprep.mubr.msk.f32.mxu0 %vm163_vm1, %v9854_v18 }
 0x19c   :  { %v14721_v0 = vadd.f32 %v11346_v48, %v2697_v47  ;;  %v2696_v28 = vadd.f32 %v2401_v52, %v14033_v56  ;;  %v3115_v17 = vpop.f32.mrf.mxu0  ;;  %v9723_v56 = vld [vmem:[%s18270_s0 + $0x24a] sm:$0xff]  ;;  %v9857_v48 = vld [vmem:[%s18270_s0 + $0x260] sm:$0xff] }
 0x19d   :  { %v11243_v27 = vpop.f32.mrf.mxu1  ;;  %11502 = vmatmul.mubr.msk.f32.gmra.mxu1 %vm163_vm1, %v9721_v7 }
 0x19e   :  { %v14728_v41 = vadd.f32 %v3115_v17, %v2696_v28  ;;  %v2699_v18 = vadd.f32 %v11243_v27, %v14043_v51  ;;  %v11349_v15 = vpop.f32.mrf.mxu0  ;;  %11608 = vmatmul.mubr.msk.f32.gmra.mxu0 %vm163_vm1, %v9855_v10  ;;  %11504 = vmatprep.mubr.msk.f32.mxu1 %vm163_vm1, %v9722_v40  ;;  %v9724_v51 = vld [vmem:[%s18270_s0 + $0x25a] sm:$0xff]  ;;  %v9858_v40 = vld [vmem:[%s18270_s0 + $0x270] sm:$0xff] }
 0x19f   :  { %v2411_v47 = vpop.f32.mrf.mxu1  ;;  %11610 = vmatprep.mubr.msk.f32.mxu0 %vm163_vm1, %v9856_v31 }
 0x1a0   :  { %v14743_v7 = vadd.f32 %v11349_v15, %v2699_v18  ;;  %v2698_v52 = vadd.f32 %v2411_v47, %v14051_v34  ;;  %v3125_v10 = vpop.f32.mrf.mxu0  ;;  %v9725_v34 = vld [vmem:[%s18270_s0 + $0x262] sm:$0xff]  ;;  %v9859_v15 = vld [vmem:[%s18270_s0 + $0x278] sm:$0xff] }
 0x1a1   :  { %v11246_v28 = vpop.f32.mrf.mxu1  ;;  %11505 = vmatmul.mubr.msk.f32.gmra.mxu1 %vm163_vm1, %v9723_v56 }
 0x1a2   :  { %v14750_v17 = vadd.f32 %v3125_v10, %v2698_v52  ;;  %v2701_v31 = vadd.f32 %v11246_v28, %v14061_v63  ;;  %v11352_v27 = vpop.f32.mrf.mxu0  ;;  %11611 = vmatmul.mubr.msk.f32.gmra.mxu0 %vm163_vm1, %v9857_v48  ;;  %11507 = vmatprep.mubr.msk.f32.mxu1 %vm163_vm1, %v9724_v51  ;;  %v9726_v63 = vld [vmem:[%s18270_s0 + $0x272] sm:$0xff]  ;;  %v9860_v51 = vld [vmem:[%s18270_s0 + $0x288] sm:$0xff] }
 0x1a3   :  { %v2421_v18 = vpop.f32.mrf.mxu1  ;;  %11613 = vmatprep.mubr.msk.f32.mxu0 %vm163_vm1, %v9858_v40 }
 0x1a4   :  { %v14765_v56 = vadd.f32 %v11352_v27, %v2701_v31  ;;  %v2700_v47 = vadd.f32 %v2421_v18, %v14069_v4  ;;  %v3135_v48 = vpop.f32.mrf.mxu0  ;;  %v9727_v4 = vld [vmem:[%s18270_s0 + $0x27a] sm:$0xff]  ;;  %v9861_v27 = vld [vmem:[%s18270_s0 + $0x290] sm:$0xff] }
 0x1a5   :  { %v11249_v52 = vpop.f32.mrf.mxu1  ;;  %11508 = vmatmul.mubr.msk.f32.gmra.mxu1 %vm163_vm1, %v9725_v34 }
 0x1a6   :  { %v14772_v10 = vadd.f32 %v3135_v48, %v2700_v47  ;;  %v2703_v40 = vadd.f32 %v11249_v52, %v14079_v21  ;;  %v11355_v28 = vpop.f32.mrf.mxu0  ;;  %11614 = vmatmul.mubr.msk.f32.gmra.mxu0 %vm163_vm1, %v9859_v15  ;;  %11510 = vmatprep.mubr.msk.f32.mxu1 %vm163_vm1, %v9726_v63  ;;  %v9728_v21 = vld [vmem:[%s18270_s0 + $0x28a] sm:$0xff]  ;;  %v9862_v63 = vld [vmem:[%s18270_s0 + $0x2a0] sm:$0xff] }
 0x1a7   :  { %v2431_v31 = vpop.f32.mrf.mxu1  ;;  %11616 = vmatprep.mubr.msk.f32.mxu0 %vm163_vm1, %v9860_v51 }
 0x1a8   :  { %v14787_v34 = vadd.f32 %v11355_v28, %v2703_v40  ;;  %v2702_v18 = vadd.f32 %v2431_v31, %v14087_v30  ;;  %v3145_v15 = vpop.f32.mrf.mxu0  ;;  %v9729_v30 = vld [vmem:[%s18270_s0 + $0x292] sm:$0xff]  ;;  %v9863_v28 = vld [vmem:[%s18270_s0 + $0x2a8] sm:$0xff] }
 0x1a9   :  { %v11252_v47 = vpop.f32.mrf.mxu1  ;;  %11511 = vmatmul.mubr.msk.f32.gmra.mxu1 %vm163_vm1, %v9727_v4 }
 0x1aa   :  { %v14794_v48 = vadd.f32 %v3145_v15, %v2702_v18  ;;  %v2705_v51 = vadd.f32 %v11252_v47, %v14097_v23  ;;  %v11358_v52 = vpop.f32.mrf.mxu0  ;;  %11617 = vmatmul.mubr.msk.f32.gmra.mxu0 %vm163_vm1, %v9861_v27  ;;  %11513 = vmatprep.mubr.msk.f32.mxu1 %vm163_vm1, %v9728_v21  ;;  %v9730_v23 = vld [vmem:[%s18270_s0 + $0x2a2] sm:$0xff]  ;;  %v9864_v21 = vld [vmem:[%s18270_s0 + $0x2b8] sm:$0xff] }
 0x1ab   :  { %v2441_v40 = vpop.f32.mrf.mxu1  ;;  %11619 = vmatprep.mubr.msk.f32.mxu0 %vm163_vm1, %v9862_v63 }
 0x1ac   :  { %v14809_v4 = vadd.f32 %v11358_v52, %v2705_v51  ;;  %v2704_v31 = vadd.f32 %v2441_v40, %v14105_v37  ;;  %v3155_v27 = vpop.f32.mrf.mxu0  ;;  %v9731_v37 = vld [vmem:[%s18270_s0 + $0x2aa] sm:$0xff]  ;;  %v9865_v52 = vld [vmem:[%s18270_s0 + $0x2c0] sm:$0xff] }
 0x1ad   :  { %v11255_v18 = vpop.f32.mrf.mxu1  ;;  %11514 = vmatmul.mubr.msk.f32.gmra.mxu1 %vm163_vm1, %v9729_v30 }
 0x1ae   :  { %v14816_v15 = vadd.f32 %v3155_v27, %v2704_v31  ;;  %v2707_v63 = vadd.f32 %v11255_v18, %v14115_v46  ;;  %v11361_v47 = vpop.f32.mrf.mxu0  ;;  %11620 = vmatmul.mubr.msk.f32.gmra.mxu0 %vm163_vm1, %v9863_v28  ;;  %11516 = vmatprep.mubr.msk.f32.mxu1 %vm163_vm1, %v9730_v23  ;;  %v9732_v46 = vld [vmem:[%s18270_s0 + $0x2ba] sm:$0xff]  ;;  %v9866_v23 = vld [vmem:[%s18270_s0 + $0x2d0] sm:$0xff] }
 0x1af   :  { %v2451_v51 = vpop.f32.mrf.mxu1  ;;  %11622 = vmatprep.mubr.msk.f32.mxu0 %vm163_vm1, %v9864_v21 }
 0x1b0   :  { %v14831_v30 = vadd.f32 %v11361_v47, %v2707_v63  ;;  %v2706_v40 = vadd.f32 %v2451_v51, %v14123_v16  ;;  %v3165_v28 = vpop.f32.mrf.mxu0  ;;  %v9733_v16 = vld [vmem:[%s18270_s0 + $0x2c2] sm:$0xff]  ;;  %v9867_v47 = vld [vmem:[%s18270_s0 + $0x2d8] sm:$0xff] }
 0x1b1   :  { %v11258_v31 = vpop.f32.mrf.mxu1  ;;  %11517 = vmatmul.mubr.msk.f32.gmra.mxu1 %vm163_vm1, %v9731_v37 }
 0x1b2   :  { %v14838_v27 = vadd.f32 %v3165_v28, %v2706_v40  ;;  %v2709_v21 = vadd.f32 %v11258_v31, %v14133_v50  ;;  %v11364_v18 = vpop.f32.mrf.mxu0  ;;  %11623 = vmatmul.mubr.msk.f32.gmra.mxu0 %vm163_vm1, %v9865_v52  ;;  %11519 = vmatprep.mubr.msk.f32.mxu1 %vm163_vm1, %v9732_v46  ;;  %v9734_v50 = vld [vmem:[%s18270_s0 + $0x2d2] sm:$0xff]  ;;  %v9868_v46 = vld [vmem:[%s18270_s0 + $0x2e8] sm:$0xff] }
 0x1b3   :  { %v2461_v63 = vpop.f32.mrf.mxu1  ;;  %11625 = vmatprep.mubr.msk.f32.mxu0 %vm163_vm1, %v9866_v23 }
 0x1b4   :  { %v14853_v37 = vadd.f32 %v11364_v18, %v2709_v21  ;;  %v2708_v51 = vadd.f32 %v2461_v63, %v14141_v36  ;;  %v3175_v52 = vpop.f32.mrf.mxu0  ;;  %v9735_v36 = vld [vmem:[%s18270_s0 + $0x2da] sm:$0xff]  ;;  %v9869_v18 = vld [vmem:[%s18270_s0 + $0x2f0] sm:$0xff] }
 0x1b5   :  { %v11261_v40 = vpop.f32.mrf.mxu1  ;;  %11520 = vmatmul.mubr.msk.f32.gmra.mxu1 %vm163_vm1, %v9733_v16 }
 0x1b6   :  { %v14860_v28 = vadd.f32 %v3175_v52, %v2708_v51  ;;  %v2711_v23 = vadd.f32 %v11261_v40, %v14151_v54  ;;  %v11367_v31 = vpop.f32.mrf.mxu0  ;;  %11626 = vmatmul.mubr.msk.f32.gmra.mxu0 %vm163_vm1, %v9867_v47  ;;  %11522 = vmatprep.mubr.msk.f32.mxu1 %vm163_vm1, %v9734_v50  ;;  %v9736_v54 = vld [vmem:[%s18270_s0 + $0x2ea] sm:$0xff]  ;;  %v9870_v50 = vld [vmem:[%s18270_s0 + $0x300] sm:$0xff] }
 0x1b7   :  { %v2471_v21 = vpop.f32.mrf.mxu1  ;;  %11628 = vmatprep.mubr.msk.f32.mxu0 %vm163_vm1, %v9868_v46 }
 0x1b8   :  { %v14875_v16 = vadd.f32 %v11367_v31, %v2711_v23  ;;  %v2710_v63 = vadd.f32 %v2471_v21, %v14159_v45  ;;  %v3185_v47 = vpop.f32.mrf.mxu0  ;;  %v9737_v45 = vld [vmem:[%s18270_s0 + $0x2f2] sm:$0xff]  ;;  %v9871_v31 = vld [vmem:[%s18270_s0 + $0x308] sm:$0xff] }
 0x1b9   :  { %v11264_v51 = vpop.f32.mrf.mxu1  ;;  %11523 = vmatmul.mubr.msk.f32.gmra.mxu1 %vm163_vm1, %v9735_v36 }
 0x1ba   :  { %v14882_v52 = vadd.f32 %v3185_v47, %v2710_v63  ;;  %v2713_v46 = vadd.f32 %v11264_v51, %v14169_v58  ;;  %v11370_v40 = vpop.f32.mrf.mxu0  ;;  %11629 = vmatmul.mubr.msk.f32.gmra.mxu0 %vm163_vm1, %v9869_v18  ;;  %11525 = vmatprep.mubr.msk.f32.mxu1 %vm163_vm1, %v9736_v54  ;;  %v9738_v58 = vld [vmem:[%s18270_s0 + $0x302] sm:$0xff]  ;;  %v9872_v54 = vld [vmem:[%s18270_s0 + $0x318] sm:$0xff] }
 0x1bb   :  { %v2481_v23 = vpop.f32.mrf.mxu1  ;;  %11631 = vmatprep.mubr.msk.f32.mxu0 %vm163_vm1, %v9870_v50 }
 0x1bc   :  { %v14897_v36 = vadd.f32 %v11370_v40, %v2713_v46  ;;  %v2712_v21 = vadd.f32 %v2481_v23, %v14177_v57  ;;  %v3195_v18 = vpop.f32.mrf.mxu0  ;;  %v9739_v57 = vld [vmem:[%s18270_s0 + $0x30a] sm:$0xff]  ;;  %v9873_v40 = vld [vmem:[%s18270_s0 + $0x320] sm:$0xff] }
 0x1bd   :  { %v11267_v63 = vpop.f32.mrf.mxu1  ;;  %11526 = vmatmul.mubr.msk.f32.gmra.mxu1 %vm163_vm1, %v9737_v45 }
 0x1be   :  { %v14904_v47 = vadd.f32 %v3195_v18, %v2712_v21  ;;  %v2715_v50 = vadd.f32 %v11267_v63, %v14187_v62  ;;  %v11373_v51 = vpop.f32.mrf.mxu0  ;;  %11632 = vmatmul.mubr.msk.f32.gmra.mxu0 %vm163_vm1, %v9871_v31  ;;  %11528 = vmatprep.mubr.msk.f32.mxu1 %vm163_vm1, %v9738_v58  ;;  %v9740_v62 = vld [vmem:[%s18270_s0 + $0x31a] sm:$0xff]  ;;  %v9874_v58 = vld [vmem:[%s18270_s0 + $0x330] sm:$0xff] }
 0x1bf   :  { %v2491_v46 = vpop.f32.mrf.mxu1  ;;  %11634 = vmatprep.mubr.msk.f32.mxu0 %vm163_vm1, %v9872_v54 }
 0x1c0   :  { %v14919_v45 = vadd.f32 %v11373_v51, %v2715_v50  ;;  %v2714_v23 = vadd.f32 %v2491_v46, %v14195_v20  ;;  %v3205_v31 = vpop.f32.mrf.mxu0  ;;  %v9741_v20 = vld [vmem:[%s18270_s0 + $0x322] sm:$0xff]  ;;  %v9875_v51 = vld [vmem:[%s18270_s0 + $0x338] sm:$0xff] }
 0x1c1   :  { %v11270_v21 = vpop.f32.mrf.mxu1  ;;  %11529 = vmatmul.mubr.msk.f32.gmra.mxu1 %vm163_vm1, %v9739_v57 }
 0x1c2   :  { %v14926_v18 = vadd.f32 %v3205_v31, %v2714_v23  ;;  %v2717_v54 = vadd.f32 %v11270_v21, %v14208_v53  ;;  %v11376_v63 = vpop.f32.mrf.mxu0  ;;  %11635 = vmatmul.mubr.msk.f32.gmra.mxu0 %vm163_vm1, %v9873_v40  ;;  %11531 = vmatprep.mubr.msk.f32.mxu1 %vm163_vm1, %v9740_v62  ;;  %v9742_v53 = vld [vmem:[%s18270_s0 + $0x332] sm:$0xff]  ;;  %v9876_v62 = vld [vmem:[%s18270_s0 + $0x348] sm:$0xff] }
 0x1c3   :  { %v2501_v50 = vpop.f32.mrf.mxu1  ;;  %11637 = vmatprep.mubr.msk.f32.mxu0 %vm163_vm1, %v9874_v58 }
 0x1c4   :  { %v14941_v57 = vadd.f32 %v11376_v63, %v2717_v54  ;;  %v2716_v46 = vadd.f32 %v2501_v50, %v14216_v59  ;;  %v3215_v40 = vpop.f32.mrf.mxu0  ;;  %v9743_v59 = vld [vmem:[%s18270_s0 + $0x33a] sm:$0xff]  ;;  %v9877_v63 = vld [vmem:[%s18270_s0 + $0x350] sm:$0xff] }
 0x1c5   :  { %v11273_v23 = vpop.f32.mrf.mxu1  ;;  %11532 = vmatmul.mubr.msk.f32.gmra.mxu1 %vm163_vm1, %v9741_v20 }
 0x1c6   :  { %v14948_v31 = vadd.f32 %v3215_v40, %v2716_v46  ;;  %v2719_v58 = vadd.f32 %v11273_v23, %v14231_v5  ;;  %v11379_v21 = vpop.f32.mrf.mxu0  ;;  %11638 = vmatmul.mubr.msk.f32.gmra.mxu0 %vm163_vm1, %v9875_v51  ;;  %11534 = vmatprep.mubr.msk.f32.mxu1 %vm163_vm1, %v9742_v53  ;;  %v9948_v5 = vld [vmem:[%s18270_s0 + $0x31] sm:$0xff] }
 0x1c7   :  { %v2511_v54 = vpop.f32.mrf.mxu1  ;;  %11640 = vmatprep.mubr.msk.f32.mxu0 %vm163_vm1, %v9876_v62  ;;  %v10082_v53 = vld [vmem:[%s18270_s0 + $0x32] sm:$0xff] }
 0x1c8   :  { %v14963_v20 = vadd.f32 %v11379_v21, %v2719_v58  ;;  %v2718_v50 = vadd.f32 %v2511_v54, %v14238_v61  ;;  %v3225_v51 = vpop.f32.mrf.mxu0  ;;  %v9949_v61 = vld [vmem:[%s18270_s0 + $0x39] sm:$0xff] }
 0x1c9   :  { %v11276_v46 = vpop.f32.mrf.mxu1  ;;  %11535 = vmatmul.mubr.msk.f32.gmra.mxu1 %vm163_vm1, %v9743_v59  ;;  %v10083_v21 = vld [vmem:[%s18270_s0 + $0x3a] sm:$0xff] }
 0x1ca   :  { %v14970_v40 = vadd.f32 %v3225_v51, %v2718_v50  ;;  %v2721_v62 = vadd.f32 %v11276_v46, %v14250_v24  ;;  %v11382_v23 = vpop.f32.mrf.mxu0  ;;  %11641 = vmatmul.mubr.msk.f32.gmra.mxu0 %vm163_vm1, %v9877_v63  ;;  %11653 = vmatprep.mubr.msk.f32.mxu1 %vm163_vm1, %v9948_v5  ;;  %v9950_v24 = vld [vmem:[%s18270_s0 + $0x49] sm:$0xff] }
 0x1cb   :  { %v2521_v58 = vpop.f32.mrf.mxu1  ;;  %11759 = vmatprep.mubr.msk.f32.mxu0 %vm163_vm1, %v10082_v53  ;;  %v10084_v5 = vld [vmem:[%s18270_s0 + $0x4a] sm:$0xff] }
 0x1cc   :  { %v14985_v59 = vadd.f32 %v11382_v23, %v2721_v62  ;;  %v2720_v54 = vadd.f32 %v2521_v58, %v14263_v6  ;;  %v3235_v63 = vpop.f32.mrf.mxu0  ;;  %v9951_v6 = vld [vmem:[%s18270_s0 + $0x51] sm:$0xff] }
 0x1cd   :  { %v11279_v50 = vpop.f32.mrf.mxu1  ;;  %11654 = vmatmul.mubr.msk.f32.vlgmr.msra.gmra.mxu1 %vm163_vm1, %v9949_v61  ;;  %v10085_v23 = vld [vmem:[%s18270_s0 + $0x52] sm:$0xff] }
 0x1ce   :  { %v14992_v51 = vadd.f32 %v3235_v63, %v2720_v54  ;;  %v2723_v53 = vadd.f32 %v11279_v50, %v14284_v25  ;;  %v11385_v46 = vpop.f32.mrf.mxu0  ;;  %11760 = vmatmul.mubr.msk.f32.vlgmr.msra.gmra.mxu0 %vm163_vm1, %v10083_v21  ;;  %11656 = vmatprep.mubr.msk.f32.mxu1 %vm163_vm1, %v9950_v24  ;;  %v9952_v25 = vld [vmem:[%s18270_s0 + $0x61] sm:$0xff] }
 0x1cf   :  { %v2531_v62 = vpop.f32.mrf.mxu1  ;;  %11762 = vmatprep.mubr.msk.f32.mxu0 %vm163_vm1, %v10084_v5  ;;  %v10086_v24 = vld [vmem:[%s18270_s0 + $0x62] sm:$0xff] }
 0x1d0   :  { %v15007_v61 = vadd.f32 %v11385_v46, %v2723_v53  ;;  %v2722_v58 = vadd.f32 %v2531_v62, %v14295_v22  ;;  %v3245_v21 = vpop.f32.mrf.mxu0  ;;  %v9953_v22 = vld [vmem:[%s18270_s0 + $0x69] sm:$0xff] }
 0x1d1   :  { %v11282_v54 = vpop.f32.mrf.mxu1  ;;  %11657 = vmatmul.mubr.msk.f32.gmra.mxu1 %vm163_vm1, %v9951_v6  ;;  %v10087_v46 = vld [vmem:[%s18270_s0 + $0x6a] sm:$0xff] }
 0x1d2   :  { %v15014_v63 = vadd.f32 %v3245_v21, %v2722_v58  ;;  %v2725_v5 = vadd.f32 %v11282_v54, %v14313_v32  ;;  %v11388_v50 = vpop.f32.mrf.mxu0  ;;  %11763 = vmatmul.mubr.msk.f32.gmra.mxu0 %vm163_vm1, %v10085_v23  ;;  %11659 = vmatprep.mubr.msk.f32.mxu1 %vm163_vm1, %v9952_v25  ;;  %v9954_v32 = vld [vmem:[%s18270_s0 + $0x79] sm:$0xff] }
 0x1d3   :  { %v2541_v53 = vpop.f32.mrf.mxu1  ;;  %11765 = vmatprep.mubr.msk.f32.mxu0 %vm163_vm1, %v10086_v24  ;;  %v10088_v25 = vld [vmem:[%s18270_s0 + $0x7a] sm:$0xff] }
 0x1d4   :  { %v15029_v6 = vadd.f32 %v11388_v50, %v2725_v5  ;;  %v2724_v62 = vadd.f32 %v2541_v53, %v14323_v1  ;;  %v3255_v23 = vpop.f32.mrf.mxu0  ;;  %v9955_v1 = vld [vmem:[%s18270_s0 + $0x81] sm:$0xff] }
 0x1d5   :  { %v11285_v58 = vpop.f32.mrf.mxu1  ;;  %11660 = vmatmul.mubr.msk.f32.gmra.mxu1 %vm163_vm1, %v9953_v22  ;;  %v10089_v50 = vld [vmem:[%s18270_s0 + $0x82] sm:$0xff] }
 0x1d6   :  { %v15036_v21 = vadd.f32 %v3255_v23, %v2724_v62  ;;  %v2727_v24 = vadd.f32 %v11285_v58, %v14341_v42  ;;  %v11391_v54 = vpop.f32.mrf.mxu0  ;;  %11766 = vmatmul.mubr.msk.f32.gmra.mxu0 %vm163_vm1, %v10087_v46  ;;  %11662 = vmatprep.mubr.msk.f32.mxu1 %vm163_vm1, %v9954_v32  ;;  %v9956_v42 = vld [vmem:[%s18270_s0 + $0x91] sm:$0xff] }
 0x1d7   :  { %v2551_v5 = vpop.f32.mrf.mxu1  ;;  %11768 = vmatprep.mubr.msk.f32.mxu0 %vm163_vm1, %v10088_v25  ;;  %v10090_v32 = vld [vmem:[%s18270_s0 + $0x92] sm:$0xff] }
 0x1d8   :  { %v15051_v22 = vadd.f32 %v11391_v54, %v2727_v24  ;;  %v2726_v53 = vadd.f32 %v2551_v5, %v14351_v49  ;;  %v3265_v46 = vpop.f32.mrf.mxu0  ;;  %v9957_v49 = vld [vmem:[%s18270_s0 + $0x99] sm:$0xff] }
 0x1d9   :  { %v11288_v62 = vpop.f32.mrf.mxu1  ;;  %11663 = vmatmul.mubr.msk.f32.gmra.mxu1 %vm163_vm1, %v9955_v1  ;;  %v10091_v54 = vld [vmem:[%s18270_s0 + $0x9a] sm:$0xff] }
 0x1da   :  { %v15058_v23 = vadd.f32 %v3265_v46, %v2726_v53  ;;  %v2729_v25 = vadd.f32 %v11288_v62, %v14369_v55  ;;  %v11394_v58 = vpop.f32.mrf.mxu0  ;;  %11769 = vmatmul.mubr.msk.f32.gmra.mxu0 %vm163_vm1, %v10089_v50  ;;  %11665 = vmatprep.mubr.msk.f32.mxu1 %vm163_vm1, %v9956_v42  ;;  %v9958_v55 = vld [vmem:[%s18270_s0 + $0xa9] sm:$0xff] }
 0x1db   :  { %v2561_v24 = vpop.f32.mrf.mxu1  ;;  %11771 = vmatprep.mubr.msk.f32.mxu0 %vm163_vm1, %v10090_v32  ;;  %v10092_v42 = vld [vmem:[%s18270_s0 + $0xaa] sm:$0xff] }
 0x1dc   :  { %v15073_v1 = vadd.f32 %v11394_v58, %v2729_v25  ;;  %v2728_v5 = vadd.f32 %v2561_v24, %v14376_v13  ;;  %v3275_v50 = vpop.f32.mrf.mxu0  ;;  %v9959_v13 = vld [vmem:[%s18270_s0 + $0xb1] sm:$0xff] }
 0x1dd   :  { %v11291_v53 = vpop.f32.mrf.mxu1  ;;  %11666 = vmatmul.mubr.msk.f32.gmra.mxu1 %vm163_vm1, %v9957_v49  ;;  %v10093_v58 = vld [vmem:[%s18270_s0 + $0xb2] sm:$0xff] }
 0x1de   :  { %v15080_v46 = vadd.f32 %v3275_v50, %v2728_v5  ;;  %v2731_v32 = vadd.f32 %v11291_v53, %v14391_v43  ;;  %v11397_v62 = vpop.f32.mrf.mxu0  ;;  %11772 = vmatmul.mubr.msk.f32.gmra.mxu0 %vm163_vm1, %v10091_v54  ;;  %11668 = vmatprep.mubr.msk.f32.mxu1 %vm163_vm1, %v9958_v55  ;;  %v9960_v43 = vld [vmem:[%s18270_s0 + $0xc1] sm:$0xff] }
 0x1df   :  { %v2571_v25 = vpop.f32.mrf.mxu1  ;;  %11774 = vmatprep.mubr.msk.f32.mxu0 %vm163_vm1, %v10092_v42  ;;  %v10094_v55 = vld [vmem:[%s18270_s0 + $0xc2] sm:$0xff] }
 0x1e0   :  { %v15095_v49 = vadd.f32 %v11397_v62, %v2731_v32  ;;  %v2730_v24 = vadd.f32 %v2571_v25, %v14398_v3  ;;  %v3285_v54 = vpop.f32.mrf.mxu0  ;;  %v9961_v3 = vld [vmem:[%s18270_s0 + $0xc9] sm:$0xff] }
 0x1e1   :  { %v11294_v5 = vpop.f32.mrf.mxu1  ;;  %11669 = vmatmul.mubr.msk.f32.gmra.mxu1 %vm163_vm1, %v9959_v13  ;;  %v10095_v62 = vld [vmem:[%s18270_s0 + $0xca] sm:$0xff] }
 0x1e2   :  { %v15102_v50 = vadd.f32 %v3285_v54, %v2730_v24  ;;  %v2733_v42 = vadd.f32 %v11294_v5, %v14413_v19  ;;  %v11400_v53 = vpop.f32.mrf.mxu0  ;;  %11775 = vmatmul.mubr.msk.f32.gmra.mxu0 %vm163_vm1, %v10093_v58  ;;  %11671 = vmatprep.mubr.msk.f32.mxu1 %vm163_vm1, %v9960_v43  ;;  %v9962_v19 = vld [vmem:[%s18270_s0 + $0xd9] sm:$0xff] }
 0x1e3   :  { %v2581_v32 = vpop.f32.mrf.mxu1  ;;  %11777 = vmatprep.mubr.msk.f32.mxu0 %vm163_vm1, %v10094_v55  ;;  %v10096_v43 = vld [vmem:[%s18270_s0 + $0xda] sm:$0xff] }
 0x1e4   :  { %v15117_v13 = vadd.f32 %v11400_v53, %v2733_v42  ;;  %v2732_v25 = vadd.f32 %v2581_v32, %v14420_v26  ;;  %v3295_v58 = vpop.f32.mrf.mxu0  ;;  %v9963_v26 = vld [vmem:[%s18270_s0 + $0xe1] sm:$0xff] }
 0x1e5   :  { %v11297_v24 = vpop.f32.mrf.mxu1  ;;  %11672 = vmatmul.mubr.msk.f32.gmra.mxu1 %vm163_vm1, %v9961_v3  ;;  %v10097_v53 = vld [vmem:[%s18270_s0 + $0xe2] sm:$0xff] }
 0x1e6   :  { %v15124_v54 = vadd.f32 %v3295_v58, %v2732_v25  ;;  %v2735_v55 = vadd.f32 %v11297_v24, %v14435_v2  ;;  %v11403_v5 = vpop.f32.mrf.mxu0  ;;  %11778 = vmatmul.mubr.msk.f32.gmra.mxu0 %vm163_vm1, %v10095_v62  ;;  %11674 = vmatprep.mubr.msk.f32.mxu1 %vm163_vm1, %v9962_v19  ;;  %v9964_v2 = vld [vmem:[%s18270_s0 + $0xf1] sm:$0xff] }
 0x1e7   :  { %v2591_v42 = vpop.f32.mrf.mxu1  ;;  %11780 = vmatprep.mubr.msk.f32.mxu0 %vm163_vm1, %v10096_v43  ;;  %v10098_v19 = vld [vmem:[%s18270_s0 + $0xf2] sm:$0xff] }
 0x1e8   :  { %v15139_v3 = vadd.f32 %v11403_v5, %v2735_v55  ;;  %v2734_v32 = vadd.f32 %v2591_v42, %v14442_v35  ;;  %v3305_v62 = vpop.f32.mrf.mxu0  ;;  %v9965_v35 = vld [vmem:[%s18270_s0 + $0xf9] sm:$0xff] }
 0x1e9   :  { %v11300_v25 = vpop.f32.mrf.mxu1  ;;  %11675 = vmatmul.mubr.msk.f32.gmra.mxu1 %vm163_vm1, %v9963_v26  ;;  %v10099_v5 = vld [vmem:[%s18270_s0 + $0xfa] sm:$0xff] }
 0x1ea   :  { %v15146_v58 = vadd.f32 %v3305_v62, %v2734_v32  ;;  %v2737_v43 = vadd.f32 %v11300_v25, %v14457_v38  ;;  %v11406_v24 = vpop.f32.mrf.mxu0  ;;  %11781 = vmatmul.mubr.msk.f32.gmra.mxu0 %vm163_vm1, %v10097_v53  ;;  %11677 = vmatprep.mubr.msk.f32.mxu1 %vm163_vm1, %v9964_v2  ;;  %v9966_v38 = vld [vmem:[%s18270_s0 + $0x109] sm:$0xff] }
 0x1eb   :  { %v2601_v55 = vpop.f32.mrf.mxu1  ;;  %11783 = vmatprep.mubr.msk.f32.mxu0 %vm163_vm1, %v10098_v19  ;;  %v10100_v2 = vld [vmem:[%s18270_s0 + $0x10a] sm:$0xff] }
 0x1ec   :  { %18553 = vst [vmem:[#allocation26_spill] sm:$0xff] %v15146_v58  ;;  %v15161_v26 = vadd.f32 %v11406_v24, %v2737_v43  ;;  %v2736_v42 = vadd.f32 %v2601_v55, %v14464_v12  ;;  %v3315_v53 = vpop.f32.mrf.mxu0  ;;  %v18555_v19 = vld [vmem:[#allocation13_spill] sm:$0xff]  ;;  %v9967_v12 = vld [vmem:[%s18270_s0 + $0x111] sm:$0xff] }
 0x1ed   :  { %v11303_v32 = vpop.f32.mrf.mxu1  ;;  %11678 = vmatmul.mubr.msk.f32.gmra.mxu1 %vm163_vm1, %v9965_v35  ;;  %v10101_v24 = vld [vmem:[%s18270_s0 + $0x112] sm:$0xff]  ;;  %v9968_v35 = vld [vmem:[%s18270_s0 + $0x121] sm:$0xff] }
 0x1ee   :  { %v15168_v62 = vadd.f32 %v3315_v53, %v2736_v42  ;;  %v2739_v25 = vadd.f32 %v11303_v32, %v18555_v19  ;;  %v11409_v58 = vpop.f32.mrf.mxu0  ;;  %11784 = vmatmul.mubr.msk.f32.gmra.mxu0 %vm163_vm1, %v10099_v5  ;;  %11680 = vmatprep.mubr.msk.f32.mxu1 %vm163_vm1, %v9966_v38  ;;  %v18557_v5 = vld [vmem:[#allocation14_spill] sm:$0xff]  ;;  %v10102_v53 = vld [vmem:[%s18270_s0 + $0x122] sm:$0xff] }
 0x1ef   :  { %v2611_v43 = vpop.f32.mrf.mxu1  ;;  %11786 = vmatprep.mubr.msk.f32.mxu0 %vm163_vm1, %v10100_v2  ;;  %v7128_v2 = vld [vmem:[%s18271_s1 + $0x10] sm:$0xff]  ;;  %v7126_v19 = vld [vmem:[%s18271_s1] sm:$0xff] }
 0x1f0   :  { %18554 = vst [vmem:[#allocation27_spill] sm:$0xff] %v15168_v62  ;;  %v15183_v55 = vadd.f32 %v11409_v58, %v2739_v25  ;;  %v2738_v42 = vadd.f32 %v2611_v43, %v18557_v5  ;;  %v3325_v38 = vpop.f32.mrf.mxu0  ;;  %v18559_v25 = vld [vmem:[#allocation15_spill] sm:$0xff]  ;;  %v10103_v62 = vld [vmem:[%s18270_s0 + $0x12a] sm:$0xff]  ;;  %7258 = vrot.lane.b32.xlu1 %v7128_v2, %s12454_s20  ;;  %7254 = vrot.lane.b32.xlu0 %v7126_v19, %s12454_s20  ;;  %v9971_v19 = vld [vmem:[%s18270_s0 + $0x141] sm:$0xff] }
 0x1f1   :  { %v11306_v32 = vpop.f32.mrf.mxu1  ;;  %11681 = vmatmul.mubr.msk.f32.gmra.mxu1 %vm163_vm1, %v9967_v12  ;;  %v9969_v12 = vld [vmem:[%s18270_s0 + $0x129] sm:$0xff] }
 0x1f2   :  { %18556 = vst [vmem:[#allocation28_spill] sm:$0xff] %v15183_v55  ;;  %v15196_v58 = vadd.f32 %v3325_v38, %v2738_v42  ;;  %v2741_v43 = vadd.f32 %v11306_v32, %v18559_v25  ;;  %v11412_v5 = vpop.f32.mrf.mxu0  ;;  %11787 = vmatmul.mubr.msk.f32.gmra.mxu0 %vm163_vm1, %v10101_v24  ;;  %11683 = vmatprep.mubr.msk.f32.mxu1 %vm163_vm1, %v9968_v35  ;;  %v9970_v42 = vld [vmem:[%s18270_s0 + $0x139] sm:$0xff]  ;;  %v7127_v2 = vld [vmem:[%s18271_s1 + $0x8] sm:$0xff] }
 0x1f3   :  { %v2621_v55 = vpop.f32.mrf.mxu1  ;;  %11789 = vmatprep.mubr.msk.f32.mxu0 %vm163_vm1, %v10102_v53  ;;  %v18561_v35 = vld [vmem:[#allocation16_spill] sm:$0xff] }
 0x1f4   :  { %18558 = vst [vmem:[#allocation29_spill] sm:$0xff] %v15196_v58  ;;  %v15212_v24 = vadd.f32 %v11412_v5, %v2741_v43  ;;  %v2740_v38 = vadd.f32 %v2621_v55, %v18561_v35  ;;  %v3335_v32 = vpop.f32.mrf.mxu0  ;;  %v10104_v53 = vld [vmem:[%s18270_s0 + $0x13a] sm:$0xff]  ;;  %v18563_v55 = vld [vmem:[#allocation17_spill] sm:$0xff]  ;;  %7256 = vrot.lane.b32.xlu0 %v7127_v2, %s12454_s20 }
 0x1f5   :  { %v11309_v25 = vpop.f32.mrf.mxu1  ;;  %11684 = vmatmul.mubr.msk.f32.gmra.mxu1 %vm163_vm1, %v9969_v12  ;;  %v7129_v58 = vld [vmem:[%s18271_s1 + $0x18] sm:$0xff] }
 0x1f6   :  { %18560 = vst [vmem:[#allocation30_spill] sm:$0xff] %v15212_v24  ;;  %v15226_v43 = vadd.f32 %v3335_v32, %v2740_v38  ;;  %v2743_v5 = vadd.f32 %v11309_v25, %v18563_v55  ;;  %v11415_v35 = vpop.f32.mrf.mxu0  ;;  %11790 = vmatmul.mubr.msk.f32.gmra.mxu0 %vm163_vm1, %v10103_v62  ;;  %11686 = vmatprep.mubr.msk.f32.mxu1 %vm163_vm1, %v9970_v42  ;;  %v10105_v24 = vld [vmem:[%s18270_s0 + $0x142] sm:$0xff]  ;;  %v9972_v38 = vld [vmem:[%s18270_s0 + $0x151] sm:$0xff]  ;;  %v9973_v2 = vld [vmem:[%s18270_s0 + $0x159] sm:$0xff] }
 0x1f7   :  { %v2631_v12 = vpop.f32.mrf.mxu1  ;;  %11792 = vmatprep.mubr.msk.f32.mxu0 %vm163_vm1, %v10104_v53  ;;  %7260 = vrot.lane.b32.xlu1 %v7129_v58, %s12454_s20  ;;  %v18565_v42 = vld [vmem:[#allocation18_spill] sm:$0xff]  ;;  %v7130_v58 = vld [vmem:[%s18271_s1 + $0x20] sm:$0xff] }
 0x1f8   :  { %18562 = vst [vmem:[#allocation31_spill] sm:$0xff] %v15226_v43  ;;  %v15242_v62 = vadd.f32 %v11415_v35, %v2743_v5  ;;  %v2742_v32 = vadd.f32 %v2631_v12, %v18565_v42  ;;  %v3345_v25 = vpop.f32.mrf.mxu0  ;;  %v10106_v55 = vld [vmem:[%s18270_s0 + $0x152] sm:$0xff]  ;;  %v7131_v43 = vld [vmem:[%s18271_s1 + $0x28] sm:$0xff]  ;;  %7262 = vrot.lane.b32.xlu0 %v7130_v58, %s12454_s20 }
 0x1f9   :  { %v11312_v53 = vpop.f32.mrf.mxu1  ;;  %11687 = vmatmul.mubr.msk.f32.gmra.mxu1 %vm163_vm1, %v9971_v19  ;;  %v18567_v35 = vld [vmem:[#allocation19_spill] sm:$0xff] }
 0x1fa   :  { %18564 = vst [vmem:[#allocation32_spill] sm:$0xff] %v15242_v62  ;;  %v15256_v5 = vadd.f32 %v3345_v25, %v2742_v32  ;;  %v2745_v12 = vadd.f32 %v11312_v53, %v18567_v35  ;;  %v11418_v42 = vpop.f32.mrf.mxu0  ;;  %11793 = vmatmul.mubr.msk.f32.gmra.mxu0 %vm163_vm1, %v10105_v24  ;;  %11689 = vmatprep.mubr.msk.f32.mxu1 %vm163_vm1, %v9972_v38  ;;  %v10107_v62 = vld [vmem:[%s18270_s0 + $0x15a] sm:$0xff]  ;;  %v9974_v32 = vld [vmem:[%s18270_s0 + $0x169] sm:$0xff]  ;;  %v9975_v58 = vld [vmem:[%s18270_s0 + $0x171] sm:$0xff] }
 0x1fb   :  { %v2641_v19 = vpop.f32.mrf.mxu1  ;;  %11795 = vmatprep.mubr.msk.f32.mxu0 %vm163_vm1, %v10106_v55  ;;  %7264 = vrot.lane.b32.xlu1 %v7131_v43, %s12454_s20  ;;  %v18569_v38 = vld [vmem:[#allocation20_spill] sm:$0xff]  ;;  %v10108_v35 = vld [vmem:[%s18270_s0 + $0x16a] sm:$0xff] }
 0x1fc   :  { %18566 = vst [vmem:[#allocation33_spill] sm:$0xff] %v15256_v5  ;;  %v15272_v24 = vadd.f32 %v11418_v42, %v2745_v12  ;;  %v2744_v25 = vadd.f32 %v2641_v19, %v18569_v38  ;;  %v3355_v53 = vpop.f32.mrf.mxu0  ;;  %v7133_v5 = vld [vmem:[%s18271_s1 + $0x38] sm:$0xff]  ;;  %v7132_v43 = vld [vmem:[%s18271_s1 + $0x30] sm:$0xff]  ;;  %v18571_v42 = vld [vmem:[#allocation21_spill] sm:$0xff] }
 0x1fd   :  { %v11315_v55 = vpop.f32.mrf.mxu1  ;;  %11690 = vmatmul.mubr.msk.f32.gmra.mxu1 %vm163_vm1, %v9973_v2  ;;  %7266 = vrot.lane.b32.xlu0 %v7132_v43, %s12454_s20  ;;  %v9977_v43 = vld [vmem:[%s18270_s0 + $0x189] sm:$0xff] }
 0x1fe   :  { %18568 = vst [vmem:[#allocation34_spill] sm:$0xff] %v15272_v24  ;;  %v15286_v12 = vadd.f32 %v3355_v53, %v2744_v25  ;;  %v2747_v19 = vadd.f32 %v11315_v55, %v18571_v42  ;;  %v11421_v38 = vpop.f32.mrf.mxu0  ;;  %11796 = vmatmul.mubr.msk.f32.gmra.mxu0 %vm163_vm1, %v10107_v62  ;;  %11692 = vmatprep.mubr.msk.f32.mxu1 %vm163_vm1, %v9974_v32  ;;  %v10109_v24 = vld [vmem:[%s18270_s0 + $0x172] sm:$0xff]  ;;  %v9976_v25 = vld [vmem:[%s18270_s0 + $0x181] sm:$0xff] }
 0x1ff   :  { %v2651_v2 = vpop.f32.mrf.mxu1  ;;  %11798 = vmatprep.mubr.msk.f32.mxu0 %vm163_vm1, %v10108_v35  ;;  %7268 = vrot.lane.b32.xlu1 %v7133_v5, %s12454_s20  ;;  %v18573_v32 = vld [vmem:[#allocation22_spill] sm:$0xff]  ;;  %v10110_v42 = vld [vmem:[%s18270_s0 + $0x182] sm:$0xff] }
 0x200   :  { %18570 = vst [vmem:[#allocation35_spill] sm:$0xff] %v15286_v12  ;;  %v15302_v62 = vadd.f32 %v11421_v38, %v2747_v19  ;;  %v2746_v53 = vadd.f32 %v2651_v2, %v18573_v32  ;;  %v3365_v55 = vpop.f32.mrf.mxu0  ;;  %v7135_v12 = vld [vmem:[%s18271_s1 + $0x48] sm:$0xff]  ;;  %v7134_v5 = vld [vmem:[%s18271_s1 + $0x40] sm:$0xff]  ;;  %v18575_v38 = vld [vmem:[#allocation23_spill] sm:$0xff] }
 0x201   :  { %v11318_v35 = vpop.f32.mrf.mxu1  ;;  %11693 = vmatmul.mubr.msk.f32.gmra.mxu1 %vm163_vm1, %v9975_v58  ;;  %7270 = vrot.lane.b32.xlu0 %v7134_v5, %s12454_s20  ;;  %v9979_v5 = vld [vmem:[%s18270_s0 + $0x1a1] sm:$0xff] }
 0x202   :  { %18572 = vst [vmem:[#allocation36_spill] sm:$0xff] %v15302_v62  ;;  %v15316_v19 = vadd.f32 %v3365_v55, %v2746_v53  ;;  %v2749_v2 = vadd.f32 %v11318_v35, %v18575_v38  ;;  %v11424_v32 = vpop.f32.mrf.mxu0  ;;  %11799 = vmatmul.mubr.msk.f32.gmra.mxu0 %vm163_vm1, %v10109_v24  ;;  %11695 = vmatprep.mubr.msk.f32.mxu1 %vm163_vm1, %v9976_v25  ;;  %v10111_v62 = vld [vmem:[%s18270_s0 + $0x18a] sm:$0xff]  ;;  %v9978_v53 = vld [vmem:[%s18270_s0 + $0x199] sm:$0xff] }
 0x203   :  { %v2661_v58 = vpop.f32.mrf.mxu1  ;;  %11801 = vmatprep.mubr.msk.f32.mxu0 %vm163_vm1, %v10110_v42  ;;  %7272 = vrot.lane.b32.xlu1 %v7135_v12, %s12454_s20  ;;  %v18576_v25 = vld [vmem:[#allocation24_spill] sm:$0xff]  ;;  %v7136_v12 = vld [vmem:[%s18271_s1 + $0x50] sm:$0xff] }
 0x204   :  { %18574 = vst [vmem:[#allocation37_spill] sm:$0xff] %v15316_v19  ;;  %v15332_v24 = vadd.f32 %v11424_v32, %v2749_v2  ;;  %v2748_v55 = vadd.f32 %v2661_v58, %v18576_v25  ;;  %v3375_v35 = vpop.f32.mrf.mxu0  ;;  %v10112_v38 = vld [vmem:[%s18270_s0 + $0x19a] sm:$0xff]  ;;  %v10113_v25 = vld [vmem:[%s18270_s0 + $0x1a2] sm:$0xff] }
 0x205   :  { %v11321_v42 = vpop.f32.mrf.mxu1  ;;  %11696 = vmatmul.mubr.msk.f32.gmra.mxu1 %vm163_vm1, %v9977_v43  ;;  %v7137_v19 = vld [vmem:[%s18271_s1 + $0x58] sm:$0xff]  ;;  %7274 = vrot.lane.b32.xlu0 %v7136_v12, %s12454_s20  ;;  %v9981_v12 = vld [vmem:[%s18270_s0 + $0x1e9] sm:$0xff] }
 0x206   :  { %v15346_v2 = vadd.f32 %v3375_v35, %v2748_v55  ;;  %v2751_v32 = vadd.f32 %v11321_v42, %v14611_v33  ;;  %v11427_v58 = vpop.f32.mrf.mxu0  ;;  %11802 = vmatmul.mubr.msk.f32.gmra.mxu0 %vm163_vm1, %v10111_v62  ;;  %11698 = vmatprep.mubr.msk.f32.mxu1 %vm163_vm1, %v9978_v53  ;;  %v9980_v33 = vld [vmem:[%s18270_s0 + $0x1e1] sm:$0xff] }
 0x207   :  { %v2671_v43 = vpop.f32.mrf.mxu1  ;;  %11804 = vmatprep.mubr.msk.f32.mxu0 %vm163_vm1, %v10112_v38  ;;  %7276 = vrot.lane.b32.xlu1 %v7137_v19, %s12454_s20  ;;  %v18578_v53 = vld [vmem:[#allocation25_spill] sm:$0xff]  ;;  %v7138_v19 = vld [vmem:[%s18271_s1 + $0x60] sm:$0xff] }
 0x208   :  { %18577 = vst [vmem:[#allocation38_spill] sm:$0xff] %v15346_v2  ;;  %v15362_v62 = vadd.f32 %v11427_v58, %v2751_v32  ;;  %v2750_v55 = vadd.f32 %v2671_v43, %v18578_v53  ;;  %v3385_v35 = vpop.f32.mrf.mxu0  ;;  %v10114_v42 = vld [vmem:[%s18270_s0 + $0x1e2] sm:$0xff]  ;;  %v10115_v53 = vld [vmem:[%s18270_s0 + $0x1ea] sm:$0xff] }
 0x209   :  { %v11324_v38 = vpop.f32.mrf.mxu1  ;;  %11699 = vmatmul.mubr.msk.f32.gmra.mxu1 %vm163_vm1, %v9979_v5  ;;  %v7139_v2 = vld [vmem:[%s18271_s1 + $0x68] sm:$0xff]  ;;  %7278 = vrot.lane.b32.xlu0 %v7138_v19, %s12454_s20 }
 0x20a   :  { %v15376_v32 = vadd.f32 %v3385_v35, %v2750_v55  ;;  %v2753_v58 = vadd.f32 %v11324_v38, %v14633_v44  ;;  %v11430_v43 = vpop.f32.mrf.mxu0  ;;  %11805 = vmatmul.mubr.msk.f32.gmra.mxu0 %vm163_vm1, %v10113_v25  ;;  %11701 = vmatprep.mubr.msk.f32.mxu1 %vm163_vm1, %v9980_v33  ;;  %v9982_v44 = vld [vmem:[%s18270_s0 + $0x1f9] sm:$0xff]  ;;  %v9983_v19 = vld [vmem:[%s18270_s0 + $0x201] sm:$0xff] }
 0x20b   :  { %v2681_v5 = vpop.f32.mrf.mxu1  ;;  %11807 = vmatprep.mubr.msk.f32.mxu0 %vm163_vm1, %v10114_v42  ;;  %7280 = vrot.lane.b32.xlu1 %v7139_v2, %s12454_s20  ;;  %v10116_v35 = vld [vmem:[%s18270_s0 + $0x1fa] sm:$0xff]  ;;  %v7140_v2 = vld [vmem:[%s18271_s1 + $0x70] sm:$0xff] }
 0x20c   :  { %v15392_v25 = vadd.f32 %v11430_v43, %v2753_v58  ;;  %v2752_v33 = vadd.f32 %v2681_v5, %v14640_v60  ;;  %v3395_v55 = vpop.f32.mrf.mxu0  ;;  %v7141_v38 = vld [vmem:[%s18271_s1 + $0x78] sm:$0xff]  ;;  %v10117_v5 = vld [vmem:[%s18270_s0 + $0x202] sm:$0xff] }
 0x20d   :  { %v11443_v42 = vpop.f32.mrf.mxu1  ;;  %11702 = vmatmul.mubr.msk.f32.gmra.mxu1 %vm163_vm1, %v9981_v12  ;;  %7282 = vrot.lane.b32.xlu0 %v7140_v2, %s12454_s20  ;;  %v9985_v2 = vld [vmem:[%s18270_s0 + $0x219] sm:$0xff] }
 0x20e   :  { %v15406_v58 = vadd.f32 %v3395_v55, %v2752_v33  ;;  %v4119_v60 = vadd.f32 %v11443_v42, %v14655_v11  ;;  %v11549_v43 = vpop.f32.mrf.mxu0  ;;  %11808 = vmatmul.mubr.msk.f32.gmra.mxu0 %vm163_vm1, %v10115_v53  ;;  %11704 = vmatprep.mubr.msk.f32.mxu1 %vm163_vm1, %v9982_v44  ;;  %v9984_v11 = vld [vmem:[%s18270_s0 + $0x211] sm:$0xff]  ;;  %v7143_v42 = vld [vmem:[%s18271_s1 + $0x88] sm:$0xff] }
 0x20f   :  { %v3799_v12 = vpop.f32.mrf.mxu1  ;;  %11810 = vmatprep.mubr.msk.f32.mxu0 %vm163_vm1, %v10116_v35  ;;  %7284 = vrot.lane.b32.xlu1 %v7141_v38, %s12454_s20  ;;  %v10118_v55 = vld [vmem:[%s18270_s0 + $0x212] sm:$0xff]  ;;  %v7142_v38 = vld [vmem:[%s18271_s1 + $0x80] sm:$0xff] }
 0x210   :  { %v15422_v53 = vadd.f32 %v11549_v43, %v4119_v60  ;;  %v4118_v44 = vadd.f32 %v3799_v12, %v14662_v9  ;;  %v4514_v33 = vpop.f32.mrf.mxu0  ;;  %v10119_v12 = vld [vmem:[%s18270_s0 + $0x21a] sm:$0xff] }
 0x211   :  { %v11446_v35 = vpop.f32.mrf.mxu1  ;;  %11705 = vmatmul.mubr.msk.f32.gmra.mxu1 %vm163_vm1, %v9983_v19  ;;  %7286 = vrot.lane.b32.xlu0 %v7142_v38, %s12454_s20 }
 0x212   :  { %v15436_v60 = vadd.f32 %v4514_v33, %v4118_v44  ;;  %v4121_v9 = vadd.f32 %v11446_v35, %v14677_v14  ;;  %v11552_v43 = vpop.f32.mrf.mxu0  ;;  %11811 = vmatmul.mubr.msk.f32.gmra.mxu0 %vm163_vm1, %v10117_v5  ;;  %11707 = vmatprep.mubr.msk.f32.mxu1 %vm163_vm1, %v9984_v11  ;;  %v9986_v14 = vld [vmem:[%s18270_s0 + $0x229] sm:$0xff] }
 0x213   :  { %v3809_v19 = vpop.f32.mrf.mxu1  ;;  %11813 = vmatprep.mubr.msk.f32.mxu0 %vm163_vm1, %v10118_v55  ;;  %7288 = vrot.lane.b32.xlu1 %v7143_v42, %s12454_s20  ;;  %v7145_v55 = vld [vmem:[%s18271_s1 + $0x98] sm:$0xff]  ;;  %v7144_v35 = vld [vmem:[%s18271_s1 + $0x90] sm:$0xff] }
 0x214   :  { %18579 = vst [vmem:[#allocation39_spill] sm:$0xff] %v15436_v60  ;;  %v15452_v5 = vadd.f32 %v11552_v43, %v4121_v9  ;;  %v4120_v11 = vadd.f32 %v3809_v19, %v14684_v39  ;;  %v4524_v44 = vpop.f32.mrf.mxu0  ;;  %v9987_v39 = vld [vmem:[%s18270_s0 + $0x231] sm:$0xff] }
 0x215   :  { %v11449_v33 = vpop.f32.mrf.mxu1  ;;  %11708 = vmatmul.mubr.msk.f32.gmra.mxu1 %vm163_vm1, %v9985_v2  ;;  %v12386_v43 = vld [vmem:[%s18270_s0 + $0x22a] sm:$0xff]  ;;  %7290 = vrot.lane.b32.xlu0 %v7144_v35, %s12454_s20 }
 0x216   :  { %v15463_v60 = vadd.f32 %v4524_v44, %v4120_v11  ;;  %v4123_v42 = vadd.f32 %v11449_v33, %v14699_v8  ;;  %v11555_v9 = vpop.f32.mrf.mxu0  ;;  %11814 = vmatmul.mubr.msk.f32.gmra.mxu0 %vm163_vm1, %v10119_v12  ;;  %11710 = vmatprep.mubr.msk.f32.mxu1 %vm163_vm1, %v9986_v14  ;;  %v9988_v8 = vld [vmem:[%s18270_s0 + $0x241] sm:$0xff]  ;;  %v9989_v35 = vld [vmem:[%s18270_s0 + $0x249] sm:$0xff] }
 0x217   :  { %v3819_v38 = vpop.f32.mrf.mxu1  ;;  %11816 = vmatprep.mubr.msk.f32.mxu0 %vm163_vm1, %v12386_v43  ;;  %7292 = vrot.lane.b32.xlu1 %v7145_v55, %s12454_s20  ;;  %v7147_v11 = vld [vmem:[%s18271_s1 + $0xa8] sm:$0xff]  ;;  %v7146_v44 = vld [vmem:[%s18271_s1 + $0xa0] sm:$0xff] }
 0x218   :  { %v15479_v2 = vadd.f32 %v11555_v9, %v4123_v42  ;;  %v4122_v19 = vadd.f32 %v3819_v38, %v14706_v29  ;;  %v4534_v12 = vpop.f32.mrf.mxu0  ;;  %v12387_v29 = vld [vmem:[%s18270_s0 + $0x232] sm:$0xff] }
 0x219   :  { %v11452_v14 = vpop.f32.mrf.mxu1  ;;  %11711 = vmatmul.mubr.msk.f32.gmra.mxu1 %vm163_vm1, %v9987_v39  ;;  %v12388_v39 = vld [vmem:[%s18270_s0 + $0x242] sm:$0xff]  ;;  %7294 = vrot.lane.b32.xlu0 %v7146_v44, %s12454_s20 }
 0x21a   :  { %v15490_v33 = vadd.f32 %v4534_v12, %v4122_v19  ;;  %v4125_v55 = vadd.f32 %v11452_v14, %v14721_v0  ;;  %v11558_v42 = vpop.f32.mrf.mxu0  ;;  %11817 = vmatmul.mubr.msk.f32.gmra.mxu0 %vm163_vm1, %v12387_v29  ;;  %11713 = vmatprep.mubr.msk.f32.mxu1 %vm163_vm1, %v9988_v8  ;;  %v9990_v0 = vld [vmem:[%s18270_s0 + $0x259] sm:$0xff]  ;;  %v7148_v14 = vld [vmem:[%s18271_s1 + $0xb0] sm:$0xff]  ;;  %v9991_v44 = vld [vmem:[%s18270_s0 + $0x261] sm:$0xff] }
 0x21b   :  { %v3829_v9 = vpop.f32.mrf.mxu1  ;;  %11819 = vmatprep.mubr.msk.f32.mxu0 %vm163_vm1, %v12388_v39  ;;  %7296 = vrot.lane.b32.xlu1 %v7147_v11, %s12454_s20  ;;  %v7149_v12 = vld [vmem:[%s18271_s1 + $0xb8] sm:$0xff] }
 0x21c   :  { %v15509_v38 = vadd.f32 %v11558_v42, %v4125_v55  ;;  %v4124_v43 = vadd.f32 %v3829_v9, %v14728_v41  ;;  %v4544_v8 = vpop.f32.mrf.mxu0  ;;  %v12389_v41 = vld [vmem:[%s18270_s0 + $0x24a] sm:$0xff] }
 0x21d   :  { %v11455_v19 = vpop.f32.mrf.mxu1  ;;  %11714 = vmatmul.mubr.msk.f32.gmra.mxu1 %vm163_vm1, %v9989_v35  ;;  %v12390_v35 = vld [vmem:[%s18270_s0 + $0x25a] sm:$0xff]  ;;  %7298 = vrot.lane.b32.xlu0 %v7148_v14, %s12454_s20 }
 0x21e   :  { %v15520_v29 = vadd.f32 %v4544_v8, %v4124_v43  ;;  %v4127_v11 = vadd.f32 %v11455_v19, %v14743_v7  ;;  %v11561_v55 = vpop.f32.mrf.mxu0  ;;  %11820 = vmatmul.mubr.msk.f32.gmra.mxu0 %vm163_vm1, %v12389_v41  ;;  %11716 = vmatprep.mubr.msk.f32.mxu1 %vm163_vm1, %v9990_v0  ;;  %v9992_v7 = vld [vmem:[%s18270_s0 + $0x271] sm:$0xff]  ;;  %v7151_v8 = vld [vmem:[%s18271_s1 + $0xc8] sm:$0xff]  ;;  %v7150_v19 = vld [vmem:[%s18271_s1 + $0xc0] sm:$0xff] }
 0x21f   :  { %v3839_v42 = vpop.f32.mrf.mxu1  ;;  %11822 = vmatprep.mubr.msk.f32.mxu0 %vm163_vm1, %v12390_v35  ;;  %7300 = vrot.lane.b32.xlu1 %v7149_v12, %s12454_s20  ;;  %v9993_v14 = vld [vmem:[%s18270_s0 + $0x279] sm:$0xff] }
 0x220   :  { %v15539_v9 = vadd.f32 %v11561_v55, %v4127_v11  ;;  %v4126_v39 = vadd.f32 %v3839_v42, %v14750_v17  ;;  %v4554_v0 = vpop.f32.mrf.mxu0  ;;  %v12391_v17 = vld [vmem:[%s18270_s0 + $0x262] sm:$0xff] }
 0x221   :  { %v11458_v43 = vpop.f32.mrf.mxu1  ;;  %11717 = vmatmul.mubr.msk.f32.gmra.mxu1 %vm163_vm1, %v9991_v44  ;;  %v12392_v44 = vld [vmem:[%s18270_s0 + $0x272] sm:$0xff]  ;;  %7302 = vrot.lane.b32.xlu0 %v7150_v19, %s12454_s20 }
 0x222   :  { %v15550_v41 = vadd.f32 %v4554_v0, %v4126_v39  ;;  %v4129_v12 = vadd.f32 %v11458_v43, %v14765_v56  ;;  %v11564_v11 = vpop.f32.mrf.mxu0  ;;  %11823 = vmatmul.mubr.msk.f32.gmra.mxu0 %vm163_vm1, %v12391_v17  ;;  %11719 = vmatprep.mubr.msk.f32.mxu1 %vm163_vm1, %v9992_v7  ;;  %v9994_v56 = vld [vmem:[%s18270_s0 + $0x289] sm:$0xff]  ;;  %v7153_v0 = vld [vmem:[%s18271_s1 + $0xd8] sm:$0xff] }
 0x223   :  { %v3849_v55 = vpop.f32.mrf.mxu1  ;;  %11825 = vmatprep.mubr.msk.f32.mxu0 %vm163_vm1, %v12392_v44  ;;  %7304 = vrot.lane.b32.xlu1 %v7151_v8, %s12454_s20  ;;  %v7152_v43 = vld [vmem:[%s18271_s1 + $0xd0] sm:$0xff] }
 0x224   :  { %v15569_v42 = vadd.f32 %v11564_v11, %v4129_v12  ;;  %v4128_v35 = vadd.f32 %v3849_v55, %v14772_v10  ;;  %v4564_v7 = vpop.f32.mrf.mxu0  ;;  %v12393_v10 = vld [vmem:[%s18270_s0 + $0x27a] sm:$0xff]  ;;  %v9995_v19 = vld [vmem:[%s18270_s0 + $0x291] sm:$0xff] }
 0x225   :  { %v11461_v39 = vpop.f32.mrf.mxu1  ;;  %11720 = vmatmul.mubr.msk.f32.gmra.mxu1 %vm163_vm1, %v9993_v14  ;;  %v12394_v14 = vld [vmem:[%s18270_s0 + $0x28a] sm:$0xff]  ;;  %7306 = vrot.lane.b32.xlu0 %v7152_v43, %s12454_s20 }
 0x226   :  { %v15580_v17 = vadd.f32 %v4564_v7, %v4128_v35  ;;  %v4131_v8 = vadd.f32 %v11461_v39, %v14787_v34  ;;  %v11567_v12 = vpop.f32.mrf.mxu0  ;;  %11826 = vmatmul.mubr.msk.f32.gmra.mxu0 %vm163_vm1, %v12393_v10  ;;  %11722 = vmatprep.mubr.msk.f32.mxu1 %vm163_vm1, %v9994_v56  ;;  %v9996_v34 = vld [vmem:[%s18270_s0 + $0x2a1] sm:$0xff]  ;;  %v9997_v43 = vld [vmem:[%s18270_s0 + $0x2a9] sm:$0xff] }
 0x227   :  { %v3859_v11 = vpop.f32.mrf.mxu1  ;;  %11828 = vmatprep.mubr.msk.f32.mxu0 %vm163_vm1, %v12394_v14  ;;  %7308 = vrot.lane.b32.xlu1 %v7153_v0, %s12454_s20  ;;  %v7155_v7 = vld [vmem:[%s18271_s1 + $0xe8] sm:$0xff]  ;;  %v7154_v39 = vld [vmem:[%s18271_s1 + $0xe0] sm:$0xff] }
 0x228   :  { %v15599_v55 = vadd.f32 %v11567_v12, %v4131_v8  ;;  %v4130_v44 = vadd.f32 %v3859_v11, %v14794_v48  ;;  %v4574_v56 = vpop.f32.mrf.mxu0  ;;  %v12395_v48 = vld [vmem:[%s18270_s0 + $0x292] sm:$0xff] }
 0x229   :  { %v11464_v35 = vpop.f32.mrf.mxu1  ;;  %11723 = vmatmul.mubr.msk.f32.gmra.mxu1 %vm163_vm1, %v9995_v19  ;;  %v12396_v19 = vld [vmem:[%s18270_s0 + $0x2a2] sm:$0xff]  ;;  %7310 = vrot.lane.b32.xlu0 %v7154_v39, %s12454_s20 }
 0x22a   :  { %v15610_v10 = vadd.f32 %v4574_v56, %v4130_v44  ;;  %v4133_v0 = vadd.f32 %v11464_v35, %v14809_v4  ;;  %v11570_v8 = vpop.f32.mrf.mxu0  ;;  %11829 = vmatmul.mubr.msk.f32.gmra.mxu0 %vm163_vm1, %v12395_v48  ;;  %11725 = vmatprep.mubr.msk.f32.mxu1 %vm163_vm1, %v9996_v34  ;;  %v9998_v4 = vld [vmem:[%s18270_s0 + $0x2b9] sm:$0xff]  ;;  %v7156_v35 = vld [vmem:[%s18271_s1 + $0xf0] sm:$0xff]  ;;  %v9999_v39 = vld [vmem:[%s18270_s0 + $0x2c1] sm:$0xff] }
 0x22b   :  { %v3869_v12 = vpop.f32.mrf.mxu1  ;;  %11831 = vmatprep.mubr.msk.f32.mxu0 %vm163_vm1, %v12396_v19  ;;  %7312 = vrot.lane.b32.xlu1 %v7155_v7, %s12454_s20  ;;  %v7157_v56 = vld [vmem:[%s18271_s1 + $0xf8] sm:$0xff] }
 0x22c   :  { %v15629_v11 = vadd.f32 %v11570_v8, %v4133_v0  ;;  %v4132_v14 = vadd.f32 %v3869_v12, %v14816_v15  ;;  %v4584_v34 = vpop.f32.mrf.mxu0  ;;  %v12397_v15 = vld [vmem:[%s18270_s0 + $0x2aa] sm:$0xff] }
 0x22d   :  { %v11467_v44 = vpop.f32.mrf.mxu1  ;;  %11726 = vmatmul.mubr.msk.f32.gmra.mxu1 %vm163_vm1, %v9997_v43  ;;  %v12398_v43 = vld [vmem:[%s18270_s0 + $0x2ba] sm:$0xff]  ;;  %7314 = vrot.lane.b32.xlu0 %v7156_v35, %s12454_s20 }
 0x22e   :  { %v15640_v48 = vadd.f32 %v4584_v34, %v4132_v14  ;;  %v4135_v7 = vadd.f32 %v11467_v44, %v14831_v30  ;;  %v11573_v0 = vpop.f32.mrf.mxu0  ;;  %11832 = vmatmul.mubr.msk.f32.gmra.mxu0 %vm163_vm1, %v12397_v15  ;;  %11728 = vmatprep.mubr.msk.f32.mxu1 %vm163_vm1, %v9998_v4  ;;  %v10000_v30 = vld [vmem:[%s18270_s0 + $0x2d1] sm:$0xff]  ;;  %v7159_v34 = vld [vmem:[%s18271_s1 + $0x108] sm:$0xff]  ;;  %v7158_v44 = vld [vmem:[%s18271_s1 + $0x100] sm:$0xff] }
 0x22f   :  { %v3879_v8 = vpop.f32.mrf.mxu1  ;;  %11834 = vmatprep.mubr.msk.f32.mxu0 %vm163_vm1, %v12398_v43  ;;  %7316 = vrot.lane.b32.xlu1 %v7157_v56, %s12454_s20  ;;  %v10001_v35 = vld [vmem:[%s18270_s0 + $0x2d9] sm:$0xff] }
 0x230   :  { %v15659_v12 = vadd.f32 %v11573_v0, %v4135_v7  ;;  %v4134_v19 = vadd.f32 %v3879_v8, %v14838_v27  ;;  %v4594_v4 = vpop.f32.mrf.mxu0  ;;  %v12399_v27 = vld [vmem:[%s18270_s0 + $0x2c2] sm:$0xff] }
 0x231   :  { %v11470_v14 = vpop.f32.mrf.mxu1  ;;  %11729 = vmatmul.mubr.msk.f32.gmra.mxu1 %vm163_vm1, %v9999_v39  ;;  %v12400_v39 = vld [vmem:[%s18270_s0 + $0x2d2] sm:$0xff]  ;;  %7318 = vrot.lane.b32.xlu0 %v7158_v44, %s12454_s20 }
 0x232   :  { %v15670_v15 = vadd.f32 %v4594_v4, %v4134_v19  ;;  %v4137_v56 = vadd.f32 %v11470_v14, %v14853_v37  ;;  %v11576_v7 = vpop.f32.mrf.mxu0  ;;  %11835 = vmatmul.mubr.msk.f32.gmra.mxu0 %vm163_vm1, %v12399_v27  ;;  %11731 = vmatprep.mubr.msk.f32.mxu1 %vm163_vm1, %v10000_v30  ;;  %v10002_v37 = vld [vmem:[%s18270_s0 + $0x2e9] sm:$0xff]  ;;  %v7161_v4 = vld [vmem:[%s18271_s1 + $0x118] sm:$0xff] }
 0x233   :  { %v3889_v0 = vpop.f32.mrf.mxu1  ;;  %11837 = vmatprep.mubr.msk.f32.mxu0 %vm163_vm1, %v12400_v39  ;;  %7320 = vrot.lane.b32.xlu1 %v7159_v34, %s12454_s20  ;;  %v7160_v14 = vld [vmem:[%s18271_s1 + $0x110] sm:$0xff] }
 0x234   :  { %v15689_v8 = vadd.f32 %v11576_v7, %v4137_v56  ;;  %v4136_v43 = vadd.f32 %v3889_v0, %v14860_v28  ;;  %v4604_v30 = vpop.f32.mrf.mxu0  ;;  %v12401_v28 = vld [vmem:[%s18270_s0 + $0x2da] sm:$0xff]  ;;  %v10003_v44 = vld [vmem:[%s18270_s0 + $0x2f1] sm:$0xff] }
 0x235   :  { %v11473_v19 = vpop.f32.mrf.mxu1  ;;  %11732 = vmatmul.mubr.msk.f32.gmra.mxu1 %vm163_vm1, %v10001_v35  ;;  %v12402_v35 = vld [vmem:[%s18270_s0 + $0x2ea] sm:$0xff]  ;;  %7322 = vrot.lane.b32.xlu0 %v7160_v14, %s12454_s20 }
 0x236   :  { %v15700_v27 = vadd.f32 %v4604_v30, %v4136_v43  ;;  %v4139_v34 = vadd.f32 %v11473_v19, %v14875_v16  ;;  %v11579_v56 = vpop.f32.mrf.mxu0  ;;  %11838 = vmatmul.mubr.msk.f32.gmra.mxu0 %vm163_vm1, %v12401_v28  ;;  %11734 = vmatprep.mubr.msk.f32.mxu1 %vm163_vm1, %v10002_v37  ;;  %v10004_v16 = vld [vmem:[%s18270_s0 + $0x301] sm:$0xff]  ;;  %v10005_v14 = vld [vmem:[%s18270_s0 + $0x309] sm:$0xff] }
 0x237   :  { %v3899_v7 = vpop.f32.mrf.mxu1  ;;  %11840 = vmatprep.mubr.msk.f32.mxu0 %vm163_vm1, %v12402_v35  ;;  %7324 = vrot.lane.b32.xlu1 %v7161_v4, %s12454_s20  ;;  %v7163_v30 = vld [vmem:[%s18271_s1 + $0x128] sm:$0xff]  ;;  %v7162_v19 = vld [vmem:[%s18271_s1 + $0x120] sm:$0xff] }
 0x238   :  { %v15719_v0 = vadd.f32 %v11579_v56, %v4139_v34  ;;  %v4138_v39 = vadd.f32 %v3899_v7, %v14882_v52  ;;  %v4614_v37 = vpop.f32.mrf.mxu0  ;;  %v12403_v52 = vld [vmem:[%s18270_s0 + $0x2f2] sm:$0xff] }
 0x239   :  { %v11476_v43 = vpop.f32.mrf.mxu1  ;;  %11735 = vmatmul.mubr.msk.f32.gmra.mxu1 %vm163_vm1, %v10003_v44  ;;  %v12404_v44 = vld [vmem:[%s18270_s0 + $0x302] sm:$0xff]  ;;  %7326 = vrot.lane.b32.xlu0 %v7162_v19, %s12454_s20 }
 0x23a   :  { %v15730_v28 = vadd.f32 %v4614_v37, %v4138_v39  ;;  %v4141_v4 = vadd.f32 %v11476_v43, %v14897_v36  ;;  %v11582_v34 = vpop.f32.mrf.mxu0  ;;  %11841 = vmatmul.mubr.msk.f32.gmra.mxu0 %vm163_vm1, %v12403_v52  ;;  %11737 = vmatprep.mubr.msk.f32.mxu1 %vm163_vm1, %v10004_v16  ;;  %v10006_v36 = vld [vmem:[%s18270_s0 + $0x319] sm:$0xff]  ;;  %v7164_v43 = vld [vmem:[%s18271_s1 + $0x130] sm:$0xff]  ;;  %v10007_v19 = vld [vmem:[%s18270_s0 + $0x321] sm:$0xff] }
 0x23b   :  { %v3909_v56 = vpop.f32.mrf.mxu1  ;;  %11843 = vmatprep.mubr.msk.f32.mxu0 %vm163_vm1, %v12404_v44  ;;  %7328 = vrot.lane.b32.xlu1 %v7163_v30, %s12454_s20  ;;  %v7165_v37 = vld [vmem:[%s18271_s1 + $0x138] sm:$0xff] }
 0x23c   :  { %v15749_v7 = vadd.f32 %v11582_v34, %v4141_v4  ;;  %v4140_v35 = vadd.f32 %v3909_v56, %v14904_v47  ;;  %v4624_v16 = vpop.f32.mrf.mxu0  ;;  %v12405_v47 = vld [vmem:[%s18270_s0 + $0x30a] sm:$0xff] }
 0x23d   :  { %v11479_v39 = vpop.f32.mrf.mxu1  ;;  %11738 = vmatmul.mubr.msk.f32.gmra.mxu1 %vm163_vm1, %v10005_v14  ;;  %v12406_v14 = vld [vmem:[%s18270_s0 + $0x31a] sm:$0xff]  ;;  %7330 = vrot.lane.b32.xlu0 %v7164_v43, %s12454_s20 }
 0x23e   :  { %v15760_v52 = vadd.f32 %v4624_v16, %v4140_v35  ;;  %v4143_v30 = vadd.f32 %v11479_v39, %v14919_v45  ;;  %v11585_v4 = vpop.f32.mrf.mxu0  ;;  %11844 = vmatmul.mubr.msk.f32.gmra.mxu0 %vm163_vm1, %v12405_v47  ;;  %11740 = vmatprep.mubr.msk.f32.mxu1 %vm163_vm1, %v10006_v36  ;;  %v10008_v45 = vld [vmem:[%s18270_s0 + $0x331] sm:$0xff]  ;;  %v7167_v16 = vld [vmem:[%s18271_s1 + $0x148] sm:$0xff]  ;;  %v7166_v39 = vld [vmem:[%s18271_s1 + $0x140] sm:$0xff] }
 0x23f   :  { %v3919_v34 = vpop.f32.mrf.mxu1  ;;  %11846 = vmatprep.mubr.msk.f32.mxu0 %vm163_vm1, %v12406_v14  ;;  %7332 = vrot.lane.b32.xlu1 %v7165_v37, %s12454_s20  ;;  %v10009_v43 = vld [vmem:[%s18270_s0 + $0x339] sm:$0xff] }
 0x240   :  { %v15779_v56 = vadd.f32 %v11585_v4, %v4143_v30  ;;  %v4142_v44 = vadd.f32 %v3919_v34, %v14926_v18  ;;  %v4634_v36 = vpop.f32.mrf.mxu0  ;;  %v12407_v18 = vld [vmem:[%s18270_s0 + $0x322] sm:$0xff] }
 0x241   :  { %v11482_v35 = vpop.f32.mrf.mxu1  ;;  %11741 = vmatmul.mubr.msk.f32.gmra.mxu1 %vm163_vm1, %v10007_v19  ;;  %v12408_v19 = vld [vmem:[%s18270_s0 + $0x332] sm:$0xff]  ;;  %7334 = vrot.lane.b32.xlu0 %v7166_v39, %s12454_s20  ;;  %v12409_v39 = vld [vmem:[%s18270_s0 + $0x33a] sm:$0xff] }
 0x242   :  { %v15790_v47 = vadd.f32 %v4634_v36, %v4142_v44  ;;  %v4145_v37 = vadd.f32 %v11482_v35, %v14941_v57  ;;  %v11588_v30 = vpop.f32.mrf.mxu0  ;;  %11847 = vmatmul.mubr.msk.f32.gmra.mxu0 %vm163_vm1, %v12407_v18  ;;  %11743 = vmatprep.mubr.msk.f32.mxu1 %vm163_vm1, %v10008_v45  ;;  %v10010_v57 = vld [vmem:[%s18270_s0 + $0x349] sm:$0xff]  ;;  %v7169_v35 = vld [vmem:[%s18271_s1 + $0x158] sm:$0xff] }
 0x243   :  { %v3929_v4 = vpop.f32.mrf.mxu1  ;;  %11849 = vmatprep.mubr.msk.f32.mxu0 %vm163_vm1, %v12408_v19  ;;  %7336 = vrot.lane.b32.xlu1 %v7167_v16, %s12454_s20  ;;  %v10144_v44 = vld [vmem:[%s18270_s0 + $0x34a] sm:$0xff] }
 0x244   :  { %v15809_v34 = vadd.f32 %v11588_v30, %v4145_v37  ;;  %v4144_v14 = vadd.f32 %v3929_v4, %v14948_v31  ;;  %v4644_v45 = vpop.f32.mrf.mxu0  ;;  %v7168_v16 = vld [vmem:[%s18271_s1 + $0x150] sm:$0xff] }
 0x245   :  { %v11485_v36 = vpop.f32.mrf.mxu1  ;;  %11744 = vmatmul.mubr.msk.f32.gmra.mxu1 %vm163_vm1, %v10009_v43  ;;  %v10011_v18 = vld [vmem:[%s18270_s0 + $0x351] sm:$0xff]  ;;  %7338 = vrot.lane.b32.xlu0 %v7168_v16, %s12454_s20 }
 0x246   :  { %v15823_v37 = vadd.f32 %v4644_v45, %v4144_v14  ;;  %v4147_v31 = vadd.f32 %v11485_v36, %v14963_v20  ;;  %v11591_v30 = vpop.f32.mrf.mxu0  ;;  %11850 = vmatmul.mubr.msk.f32.gmra.mxu0 %vm163_vm1, %v12409_v39  ;;  %11746 = vmatprep.mubr.msk.f32.mxu1 %vm163_vm1, %v10010_v57  ;;  %v10145_v20 = vld [vmem:[%s18270_s0 + $0x352] sm:$0xff]  ;;  %v7171_v45 = vld [vmem:[%s18271_s1 + $0x168] sm:$0xff] }
 0x247   :  { %v3939_v43 = vpop.f32.mrf.mxu1  ;;  %11852 = vmatprep.mubr.msk.f32.mxu0 %vm163_vm1, %v10144_v44  ;;  %7340 = vrot.lane.b32.xlu1 %v7169_v35, %s12454_s20  ;;  %v7170_v44 = vld [vmem:[%s18271_s1 + $0x160] sm:$0xff] }
 0x248   :  { %v15839_v4 = vadd.f32 %v11591_v30, %v4147_v31  ;;  %v4146_v19 = vadd.f32 %v3939_v43, %v14970_v40  ;;  %v4654_v14 = vpop.f32.mrf.mxu0  ;;  %v7173_v43 = vld [vmem:[%s18271_s1 + $0x178] sm:$0xff] }
 0x249   :  { %v11488_v57 = vpop.f32.mrf.mxu1  ;;  %11747 = vmatmul.mubr.msk.f32.gmra.mxu1 %vm163_vm1, %v10011_v18  ;;  %7342 = vrot.lane.b32.xlu0 %v7170_v44, %s12454_s20 }
 0x24a   :  { %v15850_v36 = vadd.f32 %v4654_v14, %v4146_v19  ;;  %v4149_v35 = vadd.f32 %v11488_v57, %v14985_v59  ;;  %v11594_v31 = vpop.f32.mrf.mxu0  ;;  %11853 = vmatmul.mubr.msk.f32.gmra.mxu0 %vm163_vm1, %v10145_v20  ;;  %v7172_v59 = vld [vmem:[%s18271_s1 + $0x170] sm:$0xff] }
 0x24b   :  { %v3949_v40 = vpop.f32.mrf.mxu1  ;;  %7344 = vrot.lane.b32.xlu1 %v7171_v45, %s12454_s20 }
 0x24c   :  { %v15855_v16 = vadd.f32 %v11594_v31, %v4149_v35  ;;  %v4148_v30 = vadd.f32 %v3949_v40, %v14992_v51  ;;  %v4664_v39 = vpop.f32.mrf.mxu0  ;;  %v7175_v31 = vld [vmem:[%s18271_s1 + $0x188] sm:$0xff] }
 0x24d   :  { %v11491_v18 = vpop.f32.mrf.mxu1  ;;  %7346 = vrot.lane.b32.xlu0 %v7172_v59, %s12454_s20 }
 0x24e   :  { %v15865_v20 = vadd.f32 %v4664_v39, %v4148_v30  ;;  %v4151_v19 = vadd.f32 %v11491_v18, %v15007_v61  ;;  %v11597_v14 = vpop.f32.mrf.mxu0  ;;  %v7174_v61 = vld [vmem:[%s18271_s1 + $0x180] sm:$0xff] }
 0x24f   :  { %v3959_v57 = vpop.f32.mrf.mxu1  ;;  %7348 = vrot.lane.b32.xlu1 %v7173_v43, %s12454_s20 }
 0x250   :  { %v15869_v51 = vadd.f32 %v11597_v14, %v4151_v19  ;;  %v4150_v45 = vadd.f32 %v3959_v57, %v15014_v63  ;;  %v4674_v44 = vpop.f32.mrf.mxu0  ;;  %v7177_v14 = vld [vmem:[%s18271_s1 + $0x198] sm:$0xff] }
 0x251   :  { %v11494_v35 = vpop.f32.mrf.mxu1  ;;  %7350 = vrot.lane.b32.xlu0 %v7174_v61, %s12454_s20 }
 0x252   :  { %v15879_v40 = vadd.f32 %v4674_v44, %v4150_v45  ;;  %v4153_v30 = vadd.f32 %v11494_v35, %v15029_v6  ;;  %v11600_v39 = vpop.f32.mrf.mxu0  ;;  %v7176_v6 = vld [vmem:[%s18271_s1 + $0x190] sm:$0xff] }
 0x253   :  { %v3969_v18 = vpop.f32.mrf.mxu1  ;;  %7352 = vrot.lane.b32.xlu1 %v7175_v31, %s12454_s20 }
 0x254   :  { %v15883_v63 = vadd.f32 %v11600_v39, %v4153_v30  ;;  %v4152_v43 = vadd.f32 %v3969_v18, %v15036_v21  ;;  %v4684_v59 = vpop.f32.mrf.mxu0  ;;  %v7179_v39 = vld [vmem:[%s18271_s1 + $0x1a8] sm:$0xff] }
 0x255   :  { %v11497_v19 = vpop.f32.mrf.mxu1  ;;  %7354 = vrot.lane.b32.xlu0 %v7176_v6, %s12454_s20 }
 0x256   :  { %v15893_v57 = vadd.f32 %v4684_v59, %v4152_v43  ;;  %v4155_v45 = vadd.f32 %v11497_v19, %v15051_v22  ;;  %v11603_v44 = vpop.f32.mrf.mxu0  ;;  %v7178_v22 = vld [vmem:[%s18271_s1 + $0x1a0] sm:$0xff] }
 0x257   :  { %v3979_v35 = vpop.f32.mrf.mxu1  ;;  %7356 = vrot.lane.b32.xlu1 %v7177_v14, %s12454_s20 }
 0x258   :  { %v15897_v21 = vadd.f32 %v11603_v44, %v4155_v45  ;;  %v4154_v31 = vadd.f32 %v3979_v35, %v15058_v23  ;;  %v4694_v61 = vpop.f32.mrf.mxu0  ;;  %v7181_v44 = vld [vmem:[%s18271_s1 + $0x1b8] sm:$0xff] }
 0x259   :  { %v11500_v30 = vpop.f32.mrf.mxu1  ;;  %7358 = vrot.lane.b32.xlu0 %v7178_v22, %s12454_s20 }
 0x25a   :  { %v15907_v18 = vadd.f32 %v4694_v61, %v4154_v31  ;;  %v4157_v43 = vadd.f32 %v11500_v30, %v15073_v1  ;;  %v11606_v59 = vpop.f32.mrf.mxu0  ;;  %v7180_v1 = vld [vmem:[%s18271_s1 + $0x1b0] sm:$0xff] }
 0x25b   :  { %v3989_v19 = vpop.f32.mrf.mxu1  ;;  %7360 = vrot.lane.b32.xlu1 %v7179_v39, %s12454_s20 }
 0x25c   :  { %v15911_v23 = vadd.f32 %v11606_v59, %v4157_v43  ;;  %v4156_v14 = vadd.f32 %v3989_v19, %v15080_v46  ;;  %v4704_v6 = vpop.f32.mrf.mxu0  ;;  %v7183_v59 = vld [vmem:[%s18271_s1 + $0x1c8] sm:$0xff] }
 0x25d   :  { %v11503_v45 = vpop.f32.mrf.mxu1  ;;  %7362 = vrot.lane.b32.xlu0 %v7180_v1, %s12454_s20 }
 0x25e   :  { %v15921_v35 = vadd.f32 %v4704_v6, %v4156_v14  ;;  %v4159_v31 = vadd.f32 %v11503_v45, %v15095_v49  ;;  %v11609_v61 = vpop.f32.mrf.mxu0  ;;  %v7182_v49 = vld [vmem:[%s18271_s1 + $0x1c0] sm:$0xff] }
 0x25f   :  { %v3999_v30 = vpop.f32.mrf.mxu1  ;;  %7364 = vrot.lane.b32.xlu1 %v7181_v44, %s12454_s20 }
 0x260   :  { %v15925_v46 = vadd.f32 %v11609_v61, %v4159_v31  ;;  %v4158_v39 = vadd.f32 %v3999_v30, %v15102_v50  ;;  %v4714_v22 = vpop.f32.mrf.mxu0  ;;  %v7185_v61 = vld [vmem:[%s18271_s1 + $0x1d8] sm:$0xff] }
 0x261   :  { %v11506_v43 = vpop.f32.mrf.mxu1  ;;  %7366 = vrot.lane.b32.xlu0 %v7182_v49, %s12454_s20 }
 0x262   :  { %v15935_v19 = vadd.f32 %v4714_v22, %v4158_v39  ;;  %v4161_v14 = vadd.f32 %v11506_v43, %v15117_v13  ;;  %v11612_v6 = vpop.f32.mrf.mxu0  ;;  %v7184_v13 = vld [vmem:[%s18271_s1 + $0x1d0] sm:$0xff] }
 0x263   :  { %v4009_v45 = vpop.f32.mrf.mxu1  ;;  %7368 = vrot.lane.b32.xlu1 %v7183_v59, %s12454_s20  ;;  %v18584_v59 = vld [vmem:[#allocation26_spill] sm:$0xff] }
 0x264   :  { %18580 = vst [vmem:[#allocation40_spill] sm:$0xff] %v15935_v19  ;;  %v15939_v50 = vadd.f32 %v11612_v6, %v4161_v14  ;;  %v4160_v44 = vadd.f32 %v4009_v45, %v15124_v54  ;;  %v4724_v1 = vpop.f32.mrf.mxu0  ;;  %v7187_v45 = vld [vmem:[%s18271_s1 + $0x1e8] sm:$0xff] }
 0x265   :  { %v11509_v31 = vpop.f32.mrf.mxu1  ;;  %7370 = vrot.lane.b32.xlu0 %v7184_v13, %s12454_s20  ;;  %v18587_v13 = vld [vmem:[#allocation27_spill] sm:$0xff] }
 0x266   :  { %18581 = vst [vmem:[#allocation41_spill] sm:$0xff] %v15939_v50  ;;  %v15949_v30 = vadd.f32 %v4724_v1, %v4160_v44  ;;  %v4163_v39 = vadd.f32 %v11509_v31, %v15139_v3  ;;  %v11615_v22 = vpop.f32.mrf.mxu0  ;;  %v7186_v3 = vld [vmem:[%s18271_s1 + $0x1e0] sm:$0xff] }
 0x267   :  { %v4019_v43 = vpop.f32.mrf.mxu1  ;;  %7372 = vrot.lane.b32.xlu1 %v7185_v61, %s12454_s20 }
 0x268   :  { %18582 = vst [vmem:[#allocation42_spill] sm:$0xff] %v15949_v30  ;;  %v15953_v54 = vadd.f32 %v11615_v22, %v4163_v39  ;;  %v4162_v49 = vadd.f32 %v4019_v43, %v18584_v59  ;;  %v4734_v14 = vpop.f32.mrf.mxu0  ;;  %v18593_v30 = vld [vmem:[#allocation30_spill] sm:$0xff] }
 0x269   :  { %v11512_v6 = vpop.f32.mrf.mxu1  ;;  %7374 = vrot.lane.b32.xlu0 %v7186_v3, %s12454_s20  ;;  %v18591_v3 = vld [vmem:[#allocation29_spill] sm:$0xff] }
 0x26a   :  { %18583 = vst [vmem:[#allocation43_spill] sm:$0xff] %v15953_v54  ;;  %v15963_v44 = vadd.f32 %v4734_v14, %v4162_v49  ;;  %v4165_v1 = vadd.f32 %v11512_v6, %v15161_v26  ;;  %v11618_v31 = vpop.f32.mrf.mxu0  ;;  %v7189_v54 = vld [vmem:[%s18271_s1 + $0x1f8] sm:$0xff]  ;;  %v7188_v26 = vld [vmem:[%s18271_s1 + $0x1f0] sm:$0xff]  ;;  %v18589_v14 = vld [vmem:[#allocation28_spill] sm:$0xff] }
 0x26b   :  { %v4029_v61 = vpop.f32.mrf.mxu1  ;;  %7376 = vrot.lane.b32.xlu1 %v7187_v45, %s12454_s20 }
 0x26c   :  { %18585 = vst [vmem:[#allocation44_spill] sm:$0xff] %v15963_v44  ;;  %v15967_v39 = vadd.f32 %v11618_v31, %v4165_v1  ;;  %v4164_v22 = vadd.f32 %v4029_v61, %v18587_v13  ;;  %v4744_v43 = vpop.f32.mrf.mxu0 }
 0x26d   :  { %v11515_v59 = vpop.f32.mrf.mxu1  ;;  %7378 = vrot.lane.b32.xlu0 %v7188_v26, %s12454_s20 }
 0x26e   :  { %18586 = vst [vmem:[#allocation45_spill] sm:$0xff] %v15967_v39  ;;  %v15977_v49 = vadd.f32 %v4744_v43, %v4164_v22  ;;  %v4167_v6 = vadd.f32 %v11515_v59, %v18589_v14  ;;  %v11621_v45 = vpop.f32.mrf.mxu0  ;;  %v18595_v59 = vld [vmem:[#allocation31_spill] sm:$0xff] }
 0x26f   :  { %v4039_v1 = vpop.f32.mrf.mxu1  ;;  %7380 = vrot.lane.b32.xlu1 %v7189_v54, %s12454_s20 }
 0x270   :  { %18588 = vst [vmem:[#allocation46_spill] sm:$0xff] %v15977_v49  ;;  %v15981_v31 = vadd.f32 %v11621_v45, %v4167_v6  ;;  %v4166_v61 = vadd.f32 %v4039_v1, %v18591_v3  ;;  %v4754_v13 = vpop.f32.mrf.mxu0  ;;  %v18597_v45 = vld [vmem:[#allocation32_spill] sm:$0xff] }
 0x271   :  { %v11518_v39 = vpop.f32.mrf.mxu1 }
 0x272   :  { %18590 = vst [vmem:[#allocation47_spill] sm:$0xff] %v15981_v31  ;;  %v15985_v44 = vadd.f32 %v4754_v13, %v4166_v61  ;;  %v4169_v50 = vadd.f32 %v11518_v39, %v18593_v30  ;;  %v11624_v22 = vpop.f32.mrf.mxu0  ;;  %v18599_v61 = vld [vmem:[#allocation33_spill] sm:$0xff] }
 0x273   :  { %v4049_v43 = vpop.f32.mrf.mxu1 }
 0x274   :  { %18592 = vst [vmem:[#allocation48_spill] sm:$0xff] %v15985_v44  ;;  %v15988_v49 = vadd.f32 %v11624_v22, %v4169_v50  ;;  %v4168_v14 = vadd.f32 %v4049_v43, %v18595_v59  ;;  %v4764_v19 = vpop.f32.mrf.mxu0  ;;  %v18601_v50 = vld [vmem:[#allocation34_spill] sm:$0xff] }
 0x275   :  { %v11521_v54 = vpop.f32.mrf.mxu1 }
 0x276   :  { %18594 = vst [vmem:[#allocation49_spill] sm:$0xff] %v15988_v49  ;;  %v15991_v6 = vadd.f32 %v4764_v19, %v4168_v14  ;;  %v4171_v1 = vadd.f32 %v11521_v54, %v18597_v45  ;;  %v11627_v3 = vpop.f32.mrf.mxu0  ;;  %v18602_v19 = vld [vmem:[#allocation35_spill] sm:$0xff] }
 0x277   :  { %v4059_v31 = vpop.f32.mrf.mxu1 }
 0x278   :  { %18596 = vst [vmem:[#allocation50_spill] sm:$0xff] %v15991_v6  ;;  %v15994_v26 = vadd.f32 %v11627_v3, %v4171_v1  ;;  %v4170_v13 = vadd.f32 %v4059_v31, %v18599_v61  ;;  %v4774_v44 = vpop.f32.mrf.mxu0  ;;  %v18604_v1 = vld [vmem:[#allocation36_spill] sm:$0xff] }
 0x279   :  { %v11524_v30 = vpop.f32.mrf.mxu1 }
 0x27a   :  { %18598 = vst [vmem:[#allocation8_spill] sm:$0xff] %v15994_v26  ;;  %v15997_v39 = vadd.f32 %v4774_v44, %v4170_v13  ;;  %v4173_v22 = vadd.f32 %v11524_v30, %v18601_v50  ;;  %v11630_v49 = vpop.f32.mrf.mxu0  ;;  %v18605_v44 = vld [vmem:[#allocation37_spill] sm:$0xff] }
 0x27b   :  { %v4069_v43 = vpop.f32.mrf.mxu1 }
 0x27c   :  { %18600 = vst [vmem:[#allocation11_spill] sm:$0xff] %v15997_v39  ;;  %v16000_v59 = vadd.f32 %v11630_v49, %v4173_v22  ;;  %v4172_v14 = vadd.f32 %v4069_v43, %v18602_v19  ;;  %v4784_v6 = vpop.f32.mrf.mxu0 }
 0x27d   :  { %v11527_v54 = vpop.f32.mrf.mxu1 }
 0x27e   :  { %v16003_v45 = vadd.f32 %v4784_v6, %v4172_v14  ;;  %v4175_v3 = vadd.f32 %v11527_v54, %v18604_v1  ;;  %v11633_v26 = vpop.f32.mrf.mxu0  ;;  %v18606_v6 = vld [vmem:[#allocation38_spill] sm:$0xff] }
 0x27f   :  { %v4079_v31 = vpop.f32.mrf.mxu1 }
 0x280   :  { %18603 = vst [vmem:[#allocation9_spill] sm:$0xff] %v16003_v45  ;;  %v16006_v61 = vadd.f32 %v11633_v26, %v4175_v3  ;;  %v4174_v13 = vadd.f32 %v4079_v31, %v18605_v44  ;;  %v4794_v39 = vpop.f32.mrf.mxu0 }
 0x281   :  { %v11530_v30 = vpop.f32.mrf.mxu1 }
 0x282   :  { %v16009_v50 = vadd.f32 %v4794_v39, %v4174_v13  ;;  %v4177_v49 = vadd.f32 %v11530_v30, %v15332_v24  ;;  %v11636_v22 = vpop.f32.mrf.mxu0 }
 0x283   :  { %v4089_v43 = vpop.f32.mrf.mxu1 }
 0x284   :  { %v16012_v19 = vadd.f32 %v11636_v22, %v4177_v49  ;;  %v4176_v14 = vadd.f32 %v4089_v43, %v18606_v6  ;;  %v4804_v45 = vpop.f32.mrf.mxu0 }
 0x285   :  { %v11533_v54 = vpop.f32.mrf.mxu1 }
 0x286   :  { %v16015_v1 = vadd.f32 %v4804_v45, %v4176_v14  ;;  %v4179_v26 = vadd.f32 %v11533_v54, %v15362_v62  ;;  %v11639_v3 = vpop.f32.mrf.mxu0 }
 0x287   :  { %v4099_v31 = vpop.f32.mrf.mxu1 }
 0x288   :  { %v16018_v44 = vadd.f32 %v11639_v3, %v4179_v26  ;;  %v4178_v39 = vadd.f32 %v4099_v31, %v15376_v32  ;;  %v4814_v13 = vpop.f32.mrf.mxu0  ;;  %v18610_v31 = vld [vmem:[#allocation39_spill] sm:$0xff] }
 0x289   :  { %v11536_v24 = vpop.f32.mrf.mxu1 }
 0x28a   :  { %18607 = vst [vmem:[#allocation10_spill] sm:$0xff] %v16018_v44  ;;  %v16021_v30 = vadd.f32 %v4814_v13, %v4178_v39  ;;  %v4181_v49 = vadd.f32 %v11536_v24, %v15392_v25  ;;  %v11642_v22 = vpop.f32.mrf.mxu0 }
 0x28b   :  { %v4109_v43 = vpop.f32.mrf.mxu1 }
 0x28c   :  { %v16024_v6 = vadd.f32 %v11642_v22, %v4181_v49  ;;  %v4180_v45 = vadd.f32 %v4109_v43, %v15406_v58  ;;  %v4824_v14 = vpop.f32.mrf.mxu0 }
 0x28d   :  { %v11655_v62 = vpop.f32.mrf.mxu1 }
 0x28e   :  { %18608 = vst [vmem:[#allocation12_spill] sm:$0xff] %v16024_v6  ;;  %v16027_v54 = vadd.f32 %v4824_v14, %v4180_v45  ;;  %v5548_v26 = vadd.f32 %v11655_v62, %v15422_v53  ;;  %v11761_v3 = vpop.f32.mrf.mxu0 }
 0x28f   :  { %v5228_v32 = vpop.f32.mrf.mxu1 }
 0x290   :  { %18609 = vst [vmem:[#allocation13_spill] sm:$0xff] %v16027_v54  ;;  %v5547_v44 = vadd.f32 %v5228_v32, %v18610_v31  ;;  %v5942_v39 = vpop.f32.mrf.mxu0  ;;  %v16031_v13 = vadd.f32 %v11761_v3, %v5548_v26 }
 0x291   :  { %v11658_v25 = vpop.f32.mrf.mxu1 }
 0x292   :  { %18611 = vst [vmem:[#allocation14_spill] sm:$0xff] %v16031_v13  ;;  %v16033_v24 = vadd.f32 %v5942_v39, %v5547_v44  ;;  %v5550_v49 = vadd.f32 %v11658_v25, %v15452_v5  ;;  %v11764_v22 = vpop.f32.mrf.mxu0  ;;  %v6395_v14 = vmul.f32 %v16031_v13, %v16031_v13 }
 0x293   :  { %v5238_v58 = vpop.f32.mrf.mxu1 }
 0x294   :  { %v6394_v43 = vmul.f32 %v16033_v24, %v16033_v24  ;;  %v5549_v45 = vadd.f32 %v5238_v58, %v15463_v60  ;;  %v5952_v53 = vpop.f32.mrf.mxu0  ;;  %v6325_v26 = vadd.f32 %v16031_v13, %v16033_v24  ;;  %v16043_v3 = vadd.f32 %v11764_v22, %v5550_v49 }
 0x295   :  { %v11661_v62 = vpop.f32.mrf.mxu1 }
 0x296   :  { %v16045_v44 = vadd.f32 %v5952_v53, %v5549_v45  ;;  %v5552_v5 = vadd.f32 %v11661_v62, %v15479_v2  ;;  %v11767_v32 = vpop.f32.mrf.mxu0  ;;  %v6458_v39 = vadd.f32 %v6395_v14, %v6394_v43  ;;  %v6397_v49 = vmul.f32 %v16043_v3, %v16043_v3 }
 0x297   :  { %v5248_v31 = vpop.f32.mrf.mxu1 }
 0x298   :  { %v6326_v25 = vadd.f32 %v6325_v26, %v16045_v44  ;;  %v6396_v60 = vmul.f32 %v16045_v44, %v16045_v44  ;;  %v5551_v58 = vadd.f32 %v5248_v31, %v15490_v33  ;;  %v5962_v54 = vpop.f32.mrf.mxu0  ;;  %v16052_v6 = vadd.f32 %v11767_v32, %v5552_v5 }
 0x299   :  { %v11664_v13 = vpop.f32.mrf.mxu1 }
 0x29a   :  { %v6327_v22 = vadd.f32 %v6326_v25, %v16043_v3  ;;  %v6459_v2 = vadd.f32 %v6458_v39, %v6396_v60  ;;  %v16057_v45 = vadd.f32 %v5962_v54, %v5551_v58  ;;  %v11770_v43 = vpop.f32.mrf.mxu0  ;;  %v5554_v53 = vadd.f32 %v11664_v13, %v15509_v38 }
 0x29b   :  { %v5258_v14 = vpop.f32.mrf.mxu1  ;;  %v6399_v31 = vmul.f32 %v16052_v6, %v16052_v6 }
 0x29c   :  { %18612 = vst [vmem:[#allocation15_spill] sm:$0xff] %v16057_v45  ;;  %v6460_v62 = vadd.f32 %v6459_v2, %v6397_v49  ;;  %v6328_v26 = vadd.f32 %v6327_v22, %v16057_v45  ;;  %v6398_v33 = vmul.f32 %v16057_v45, %v16057_v45  ;;  %v5553_v5 = vadd.f32 %v5258_v14, %v15520_v29  ;;  %v5972_v32 = vpop.f32.mrf.mxu0 }
 0x29d   :  { %v11667_v25 = vpop.f32.mrf.mxu1  ;;  %v16066_v54 = vadd.f32 %v11770_v43, %v5554_v53 }
 0x29e   :  { %v6461_v39 = vadd.f32 %v6460_v62, %v6398_v33  ;;  %v16068_v60 = vadd.f32 %v5972_v32, %v5553_v5  ;;  %v6329_v38 = vadd.f32 %v6328_v26, %v16052_v6  ;;  %v11773_v13 = vpop.f32.mrf.mxu0  ;;  %v5556_v58 = vadd.f32 %v11667_v25, %v15539_v9 }
 0x29f   :  { %v5268_v49 = vpop.f32.mrf.mxu1  ;;  %v6401_v43 = vmul.f32 %v16066_v54, %v16066_v54 }
 0x2a0   :  { %v6330_v22 = vadd.f32 %v6329_v38, %v16068_v60  ;;  %v6400_v29 = vmul.f32 %v16068_v60, %v16068_v60  ;;  %v6462_v2 = vadd.f32 %v6461_v39, %v6399_v31  ;;  %v5982_v14 = vpop.f32.mrf.mxu0  ;;  %v5555_v45 = vadd.f32 %v5268_v49, %v15550_v41 }
 0x2a1   :  { %v11670_v62 = vpop.f32.mrf.mxu1  ;;  %v16080_v5 = vadd.f32 %v11773_v13, %v5556_v58 }
 0x2a2   :  { %v6463_v53 = vadd.f32 %v6462_v2, %v6400_v29  ;;  %v6331_v26 = vadd.f32 %v6330_v22, %v16066_v54  ;;  %v5558_v33 = vadd.f32 %v11670_v62, %v15569_v42  ;;  %v11776_v9 = vpop.f32.mrf.mxu0  ;;  %v16082_v32 = vadd.f32 %v5982_v14, %v5555_v45 }
 0x2a3   :  { %v5278_v25 = vpop.f32.mrf.mxu1  ;;  %v6403_v45 = vmul.f32 %v16080_v5, %v16080_v5 }
 0x2a4   :  { %v6464_v38 = vadd.f32 %v6463_v53, %v6401_v43  ;;  %v5557_v31 = vadd.f32 %v5278_v25, %v15580_v17  ;;  %v5992_v39 = vpop.f32.mrf.mxu0  ;;  %v6332_v41 = vadd.f32 %v6331_v26, %v16082_v32  ;;  %v6402_v49 = vmul.f32 %v16082_v32, %v16082_v32 }
 0x2a5   :  { %v11673_v29 = vpop.f32.mrf.mxu1  ;;  %v16088_v2 = vadd.f32 %v11776_v9, %v5558_v33 }
 0x2a6   :  { %v16090_v22 = vadd.f32 %v5992_v39, %v5557_v31  ;;  %v11779_v42 = vpop.f32.mrf.mxu0  ;;  %v6465_v13 = vadd.f32 %v6464_v38, %v6402_v49  ;;  %v6333_v58 = vadd.f32 %v6332_v41, %v16080_v5  ;;  %v5560_v17 = vadd.f32 %v11673_v29, %v15599_v55 }
 0x2a7   :  { %v5288_v14 = vpop.f32.mrf.mxu1  ;;  %v6405_v25 = vmul.f32 %v16088_v2, %v16088_v2 }
 0x2a8   :  { %v6404_v62 = vmul.f32 %v16090_v22, %v16090_v22  ;;  %v5559_v43 = vadd.f32 %v5288_v14, %v15610_v10  ;;  %v6002_v53 = vpop.f32.mrf.mxu0  ;;  %v6334_v26 = vadd.f32 %v6333_v58, %v16090_v22  ;;  %v6466_v33 = vadd.f32 %v6465_v13, %v6403_v45 }
 0x2a9   :  { %v11676_v9 = vpop.f32.mrf.mxu1  ;;  %v16104_v41 = vadd.f32 %v11779_v42, %v5560_v17 }
 0x2aa   :  { %v16102_v31 = vadd.f32 %v6002_v53, %v5559_v43  ;;  %v11782_v38 = vpop.f32.mrf.mxu0  ;;  %v6467_v39 = vadd.f32 %v6466_v33, %v6404_v62  ;;  %v6335_v55 = vadd.f32 %v6334_v26, %v16088_v2  ;;  %v5562_v49 = vadd.f32 %v11676_v9, %v15629_v11 }
 0x2ab   :  { %v5298_v29 = vpop.f32.mrf.mxu1  ;;  %v6407_v62 = vmul.f32 %v16104_v41, %v16104_v41 }
 0x2ac   :  { %v6406_v10 = vmul.f32 %v16102_v31, %v16102_v31  ;;  %v5561_v45 = vadd.f32 %v5298_v29, %v15640_v48  ;;  %v6012_v13 = vpop.f32.mrf.mxu0  ;;  %v6336_v58 = vadd.f32 %v6335_v55, %v16102_v31  ;;  %v6468_v14 = vadd.f32 %v6467_v39, %v6405_v25 }
 0x2ad   :  { %v11679_v43 = vpop.f32.mrf.mxu1  ;;  %v16117_v26 = vadd.f32 %v11782_v38, %v5562_v49 }
 0x2ae   :  { %v16112_v53 = vadd.f32 %v6012_v13, %v5561_v45  ;;  %v5564_v42 = vadd.f32 %v11679_v43, %v15659_v12  ;;  %v11785_v17 = vpop.f32.mrf.mxu0  ;;  %v6469_v11 = vadd.f32 %v6468_v14, %v6406_v10  ;;  %v6337_v33 = vadd.f32 %v6336_v58, %v16104_v41 }
 0x2af   :  { %v5308_v9 = vpop.f32.mrf.mxu1  ;;  %v6409_v38 = vmul.f32 %v16117_v26, %v16117_v26 }
 0x2b0   :  { %v6408_v48 = vmul.f32 %v16112_v53, %v16112_v53  ;;  %v5563_v25 = vadd.f32 %v5308_v9, %v15670_v15  ;;  %v6022_v39 = vpop.f32.mrf.mxu0  ;;  %v6338_v55 = vadd.f32 %v6337_v33, %v16112_v53  ;;  %v6470_v29 = vadd.f32 %v6469_v11, %v6407_v62 }
 0x2b1   :  { %v11682_v12 = vpop.f32.mrf.mxu1  ;;  %v16124_v45 = vadd.f32 %v11785_v17, %v5564_v42 }
 0x2b2   :  { %v16126_v13 = vadd.f32 %v6022_v39, %v5563_v25  ;;  %v11788_v10 = vpop.f32.mrf.mxu0  ;;  %v6471_v49 = vadd.f32 %v6470_v29, %v6408_v48  ;;  %v6339_v58 = vadd.f32 %v6338_v55, %v16117_v26  ;;  %v5566_v14 = vadd.f32 %v11682_v12, %v15689_v8 }
 0x2b3   :  { %v5318_v43 = vpop.f32.mrf.mxu1  ;;  %v6411_v9 = vmul.f32 %v16124_v45, %v16124_v45 }
 0x2b4   :  { %v6410_v15 = vmul.f32 %v16126_v13, %v16126_v13  ;;  %v5565_v62 = vadd.f32 %v5318_v43, %v15700_v27  ;;  %v6032_v11 = vpop.f32.mrf.mxu0  ;;  %v6340_v42 = vadd.f32 %v6339_v58, %v16126_v13  ;;  %v6472_v17 = vadd.f32 %v6471_v49, %v6409_v38 }
 0x2b5   :  { %v11685_v33 = vpop.f32.mrf.mxu1  ;;  %v16140_v55 = vadd.f32 %v11788_v10, %v5566_v14 }
 0x2b6   :  { %v16138_v25 = vadd.f32 %v6032_v11, %v5565_v62  ;;  %v11791_v48 = vpop.f32.mrf.mxu0  ;;  %v6473_v39 = vadd.f32 %v6472_v17, %v6410_v15  ;;  %v6341_v8 = vadd.f32 %v6340_v42, %v16124_v45  ;;  %v5568_v29 = vadd.f32 %v11685_v33, %v15719_v0 }
 0x2b7   :  { %v5328_v12 = vpop.f32.mrf.mxu1  ;;  %v6413_v15 = vmul.f32 %v16140_v55, %v16140_v55 }
 0x2b8   :  { %v6412_v27 = vmul.f32 %v16138_v25, %v16138_v25  ;;  %v5567_v38 = vadd.f32 %v5328_v12, %v15730_v28  ;;  %v6042_v49 = vpop.f32.mrf.mxu0  ;;  %v6342_v58 = vadd.f32 %v6341_v8, %v16138_v25  ;;  %v6474_v43 = vadd.f32 %v6473_v39, %v6411_v9 }
 0x2b9   :  { %v11688_v62 = vpop.f32.mrf.mxu1  ;;  %v16153_v42 = vadd.f32 %v11791_v48, %v5568_v29 }
 0x2ba   :  { %v16148_v11 = vadd.f32 %v6042_v49, %v5567_v38  ;;  %v5570_v10 = vadd.f32 %v11688_v62, %v15749_v7  ;;  %v11794_v14 = vpop.f32.mrf.mxu0  ;;  %v6475_v0 = vadd.f32 %v6474_v43, %v6412_v27  ;;  %v6343_v17 = vadd.f32 %v6342_v58, %v16140_v55 }
 0x2bb   :  { %v5338_v33 = vpop.f32.mrf.mxu1  ;;  %v6415_v48 = vmul.f32 %v16153_v42, %v16153_v42 }
 0x2bc   :  { %v6414_v28 = vmul.f32 %v16148_v11, %v16148_v11  ;;  %v5569_v9 = vadd.f32 %v5338_v33, %v15760_v52  ;;  %v6052_v39 = vpop.f32.mrf.mxu0  ;;  %v6344_v8 = vadd.f32 %v6343_v17, %v16148_v11  ;;  %v6476_v12 = vadd.f32 %v6475_v0, %v6413_v15 }
 0x2bd   :  { %v11691_v7 = vpop.f32.mrf.mxu1  ;;  %v16160_v38 = vadd.f32 %v11794_v14, %v5570_v10 }
 0x2be   :  { %v16162_v49 = vadd.f32 %v6052_v39, %v5569_v9  ;;  %v11797_v27 = vpop.f32.mrf.mxu0  ;;  %v6477_v29 = vadd.f32 %v6476_v12, %v6414_v28  ;;  %v6345_v58 = vadd.f32 %v6344_v8, %v16153_v42  ;;  %v5572_v43 = vadd.f32 %v11691_v7, %v15779_v56 }
 0x2bf   :  { %v5348_v62 = vpop.f32.mrf.mxu1  ;;  %v6417_v33 = vmul.f32 %v16160_v38, %v16160_v38 }
 0x2c0   :  { %v6416_v52 = vmul.f32 %v16162_v49, %v16162_v49  ;;  %v5571_v15 = vadd.f32 %v5348_v62, %v15790_v47  ;;  %v6062_v0 = vpop.f32.mrf.mxu0  ;;  %v6346_v10 = vadd.f32 %v6345_v58, %v16162_v49  ;;  %v6478_v14 = vadd.f32 %v6477_v29, %v6415_v48 }
 0x2c1   :  { %v11694_v17 = vpop.f32.mrf.mxu1  ;;  %v16176_v8 = vadd.f32 %v11797_v27, %v5572_v43 }
 0x2c2   :  { %v16174_v9 = vadd.f32 %v6062_v0, %v5571_v15  ;;  %v11800_v28 = vpop.f32.mrf.mxu0  ;;  %v6479_v39 = vadd.f32 %v6478_v14, %v6416_v52  ;;  %v6347_v56 = vadd.f32 %v6346_v10, %v16160_v38  ;;  %v5574_v12 = vadd.f32 %v11694_v17, %v15809_v34 }
 0x2c3   :  { %v5358_v7 = vpop.f32.mrf.mxu1  ;;  %v6419_v52 = vmul.f32 %v16176_v8, %v16176_v8 }
 0x2c4   :  { %v6418_v47 = vmul.f32 %v16174_v9, %v16174_v9  ;;  %v5573_v48 = vadd.f32 %v5358_v7, %v15823_v37  ;;  %v6072_v29 = vpop.f32.mrf.mxu0  ;;  %v6348_v58 = vadd.f32 %v6347_v56, %v16174_v9  ;;  %v6480_v62 = vadd.f32 %v6479_v39, %v6417_v33 }
 0x2c5   :  { %v11697_v15 = vpop.f32.mrf.mxu1  ;;  %v16189_v10 = vadd.f32 %v11800_v28, %v5574_v12 }
 0x2c6   :  { %v16184_v0 = vadd.f32 %v6072_v29, %v5573_v48  ;;  %v5576_v27 = vadd.f32 %v11697_v15, %v15839_v4  ;;  %v11803_v43 = vpop.f32.mrf.mxu0  ;;  %v6481_v34 = vadd.f32 %v6480_v62, %v6418_v47  ;;  %v6349_v14 = vadd.f32 %v6348_v58, %v16176_v8 }
 0x2c7   :  { %v5368_v17 = vpop.f32.mrf.mxu1  ;;  %v6421_v28 = vmul.f32 %v16189_v10, %v16189_v10 }
 0x2c8   :  { %v6420_v37 = vmul.f32 %v16184_v0, %v16184_v0  ;;  %v5575_v33 = vadd.f32 %v5368_v17, %v15850_v36  ;;  %v6082_v39 = vpop.f32.mrf.mxu0  ;;  %v6350_v56 = vadd.f32 %v6349_v14, %v16184_v0  ;;  %v6482_v7 = vadd.f32 %v6481_v34, %v6419_v52 }
 0x2c9   :  { %v11700_v4 = vpop.f32.mrf.mxu1  ;;  %v16196_v48 = vadd.f32 %v11803_v43, %v5576_v27 }
 0x2ca   :  { %v16198_v29 = vadd.f32 %v6082_v39, %v5575_v33  ;;  %v11806_v47 = vpop.f32.mrf.mxu0  ;;  %v6483_v12 = vadd.f32 %v6482_v7, %v6420_v37  ;;  %v6351_v58 = vadd.f32 %v6350_v56, %v16189_v10  ;;  %v5578_v62 = vadd.f32 %v11700_v4, %v15855_v16 }
 0x2cb   :  { %v5378_v15 = vpop.f32.mrf.mxu1  ;;  %v6423_v17 = vmul.f32 %v16196_v48, %v16196_v48 }
 0x2cc   :  { %v6422_v36 = vmul.f32 %v16198_v29, %v16198_v29  ;;  %v5577_v52 = vadd.f32 %v5378_v15, %v15865_v20  ;;  %v6092_v34 = vpop.f32.mrf.mxu0  ;;  %v6352_v27 = vadd.f32 %v6351_v58, %v16198_v29  ;;  %v6484_v43 = vadd.f32 %v6483_v12, %v6421_v28 }
 0x2cd   :  { %v11703_v14 = vpop.f32.mrf.mxu1  ;;  %v16212_v56 = vadd.f32 %v11806_v47, %v5578_v62 }
 0x2ce   :  { %v16210_v33 = vadd.f32 %v6092_v34, %v5577_v52  ;;  %v11809_v37 = vpop.f32.mrf.mxu0  ;;  %v6485_v39 = vadd.f32 %v6484_v43, %v6422_v36  ;;  %v6353_v16 = vadd.f32 %v6352_v27, %v16196_v48  ;;  %v5580_v7 = vadd.f32 %v11703_v14, %v15869_v51 }
 0x2cf   :  { %v5388_v4 = vpop.f32.mrf.mxu1  ;;  %v6425_v36 = vmul.f32 %v16212_v56, %v16212_v56 }
 0x2d0   :  { %v6424_v20 = vmul.f32 %v16210_v33, %v16210_v33  ;;  %v5579_v28 = vadd.f32 %v5388_v4, %v15879_v40  ;;  %v6102_v12 = vpop.f32.mrf.mxu0  ;;  %v6354_v58 = vadd.f32 %v6353_v16, %v16210_v33  ;;  %v6486_v15 = vadd.f32 %v6485_v39, %v6423_v17 }
 0x2d1   :  { %v11706_v52 = vpop.f32.mrf.mxu1  ;;  %v16225_v27 = vadd.f32 %v11809_v37, %v5580_v7 }
 0x2d2   :  { %v16220_v34 = vadd.f32 %v6102_v12, %v5579_v28  ;;  %v5582_v47 = vadd.f32 %v11706_v52, %v15883_v63  ;;  %v11812_v62 = vpop.f32.mrf.mxu0  ;;  %v6487_v51 = vadd.f32 %v6486_v15, %v6424_v20  ;;  %v6355_v43 = vadd.f32 %v6354_v58, %v16212_v56 }
 0x2d3   :  { %v5398_v14 = vpop.f32.mrf.mxu1  ;;  %v6427_v37 = vmul.f32 %v16225_v27, %v16225_v27 }
 0x2d4   :  { %v6426_v40 = vmul.f32 %v16220_v34, %v16220_v34  ;;  %v5581_v17 = vadd.f32 %v5398_v14, %v15893_v57  ;;  %v6112_v39 = vpop.f32.mrf.mxu0  ;;  %v6356_v16 = vadd.f32 %v6355_v43, %v16220_v34  ;;  %v6488_v4 = vadd.f32 %v6487_v51, %v6425_v36 }
 0x2d5   :  { %v11709_v63 = vpop.f32.mrf.mxu1  ;;  %v16232_v28 = vadd.f32 %v11812_v62, %v5582_v47 }
 0x2d6   :  { %v16234_v12 = vadd.f32 %v6112_v39, %v5581_v17  ;;  %v11815_v20 = vpop.f32.mrf.mxu0  ;;  %v6489_v7 = vadd.f32 %v6488_v4, %v6426_v40  ;;  %v6357_v58 = vadd.f32 %v6356_v16, %v16225_v27  ;;  %v5584_v15 = vadd.f32 %v11709_v63, %v15897_v21 }
 0x2d7   :  { %v5408_v52 = vpop.f32.mrf.mxu1  ;;  %v6429_v14 = vmul.f32 %v16232_v28, %v16232_v28 }
 0x2d8   :  { %v6428_v57 = vmul.f32 %v16234_v12, %v16234_v12  ;;  %v5583_v36 = vadd.f32 %v5408_v52, %v15907_v18  ;;  %v6122_v51 = vpop.f32.mrf.mxu0  ;;  %v6358_v47 = vadd.f32 %v6357_v58, %v16234_v12  ;;  %v6490_v62 = vadd.f32 %v6489_v7, %v6427_v37 }
 0x2d9   :  { %v11712_v43 = vpop.f32.mrf.mxu1  ;;  %v16248_v16 = vadd.f32 %v11815_v20, %v5584_v15 }
 0x2da   :  { %v16246_v17 = vadd.f32 %v6122_v51, %v5583_v36  ;;  %v11818_v40 = vpop.f32.mrf.mxu0  ;;  %v6491_v39 = vadd.f32 %v6490_v62, %v6428_v57  ;;  %v6359_v21 = vadd.f32 %v6358_v47, %v16232_v28  ;;  %v5586_v4 = vadd.f32 %v11712_v43, %v15911_v23 }
 0x2db   :  { %18614 = vst [vmem:[#allocation17_spill] sm:$0xff] %v16248_v16  ;;  %v5418_v63 = vpop.f32.mrf.mxu1  ;;  %v6431_v57 = vmul.f32 %v16248_v16, %v16248_v16 }
 0x2dc   :  { %18613 = vst [vmem:[#allocation16_spill] sm:$0xff] %v16246_v17  ;;  %v6430_v18 = vmul.f32 %v16246_v17, %v16246_v17  ;;  %v5585_v37 = vadd.f32 %v5418_v63, %v15921_v35  ;;  %v6132_v7 = vpop.f32.mrf.mxu0  ;;  %v6360_v58 = vadd.f32 %v6359_v21, %v16246_v17  ;;  %v6492_v52 = vadd.f32 %v6491_v39, %v6429_v14  ;;  %v18617_v21 = vld [vmem:[#allocation40_spill] sm:$0xff] }
 0x2dd   :  { %v11715_v36 = vpop.f32.mrf.mxu1  ;;  %v16261_v47 = vadd.f32 %v11818_v40, %v5586_v4 }
 0x2de   :  { %v16256_v51 = vadd.f32 %v6132_v7, %v5585_v37  ;;  %v5588_v20 = vadd.f32 %v11715_v36, %v15925_v46  ;;  %v11821_v15 = vpop.f32.mrf.mxu0  ;;  %v6493_v23 = vadd.f32 %v6492_v52, %v6430_v18  ;;  %v6361_v62 = vadd.f32 %v6360_v58, %v16248_v16  ;;  %v18620_v52 = vld [vmem:[#allocation41_spill] sm:$0xff] }
 0x2df   :  { %18616 = vst [vmem:[#allocation19_spill] sm:$0xff] %v16261_v47  ;;  %v5428_v43 = vpop.f32.mrf.mxu1  ;;  %v6433_v40 = vmul.f32 %v16261_v47, %v16261_v47 }
 0x2e0   :  { %18615 = vst [vmem:[#allocation18_spill] sm:$0xff] %v16256_v51  ;;  %v6432_v35 = vmul.f32 %v16256_v51, %v16256_v51  ;;  %v5587_v14 = vadd.f32 %v5428_v43, %v18617_v21  ;;  %v6142_v39 = vpop.f32.mrf.mxu0  ;;  %v6362_v63 = vadd.f32 %v6361_v62, %v16256_v51  ;;  %v6494_v37 = vadd.f32 %v6493_v23, %v6431_v57  ;;  %v18621_v62 = vld [vmem:[#allocation42_spill] sm:$0xff] }
 0x2e1   :  { %v11718_v46 = vpop.f32.mrf.mxu1  ;;  %v16268_v7 = vadd.f32 %v11821_v15, %v5588_v20 }
 0x2e2   :  { %v16270_v36 = vadd.f32 %v6142_v39, %v5587_v14  ;;  %v11824_v18 = vpop.f32.mrf.mxu0  ;;  %v6495_v4 = vadd.f32 %v6494_v37, %v6432_v35  ;;  %v6363_v58 = vadd.f32 %v6362_v63, %v16261_v47  ;;  %v5590_v16 = vadd.f32 %v11718_v46, %v18620_v52  ;;  %v18624_v52 = vld [vmem:[#allocation43_spill] sm:$0xff] }
 0x2e3   :  { %18618 = vst [vmem:[#allocation20_spill] sm:$0xff] %v16268_v7  ;;  %v5438_v17 = vpop.f32.mrf.mxu1  ;;  %v6435_v14 = vmul.f32 %v16268_v7, %v16268_v7 }
 0x2e4   :  { %18619 = vst [vmem:[#allocation21_spill] sm:$0xff] %v16270_v36  ;;  %v6434_v43 = vmul.f32 %v16270_v36, %v16270_v36  ;;  %v5589_v57 = vadd.f32 %v5438_v17, %v18621_v62  ;;  %v6152_v23 = vpop.f32.mrf.mxu0  ;;  %v6364_v20 = vadd.f32 %v6363_v58, %v16270_v36  ;;  %v6496_v15 = vadd.f32 %v6495_v4, %v6433_v40  ;;  %v18625_v58 = vld [vmem:[#allocation44_spill] sm:$0xff] }
 0x2e5   :  { %v11721_v21 = vpop.f32.mrf.mxu1  ;;  %v16284_v37 = vadd.f32 %v11824_v18, %v5590_v16 }
 0x2e6   :  { %v16282_v39 = vadd.f32 %v6152_v23, %v5589_v57  ;;  %v11827_v35 = vpop.f32.mrf.mxu0  ;;  %v6497_v63 = vadd.f32 %v6496_v15, %v6434_v43  ;;  %v6365_v46 = vadd.f32 %v6364_v20, %v16268_v7  ;;  %v5592_v47 = vadd.f32 %v11721_v21, %v18624_v52  ;;  %v18627_v43 = vld [vmem:[#allocation45_spill] sm:$0xff] }
 0x2e7   :  { %18623 = vst [vmem:[#allocation23_spill] sm:$0xff] %v16284_v37  ;;  %v5448_v51 = vpop.f32.mrf.mxu1  ;;  %v6437_v20 = vmul.f32 %v16284_v37, %v16284_v37 }
 0x2e8   :  { %18622 = vst [vmem:[#allocation22_spill] sm:$0xff] %v16282_v39  ;;  %v6436_v17 = vmul.f32 %v16282_v39, %v16282_v39  ;;  %v5591_v40 = vadd.f32 %v5448_v51, %v18625_v58  ;;  %v6162_v4 = vpop.f32.mrf.mxu0  ;;  %v6366_v62 = vadd.f32 %v6365_v46, %v16282_v39  ;;  %v6498_v36 = vadd.f32 %v6497_v63, %v6435_v14  ;;  %v18629_v46 = vld [vmem:[#allocation46_spill] sm:$0xff] }
 0x2e9   :  { %v11724_v57 = vpop.f32.mrf.mxu1  ;;  %v16297_v21 = vadd.f32 %v11827_v35, %v5592_v47 }
 0x2ea   :  { %v16292_v23 = vadd.f32 %v6162_v4, %v5591_v40  ;;  %v5594_v16 = vadd.f32 %v11724_v57, %v18627_v43  ;;  %v11830_v18 = vpop.f32.mrf.mxu0  ;;  %v6499_v15 = vadd.f32 %v6498_v36, %v6436_v17  ;;  %v6367_v52 = vadd.f32 %v6366_v62, %v16284_v37  ;;  %v18632_v62 = vld [vmem:[#allocation47_spill] sm:$0xff] }
 0x2eb   :  { %18628 = vst [vmem:[#allocation25_spill] sm:$0xff] %v16297_v21  ;;  %v5458_v7 = vpop.f32.mrf.mxu1  ;;  %v6439_v47 = vmul.f32 %v16297_v21, %v16297_v21 }
 0x2ec   :  { %18626 = vst [vmem:[#allocation24_spill] sm:$0xff] %v16292_v23  ;;  %v6438_v51 = vmul.f32 %v16292_v23, %v16292_v23  ;;  %v5593_v14 = vadd.f32 %v5458_v7, %v18629_v46  ;;  %v6172_v63 = vpop.f32.mrf.mxu0  ;;  %v6368_v58 = vadd.f32 %v6367_v52, %v16292_v23  ;;  %v6500_v40 = vadd.f32 %v6499_v15, %v6437_v20  ;;  %v18633_v52 = vld [vmem:[#allocation48_spill] sm:$0xff] }
 0x2ed   :  { %v11727_v4 = vpop.f32.mrf.mxu1  ;;  %v16304_v57 = vadd.f32 %v11830_v18, %v5594_v16 }
 0x2ee   :  { %v16306_v43 = vadd.f32 %v6172_v63, %v5593_v14  ;;  %v11833_v36 = vpop.f32.mrf.mxu0  ;;  %v6501_v35 = vadd.f32 %v6500_v40, %v6438_v51  ;;  %v6369_v17 = vadd.f32 %v6368_v58, %v16297_v21  ;;  %v5596_v37 = vadd.f32 %v11727_v4, %v18632_v62  ;;  %v18635_v62 = vld [vmem:[#allocation49_spill] sm:$0xff] }
 0x2ef   :  { %18630 = vst [vmem:[#allocation26_spill] sm:$0xff] %v16304_v57  ;;  %v5468_v39 = vpop.f32.mrf.mxu1  ;;  %v6441_v14 = vmul.f32 %v16304_v57, %v16304_v57 }
 0x2f0   :  { %18631 = vst [vmem:[#allocation27_spill] sm:$0xff] %v16306_v43  ;;  %v6440_v7 = vmul.f32 %v16306_v43, %v16306_v43  ;;  %v5595_v20 = vadd.f32 %v5468_v39, %v18633_v52  ;;  %v6182_v15 = vpop.f32.mrf.mxu0  ;;  %v6370_v16 = vadd.f32 %v6369_v17, %v16306_v43  ;;  %v6502_v18 = vadd.f32 %v6501_v35, %v6439_v47  ;;  %v18636_v17 = vld [vmem:[#allocation50_spill] sm:$0xff] }
 0x2f1   :  { %v11730_v46 = vpop.f32.mrf.mxu1  ;;  %v16320_v40 = vadd.f32 %v11833_v36, %v5596_v37 }
 0x2f2   :  { %v16318_v63 = vadd.f32 %v6182_v15, %v5595_v20  ;;  %v11836_v51 = vpop.f32.mrf.mxu0  ;;  %v6503_v58 = vadd.f32 %v6502_v18, %v6440_v7  ;;  %v6371_v4 = vadd.f32 %v6370_v16, %v16304_v57  ;;  %v5598_v21 = vadd.f32 %v11730_v46, %v18635_v62  ;;  %v18637_v7 = vld [vmem:[#allocation8_spill] sm:$0xff] }
 0x2f3   :  { %18634 = vst [vmem:[#allocation28_spill] sm:$0xff] %v16320_v40  ;;  %v5478_v23 = vpop.f32.mrf.mxu1  ;;  %v6443_v16 = vmul.f32 %v16320_v40, %v16320_v40 }
 0x2f4   :  { %v6442_v39 = vmul.f32 %v16318_v63, %v16318_v63  ;;  %v5597_v47 = vadd.f32 %v5478_v23, %v18636_v17  ;;  %v6192_v35 = vpop.f32.mrf.mxu0  ;;  %v6372_v52 = vadd.f32 %v6371_v4, %v16318_v63  ;;  %v6504_v43 = vadd.f32 %v6503_v58, %v6441_v14  ;;  %v18639_v4 = vld [vmem:[#allocation11_spill] sm:$0xff] }
 0x2f5   :  { %v11733_v20 = vpop.f32.mrf.mxu1  ;;  %v16333_v46 = vadd.f32 %v11836_v51, %v5598_v21 }
 0x2f6   :  { %v16328_v15 = vadd.f32 %v6192_v35, %v5597_v47  ;;  %v5600_v37 = vadd.f32 %v11733_v20, %v18637_v7  ;;  %v11839_v36 = vpop.f32.mrf.mxu0  ;;  %v6505_v18 = vadd.f32 %v6504_v43, %v6442_v39  ;;  %v6373_v62 = vadd.f32 %v6372_v52, %v16320_v40 }
 0x2f7   :  { %18638 = vst [vmem:[#allocation29_spill] sm:$0xff] %v16333_v46  ;;  %v5488_v57 = vpop.f32.mrf.mxu1  ;;  %v6445_v21 = vmul.f32 %v16333_v46, %v16333_v46 }
 0x2f8   :  { %v6444_v23 = vmul.f32 %v16328_v15, %v16328_v15  ;;  %v5599_v14 = vadd.f32 %v5488_v57, %v18639_v4  ;;  %v6202_v58 = vpop.f32.mrf.mxu0  ;;  %v6374_v17 = vadd.f32 %v6373_v62, %v16328_v15  ;;  %v6506_v47 = vadd.f32 %v6505_v18, %v6443_v16  ;;  %v18640_v62 = vld [vmem:[#allocation9_spill] sm:$0xff] }
 0x2f9   :  { %v11736_v35 = vpop.f32.mrf.mxu1  ;;  %v16340_v20 = vadd.f32 %v11839_v36, %v5600_v37 }
 0x2fa   :  { %v16342_v7 = vadd.f32 %v6202_v58, %v5599_v14  ;;  %v11842_v43 = vpop.f32.mrf.mxu0  ;;  %v6507_v51 = vadd.f32 %v6506_v47, %v6444_v23  ;;  %v6375_v39 = vadd.f32 %v6374_v17, %v16333_v46  ;;  %v5602_v52 = vadd.f32 %v11736_v35, %v16000_v59 }
 0x2fb   :  { %v5498_v40 = vpop.f32.mrf.mxu1  ;;  %v6447_v14 = vmul.f32 %v16340_v20, %v16340_v20 }
 0x2fc   :  { %v6446_v57 = vmul.f32 %v16342_v7, %v16342_v7  ;;  %v5601_v16 = vadd.f32 %v5498_v40, %v18640_v62  ;;  %v6212_v18 = vpop.f32.mrf.mxu0  ;;  %v6376_v37 = vadd.f32 %v6375_v39, %v16342_v7  ;;  %v6508_v36 = vadd.f32 %v6507_v51, %v6445_v21 }
 0x2fd   :  { %v11739_v4 = vpop.f32.mrf.mxu1  ;;  %v16356_v47 = vadd.f32 %v11842_v43, %v5602_v52 }
 0x2fe   :  { %v16354_v58 = vadd.f32 %v6212_v18, %v5601_v16  ;;  %v11845_v23 = vpop.f32.mrf.mxu0  ;;  %v6509_v17 = vadd.f32 %v6508_v36, %v6446_v57  ;;  %v6377_v59 = vadd.f32 %v6376_v37, %v16340_v20  ;;  %v5604_v35 = vadd.f32 %v11739_v4, %v16006_v61 }
 0x2ff   :  { %18642 = vst [vmem:[#allocation31_spill] sm:$0xff] %v16356_v47  ;;  %v5508_v46 = vpop.f32.mrf.mxu1  ;;  %v6449_v57 = vmul.f32 %v16356_v47, %v16356_v47 }
 0x300   :  { %18641 = vst [vmem:[#allocation30_spill] sm:$0xff] %v16354_v58  ;;  %v6448_v40 = vmul.f32 %v16354_v58, %v16354_v58  ;;  %v5603_v21 = vadd.f32 %v5508_v46, %v16009_v50  ;;  %v6222_v51 = vpop.f32.mrf.mxu0  ;;  %v6378_v39 = vadd.f32 %v6377_v59, %v16354_v58  ;;  %v6510_v62 = vadd.f32 %v6509_v17, %v6447_v14 }
 0x301   :  { %v11742_v16 = vpop.f32.mrf.mxu1  ;;  %v16369_v37 = vadd.f32 %v11845_v23, %v5604_v35 }
 0x302   :  { %v16364_v18 = vadd.f32 %v6222_v51, %v5603_v21  ;;  %v5606_v43 = vadd.f32 %v11742_v16, %v16012_v19  ;;  %v11848_v52 = vpop.f32.mrf.mxu0  ;;  %v6511_v61 = vadd.f32 %v6510_v62, %v6448_v40  ;;  %v6379_v36 = vadd.f32 %v6378_v39, %v16356_v47  ;;  %v18647_v62 = vld [vmem:[#allocation10_spill] sm:$0xff] }
 0x303   :  { %18644 = vst [vmem:[#allocation33_spill] sm:$0xff] %v16369_v37  ;;  %v5518_v4 = vpop.f32.mrf.mxu1  ;;  %v6451_v23 = vmul.f32 %v16369_v37, %v16369_v37 }
 0x304   :  { %18643 = vst [vmem:[#allocation32_spill] sm:$0xff] %v16364_v18  ;;  %v6450_v50 = vmul.f32 %v16364_v18, %v16364_v18  ;;  %v5605_v46 = vadd.f32 %v5518_v4, %v16015_v1  ;;  %v6232_v14 = vpop.f32.mrf.mxu0  ;;  %v6380_v17 = vadd.f32 %v6379_v36, %v16364_v18  ;;  %v6512_v59 = vadd.f32 %v6511_v61, %v6449_v57 }
 0x305   :  { %v11745_v19 = vpop.f32.mrf.mxu1  ;;  %v16376_v21 = vadd.f32 %v11848_v52, %v5606_v43 }
 0x306   :  { %v16378_v51 = vadd.f32 %v6232_v14, %v5605_v46  ;;  %v11851_v40 = vpop.f32.mrf.mxu0  ;;  %v6513_v35 = vadd.f32 %v6512_v59, %v6450_v50  ;;  %v6381_v39 = vadd.f32 %v6380_v17, %v16369_v37  ;;  %v5608_v16 = vadd.f32 %v11745_v19, %v18647_v62  ;;  %v18650_v19 = vld [vmem:[#allocation12_spill] sm:$0xff] }
 0x307   :  { %18645 = vst [vmem:[#allocation34_spill] sm:$0xff] %v16376_v21  ;;  %v5528_v47 = vpop.f32.mrf.mxu1  ;;  %v6453_v4 = vmul.f32 %v16376_v21, %v16376_v21 }
 0x308   :  { %18646 = vst [vmem:[#allocation35_spill] sm:$0xff] %v16378_v51  ;;  %v6452_v1 = vmul.f32 %v16378_v51, %v16378_v51  ;;  %v5607_v57 = vadd.f32 %v5528_v47, %v16021_v30  ;;  %v6242_v61 = vpop.f32.mrf.mxu0  ;;  %v6382_v43 = vadd.f32 %v6381_v39, %v16378_v51  ;;  %v6514_v52 = vadd.f32 %v6513_v35, %v6451_v23  ;;  %v18651_v47 = vld [vmem:[#allocation13_spill] sm:$0xff] }
 0x309   :  { %v11748_v36 = vpop.f32.mrf.mxu1  ;;  %v16392_v17 = vadd.f32 %v11851_v40, %v5608_v16 }
 0x30a   :  { %v16390_v46 = vadd.f32 %v6242_v61, %v5607_v57  ;;  %v11854_v50 = vpop.f32.mrf.mxu0  ;;  %v6515_v14 = vadd.f32 %v6514_v52, %v6452_v1  ;;  %v6383_v59 = vadd.f32 %v6382_v43, %v16376_v21  ;;  %v5610_v62 = vadd.f32 %v11748_v36, %v18650_v19 }
 0x30b   :  { %18649 = vst [vmem:[#allocation37_spill] sm:$0xff] %v16392_v17  ;;  %v5538_v37 = vpop.f32.mrf.mxu1  ;;  %v6455_v1 = vmul.f32 %v16392_v17, %v16392_v17 }
 0x30c   :  { %18648 = vst [vmem:[#allocation36_spill] sm:$0xff] %v16390_v46  ;;  %v6454_v30 = vmul.f32 %v16390_v46, %v16390_v46  ;;  %v5609_v23 = vadd.f32 %v5538_v37, %v18651_v47  ;;  %v6384_v35 = vadd.f32 %v6383_v59, %v16390_v46  ;;  %v6516_v39 = vadd.f32 %v6515_v14, %v6453_v4  ;;  %v6252_v51 = vpop.f32.mrf.mxu0 }
 0x30d   :  { %v16402_v16 = vadd.f32 %v11854_v50, %v5610_v62 }
 0x30e   :  { %v6323_v57 = vadd.f32 %v6252_v51, %v5609_v23  ;;  %v6517_v40 = vadd.f32 %v6516_v39, %v6454_v30  ;;  %v6385_v61 = vadd.f32 %v6384_v35, %v16392_v17 }
 0x30f   :  { %v6457_v19 = vmul.f32 %v16402_v16, %v16402_v16 }
 0x310   :  { %v6456_v43 = vmul.f32 %v6323_v57, %v6323_v57  ;;  %v6386_v52 = vadd.f32 %v6385_v61, %v6323_v57  ;;  %v6518_v36 = vadd.f32 %v6517_v40, %v6455_v1 }
 0x312   :  { %v6387_v37 = vadd.f32 %v6386_v52, %v16402_v16  ;;  %v6519_v59 = vadd.f32 %v6518_v36, %v6456_v43  ;;  %v6539_v43 = vlaneseq  ;;  %v6531_v36 = vld [vmem:[%s18273_s3] sm:$0x1]  ;;  %s12455_s3 = smov 64  }
 0x314   :  { %v6388_v4 = vrot.slane %v6387_v37, 4  ;;  %v6520_v14 = vadd.f32 %v6519_v59, %v6457_v19  ;;  %v6540_v52 = vshrl.u32 %v6539_v43, 7  ;;  %v18658_v43 = vld [vmem:[#allocation19_spill] sm:$0xff] }
 0x316   :  { %v6389_v51 = vadd.f32 %v6388_v4, %v6387_v37  ;;  %v6521_v47 = vrot.slane %v6520_v14, 4  ;;  %v6541_v19 = vsub.s32 0, %v6540_v52  ;;  %v18659_v52 = vld [vmem:[#allocation21_spill] sm:$0xff] }
 0x318   :  { %v6390_v23 = vrot.slane %v6389_v51, 2  ;;  %v6522_v21 = vadd.f32 %v6521_v47, %v6520_v14 }
 0x31a   :  { %v6391_v30 = vadd.f32 %v6390_v23, %v6389_v51  ;;  %v6523_v50 = vrot.slane %v6522_v21, 2  ;;  %v18652_v51 = vld [vmem:[#allocation14_spill] sm:$0xff] }
 0x31c   :  { %v6392_v62 = vrot.slane %v6391_v30, 1  ;;  %v6524_v39 = vadd.f32 %v6523_v50, %v6522_v21  ;;  %v6535_v21 = vld [vmem:[%s18274_s4] sm:$0x1]  ;;  %v18653_v50 = vld [vmem:[#allocation15_spill] sm:$0xff]  ;;  %s12456_s4 = smov 96  }
 0x31e   :  { %v6393_v35 = vadd.f32 %v6392_v62, %v6391_v30  ;;  %v6525_v17 = vrot.slane %v6524_v39, 1 }
 0x320   :  { %v6526_v61 = vadd.f32 %v6525_v17, %v6524_v39  ;;  %v6527_v1 = vmul.f32 0.001953125, %v6393_v35 }
 0x322   :  { %v6528_v40 = vmul.f32 0.001953125, %v6526_v61  ;;  %v6529_v18 = vmul.f32 %v6527_v1, %v6527_v1 }
 0x324   :  { %v6530_v46 = vsub.f32 %v6528_v40, %v6529_v18  ;;  %v18657_v40 = vld [vmem:[#allocation18_spill] sm:$0xff] }
 0x326   :  { %v6532_v58 = vadd.f32 1e-05, %v6530_v46 }
 0x328   :  { %11872 = vrsqrt.f32 %v6532_v58 }
 0x335   :  { %v11873_v37 = vpop.eup %11872 }
 0x336   :  { %v6534_v59 = vmul.f32 %v11873_v37, %v6531_v36  ;;  %v18660_v36 = vld [vmem:[#allocation20_spill] sm:$0xff]  ;;  %v18661_v37 = vld [vmem:[#allocation22_spill] sm:$0xff] }
 0x338   :  { %v6536_v17 = vmul.f32 %v6534_v59, %v6527_v1  ;;  %v16414_v4 = vrot.slane %v6534_v59, %v6541_v19  ;;  %v18656_v1 = vld [vmem:[#allocation17_spill] sm:$0xff] }
 0x33a   :  { %v6537_v14 = vsub.f32 %v6535_v21, %v6536_v17  ;;  %v6606_v18 = vmul.f32 %v16414_v4, %v6323_v57  ;;  %v16421_v46 = vmul.f32 %v16414_v4, %v16033_v24  ;;  %v16425_v47 = vmul.f32 %v16414_v4, %v18652_v51  ;;  %v18662_v21 = vld [vmem:[#allocation23_spill] sm:$0xff]  ;;  %v16600_v51 = vpop.permute.xlu1 %7258 }
 0x33b   :  { %v16429_v23 = vmul.f32 %v16414_v4, %v16045_v44  ;;  %v16433_v30 = vmul.f32 %v16414_v4, %v16043_v3  ;;  %v16437_v57 = vmul.f32 %v16414_v4, %v18653_v50  ;;  %v16441_v24 = vmul.f32 %v16414_v4, %v16052_v6  ;;  %18664 = vst [vmem:[#allocation39_spill] sm:$0xff] %v16600_v51  ;;  %v16602_v50 = vpop.permute.xlu0 %7254  ;;  %v18671_v51 = vld [vmem:[#allocation29_spill] sm:$0xff] }
 0x33c   :  { %v16417_v58 = vrot.slane %v6537_v14, %v6541_v19  ;;  %v16448_v39 = vmul.f32 %v16414_v4, %v16068_v60  ;;  %v16452_v44 = vmul.f32 %v16414_v4, %v16066_v54  ;;  %v16456_v3 = vmul.f32 %v16414_v4, %v16082_v32  ;;  %v18663_v14 = vld [vmem:[#allocation24_spill] sm:$0xff]  ;;  %18665 = vst [vmem:[#allocation40_spill] sm:$0xff] %v16602_v50  ;;  %v18674_v50 = vld [vmem:[#allocation30_spill] sm:$0xff] }
 0x33d   :  { %v16460_v35 = vmul.f32 %v16414_v4, %v16080_v5  ;;  %v16464_v6 = vmul.f32 %v16414_v4, %v16090_v22  ;;  %v16468_v60 = vmul.f32 %v16414_v4, %v16088_v2  ;;  %v16472_v54 = vmul.f32 %v16414_v4, %v16102_v31 }
 0x33e   :  { %v16444_v62 = vadd.f32 %v16417_v58, %v6606_v18  ;;  %v16476_v32 = vmul.f32 %v16414_v4, %v16104_v41  ;;  %v16480_v5 = vmul.f32 %v16414_v4, %v16112_v53  ;;  %v16484_v22 = vmul.f32 %v16414_v4, %v16117_v26 }
 0x33f   :  { %v16488_v2 = vmul.f32 %v16414_v4, %v16126_v13  ;;  %v16492_v31 = vmul.f32 %v16414_v4, %v16124_v45  ;;  %v16496_v41 = vmul.f32 %v16414_v4, %v16138_v25  ;;  %v16500_v53 = vmul.f32 %v16414_v4, %v16140_v55 }
 0x340   :  { %18654 = vst [vmem:[#allocation38_spill] sm:$0xff] %v16444_v62  ;;  %v16504_v26 = vmul.f32 %v16414_v4, %v16148_v11  ;;  %v16508_v13 = vmul.f32 %v16414_v4, %v16153_v42  ;;  %v16512_v45 = vmul.f32 %v16414_v4, %v16162_v49  ;;  %v6567_v25 = vmul.f32 %v16414_v4, %v16160_v38  ;;  %v18675_v62 = vld [vmem:[#allocation31_spill] sm:$0xff] }
 0x341   :  { %v16518_v61 = vmul.f32 %v16414_v4, %v16174_v9  ;;  %v16522_v55 = vmul.f32 %v16414_v4, %v16176_v8  ;;  %v16526_v11 = vmul.f32 %v16414_v4, %v16184_v0  ;;  %v16530_v42 = vmul.f32 %v16414_v4, %v16189_v10 }
 0x342   :  { %v16534_v49 = vmul.f32 %v16414_v4, %v16198_v29  ;;  %v16538_v38 = vmul.f32 %v16414_v4, %v16196_v48  ;;  %v16542_v9 = vmul.f32 %v16414_v4, %v16210_v33  ;;  %v16546_v8 = vmul.f32 %v16414_v4, %v16212_v56  ;;  %v18655_v33 = vld [vmem:[#allocation16_spill] sm:$0xff] }
 0x343   :  { %v16550_v0 = vmul.f32 %v16414_v4, %v16220_v34  ;;  %v16554_v10 = vmul.f32 %v16414_v4, %v16225_v27  ;;  %v16558_v48 = vmul.f32 %v16414_v4, %v16234_v12  ;;  %v16562_v29 = vmul.f32 %v16414_v4, %v16232_v28 }
 0x344   :  { %v16566_v56 = vmul.f32 %v16414_v4, %v18655_v33  ;;  %v16570_v34 = vmul.f32 %v16414_v4, %v18656_v1  ;;  %v16574_v27 = vmul.f32 %v16414_v4, %v18657_v40  ;;  %v16578_v12 = vmul.f32 %v16414_v4, %v18658_v43  ;;  %v18666_v33 = vld [vmem:[#allocation25_spill] sm:$0xff]  ;;  %v18667_v40 = vld [vmem:[#allocation27_spill] sm:$0xff] }
 0x345   :  { %v16582_v28 = vmul.f32 %v16414_v4, %v18659_v52  ;;  %v16586_v19 = vmul.f32 %v16414_v4, %v18660_v36  ;;  %v16590_v59 = vmul.f32 %v16414_v4, %v18661_v37  ;;  %v16594_v17 = vmul.f32 %v16414_v4, %v18662_v21  ;;  %v18668_v52 = vld [vmem:[#allocation26_spill] sm:$0xff]  ;;  %v18669_v21 = vld [vmem:[#allocation28_spill] sm:$0xff] }
 0x346   :  { %v16598_v18 = vmul.f32 %v16414_v4, %v18663_v14  ;;  %v16606_v1 = vmul.f32 %v16414_v4, %v18666_v33  ;;  %v16610_v43 = vmul.f32 %v16414_v4, %v18667_v40  ;;  %v16614_v36 = vmul.f32 %v16414_v4, %v18668_v52 }
 0x347   :  { %v16618_v37 = vmul.f32 %v16414_v4, %v16318_v63  ;;  %v16622_v14 = vmul.f32 %v16414_v4, %v18669_v21  ;;  %v16626_v33 = vmul.f32 %v16414_v4, %v16328_v15  ;;  %v16630_v40 = vmul.f32 %v16414_v4, %v18671_v51 }
 0x348   :  { %v16634_v52 = vmul.f32 %v16414_v4, %v16342_v7  ;;  %v16638_v63 = vmul.f32 %v16414_v4, %v16340_v20  ;;  %v16642_v21 = vmul.f32 %v16414_v4, %v18674_v50  ;;  %v16646_v15 = vmul.f32 %v16414_v4, %v18675_v62 }
 0x349   :  { %18670 = vst [vmem:[#allocation41_spill] sm:$0xff] %v16626_v33  ;;  %18672 = vst [vmem:[#allocation42_spill] sm:$0xff] %v16630_v40  ;;  %v18676_v33 = vld [vmem:[#allocation36_spill] sm:$0xff]  ;;  %v16658_v20 = vmul.f32 %v16414_v4, %v16402_v16  ;;  %v16665_v50 = vadd.f32 %v16417_v58, %v16421_v46  ;;  %v16669_v62 = vadd.f32 %v16417_v58, %v16425_v47 }
 0x34a   :  { %18673 = vst [vmem:[#allocation43_spill] sm:$0xff] %v16638_v63  ;;  %v16650_v51 = vmul.f32 %v16414_v4, %v18676_v33  ;;  %v18677_v40 = vld [vmem:[#allocation32_spill] sm:$0xff]  ;;  %v16661_v63 = vadd.f32 %v16417_v58, %v6567_v25  ;;  %v16673_v33 = vadd.f32 %v16417_v58, %v16429_v23  ;;  %v16681_v16 = vadd.f32 %v16417_v58, %v16437_v57  ;;  %v18680_v25 = vld [vmem:[#allocation33_spill] sm:$0xff] }
 0x34b   :  { %v16654_v7 = vmul.f32 %v16414_v4, %v18677_v40  ;;  %v16677_v40 = vadd.f32 %v16417_v58, %v16433_v30  ;;  %v6601_v46 = vmul.f32 %v16414_v4, %v18680_v25  ;;  %v16691_v47 = vadd.f32 %v16417_v58, %v16448_v39  ;;  %v16697_v30 = vpop.permute.xlu1 %7260  ;;  %v18684_v25 = vld [vmem:[#allocation35_spill] sm:$0xff] }
 0x34c   :  { %18678 = vst [vmem:[#allocation44_spill] sm:$0xff] %v16661_v63  ;;  %v16687_v63 = vadd.f32 %v16417_v58, %v16441_v24  ;;  %v16695_v23 = vadd.f32 %v16417_v58, %v16452_v44  ;;  %18681 = vst [vmem:[#allocation46_spill] sm:$0xff] %v16697_v30  ;;  %v16703_v57 = vadd.f32 %v16417_v58, %v16456_v3  ;;  %11874 = vtanh.f32 %v16665_v50 }
 0x34d   :  { %18679 = vst [vmem:[#allocation45_spill] sm:$0xff] %v16677_v40  ;;  %v16699_v40 = vpop.permute.xlu0 %7256  ;;  %v16707_v24 = vadd.f32 %v16417_v58, %v16460_v35  ;;  %v16711_v39 = vadd.f32 %v16417_v58, %v16464_v6  ;;  %v16715_v44 = vadd.f32 %v16417_v58, %v16468_v60  ;;  %v6602_v30 = vmul.f32 %v16414_v4, %v18684_v25  ;;  %v18685_v6 = vld [vmem:[#allocation34_spill] sm:$0xff] }
 0x34e   :  { %18682 = vst [vmem:[#allocation47_spill] sm:$0xff] %v16699_v40  ;;  %v16721_v40 = vadd.f32 %v16417_v58, %v16472_v54  ;;  %v16725_v3 = vadd.f32 %v16417_v58, %v16476_v32  ;;  %v16729_v35 = vadd.f32 %v16417_v58, %v16480_v5  ;;  %v16735_v60 = vadd.f32 %v16417_v58, %v16484_v22 }
 0x34f   :  { %18683 = vst [vmem:[#allocation48_spill] sm:$0xff] %v16711_v39  ;;  %v6603_v39 = vmul.f32 %v16414_v4, %v18685_v6  ;;  %v16739_v25 = vadd.f32 %v16417_v58, %v16488_v2  ;;  %v16743_v54 = vadd.f32 %v16417_v58, %v16492_v31  ;;  %v16747_v32 = vadd.f32 %v16417_v58, %v16496_v41  ;;  %v18688_v6 = vld [vmem:[#allocation37_spill] sm:$0xff] }
 0x350   :  { %v16751_v5 = vadd.f32 %v16417_v58, %v16500_v53  ;;  %v16755_v22 = vadd.f32 %v16417_v58, %v16504_v26  ;;  %v16759_v2 = vadd.f32 %v16417_v58, %v16508_v13  ;;  %v6605_v31 = vmul.f32 %v16414_v4, %v18688_v6 }
 0x351   :  { %18686 = vst [vmem:[#allocation49_spill] sm:$0xff] %v16743_v54  ;;  %v16765_v54 = vadd.f32 %v16417_v58, %v16512_v45  ;;  %v16769_v41 = vadd.f32 %v16417_v58, %v16518_v61  ;;  %v16773_v53 = vadd.f32 %v16417_v58, %v16522_v55  ;;  %v16777_v26 = vadd.f32 %v16417_v58, %v16526_v11  ;;  %v16791_v61 = vpop.permute.xlu1 %7264  ;;  %v16793_v55 = vpop.permute.xlu0 %7262 }
 0x352   :  { %18687 = vst [vmem:[#allocation50_spill] sm:$0xff] %v16755_v22  ;;  %v16781_v13 = vadd.f32 %v16417_v58, %v16530_v42  ;;  %v16785_v4 = vadd.f32 %v16417_v58, %v16534_v49  ;;  %v16789_v45 = vadd.f32 %v16417_v58, %v16538_v38  ;;  %18689 = vst [vmem:[#allocation8_spill] sm:$0xff] %v16791_v61  ;;  %v18695_v61 = vld [vmem:[#allocation41_spill] sm:$0xff]  ;;  %11876 = vtanh.f32 %v16669_v62 }
 0x353   :  { %18690 = vst [vmem:[#allocation11_spill] sm:$0xff] %v16793_v55  ;;  %v16797_v11 = vadd.f32 %v16417_v58, %v16542_v9  ;;  %v16801_v42 = vadd.f32 %v16417_v58, %v16546_v8  ;;  %v16805_v49 = vadd.f32 %v16417_v58, %v16550_v0  ;;  %v16809_v38 = vadd.f32 %v16417_v58, %v16554_v10  ;;  %v18696_v55 = vld [vmem:[#allocation42_spill] sm:$0xff] }
 0x354   :  { %v16813_v6 = vadd.f32 %v16417_v58, %v16558_v48  ;;  %v16817_v9 = vadd.f32 %v16417_v58, %v16562_v29  ;;  %v16821_v8 = vadd.f32 %v16417_v58, %v16566_v56  ;;  %v16825_v0 = vadd.f32 %v16417_v58, %v16570_v34 }
 0x355   :  { %v16829_v10 = vadd.f32 %v16417_v58, %v16574_v27  ;;  %v16833_v48 = vadd.f32 %v16417_v58, %v16578_v12  ;;  %v16837_v29 = vadd.f32 %v16417_v58, %v16582_v28  ;;  %v16841_v56 = vadd.f32 %v16417_v58, %v16586_v19 }
 0x356   :  { %v16845_v34 = vadd.f32 %v16417_v58, %v16590_v59  ;;  %v16849_v27 = vadd.f32 %v16417_v58, %v16594_v17  ;;  %v16853_v12 = vadd.f32 %v16417_v58, %v16598_v18  ;;  %v16857_v28 = vadd.f32 %v16417_v58, %v16606_v1 }
 0x357   :  { %v16861_v19 = vadd.f32 %v16417_v58, %v16610_v43  ;;  %v16865_v59 = vadd.f32 %v16417_v58, %v16614_v36  ;;  %v16869_v17 = vadd.f32 %v16417_v58, %v16618_v37  ;;  %v16873_v18 = vadd.f32 %v16417_v58, %v16622_v14  ;;  %v16893_v14 = vpop.permute.xlu0 %7266 }
 0x358   :  { %18691 = vst [vmem:[#allocation9_spill] sm:$0xff] %v16853_v12  ;;  %v16877_v1 = vadd.f32 %v16417_v58, %v18695_v61  ;;  %v16881_v43 = vadd.f32 %v16417_v58, %v18696_v55  ;;  %v16885_v36 = vadd.f32 %v16417_v58, %v16634_v52  ;;  %18700 = vst [vmem:[#allocation16_spill] sm:$0xff] %v16893_v14  ;;  %11878 = vtanh.f32 %v16673_v33 }
 0x359   :  { %18692 = vst [vmem:[#allocation10_spill] sm:$0xff] %v16865_v59  ;;  %18693 = vst [vmem:[#allocation12_spill] sm:$0xff] %v16869_v17  ;;  %v18698_v59 = vld [vmem:[#allocation43_spill] sm:$0xff]  ;;  %v16891_v17 = vpop.permute.xlu1 %7268  ;;  %v16897_v61 = vadd.f32 %v16417_v58, %v16642_v21  ;;  %v16901_v55 = vadd.f32 %v16417_v58, %v16646_v15  ;;  %v16905_v52 = vadd.f32 %v16417_v58, %v16654_v7 }
 0x35a   :  { %18694 = vst [vmem:[#allocation13_spill] sm:$0xff] %v16873_v18  ;;  %18697 = vst [vmem:[#allocation14_spill] sm:$0xff] %v16885_v36  ;;  %v16889_v37 = vadd.f32 %v16417_v58, %v18698_v59  ;;  %v16908_v36 = vadd.f32 %v16417_v58, %v6601_v46  ;;  %v16911_v59 = vadd.f32 %v16417_v58, %v6602_v30 }
 0x35b   :  { %18699 = vst [vmem:[#allocation15_spill] sm:$0xff] %v16891_v17  ;;  %v16914_v17 = vadd.f32 %v16417_v58, %v6603_v39  ;;  %v16918_v21 = vadd.f32 %v16417_v58, %v16650_v51  ;;  %v16921_v15 = vadd.f32 %v16417_v58, %v6605_v31  ;;  %v16925_v7 = vadd.f32 %v16417_v58, %v16658_v20  ;;  %v16929_v46 = vpop.permute.xlu0 %7270 }
 0x35c   :  { %18701 = vst [vmem:[#allocation17_spill] sm:$0xff] %v16911_v59  ;;  %18706 = vst [vmem:[#allocation22_spill] sm:$0xff] %v16929_v46 }
 0x35d   :  { %18702 = vst [vmem:[#allocation18_spill] sm:$0xff] %v16914_v17  ;;  %18703 = vst [vmem:[#allocation19_spill] sm:$0xff] %v16921_v15  ;;  %v16927_v14 = vpop.permute.xlu1 %7272 }
 0x35e   :  { %18704 = vst [vmem:[#allocation21_spill] sm:$0xff] %v16925_v7  ;;  %18705 = vst [vmem:[#allocation20_spill] sm:$0xff] %v16927_v14 }
 0x35f   :  { %v16933_v59 = vpop.permute.xlu0 %7274 }
 0x360   :  { %18708 = vst [vmem:[#allocation24_spill] sm:$0xff] %v16933_v59 }
 0x361   :  { %v16931_v30 = vpop.permute.xlu1 %7276 }
 0x362   :  { %18707 = vst [vmem:[#allocation23_spill] sm:$0xff] %v16931_v30 }
 0x363   :  { %v16937_v17 = vpop.permute.xlu0 %7278 }
 0x364   :  { %18710 = vst [vmem:[#allocation27_spill] sm:$0xff] %v16937_v17 }
 0x365   :  { %v16935_v39 = vpop.permute.xlu1 %7280 }
 0x366   :  { %18709 = vst [vmem:[#allocation25_spill] sm:$0xff] %v16935_v39 }
 0x367   :  { %v16941_v31 = vpop.permute.xlu0 %7282 }
 0x368   :  { %18712 = vst [vmem:[#allocation28_spill] sm:$0xff] %v16941_v31 }
 0x369   :  { %v16939_v51 = vpop.permute.xlu1 %7284 }
 0x36a   :  { %18711 = vst [vmem:[#allocation26_spill] sm:$0xff] %v16939_v51 }
 0x36b   :  { %v16945_v58 = vpop.permute.xlu0 %7286 }
 0x36c   :  { %18714 = vst [vmem:[#allocation30_spill] sm:$0xff] %v16945_v58  ;;  %v18726_v58 = vld [vmem:[#allocation48_spill] sm:$0xff] }
 0x36d   :  { %v16943_v15 = vpop.permute.xlu1 %7288 }
 0x36e   :  { %18713 = vst [vmem:[#allocation29_spill] sm:$0xff] %v16943_v15  ;;  %v18721_v15 = vld [vmem:[#allocation45_spill] sm:$0xff] }
 0x36f   :  { %v16949_v14 = vpop.permute.xlu0 %7290  ;;  %11880 = vtanh.f32 %v18721_v15 }
 0x370   :  { %18716 = vst [vmem:[#allocation36_spill] sm:$0xff] %v16949_v14  ;;  %11882 = vtanh.f32 %v16681_v16 }
 0x371   :  { %v16947_v20 = vpop.permute.xlu1 %7292  ;;  %11884 = vtanh.f32 %v16687_v63 }
 0x372   :  { %18715 = vst [vmem:[#allocation31_spill] sm:$0xff] %v16947_v20  ;;  %v11875_v20 = vpop.eup %11874  ;;  %11886 = vtanh.f32 %v16691_v47 }
 0x373   :  { %v16954_v59 = vpop.permute.xlu0 %7294  ;;  %11888 = vtanh.f32 %v16695_v23  ;;  %7574 = vrot.lane.b32.xlu0 %v11875_v20, %s12455_s3 }
 0x374   :  { %18718 = vst [vmem:[#allocation33_spill] sm:$0xff] %v16954_v59  ;;  %v11877_v59 = vpop.eup %11876  ;;  %11890 = vtanh.f32 %v16703_v57 }
 0x375   :  { %v16952_v30 = vpop.permute.xlu1 %7296  ;;  %7576 = vrot.lane.b32.xlu1 %v11877_v59, %s12455_s3  ;;  %11892 = vtanh.f32 %v16707_v24 }
 0x376   :  { %18717 = vst [vmem:[#allocation32_spill] sm:$0xff] %v16952_v30  ;;  %11894 = vtanh.f32 %v18726_v58 }
 0x377   :  { %v16960_v31 = vpop.permute.xlu0 %7298  ;;  %11896 = vtanh.f32 %v16715_v44 }
 0x378   :  { %18720 = vst [vmem:[#allocation34_spill] sm:$0xff] %v16960_v31  ;;  %v11879_v31 = vpop.eup %11878  ;;  %11898 = vtanh.f32 %v16721_v40 }
 0x379   :  { %v16958_v51 = vpop.permute.xlu1 %7300  ;;  %7578 = vrot.lane.b32.xlu0 %v11879_v31, %s12455_s3  ;;  %11900 = vtanh.f32 %v16725_v3 }
 0x37a   :  { %18719 = vst [vmem:[#allocation35_spill] sm:$0xff] %v16958_v51  ;;  %11902 = vtanh.f32 %v16729_v35 }
 0x37b   :  { %v16967_v30 = vpop.permute.xlu0 %7302  ;;  %11904 = vtanh.f32 %v16735_v60 }
 0x37c   :  { %18723 = vst [vmem:[#allocation41_spill] sm:$0xff] %v16967_v30  ;;  %v11881_v30 = vpop.eup %11880  ;;  %11906 = vtanh.f32 %v16739_v25 }
 0x37d   :  { %v16965_v14 = vpop.permute.xlu1 %7304  ;;  %7580 = vrot.lane.b32.xlu1 %v11881_v30, %s12455_s3  ;;  %v11883_v39 = vpop.eup %11882 }
 0x37e   :  { %18722 = vst [vmem:[#allocation37_spill] sm:$0xff] %v16965_v14  ;;  %v11885_v59 = vpop.eup %11884  ;;  %7582 = vrot.lane.b32.xlu0 %v11883_v39, %s12455_s3 }
 0x37f   :  { %v16977_v14 = vpop.permute.xlu0 %7306 }
 0x380   :  { %18725 = vst [vmem:[#allocation43_spill] sm:$0xff] %v16977_v14  ;;  %v11887_v14 = vpop.eup %11886 }
 0x381   :  { %v16975_v51 = vpop.permute.xlu1 %7308  ;;  %7584 = vrot.lane.b32.xlu1 %v11885_v59, %s12455_s3  ;;  %v11889_v30 = vpop.eup %11888 }
 0x382   :  { %18724 = vst [vmem:[#allocation42_spill] sm:$0xff] %v16975_v51  ;;  %7586 = vrot.lane.b32.xlu0 %v11887_v14, %s12455_s3  ;;  %v11891_v31 = vpop.eup %11890 }
 0x383   :  { %v16985_v17 = vpop.permute.xlu0 %7310  ;;  %v11893_v39 = vpop.eup %11892 }
 0x384   :  { %18728 = vst [vmem:[#allocation48_spill] sm:$0xff] %v16985_v17 }
 0x385   :  { %v16983_v20 = vpop.permute.xlu1 %7312  ;;  %7588 = vrot.lane.b32.xlu1 %v11889_v30, %s12455_s3  ;;  %v18731_v30 = vld [vmem:[#allocation49_spill] sm:$0xff] }
 0x386   :  { %18727 = vst [vmem:[#allocation45_spill] sm:$0xff] %v16983_v20  ;;  %7590 = vrot.lane.b32.xlu0 %v11891_v31, %s12455_s3  ;;  %v11895_v20 = vpop.eup %11894  ;;  %11908 = vtanh.f32 %v18731_v30 }
 0x387   :  { %v16997_v59 = vpop.permute.xlu0 %7314  ;;  %v11897_v14 = vpop.eup %11896  ;;  %11910 = vtanh.f32 %v16747_v32 }
 0x388   :  { %18730 = vst [vmem:[#allocation52_spill] sm:$0xff] %v16997_v59  ;;  %v11899_v59 = vpop.eup %11898  ;;  %11912 = vtanh.f32 %v16751_v5 }
 0x389   :  { %v16995_v17 = vpop.permute.xlu1 %7316  ;;  %7592 = vrot.lane.b32.xlu1 %v11893_v39, %s12455_s3  ;;  %v11901_v31 = vpop.eup %11900  ;;  %11914 = vtanh.f32 %v16755_v22 }
 0x38a   :  { %18729 = vst [vmem:[#allocation51_spill] sm:$0xff] %v16995_v17  ;;  %7594 = vrot.lane.b32.xlu0 %v11895_v20, %s12455_s3  ;;  %v11903_v39 = vpop.eup %11902  ;;  %11916 = vtanh.f32 %v16759_v2 }
 0x38b   :  { %v17005_v46 = vpop.permute.xlu0 %7318  ;;  %v11905_v20 = vpop.eup %11904 }
 0x38c   :  { %18733 = vst [vmem:[#allocation53_spill] sm:$0xff] %v17005_v46  ;;  %v11907_v17 = vpop.eup %11906 }
 0x38d   :  { %v17003_v51 = vpop.permute.xlu1 %7320  ;;  %7596 = vrot.lane.b32.xlu1 %v11897_v14, %s12455_s3 }
 0x38e   :  { %18732 = vst [vmem:[#allocation49_spill] sm:$0xff] %v17003_v51  ;;  %7598 = vrot.lane.b32.xlu0 %v11899_v59, %s12455_s3  ;;  %v18736_v51 = vld [vmem:[#allocation44_spill] sm:$0xff] }
 0x38f   :  { %v17017_v14 = vpop.permute.xlu0 %7322  ;;  %11918 = vtanh.f32 %v18736_v51 }
 0x390   :  { %18735 = vst [vmem:[#allocation55_spill] sm:$0xff] %v17017_v14  ;;  %11920 = vtanh.f32 %v16765_v54 }
 0x391   :  { %7600 = vrot.lane.b32.xlu1 %v11901_v31, %s12455_s3  ;;  %v17015_v46 = vpop.permute.xlu1 %7324  ;;  %11922 = vtanh.f32 %v16769_v41 }
 0x392   :  { %18734 = vst [vmem:[#allocation54_spill] sm:$0xff] %v17015_v46  ;;  %7602 = vrot.lane.b32.xlu0 %v11903_v39, %s12455_s3  ;;  %11924 = vtanh.f32 %v16773_v53 }
 0x393   :  { %v11909_v59 = vpop.eup %11908  ;;  %v17025_v22 = vpop.permute.xlu0 %7326  ;;  %11926 = vtanh.f32 %v16777_v26 }
 0x394   :  { %18738 = vst [vmem:[#allocation56_spill] sm:$0xff] %v17025_v22  ;;  %v11911_v14 = vpop.eup %11910  ;;  %11928 = vtanh.f32 %v16781_v13 }
 0x395   :  { %7604 = vrot.lane.b32.xlu1 %v11905_v20, %s12455_s3  ;;  %v17023_v31 = vpop.permute.xlu1 %7328  ;;  %v11913_v39 = vpop.eup %11912  ;;  %11930 = vtanh.f32 %v16785_v4 }
 0x396   :  { %18737 = vst [vmem:[#allocation44_spill] sm:$0xff] %v17023_v31  ;;  %7606 = vrot.lane.b32.xlu0 %v11907_v17, %s12455_s3  ;;  %v11915_v20 = vpop.eup %11914  ;;  %11932 = vtanh.f32 %v16789_v45 }
 0x397   :  { %v11917_v17 = vpop.eup %11916  ;;  %11934 = vtanh.f32 %v16797_v11 }
 0x398   :  { %11936 = vtanh.f32 %v16801_v42 }
 0x399   :  { %7608 = vrot.lane.b32.xlu1 %v11909_v59, %s12455_s3  ;;  %v17035_v22 = vpop.permute.xlu1 %7332  ;;  %v17037_v59 = vpop.permute.xlu0 %7330  ;;  %11938 = vtanh.f32 %v16805_v49 }
 0x39a   :  { %7610 = vrot.lane.b32.xlu0 %v11911_v14, %s12455_s3  ;;  %18739 = vst [vmem:[#allocation57_spill] sm:$0xff] %v17035_v22  ;;  %18740 = vst [vmem:[#allocation58_spill] sm:$0xff] %v17037_v59  ;;  %11940 = vtanh.f32 %v16809_v38 }
 0x39b   :  { %11942 = vtanh.f32 %v16813_v6 }
 0x39c   :  { %v11919_v31 = vpop.eup %11918  ;;  %11944 = vtanh.f32 %v16817_v9 }
 0x39d   :  { %7612 = vrot.lane.b32.xlu1 %v11913_v39, %s12455_s3  ;;  %v11921_v14 = vpop.eup %11920  ;;  %v17043_v39 = vpop.permute.xlu1 %7336  ;;  %11946 = vtanh.f32 %v16821_v8 }
 0x39e   :  { %7614 = vrot.lane.b32.xlu0 %v11915_v20, %s12455_s3  ;;  %18741 = vst [vmem:[#allocation59_spill] sm:$0xff] %v17043_v39  ;;  %v17045_v46 = vpop.permute.xlu0 %7334  ;;  %v11923_v59 = vpop.eup %11922  ;;  %11948 = vtanh.f32 %v16825_v0 }
 0x39f   :  { %18742 = vst [vmem:[#allocation60_spill] sm:$0xff] %v17045_v46  ;;  %v11925_v20 = vpop.eup %11924  ;;  %11950 = vtanh.f32 %v16829_v10 }
 0x3a0   :  { %11952 = vtanh.f32 %v16833_v48 }
 0x3a1   :  { %7616 = vrot.lane.b32.xlu1 %v11917_v17, %s12455_s3  ;;  %v11927_v17 = vpop.eup %11926  ;;  %v17055_v46 = vpop.permute.xlu1 %7340  ;;  %11954 = vtanh.f32 %v16837_v29 }
 0x3a2   :  { %7618 = vrot.lane.b32.xlu0 %v11921_v14, %s12455_s3  ;;  %18743 = vst [vmem:[#allocation61_spill] sm:$0xff] %v17055_v46  ;;  %v11929_v14 = vpop.eup %11928  ;;  %11956 = vtanh.f32 %v16841_v56 }
 0x3a3   :  { %v11931_v39 = vpop.eup %11930  ;;  %11958 = vtanh.f32 %v16845_v34 }
 0x3a4   :  { %11960 = vtanh.f32 %v16849_v27 }
 0x3a5   :  { %7620 = vrot.lane.b32.xlu1 %v11919_v31, %s12455_s3  ;;  %v17057_v31 = vpop.permute.xlu0 %7338  ;;  %11962 = vtanh.f32 %v16853_v12 }
 0x3a6   :  { %7622 = vrot.lane.b32.xlu0 %v11923_v59, %s12455_s3  ;;  %18744 = vst [vmem:[#allocation62_spill] sm:$0xff] %v17057_v31  ;;  %v11933_v59 = vpop.eup %11932  ;;  %11964 = vtanh.f32 %v16857_v28 }
 0x3a7   :  { %v11935_v31 = vpop.eup %11934  ;;  %11966 = vtanh.f32 %v16861_v19 }
 0x3a9   :  { %7624 = vrot.lane.b32.xlu1 %v11925_v20, %s12455_s3  ;;  %v17063_v20 = vpop.permute.xlu1 %7344  ;;  %v17065_v22 = vpop.permute.xlu0 %7342 }
 0x3aa   :  { %7626 = vrot.lane.b32.xlu0 %v11927_v17, %s12455_s3  ;;  %18745 = vst [vmem:[#allocation63_spill] sm:$0xff] %v17063_v20  ;;  %18746 = vst [vmem:[#allocation64_spill] sm:$0xff] %v17065_v22  ;;  %v11937_v17 = vpop.eup %11936 }
 0x3ad   :  { %7628 = vrot.lane.b32.xlu1 %v11929_v14, %s12455_s3  ;;  %v11939_v14 = vpop.eup %11938  ;;  %v17075_v22 = vpop.permute.xlu1 %7348 }
 0x3ae   :  { %7630 = vrot.lane.b32.xlu0 %v11931_v39, %s12455_s3  ;;  %18747 = vst [vmem:[#allocation65_spill] sm:$0xff] %v17075_v22  ;;  %v11941_v39 = vpop.eup %11940 }
 0x3af   :  { %v11943_v20 = vpop.eup %11942 }
 0x3b1   :  { %7632 = vrot.lane.b32.xlu1 %v11933_v59, %s12455_s3  ;;  %v17077_v59 = vpop.permute.xlu0 %7346 }
 0x3b2   :  { %7634 = vrot.lane.b32.xlu0 %v11935_v31, %s12455_s3  ;;  %18748 = vst [vmem:[#allocation66_spill] sm:$0xff] %v17077_v59  ;;  %v11945_v31 = vpop.eup %11944 }
 0x3b3   :  { %v11947_v59 = vpop.eup %11946 }
 0x3b5   :  { %7636 = vrot.lane.b32.xlu1 %v11937_v17, %s12455_s3  ;;  %v17083_v17 = vpop.permute.xlu1 %7352  ;;  %v17085_v46 = vpop.permute.xlu0 %7350 }
 0x3b6   :  { %7638 = vrot.lane.b32.xlu0 %v11939_v14, %s12455_s3  ;;  %18749 = vst [vmem:[#allocation67_spill] sm:$0xff] %v17083_v17  ;;  %18750 = vst [vmem:[#allocation68_spill] sm:$0xff] %v17085_v46  ;;  %v11949_v14 = vpop.eup %11948 }
 0x3b9   :  { %7640 = vrot.lane.b32.xlu1 %v11941_v39, %s12455_s3  ;;  %v11951_v39 = vpop.eup %11950  ;;  %v17095_v46 = vpop.permute.xlu1 %7356 }
 0x3ba   :  { %7642 = vrot.lane.b32.xlu0 %v11943_v20, %s12455_s3  ;;  %18751 = vst [vmem:[#allocation69_spill] sm:$0xff] %v17095_v46  ;;  %v11953_v20 = vpop.eup %11952 }
 0x3bb   :  { %v11955_v17 = vpop.eup %11954 }
 0x3bd   :  { %7644 = vrot.lane.b32.xlu1 %v11945_v31, %s12455_s3  ;;  %v17097_v31 = vpop.permute.xlu0 %7354  ;;  %v17103_v22 = vpop.permute.xlu1 %7360 }
 0x3be   :  { %7646 = vrot.lane.b32.xlu0 %v11947_v59, %s12455_s3  ;;  %18752 = vst [vmem:[#allocation70_spill] sm:$0xff] %v17097_v31  ;;  %v11957_v59 = vpop.eup %11956  ;;  %18754 = vst [vmem:[#allocation71_spill] sm:$0xff] %v17103_v22  ;;  %v18756_v31 = vld [vmem:[#allocation12_spill] sm:$0xff]  ;;  %v18759_v22 = vld [vmem:[#allocation38_spill] sm:$0xff] }
 0x3bf   :  { %v11959_v46 = vpop.eup %11958 }
 0x3c1   :  { %7648 = vrot.lane.b32.xlu1 %v11949_v14, %s12455_s3  ;;  %v18753_v14 = vld [vmem:[#allocation10_spill] sm:$0xff]  ;;  %v17105_v12 = vpop.permute.xlu0 %7358 }
 0x3c2   :  { %7650 = vrot.lane.b32.xlu0 %v11951_v39, %s12455_s3  ;;  %11968 = vtanh.f32 %v18753_v14  ;;  %18755 = vst [vmem:[#allocation72_spill] sm:$0xff] %v17105_v12  ;;  %v11961_v39 = vpop.eup %11960  ;;  %v17115_v12 = vpop.permute.xlu1 %7364  ;;  %v18760_v14 = vld [vmem:[#allocation14_spill] sm:$0xff] }
 0x3c3   :  { %11970 = vtanh.f32 %v18756_v31  ;;  %18757 = vst [vmem:[#allocation73_spill] sm:$0xff] %v17115_v12  ;;  %v10216_v31 = vmul.f32 -1.442695, %v16665_v50  ;;  %v10219_v12 = vmul.f32 -1.442695, %v18721_v15 }
 0x3c4   :  { %11972 = vtanh.f32 %v16873_v18  ;;  %v10217_v18 = vmul.f32 -1.442695, %v16669_v62  ;;  %v10221_v15 = vmul.f32 -1.442695, %v16687_v63  ;;  %v10223_v63 = vmul.f32 -1.442695, %v16695_v23 }
 0x3c5   :  { %7652 = vrot.lane.b32.xlu1 %v11953_v20, %s12455_s3  ;;  %11974 = vtanh.f32 %v16877_v1  ;;  %v11963_v20 = vpop.eup %11962 }
 0x3c6   :  { %7654 = vrot.lane.b32.xlu0 %v11955_v17, %s12455_s3  ;;  %11976 = vtanh.f32 %v16881_v43  ;;  %v11965_v17 = vpop.eup %11964  ;;  %v17129_v50 = vpop.permute.xlu1 %7368 }
 0x3c7   :  { %11978 = vtanh.f32 %v18759_v22  ;;  %18761 = vst [vmem:[#allocation14_spill] sm:$0xff] %v17129_v50  ;;  %v18769_v50 = vld [vmem:[#allocation19_spill] sm:$0xff] }
 0x3c8   :  { %11980 = vtanh.f32 %v18760_v14 }
 0x3c9   :  { %7656 = vrot.lane.b32.xlu1 %v11957_v59, %s12455_s3  ;;  %v17117_v59 = vpop.permute.xlu0 %7362  ;;  %11982 = vtanh.f32 %v16889_v37 }
 0x3ca   :  { %7658 = vrot.lane.b32.xlu0 %v11959_v46, %s12455_s3  ;;  %18758 = vst [vmem:[#allocation74_spill] sm:$0xff] %v17117_v59  ;;  %v11967_v46 = vpop.eup %11966  ;;  %11984 = vtanh.f32 %v16897_v61  ;;  %v10218_v59 = vmul.f32 -1.442695, %v16673_v33  ;;  %v10220_v33 = vmul.f32 -1.442695, %v16681_v16 }
 0x3cb   :  { %11986 = vpow2.f32 %v10216_v31  ;;  %v18763_v31 = vld [vmem:[#allocation17_spill] sm:$0xff]  ;;  %v10222_v16 = vmul.f32 -1.442695, %v16691_v47 }
 0x3cc   :  { %11988 = vpow2.f32 %v10217_v18 }
 0x3cd   :  { %7660 = vrot.lane.b32.xlu1 %v11961_v39, %s12455_s3  ;;  %v17131_v62 = vpop.permute.xlu0 %7366  ;;  %11990 = vtanh.f32 %v16901_v55 }
 0x3ce   :  { %7662 = vrot.lane.b32.xlu0 %v11963_v20, %s12455_s3  ;;  %18762 = vst [vmem:[#allocation75_spill] sm:$0xff] %v17131_v62  ;;  %11992 = vtanh.f32 %v16905_v52 }
 0x3cf   :  { %v11969_v39 = vpop.eup %11968  ;;  %11994 = vpow2.f32 %v10218_v59 }
 0x3d0   :  { %v11971_v20 = vpop.eup %11970  ;;  %11996 = vpow2.f32 %v10219_v12 }
 0x3d1   :  { %7664 = vrot.lane.b32.xlu1 %v11965_v17, %s12455_s3  ;;  %v11973_v17 = vpop.eup %11972  ;;  %11998 = vtanh.f32 %v16908_v36 }
 0x3d2   :  { %7666 = vrot.lane.b32.xlu0 %v11967_v46, %s12455_s3  ;;  %v11975_v18 = vpop.eup %11974  ;;  %12000 = vtanh.f32 %v18763_v31  ;;  %v17143_v46 = vpop.permute.xlu1 %7372 }
 0x3d3   :  { %18764 = vst [vmem:[#allocation17_spill] sm:$0xff] %v17143_v46  ;;  %v11977_v62 = vpop.eup %11976  ;;  %12002 = vpow2.f32 %v10220_v33  ;;  %v10224_v46 = vmul.f32 -1.442695, %v16703_v57  ;;  %v10225_v33 = vmul.f32 -1.442695, %v16707_v24 }
 0x3d4   :  { %v17148_v59 = vpop.eup %11978  ;;  %12004 = vpow2.f32 %v10221_v15  ;;  %v10227_v57 = vmul.f32 -1.442695, %v16715_v44 }
 0x3d5   :  { %7668 = vrot.lane.b32.xlu1 %v11969_v39, %s12455_s3  ;;  %v17145_v39 = vpop.permute.xlu0 %7370  ;;  %v11981_v12 = vpop.eup %11980 }
 0x3d6   :  { %7670 = vrot.lane.b32.xlu0 %v11971_v20, %s12455_s3  ;;  %18765 = vst [vmem:[#allocation76_spill] sm:$0xff] %v17145_v39  ;;  %v18766_v20 = vld [vmem:[#allocation18_spill] sm:$0xff]  ;;  %v17157_v23 = vpop.permute.xlu1 %7376 }
 0x3d7   :  { %12006 = vtanh.f32 %v18766_v20  ;;  %18767 = vst [vmem:[#allocation18_spill] sm:$0xff] %v17157_v23  ;;  %v10229_v23 = vmul.f32 -1.442695, %v16725_v3 }
 0x3d8   :  { %12008 = vtanh.f32 %v16918_v21 }
 0x3d9   :  { %7672 = vrot.lane.b32.xlu1 %v11973_v17, %s12455_s3  ;;  %v11983_v17 = vpop.eup %11982  ;;  %12010 = vpow2.f32 %v10222_v16  ;;  %v17159_v15 = vpop.permute.xlu0 %7374 }
 0x3da   :  { %7674 = vrot.lane.b32.xlu0 %v11975_v18, %s12455_s3  ;;  %v11985_v39 = vpop.eup %11984  ;;  %12012 = vpow2.f32 %v10223_v63  ;;  %18768 = vst [vmem:[#allocation77_spill] sm:$0xff] %v17159_v15  ;;  %v10226_v18 = vmul.f32 -1.442695, %v18726_v58  ;;  %v10228_v58 = vmul.f32 -1.442695, %v16721_v40  ;;  %v17171_v44 = vpop.permute.xlu1 %7380 }
 0x3db   :  { %v11987_v47 = vpop.eup %11986  ;;  %12014 = vtanh.f32 %v18769_v50  ;;  %18770 = vst [vmem:[#allocation19_spill] sm:$0xff] %v17171_v44 }
 0x3dc   :  { %12016 = vtanh.f32 %v16925_v7  ;;  %v6870_v16 = vadd.f32 1.0, %v11987_v47 }
 0x3dd   :  { %7676 = vrot.lane.b32.xlu1 %v11977_v62, %s12455_s3  ;;  %v11989_v62 = vpop.eup %11988  ;;  %12018 = vpow2.f32 %v10224_v46  ;;  %v17173_v7 = vpop.permute.xlu0 %7378 }
 0x3de   :  { %7678 = vrot.lane.b32.xlu0 %v11981_v12, %s12455_s3  ;;  %v11991_v22 = vpop.eup %11990  ;;  %12020 = vpow2.f32 %v10225_v33  ;;  %v6871_v15 = vadd.f32 1.0, %v11989_v62  ;;  %18771 = vst [vmem:[#allocation78_spill] sm:$0xff] %v17173_v7 }
 0x3df   :  { %v11993_v24 = vpop.eup %11992  ;;  %12022 = vpow2.f32 %v10226_v18 }
 0x3e0   :  { %v11995_v63 = vpop.eup %11994  ;;  %12024 = vpow2.f32 %v10227_v57 }
 0x3e1   :  { %7680 = vrot.lane.b32.xlu1 %v11983_v17, %s12455_s3  ;;  %v11997_v12 = vpop.eup %11996  ;;  %v6872_v47 = vadd.f32 1.0, %v11995_v63  ;;  %12026 = vrcp.f32 %v6870_v16 }
 0x3e2   :  { %7682 = vrot.lane.b32.xlu0 %v11985_v39, %s12455_s3  ;;  %v11999_v17 = vpop.eup %11998  ;;  %v6873_v62 = vadd.f32 1.0, %v11997_v12  ;;  %12028 = vrcp.f32 %v6871_v15  ;;  %v10231_v39 = vmul.f32 -1.442695, %v16735_v60  ;;  %v10233_v60 = vmul.f32 -1.442695, %v18731_v30 }
 0x3e3   :  { %v12001_v46 = vpop.eup %12000  ;;  %12030 = vpow2.f32 %v10228_v58  ;;  %v10235_v30 = vmul.f32 -1.442695, %v16751_v5 }
 0x3e4   :  { %v12003_v33 = vpop.eup %12002  ;;  %12032 = vpow2.f32 %v10229_v23 }
 0x3e5   :  { %7684 = vrot.lane.b32.xlu1 %v11991_v22, %s12455_s3  ;;  %v12005_v40 = vpop.eup %12004  ;;  %v10230_v22 = vmul.f32 -1.442695, %v16729_v35  ;;  %v7575_v57 = vpop.permute.xlu0 %7574  ;;  %v6874_v63 = vadd.f32 1.0, %v12003_v33  ;;  %12034 = vrcp.f32 %v6872_v47  ;;  %v10232_v35 = vmul.f32 -1.442695, %v16739_v25 }
 0x3e6   :  { %7686 = vrot.lane.b32.xlu0 %v11993_v24, %s12455_s3  ;;  %v12007_v3 = vpop.eup %12006  ;;  %v6875_v12 = vadd.f32 1.0, %v12005_v40  ;;  %12036 = vrcp.f32 %v6873_v62  ;;  %v10234_v25 = vmul.f32 -1.442695, %v16747_v32 }
 0x3e7   :  { %v7577_v18 = vpop.permute.xlu1 %7576  ;;  %v12009_v7 = vpop.eup %12008  ;;  %12038 = vpow2.f32 %v10230_v22 }
 0x3e8   :  { %v12011_v16 = vpop.eup %12010  ;;  %12040 = vpow2.f32 %v10231_v39 }
 0x3e9   :  { %7688 = vrot.lane.b32.xlu1 %v11999_v17, %s12455_s3  ;;  %v12013_v15 = vpop.eup %12012  ;;  %v6876_v33 = vadd.f32 1.0, %v12011_v16  ;;  %12042 = vrcp.f32 %v6874_v63 }
 0x3ea   :  { %7690 = vrot.lane.b32.xlu0 %v12001_v46, %s12455_s3  ;;  %v12015_v24 = vpop.eup %12014  ;;  %v6877_v40 = vadd.f32 1.0, %v12013_v15  ;;  %12044 = vrcp.f32 %v6875_v12 }
 0x3eb   :  { %v7579_v58 = vpop.permute.xlu0 %7578  ;;  %v12017_v17 = vpop.eup %12016  ;;  %12046 = vpow2.f32 %v10232_v35  ;;  %v10237_v35 = vmul.f32 -1.442695, %v16759_v2  ;;  %v10239_v2 = vmul.f32 -1.442695, %v18736_v51 }
 0x3ec   :  { %v12019_v47 = vpop.eup %12018  ;;  %12048 = vpow2.f32 %v10233_v60 }
 0x3ed   :  { %7692 = vrot.lane.b32.xlu1 %v12007_v3, %s12455_s3  ;;  %v12021_v46 = vpop.eup %12020  ;;  %v6878_v16 = vadd.f32 1.0, %v12019_v47  ;;  %12050 = vrcp.f32 %v6876_v33 }
 0x3ee   :  { %7694 = vrot.lane.b32.xlu0 %v12009_v7, %s12455_s3  ;;  %v12023_v62 = vpop.eup %12022  ;;  %v6879_v12 = vadd.f32 1.0, %v12021_v46  ;;  %12052 = vrcp.f32 %v6877_v40  ;;  %v18774_v7 = vld [vmem:[#allocation50_spill] sm:$0xff] }
 0x3ef   :  { %v7581_v23 = vpop.permute.xlu1 %7580  ;;  %v12025_v39 = vpop.eup %12024  ;;  %v10236_v15 = vmul.f32 -1.442695, %v18774_v7  ;;  %12054 = vpow2.f32 %v10234_v25 }
 0x3f0   :  { %v7583_v3 = vpop.permute.xlu0 %7582  ;;  %v17187_v63 = vpop.eup %12026  ;;  %12056 = vpow2.f32 %v10235_v30 }
 0x3f1   :  { %7696 = vrot.lane.b32.xlu1 %v12015_v24, %s12455_s3  ;;  %18772 = vst [vmem:[#allocation79_spill] sm:$0xff] %v17187_v63  ;;  %v17192_v32 = vpop.eup %12028  ;;  %v7766_v60 = vmul.f32 %v17187_v63, %v7575_v57  ;;  %12058 = vrcp.f32 %v6878_v16  ;;  %v10238_v57 = vmul.f32 -1.442695, %v16765_v54  ;;  %v10241_v54 = vmul.f32 -1.442695, %v16773_v53 }
 0x3f2   :  { %7698 = vrot.lane.b32.xlu0 %v17148_v59, %s12455_s3  ;;  %18773 = vst [vmem:[#allocation80_spill] sm:$0xff] %v17192_v32  ;;  %v12031_v5 = vpop.eup %12030  ;;  %v7767_v24 = vmul.f32 %v17192_v32, %v7577_v18  ;;  %v6881_v59 = vadd.f32 1.0, %v12025_v39  ;;  %12060 = vrcp.f32 %v6879_v12 }
 0x3f3   :  { %v7585_v22 = vpop.permute.xlu1 %7584  ;;  %v12033_v40 = vpop.eup %12032  ;;  %12062 = vpow2.f32 %v10236_v15  ;;  %v6882_v7 = vadd.f32 1.0, %v12031_v5 }
 0x3f4   :  { %v7587_v47 = vpop.permute.xlu0 %7586  ;;  %v17198_v46 = vpop.eup %12034  ;;  %12064 = vpow2.f32 %v10237_v35 }
 0x3f5   :  { %7700 = vrot.lane.b32.xlu1 %v12017_v17, %s12455_s3  ;;  %v6880_v17 = vadd.f32 1.0, %v12023_v62  ;;  %18775 = vst [vmem:[#allocation50_spill] sm:$0xff] %v17198_v46  ;;  %v17202_v25 = vpop.eup %12036  ;;  %v7768_v30 = vmul.f32 %v17198_v46, %v7579_v58  ;;  %v10240_v58 = vmul.f32 -1.442695, %v16769_v41  ;;  %v10242_v41 = vmul.f32 -1.442695, %v16777_v26 }
 0x3f6   :  { %7894 = vrot.lane.b32.xlu0 %v7766_v60, %s12454_s20  ;;  %18776 = vst [vmem:[#allocation81_spill] sm:$0xff] %v17202_v25  ;;  %v12039_v18 = vpop.eup %12038  ;;  %v7769_v62 = vmul.f32 %v17202_v25, %v7581_v23  ;;  %v6883_v60 = vadd.f32 1.0, %v12033_v40 }
 0x3f7   :  { %v7589_v33 = vpop.permute.xlu1 %7588  ;;  %v12041_v12 = vpop.eup %12040  ;;  %12066 = vrcp.f32 %v6880_v17 }
 0x3f8   :  { %v7591_v39 = vpop.permute.xlu0 %7590  ;;  %12068 = vrcp.f32 %v6881_v59  ;;  %v6884_v59 = vadd.f32 1.0, %v12039_v18 }
 0x3f9   :  { %7896 = vrot.lane.b32.xlu1 %v7767_v24, %s12454_s20  ;;  %v17208_v24 = vpop.eup %12042  ;;  %12070 = vpow2.f32 %v10239_v2 }
 0x3fa   :  { %18777 = vst [vmem:[#allocation82_spill] sm:$0xff] %v17208_v24  ;;  %7898 = vrot.lane.b32.xlu0 %v7768_v30, %s12454_s20  ;;  %v17212_v51 = vpop.eup %12044  ;;  %12072 = vpow2.f32 %v10238_v57  ;;  %v7770_v5 = vmul.f32 %v17208_v24, %v7583_v3  ;;  %v6885_v30 = vadd.f32 1.0, %v12041_v12  ;;  %v10243_v3 = vmul.f32 -1.442695, %v16781_v13 }
 0x3fb   :  { %v7593_v16 = vpop.permute.xlu1 %7592  ;;  %18778 = vst [vmem:[#allocation83_spill] sm:$0xff] %v17212_v51  ;;  %v12047_v23 = vpop.eup %12046  ;;  %v7771_v15 = vmul.f32 %v17212_v51, %v7585_v22  ;;  %12074 = vrcp.f32 %v6882_v7  ;;  %v10244_v13 = vmul.f32 -1.442695, %v16785_v4 }
 0x3fc   :  { %v7595_v40 = vpop.permute.xlu0 %7594  ;;  %v12049_v17 = vpop.eup %12048  ;;  %12076 = vrcp.f32 %v6883_v60  ;;  %v6886_v60 = vadd.f32 1.0, %v12047_v23 }
 0x3fd   :  { %7900 = vrot.lane.b32.xlu1 %v7769_v62, %s12454_s20  ;;  %v17218_v62 = vpop.eup %12050  ;;  %12078 = vpow2.f32 %v10241_v54 }
 0x3fe   :  { %18779 = vst [vmem:[#allocation84_spill] sm:$0xff] %v17218_v62  ;;  %7902 = vrot.lane.b32.xlu0 %v7770_v5, %s12454_s20  ;;  %v17222_v53 = vpop.eup %12052  ;;  %12080 = vpow2.f32 %v10240_v58  ;;  %v7772_v18 = vmul.f32 %v17218_v62, %v7587_v47  ;;  %v6887_v5 = vadd.f32 1.0, %v12049_v17  ;;  %v10245_v47 = vmul.f32 -1.442695, %v16789_v45 }
 0x3ff   :  { %v7597_v35 = vpop.permute.xlu1 %7596  ;;  %18780 = vst [vmem:[#allocation85_spill] sm:$0xff] %v17222_v53  ;;  %v12055_v22 = vpop.eup %12054  ;;  %v7773_v2 = vmul.f32 %v17222_v53, %v7589_v33  ;;  %12082 = vrcp.f32 %v6884_v59  ;;  %v10246_v45 = vmul.f32 -1.442695, %v16797_v11 }
 0x400   :  { %v7599_v12 = vpop.permute.xlu0 %7598  ;;  %v12057_v7 = vpop.eup %12056  ;;  %12084 = vrcp.f32 %v6885_v30  ;;  %v6888_v30 = vadd.f32 1.0, %v12055_v22 }
 0x401   :  { %7904 = vrot.lane.b32.xlu1 %v7771_v15, %s12454_s20  ;;  %v17228_v15 = vpop.eup %12058  ;;  %12086 = vpow2.f32 %v10242_v41 }
 0x402   :  { %18781 = vst [vmem:[#allocation86_spill] sm:$0xff] %v17228_v15  ;;  %7906 = vrot.lane.b32.xlu0 %v7772_v18, %s12454_s20  ;;  %v17232_v26 = vpop.eup %12060  ;;  %12088 = vpow2.f32 %v10243_v3  ;;  %v7774_v23 = vmul.f32 %v17228_v15, %v7591_v39  ;;  %v6889_v18 = vadd.f32 1.0, %v12057_v7  ;;  %v10247_v39 = vmul.f32 -1.442695, %v16801_v42 }
 0x403   :  { %v7601_v57 = vpop.permute.xlu1 %7600  ;;  %18782 = vst [vmem:[#allocation87_spill] sm:$0xff] %v17232_v26  ;;  %v12063_v33 = vpop.eup %12062  ;;  %v7775_v54 = vmul.f32 %v17232_v26, %v7593_v16  ;;  %12090 = vrcp.f32 %v6886_v60 }
 0x404   :  { %v7603_v17 = vpop.permute.xlu0 %7602  ;;  %v12065_v59 = vpop.eup %12064  ;;  %12092 = vrcp.f32 %v6887_v5  ;;  %v6890_v5 = vadd.f32 1.0, %v12063_v33 }
 0x405   :  { %7908 = vrot.lane.b32.xlu1 %v7773_v2, %s12454_s20  ;;  %v17238_v2 = vpop.eup %12066  ;;  %12094 = vpow2.f32 %v10244_v13 }
 0x406   :  { %18783 = vst [vmem:[#allocation88_spill] sm:$0xff] %v17238_v2  ;;  %7910 = vrot.lane.b32.xlu0 %v7774_v23, %s12454_s20  ;;  %v17242_v4 = vpop.eup %12068  ;;  %12096 = vpow2.f32 %v10245_v47  ;;  %v7776_v22 = vmul.f32 %v17238_v2, %v7595_v40  ;;  %v6891_v23 = vadd.f32 1.0, %v12065_v59  ;;  %v10248_v59 = vmul.f32 -1.442695, %v16805_v49 }
 0x407   :  { %v7605_v58 = vpop.permute.xlu1 %7604  ;;  %18784 = vst [vmem:[#allocation89_spill] sm:$0xff] %v17242_v4  ;;  %v12071_v16 = vpop.eup %12070  ;;  %v7777_v41 = vmul.f32 %v17242_v4, %v7597_v35  ;;  %12098 = vrcp.f32 %v6888_v30 }
 0x408   :  { %v7607_v7 = vpop.permute.xlu0 %7606  ;;  %v12073_v60 = vpop.eup %12072  ;;  %12100 = vrcp.f32 %v6889_v18  ;;  %v6893_v42 = vadd.f32 1.0, %v12071_v16  ;;  %v10250_v16 = vmul.f32 -1.442695, %v16813_v6  ;;  %v10252_v6 = vmul.f32 -1.442695, %v16821_v8 }
 0x409   :  { %7912 = vrot.lane.b32.xlu1 %v7775_v54, %s12454_s20  ;;  %v17248_v54 = vpop.eup %12074  ;;  %12102 = vpow2.f32 %v10246_v45  ;;  %v6892_v13 = vadd.f32 1.0, %v12073_v60 }
 0x40a   :  { %18785 = vst [vmem:[#allocation90_spill] sm:$0xff] %v17248_v54  ;;  %7914 = vrot.lane.b32.xlu0 %v7776_v22, %s12454_s20  ;;  %v17252_v11 = vpop.eup %12076  ;;  %12104 = vpow2.f32 %v10247_v39  ;;  %v7778_v33 = vmul.f32 %v17248_v54, %v7599_v12 }
 0x40b   :  { %v7609_v3 = vpop.permute.xlu1 %7608  ;;  %18786 = vst [vmem:[#allocation91_spill] sm:$0xff] %v17252_v11  ;;  %v12079_v35 = vpop.eup %12078  ;;  %v7779_v40 = vmul.f32 %v17252_v11, %v7601_v57  ;;  %12106 = vrcp.f32 %v6890_v5  ;;  %v10251_v5 = vmul.f32 -1.442695, %v16817_v9 }
 0x40c   :  { %v7611_v30 = vpop.permute.xlu0 %7610  ;;  %v12081_v44 = vpop.eup %12080  ;;  %12108 = vrcp.f32 %v6891_v23  ;;  %v6895_v57 = vadd.f32 1.0, %v12079_v35 }
 0x40d   :  { %7916 = vrot.lane.b32.xlu1 %v7777_v41, %s12454_s20  ;;  %v17257_v18 = vpop.eup %12082  ;;  %v10249_v41 = vmul.f32 -1.442695, %v16809_v38  ;;  %12110 = vrcp.f32 %v6893_v42 }
 0x40e   :  { %18787 = vst [vmem:[#allocation92_spill] sm:$0xff] %v17257_v18  ;;  %7918 = vrot.lane.b32.xlu0 %v7778_v33, %s12454_s20  ;;  %v17262_v45 = vpop.eup %12084  ;;  %12112 = vrcp.f32 %v6892_v13  ;;  %v7780_v39 = vmul.f32 %v17257_v18, %v7603_v17  ;;  %v10253_v17 = vmul.f32 -1.442695, %v16825_v0  ;;  %v10254_v0 = vmul.f32 -1.442695, %v16829_v10 }
 0x40f   :  { %v7613_v47 = vpop.permute.xlu1 %7612  ;;  %18788 = vst [vmem:[#allocation93_spill] sm:$0xff] %v17262_v45  ;;  %v12087_v12 = vpop.eup %12086  ;;  %v7781_v49 = vmul.f32 %v17262_v45, %v7605_v58  ;;  %12114 = vpow2.f32 %v10248_v59 }
 0x410   :  { %v7615_v60 = vpop.permute.xlu0 %7614  ;;  %v12089_v38 = vpop.eup %12088  ;;  %12116 = vpow2.f32 %v10249_v41 }
 0x411   :  { %7920 = vrot.lane.b32.xlu1 %v7779_v40, %s12454_s20  ;;  %v17268_v23 = vpop.eup %12090  ;;  %v6894_v40 = vadd.f32 1.0, %v12081_v44  ;;  %12118 = vrcp.f32 %v6895_v57  ;;  %v6897_v59 = vadd.f32 1.0, %v12089_v38 }
 0x412   :  { %18789 = vst [vmem:[#allocation94_spill] sm:$0xff] %v17268_v23  ;;  %7922 = vrot.lane.b32.xlu0 %v7780_v39, %s12454_s20  ;;  %v17272_v42 = vpop.eup %12092  ;;  %12120 = vpow2.f32 %v10250_v16  ;;  %v7782_v35 = vmul.f32 %v17268_v23, %v7607_v7  ;;  %v10255_v7 = vmul.f32 -1.442695, %v16833_v48  ;;  %v10256_v48 = vmul.f32 -1.442695, %v16837_v29 }
 0x413   :  { %v7617_v22 = vpop.permute.xlu1 %7616  ;;  %18790 = vst [vmem:[#allocation95_spill] sm:$0xff] %v17272_v42  ;;  %v12095_v58 = vpop.eup %12094  ;;  %v7783_v9 = vmul.f32 %v17272_v42, %v7609_v3  ;;  %12122 = vpow2.f32 %v10251_v5 }
 0x414   :  { %v7619_v33 = vpop.permute.xlu0 %7618  ;;  %v12097_v44 = vpop.eup %12096  ;;  %12124 = vrcp.f32 %v6894_v40  ;;  %v6898_v5 = vadd.f32 1.0, %v12095_v58 }
 0x415   :  { %7924 = vrot.lane.b32.xlu1 %v7781_v49, %s12454_s20  ;;  %v17278_v41 = vpop.eup %12098  ;;  %v6896_v49 = vadd.f32 1.0, %v12087_v12  ;;  %12126 = vpow2.f32 %v10252_v6 }
 0x416   :  { %18791 = vst [vmem:[#allocation96_spill] sm:$0xff] %v17278_v41  ;;  %7926 = vrot.lane.b32.xlu0 %v7782_v35, %s12454_s20  ;;  %v17282_v8 = vpop.eup %12100  ;;  %12128 = vpow2.f32 %v10253_v17  ;;  %v7784_v16 = vmul.f32 %v17278_v41, %v7611_v30  ;;  %v10257_v30 = vmul.f32 -1.442695, %v16841_v56  ;;  %v10258_v56 = vmul.f32 -1.442695, %v16845_v34 }
 0x417   :  { %v7621_v13 = vpop.permute.xlu1 %7620  ;;  %18792 = vst [vmem:[#allocation97_spill] sm:$0xff] %v17282_v8  ;;  %v12103_v3 = vpop.eup %12102  ;;  %v7785_v57 = vmul.f32 %v17282_v8, %v7613_v47  ;;  %12130 = vrcp.f32 %v6897_v59 }
 0x418   :  { %v7623_v38 = vpop.permute.xlu0 %7622  ;;  %v12105_v12 = vpop.eup %12104  ;;  %12132 = vrcp.f32 %v6896_v49  ;;  %v6900_v59 = vadd.f32 1.0, %v12103_v3 }
 0x419   :  { %7928 = vrot.lane.b32.xlu1 %v7783_v9, %s12454_s20  ;;  %v17288_v40 = vpop.eup %12106  ;;  %v6899_v9 = vadd.f32 1.0, %v12097_v44  ;;  %12134 = vpow2.f32 %v10254_v0 }
 0x41a   :  { %18793 = vst [vmem:[#allocation98_spill] sm:$0xff] %v17288_v40  ;;  %7930 = vrot.lane.b32.xlu0 %v7784_v16, %s12454_s20  ;;  %v17292_v10 = vpop.eup %12108  ;;  %12136 = vpow2.f32 %v10255_v7  ;;  %v7786_v58 = vmul.f32 %v17288_v40, %v7615_v60  ;;  %v10259_v60 = vmul.f32 -1.442695, %v16849_v27  ;;  %v18799_v27 = vld [vmem:[#allocation9_spill] sm:$0xff] }
 0x41b   :  { %v7625_v39 = vpop.permute.xlu1 %7624  ;;  %18794 = vst [vmem:[#allocation99_spill] sm:$0xff] %v17292_v10  ;;  %v17295_v47 = vpop.eup %12110  ;;  %v7787_v6 = vmul.f32 %v17292_v10, %v7617_v22  ;;  %12138 = vrcp.f32 %v6898_v5 }
 0x41c   :  { %18795 = vst [vmem:[#allocation100_spill] sm:$0xff] %v17295_v47  ;;  %v7627_v35 = vpop.permute.xlu0 %7626  ;;  %v17300_v44 = vpop.eup %12112  ;;  %12140 = vrcp.f32 %v6899_v9  ;;  %v7789_v0 = vmul.f32 %v17295_v47, %v7621_v13 }
 0x41d   :  { %7932 = vrot.lane.b32.xlu1 %v7785_v57, %s12454_s20  ;;  %18796 = vst [vmem:[#allocation101_spill] sm:$0xff] %v17300_v44  ;;  %v12115_v49 = vpop.eup %12114  ;;  %v6901_v57 = vadd.f32 1.0, %v12105_v12  ;;  %12142 = vpow2.f32 %v10256_v48  ;;  %v7788_v3 = vmul.f32 %v17300_v44, %v7619_v33  ;;  %v10260_v48 = vmul.f32 -1.442695, %v18799_v27 }
 0x41e   :  { %7934 = vrot.lane.b32.xlu0 %v7786_v58, %s12454_s20  ;;  %v12117_v29 = vpop.eup %12116  ;;  %12144 = vpow2.f32 %v10257_v30  ;;  %v6902_v5 = vadd.f32 1.0, %v12115_v49  ;;  %v10261_v33 = vmul.f32 -1.442695, %v16857_v28  ;;  %v10262_v28 = vmul.f32 -1.442695, %v16861_v19 }
 0x41f   :  { %v7629_v17 = vpop.permute.xlu1 %7628  ;;  %v17305_v22 = vpop.eup %12118  ;;  %12146 = vrcp.f32 %v6900_v59 }
 0x420   :  { %18797 = vst [vmem:[#allocation102_spill] sm:$0xff] %v17305_v22  ;;  %v7631_v16 = vpop.permute.xlu0 %7630  ;;  %v12121_v12 = vpop.eup %12120  ;;  %12148 = vrcp.f32 %v6901_v57  ;;  %v7791_v30 = vmul.f32 %v17305_v22, %v7625_v39 }
 0x421   :  { %7936 = vrot.lane.b32.xlu1 %v7787_v6, %s12454_s20  ;;  %v12123_v9 = vpop.eup %12122  ;;  %v6903_v6 = vadd.f32 1.0, %v12117_v29  ;;  %12150 = vpow2.f32 %v10258_v56  ;;  %v6904_v29 = vadd.f32 1.0, %v12121_v12 }
 0x422   :  { %7938 = vrot.lane.b32.xlu0 %v7788_v3, %s12454_s20  ;;  %v17312_v34 = vpop.eup %12124  ;;  %12152 = vpow2.f32 %v10259_v60  ;;  %v6905_v3 = vadd.f32 1.0, %v12123_v9 }
 0x423   :  { %v7633_v7 = vpop.permute.xlu1 %7632  ;;  %18798 = vst [vmem:[#allocation103_spill] sm:$0xff] %v17312_v34  ;;  %v12127_v13 = vpop.eup %12126  ;;  %v7790_v58 = vmul.f32 %v17312_v34, %v7623_v38  ;;  %12154 = vrcp.f32 %v6902_v5  ;;  %v18802_v38 = vld [vmem:[#allocation10_spill] sm:$0xff] }
 0x424   :  { %v7635_v49 = vpop.permute.xlu0 %7634  ;;  %v12129_v57 = vpop.eup %12128  ;;  %12156 = vrcp.f32 %v6903_v6  ;;  %v10263_v60 = vmul.f32 -1.442695, %v18802_v38  ;;  %v6906_v34 = vadd.f32 1.0, %v12127_v13 }
 0x425   :  { %7940 = vrot.lane.b32.xlu1 %v7789_v0, %s12454_s20  ;;  %v17318_v0 = vpop.eup %12130  ;;  %12158 = vpow2.f32 %v10260_v48  ;;  %v18805_v48 = vld [vmem:[#allocation12_spill] sm:$0xff] }
 0x426   :  { %18800 = vst [vmem:[#allocation9_spill] sm:$0xff] %v17318_v0  ;;  %7942 = vrot.lane.b32.xlu0 %v7790_v58, %s12454_s20  ;;  %v17322_v56 = vpop.eup %12132  ;;  %12160 = vpow2.f32 %v10261_v33  ;;  %v7793_v12 = vmul.f32 %v17318_v0, %v7629_v17  ;;  %v6907_v58 = vadd.f32 1.0, %v12129_v57  ;;  %v10264_v33 = vmul.f32 -1.442695, %v18805_v48 }
 0x427   :  { %v7637_v59 = vpop.permute.xlu1 %7636  ;;  %18801 = vst [vmem:[#allocation104_spill] sm:$0xff] %v17322_v56  ;;  %v12135_v39 = vpop.eup %12134  ;;  %v7792_v5 = vmul.f32 %v17322_v56, %v7627_v35  ;;  %12162 = vrcp.f32 %v6904_v29  ;;  %v18806_v35 = vld [vmem:[#allocation13_spill] sm:$0xff] }
 0x428   :  { %v7639_v9 = vpop.permute.xlu0 %7638  ;;  %v12137_v6 = vpop.eup %12136  ;;  %12164 = vrcp.f32 %v6905_v3  ;;  %v10265_v38 = vmul.f32 -1.442695, %v18806_v35  ;;  %v6908_v0 = vadd.f32 1.0, %v12135_v39 }
 0x429   :  { %7944 = vrot.lane.b32.xlu1 %v7791_v30, %s12454_s20  ;;  %v17328_v30 = vpop.eup %12138  ;;  %12166 = vpow2.f32 %v10262_v28 }
 0x42a   :  { %18803 = vst [vmem:[#allocation10_spill] sm:$0xff] %v17328_v30  ;;  %7946 = vrot.lane.b32.xlu0 %v7792_v5, %s12454_s20  ;;  %v17332_v19 = vpop.eup %12140  ;;  %12168 = vpow2.f32 %v10263_v60  ;;  %v7794_v29 = vmul.f32 %v17328_v30, %v7631_v16  ;;  %v6909_v5 = vadd.f32 1.0, %v12137_v6  ;;  %v10266_v60 = vmul.f32 -1.442695, %v16877_v1 }
 0x42b   :  { %v7641_v27 = vpop.permute.xlu1 %7640  ;;  %18804 = vst [vmem:[#allocation105_spill] sm:$0xff] %v17332_v19  ;;  %v12143_v17 = vpop.eup %12142  ;;  %v7795_v13 = vmul.f32 %v17332_v19, %v7633_v7  ;;  %12170 = vrcp.f32 %v6906_v34  ;;  %v10267_v16 = vmul.f32 -1.442695, %v16881_v43  ;;  %v10268_v43 = vmul.f32 -1.442695, %v18760_v14 }
 0x42c   :  { %v7643_v57 = vpop.permute.xlu0 %7642  ;;  %v12145_v3 = vpop.eup %12144  ;;  %12172 = vrcp.f32 %v6907_v58  ;;  %v6910_v35 = vadd.f32 1.0, %v12143_v17 }
 0x42d   :  { %7948 = vrot.lane.b32.xlu1 %v7793_v12, %s12454_s20  ;;  %v17338_v12 = vpop.eup %12146  ;;  %12174 = vpow2.f32 %v10264_v33 }
 0x42e   :  { %18807 = vst [vmem:[#allocation12_spill] sm:$0xff] %v17338_v12  ;;  %7950 = vrot.lane.b32.xlu0 %v7794_v29, %s12454_s20  ;;  %v17342_v28 = vpop.eup %12148  ;;  %12176 = vpow2.f32 %v10265_v38  ;;  %v7796_v34 = vmul.f32 %v17338_v12, %v7635_v49  ;;  %v6911_v29 = vadd.f32 1.0, %v12145_v3  ;;  %v10269_v49 = vmul.f32 -1.442695, %v16889_v37 }
 0x42f   :  { %v7645_v56 = vpop.permute.xlu1 %7644  ;;  %18808 = vst [vmem:[#allocation13_spill] sm:$0xff] %v17342_v28  ;;  %v12151_v7 = vpop.eup %12150  ;;  %v7797_v39 = vmul.f32 %v17342_v28, %v7637_v59  ;;  %12178 = vrcp.f32 %v6908_v0  ;;  %v10270_v37 = vmul.f32 -1.442695, %v16897_v61 }
 0x430   :  { %v7647_v6 = vpop.permute.xlu0 %7646  ;;  %v12153_v58 = vpop.eup %12152  ;;  %12180 = vrcp.f32 %v6909_v5  ;;  %v6912_v5 = vadd.f32 1.0, %v12151_v7 }
 0x431   :  { %7952 = vrot.lane.b32.xlu1 %v7795_v13, %s12454_s20  ;;  %v17348_v13 = vpop.eup %12154  ;;  %12182 = vpow2.f32 %v10266_v60 }
 0x432   :  { %18809 = vst [vmem:[#allocation106_spill] sm:$0xff] %v17348_v13  ;;  %7954 = vrot.lane.b32.xlu0 %v7796_v34, %s12454_s20  ;;  %v17352_v1 = vpop.eup %12156  ;;  %12184 = vpow2.f32 %v10267_v16  ;;  %v7798_v0 = vmul.f32 %v17348_v13, %v7639_v9  ;;  %v6913_v34 = vadd.f32 1.0, %v12153_v58  ;;  %v10271_v9 = vmul.f32 -1.442695, %v16901_v55 }
 0x433   :  { %v7649_v48 = vpop.permute.xlu1 %7648  ;;  %18810 = vst [vmem:[#allocation107_spill] sm:$0xff] %v17352_v1  ;;  %v12159_v59 = vpop.eup %12158  ;;  %v7799_v33 = vmul.f32 %v17352_v1, %v7641_v27  ;;  %12186 = vrcp.f32 %v6910_v35  ;;  %v10272_v55 = vmul.f32 -1.442695, %v16905_v52 }
 0x434   :  { %v7651_v38 = vpop.permute.xlu0 %7650  ;;  %v12161_v3 = vpop.eup %12160  ;;  %12188 = vrcp.f32 %v6911_v29  ;;  %v6914_v29 = vadd.f32 1.0, %v12159_v59 }
 0x435   :  { %7956 = vrot.lane.b32.xlu1 %v7797_v39, %s12454_s20  ;;  %v17358_v39 = vpop.eup %12162  ;;  %12190 = vpow2.f32 %v10268_v43 }
 0x436   :  { %18811 = vst [vmem:[#allocation108_spill] sm:$0xff] %v17358_v39  ;;  %7958 = vrot.lane.b32.xlu0 %v7798_v0, %s12454_s20  ;;  %v17362_v14 = vpop.eup %12164  ;;  %12192 = vpow2.f32 %v10269_v49  ;;  %v7800_v7 = vmul.f32 %v17358_v39, %v7643_v57  ;;  %v6915_v0 = vadd.f32 1.0, %v12161_v3  ;;  %v10273_v57 = vmul.f32 -1.442695, %v16908_v36 }
 0x437   :  { %v7653_v17 = vpop.permute.xlu1 %7652  ;;  %18812 = vst [vmem:[#allocation109_spill] sm:$0xff] %v17362_v14  ;;  %v12167_v27 = vpop.eup %12166  ;;  %v7801_v60 = vmul.f32 %v17362_v14, %v7645_v56  ;;  %12194 = vrcp.f32 %v6912_v5  ;;  %v10274_v36 = vmul.f32 -1.442695, %v18763_v31 }
 0x438   :  { %v7655_v58 = vpop.permute.xlu0 %7654  ;;  %v12169_v35 = vpop.eup %12168  ;;  %12196 = vrcp.f32 %v6913_v34  ;;  %v6916_v34 = vadd.f32 1.0, %v12167_v27 }
 0x439   :  { %7960 = vrot.lane.b32.xlu1 %v7799_v33, %s12454_s20  ;;  %v17368_v33 = vpop.eup %12170  ;;  %12198 = vpow2.f32 %v10270_v37 }
 0x43a   :  { %18813 = vst [vmem:[#allocation110_spill] sm:$0xff] %v17368_v33  ;;  %7962 = vrot.lane.b32.xlu0 %v7800_v7, %s12454_s20  ;;  %v17372_v61 = vpop.eup %12172  ;;  %12200 = vpow2.f32 %v10271_v9  ;;  %v7802_v59 = vmul.f32 %v17368_v33, %v7647_v6  ;;  %v6917_v7 = vadd.f32 1.0, %v12169_v35  ;;  %v10275_v6 = vmul.f32 -1.442695, %v18766_v20 }
 0x43b   :  { %v7657_v16 = vpop.permute.xlu1 %7656  ;;  %18814 = vst [vmem:[#allocation111_spill] sm:$0xff] %v17372_v61  ;;  %v12175_v56 = vpop.eup %12174  ;;  %v7803_v43 = vmul.f32 %v17372_v61, %v7649_v48  ;;  %12202 = vrcp.f32 %v6914_v29  ;;  %v10276_v20 = vmul.f32 -1.442695, %v16918_v21 }
 0x43c   :  { %v7659_v3 = vpop.permute.xlu0 %7658  ;;  %v12177_v5 = vpop.eup %12176  ;;  %12204 = vrcp.f32 %v6915_v0  ;;  %v6918_v0 = vadd.f32 1.0, %v12175_v56 }
 0x43d   :  { %7964 = vrot.lane.b32.xlu1 %v7801_v60, %s12454_s20  ;;  %v17378_v60 = vpop.eup %12178  ;;  %12206 = vpow2.f32 %v10272_v55 }
 0x43e   :  { %18815 = vst [vmem:[#allocation112_spill] sm:$0xff] %v17378_v60  ;;  %7966 = vrot.lane.b32.xlu0 %v7802_v59, %s12454_s20  ;;  %v17382_v52 = vpop.eup %12180  ;;  %12208 = vpow2.f32 %v10273_v57  ;;  %v7804_v27 = vmul.f32 %v17378_v60, %v7651_v38  ;;  %v6919_v59 = vadd.f32 1.0, %v12177_v5  ;;  %v10277_v38 = vmul.f32 -1.442695, %v18769_v50  ;;  %v18821_v50 = vld [vmem:[#allocation38_spill] sm:$0xff] }
 0x43f   :  { %v7661_v49 = vpop.permute.xlu1 %7660  ;;  %18816 = vst [vmem:[#allocation113_spill] sm:$0xff] %v17382_v52  ;;  %v12183_v48 = vpop.eup %12182  ;;  %v7805_v37 = vmul.f32 %v17382_v52, %v7653_v17  ;;  %12210 = vrcp.f32 %v6916_v34 }
 0x440   :  { %v7663_v35 = vpop.permute.xlu0 %7662  ;;  %v12185_v29 = vpop.eup %12184  ;;  %12212 = vrcp.f32 %v6917_v7  ;;  %v6920_v7 = vadd.f32 1.0, %v12183_v48 }
 0x441   :  { %7968 = vrot.lane.b32.xlu1 %v7803_v43, %s12454_s20  ;;  %v17388_v43 = vpop.eup %12186  ;;  %12214 = vpow2.f32 %v10274_v36  ;;  %v10278_v36 = vmul.f32 -1.442695, %v18821_v50 }
 0x442   :  { %18817 = vst [vmem:[#allocation114_spill] sm:$0xff] %v17388_v43  ;;  %7970 = vrot.lane.b32.xlu0 %v7804_v27, %s12454_s20  ;;  %v17392_v31 = vpop.eup %12188  ;;  %12216 = vpow2.f32 %v10275_v6  ;;  %v7806_v56 = vmul.f32 %v17388_v43, %v7655_v58  ;;  %v6921_v27 = vadd.f32 1.0, %v12185_v29  ;;  %v18822_v58 = vld [vmem:[#allocation21_spill] sm:$0xff] }
 0x443   :  { %v7665_v9 = vpop.permute.xlu1 %7664  ;;  %18818 = vst [vmem:[#allocation115_spill] sm:$0xff] %v17392_v31  ;;  %v12191_v17 = vpop.eup %12190  ;;  %v7807_v55 = vmul.f32 %v17392_v31, %v7657_v16  ;;  %12218 = vrcp.f32 %v6918_v0  ;;  %v10279_v6 = vmul.f32 -1.442695, %v18822_v58 }
 0x444   :  { %v7667_v5 = vpop.permute.xlu0 %7666  ;;  %v12193_v34 = vpop.eup %12192  ;;  %12220 = vrcp.f32 %v6919_v59  ;;  %v6922_v31 = vadd.f32 1.0, %v12191_v17 }
 0x445   :  { %7972 = vrot.lane.b32.xlu1 %v7805_v37, %s12454_s20  ;;  %v17398_v37 = vpop.eup %12194  ;;  %12222 = vpow2.f32 %v10276_v20 }
 0x446   :  { %18819 = vst [vmem:[#allocation116_spill] sm:$0xff] %v17398_v37  ;;  %7974 = vrot.lane.b32.xlu0 %v7806_v56, %s12454_s20  ;;  %v17402_v21 = vpop.eup %12196  ;;  %12224 = vpow2.f32 %v10277_v38  ;;  %v7808_v0 = vmul.f32 %v17398_v37, %v7659_v3  ;;  %v6923_v56 = vadd.f32 1.0, %v12193_v34 }
 0x447   :  { %v7669_v57 = vpop.permute.xlu1 %7668  ;;  %18820 = vst [vmem:[#allocation117_spill] sm:$0xff] %v17402_v21  ;;  %v12199_v16 = vpop.eup %12198  ;;  %v7809_v48 = vmul.f32 %v17402_v21, %v7661_v49  ;;  %12226 = vrcp.f32 %v6920_v7 }
 0x448   :  { %v7671_v29 = vpop.permute.xlu0 %7670  ;;  %v12201_v59 = vpop.eup %12200  ;;  %12228 = vrcp.f32 %v6921_v27  ;;  %v6924_v58 = vadd.f32 1.0, %v12199_v16 }
 0x449   :  { %7976 = vrot.lane.b32.xlu1 %v7807_v55, %s12454_s20  ;;  %v17408_v55 = vpop.eup %12202  ;;  %12230 = vpow2.f32 %v10278_v36  ;;  %v6925_v27 = vadd.f32 1.0, %v12201_v59 }
 0x44a   :  { %18823 = vst [vmem:[#allocation38_spill] sm:$0xff] %v17408_v55  ;;  %7978 = vrot.lane.b32.xlu0 %v7808_v0, %s12454_s20  ;;  %v17412_v20 = vpop.eup %12204  ;;  %12232 = vpow2.f32 %v10279_v6  ;;  %v7810_v3 = vmul.f32 %v17408_v55, %v7663_v35 }
 0x44b   :  { %v7673_v43 = vpop.permute.xlu1 %7672  ;;  %18824 = vst [vmem:[#allocation21_spill] sm:$0xff] %v17412_v20  ;;  %v12207_v38 = vpop.eup %12206  ;;  %v7811_v49 = vmul.f32 %v17412_v20, %v7665_v9  ;;  %12234 = vrcp.f32 %v6922_v31 }
 0x44c   :  { %v7675_v17 = vpop.permute.xlu0 %7674  ;;  %v12209_v7 = vpop.eup %12208  ;;  %12236 = vrcp.f32 %v6923_v56  ;;  %v6926_v16 = vadd.f32 1.0, %v12207_v38 }
 0x44d   :  { %7980 = vrot.lane.b32.xlu1 %v7809_v48, %s12454_s20  ;;  %v17416_v34 = vpop.eup %12210  ;;  %12238 = vrcp.f32 %v6924_v58  ;;  %v6927_v59 = vadd.f32 1.0, %v12209_v7 }
 0x44e   :  { %18825 = vst [vmem:[#allocation118_spill] sm:$0xff] %v17416_v34  ;;  %7982 = vrot.lane.b32.xlu0 %v7810_v3, %s12454_s20  ;;  %v17420_v36 = vpop.eup %12212  ;;  %v7812_v35 = vmul.f32 %v17416_v34, %v7667_v5  ;;  %12240 = vrcp.f32 %v6925_v27 }
 0x44f   :  { %v7677_v50 = vpop.permute.xlu1 %7676  ;;  %18826 = vst [vmem:[#allocation119_spill] sm:$0xff] %v17420_v36  ;;  %v12215_v6 = vpop.eup %12214  ;;  %v7813_v9 = vmul.f32 %v17420_v36, %v7669_v57  ;;  %12242 = vrcp.f32 %v6926_v16 }
 0x450   :  { %v7679_v0 = vpop.permute.xlu0 %7678  ;;  %v12217_v55 = vpop.eup %12216  ;;  %v6928_v38 = vadd.f32 1.0, %v12215_v6  ;;  %12244 = vrcp.f32 %v6927_v59 }
 0x451   :  { %7984 = vrot.lane.b32.xlu1 %v7811_v49, %s12454_s20  ;;  %v17424_v31 = vpop.eup %12218  ;;  %v6929_v7 = vadd.f32 1.0, %v12217_v55 }
 0x452   :  { %18827 = vst [vmem:[#allocation120_spill] sm:$0xff] %v17424_v31  ;;  %7986 = vrot.lane.b32.xlu0 %v7812_v35, %s12454_s20  ;;  %v17428_v56 = vpop.eup %12220  ;;  %v7814_v5 = vmul.f32 %v17424_v31, %v7671_v29  ;;  %12246 = vrcp.f32 %v6928_v38 }
 0x453   :  { %v7681_v48 = vpop.permute.xlu1 %7680  ;;  %18828 = vst [vmem:[#allocation121_spill] sm:$0xff] %v17428_v56  ;;  %v12223_v49 = vpop.eup %12222  ;;  %v7815_v57 = vmul.f32 %v17428_v56, %v7673_v43  ;;  %12248 = vrcp.f32 %v6929_v7 }
 0x454   :  { %v7683_v34 = vpop.permute.xlu0 %7682  ;;  %v12225_v36 = vpop.eup %12224  ;;  %v6930_v6 = vadd.f32 1.0, %v12223_v49 }
 0x455   :  { %7988 = vrot.lane.b32.xlu1 %v7813_v9, %s12454_s20  ;;  %v17432_v58 = vpop.eup %12226  ;;  %v6931_v55 = vadd.f32 1.0, %v12225_v36 }
 0x456   :  { %18829 = vst [vmem:[#allocation122_spill] sm:$0xff] %v17432_v58  ;;  %7990 = vrot.lane.b32.xlu0 %v7814_v5, %s12454_s20  ;;  %v17436_v27 = vpop.eup %12228  ;;  %v7816_v29 = vmul.f32 %v17432_v58, %v7675_v17  ;;  %12250 = vrcp.f32 %v6930_v6 }
 0x457   :  { %v7685_v3 = vpop.permute.xlu1 %7684  ;;  %18830 = vst [vmem:[#allocation123_spill] sm:$0xff] %v17436_v27  ;;  %v12231_v9 = vpop.eup %12230  ;;  %v7817_v43 = vmul.f32 %v17436_v27, %v7677_v50  ;;  %12252 = vrcp.f32 %v6931_v55 }
 0x458   :  { %v7687_v31 = vpop.permute.xlu0 %7686  ;;  %v12233_v56 = vpop.eup %12232  ;;  %v6932_v58 = vadd.f32 1.0, %v12231_v9 }
 0x459   :  { %7992 = vrot.lane.b32.xlu1 %v7815_v57, %s12454_s20  ;;  %v17440_v16 = vpop.eup %12234  ;;  %v6933_v38 = vadd.f32 1.0, %v12233_v56 }
 0x45a   :  { %18831 = vst [vmem:[#allocation124_spill] sm:$0xff] %v17440_v16  ;;  %7994 = vrot.lane.b32.xlu0 %v7816_v29, %s12454_s20  ;;  %v17444_v59 = vpop.eup %12236  ;;  %v7818_v50 = vmul.f32 %v17440_v16, %v7679_v0  ;;  %12254 = vrcp.f32 %v6932_v58 }
 0x45b   :  { %v7689_v35 = vpop.permute.xlu1 %7688  ;;  %18832 = vst [vmem:[#allocation125_spill] sm:$0xff] %v17444_v59  ;;  %v7819_v57 = vmul.f32 %v17444_v59, %v7681_v48  ;;  %v17448_v49 = vpop.eup %12238  ;;  %12256 = vrcp.f32 %v6933_v38 }
 0x45c   :  { %v7691_v5 = vpop.permute.xlu0 %7690  ;;  %18833 = vst [vmem:[#allocation126_spill] sm:$0xff] %v17448_v49  ;;  %v17452_v36 = vpop.eup %12240  ;;  %v7820_v48 = vmul.f32 %v17448_v49, %v7683_v34 }
 0x45d   :  { %7996 = vrot.lane.b32.xlu1 %v7817_v43, %s12454_s20  ;;  %18834 = vst [vmem:[#allocation127_spill] sm:$0xff] %v17452_v36  ;;  %v7821_v7 = vmul.f32 %v17452_v36, %v7685_v3  ;;  %v17456_v29 = vpop.eup %12242 }
 0x45e   :  { %7998 = vrot.lane.b32.xlu0 %v7818_v50, %s12454_s20  ;;  %18835 = vst [vmem:[#allocation128_spill] sm:$0xff] %v17456_v29  ;;  %v17460_v56 = vpop.eup %12244  ;;  %v7822_v6 = vmul.f32 %v17456_v29, %v7687_v31 }
 0x45f   :  { %v7693_v17 = vpop.permute.xlu1 %7692  ;;  %18836 = vst [vmem:[#allocation129_spill] sm:$0xff] %v17460_v56  ;;  %v7823_v9 = vmul.f32 %v17460_v56, %v7689_v35 }
 0x460   :  { %v7695_v0 = vpop.permute.xlu0 %7694 }
 0x461   :  { %8000 = vrot.lane.b32.xlu1 %v7819_v57, %s12454_s20  ;;  %v17464_v57 = vpop.eup %12246 }
 0x462   :  { %8002 = vrot.lane.b32.xlu0 %v7820_v48, %s12454_s20  ;;  %18837 = vst [vmem:[#allocation130_spill] sm:$0xff] %v17464_v57  ;;  %v17468_v34 = vpop.eup %12248  ;;  %v7824_v50 = vmul.f32 %v17464_v57, %v7691_v5 }
 0x463   :  { %v7697_v43 = vpop.permute.xlu1 %7696  ;;  %18838 = vst [vmem:[#allocation131_spill] sm:$0xff] %v17468_v34  ;;  %v7825_v58 = vmul.f32 %v17468_v34, %v7693_v17  ;;  %v17472_v48 = vpop.eup %12250  ;;  %v18843_v34 = vld [vmem:[#allocation40_spill] sm:$0xff] }
 0x464   :  { %v7699_v3 = vpop.permute.xlu0 %7698  ;;  %18839 = vst [vmem:[#allocation132_spill] sm:$0xff] %v17472_v48  ;;  %v17476_v31 = vpop.eup %12252 }
 0x465   :  { %8004 = vrot.lane.b32.xlu1 %v7821_v7, %s12454_s20  ;;  %18840 = vst [vmem:[#allocation133_spill] sm:$0xff] %v17476_v31  ;;  %v7827_v35 = vmul.f32 %v17476_v31, %v7697_v43  ;;  %v7446_v43 = vmul.f32 %v17187_v63, %v18843_v34  ;;  %v18872_v63 = vld [vmem:[#allocation43_spill] sm:$0xff] }
 0x466   :  { %8006 = vrot.lane.b32.xlu0 %v7822_v6, %s12454_s20 }
 0x467   :  { %v7701_v55 = vpop.permute.xlu1 %7700  ;;  %v17480_v56 = vpop.eup %12254 }
 0x468   :  { %v7895_v7 = vpop.permute.xlu0 %7894  ;;  %18841 = vst [vmem:[#allocation134_spill] sm:$0xff] %v17480_v56  ;;  %v17484_v17 = vpop.eup %12256 }
 0x469   :  { %8008 = vrot.lane.b32.xlu1 %v7823_v9, %s12454_s20  ;;  %v7826_v9 = vmul.f32 %v17472_v48, %v7695_v0  ;;  %18842 = vst [vmem:[#allocation135_spill] sm:$0xff] %v17484_v17  ;;  %v7829_v5 = vmul.f32 %v17484_v17, %v7701_v55  ;;  %v18844_v0 = vld [vmem:[#allocation47_spill] sm:$0xff] }
 0x46a   :  { %8010 = vrot.lane.b32.xlu0 %v7824_v50, %s12454_s20  ;;  %v7447_v48 = vmul.f32 %v17192_v32, %v18844_v0  ;;  %v18845_v17 = vld [vmem:[#allocation39_spill] sm:$0xff]  ;;  %v18849_v0 = vld [vmem:[#allocation16_spill] sm:$0xff] }
 0x46b   :  { %v7897_v38 = vpop.permute.xlu1 %7896  ;;  %v18875_v32 = vld [vmem:[#allocation48_spill] sm:$0xff] }
 0x46c   :  { %v7899_v29 = vpop.permute.xlu0 %7898 }
 0x46d   :  { %8012 = vrot.lane.b32.xlu1 %v7825_v58, %s12454_s20  ;;  %v7828_v58 = vmul.f32 %v17480_v56, %v7699_v3  ;;  %v7448_v3 = vmul.f32 %v17198_v46, %v18845_v17  ;;  %v18846_v56 = vld [vmem:[#allocation46_spill] sm:$0xff]  ;;  %v18848_v17 = vld [vmem:[#allocation8_spill] sm:$0xff]  ;;  %v18850_v46 = vld [vmem:[#allocation15_spill] sm:$0xff] }
 0x46e   :  { %8014 = vrot.lane.b32.xlu0 %v7826_v9, %s12454_s20  ;;  %v17496_v9 = vadd.f32 %v7895_v7, %v7446_v43  ;;  %v7449_v49 = vmul.f32 %v17202_v25, %v18846_v56  ;;  %v7451_v43 = vmul.f32 %v17212_v51, %v18848_v17  ;;  %v18852_v51 = vld [vmem:[#allocation20_spill] sm:$0xff] }
 0x46f   :  { %v7901_v6 = vpop.permute.xlu1 %7900 }
 0x470   :  { %v7903_v57 = vpop.permute.xlu0 %7902  ;;  %v17506_v34 = vadd.f32 %v7901_v6, %v7449_v49 }
 0x471   :  { %8016 = vrot.lane.b32.xlu1 %v7827_v35, %s12454_s20  ;;  %v17494_v35 = vadd.f32 %v7897_v38, %v7447_v48  ;;  %v17508_v38 = vadd.f32 %v7899_v29, %v7448_v3  ;;  %v7452_v3 = vmul.f32 %v17218_v62, %v18849_v0  ;;  %v7455_v0 = vmul.f32 %v17232_v26, %v18852_v51  ;;  %v18856_v26 = vld [vmem:[#allocation25_spill] sm:$0xff] }
 0x472   :  { %8018 = vrot.lane.b32.xlu0 %v7828_v58, %s12454_s20 }
 0x473   :  { %v7905_v50 = vpop.permute.xlu1 %7904  ;;  %12258 = vtanh.f32 %v17494_v35 }
 0x474   :  { %v7907_v55 = vpop.permute.xlu0 %7906  ;;  %v17518_v56 = vadd.f32 %v7905_v50, %v7451_v43  ;;  %v18851_v43 = vld [vmem:[#allocation22_spill] sm:$0xff]  ;;  %12260 = vtanh.f32 %v17496_v9 }
 0x475   :  { %8020 = vrot.lane.b32.xlu1 %v7829_v5, %s12454_s20  ;;  %v18847_v5 = vld [vmem:[#allocation11_spill] sm:$0xff]  ;;  %v17532_v50 = vadd.f32 %v7907_v55, %v7452_v3  ;;  %12262 = vtanh.f32 %v17506_v34 }
 0x476   :  { %8598 = vrot.lane.b32.xlu0 %v17496_v9, %s12456_s4  ;;  %v7450_v58 = vmul.f32 %v17208_v24, %v18847_v5  ;;  %v7453_v5 = vmul.f32 %v17222_v53, %v18850_v46  ;;  %v7454_v24 = vmul.f32 %v17228_v15, %v18851_v43  ;;  %v18854_v53 = vld [vmem:[#allocation23_spill] sm:$0xff]  ;;  %12264 = vtanh.f32 %v17508_v38 }
 0x477   :  { %v7909_v31 = vpop.permute.xlu1 %7908  ;;  %v7457_v43 = vmul.f32 %v17242_v4, %v18854_v53  ;;  %v18858_v4 = vld [vmem:[#allocation26_spill] sm:$0xff]  ;;  %12266 = vtanh.f32 %v17518_v56 }
 0x478   :  { %v7911_v48 = vpop.permute.xlu0 %7910  ;;  %v17520_v49 = vadd.f32 %v7903_v57, %v7450_v58  ;;  %v17530_v17 = vadd.f32 %v7909_v31, %v7453_v5  ;;  %v18853_v5 = vld [vmem:[#allocation24_spill] sm:$0xff] }
 0x479   :  { %8600 = vrot.lane.b32.xlu1 %v17494_v35, %s12456_s4  ;;  %v17544_v31 = vadd.f32 %v7911_v48, %v7454_v24  ;;  %v7456_v62 = vmul.f32 %v17238_v2, %v18853_v5  ;;  %v7459_v5 = vmul.f32 %v17252_v11, %v18856_v26  ;;  %v18860_v11 = vld [vmem:[#allocation29_spill] sm:$0xff] }
 0x47a   :  { %8602 = vrot.lane.b32.xlu0 %v17508_v38, %s12456_s4  ;;  %12268 = vtanh.f32 %v17520_v49 }
 0x47b   :  { %v7913_v7 = vpop.permute.xlu1 %7912  ;;  %12270 = vtanh.f32 %v17530_v17 }
 0x47c   :  { %v7915_v6 = vpop.permute.xlu0 %7914  ;;  %v17542_v46 = vadd.f32 %v7913_v7, %v7455_v0  ;;  %v18855_v0 = vld [vmem:[#allocation27_spill] sm:$0xff]  ;;  %12272 = vtanh.f32 %v17532_v50 }
 0x47d   :  { %8604 = vrot.lane.b32.xlu1 %v17506_v34, %s12456_s4  ;;  %v17556_v7 = vadd.f32 %v7915_v6, %v7456_v62  ;;  %v7458_v15 = vmul.f32 %v17248_v54, %v18855_v0  ;;  %v7461_v0 = vmul.f32 %v17262_v45, %v18858_v4  ;;  %v18862_v45 = vld [vmem:[#allocation31_spill] sm:$0xff] }
 0x47e   :  { %8606 = vrot.lane.b32.xlu0 %v17520_v49, %s12456_s4  ;;  %12274 = vtanh.f32 %v17542_v46 }
 0x47f   :  { %v7917_v29 = vpop.permute.xlu1 %7916  ;;  %12276 = vtanh.f32 %v17544_v31 }
 0x480   :  { %v7919_v58 = vpop.permute.xlu0 %7918  ;;  %v17554_v51 = vadd.f32 %v7917_v29, %v7457_v43  ;;  %v18857_v43 = vld [vmem:[#allocation28_spill] sm:$0xff] }
 0x481   :  { %8608 = vrot.lane.b32.xlu1 %v17518_v56, %s12456_s4  ;;  %v17568_v29 = vadd.f32 %v7919_v58, %v7458_v15  ;;  %v7460_v2 = vmul.f32 %v17257_v18, %v18857_v43  ;;  %v7463_v43 = vmul.f32 %v17272_v42, %v18860_v11  ;;  %v18864_v42 = vld [vmem:[#allocation32_spill] sm:$0xff]  ;;  %v12259_v56 = vpop.eup %12258 }
 0x482   :  { %8610 = vrot.lane.b32.xlu0 %v17532_v50, %s12456_s4  ;;  %12278 = vtanh.f32 %v17554_v51 }
 0x483   :  { %v7921_v57 = vpop.permute.xlu1 %7920  ;;  %12280 = vtanh.f32 %v17556_v7 }
 0x484   :  { %v7923_v3 = vpop.permute.xlu0 %7922  ;;  %v17566_v53 = vadd.f32 %v7921_v57, %v7459_v5  ;;  %v18859_v5 = vld [vmem:[#allocation30_spill] sm:$0xff] }
 0x485   :  { %8612 = vrot.lane.b32.xlu1 %v17530_v17, %s12456_s4  ;;  %v17580_v57 = vadd.f32 %v7923_v3, %v7460_v2  ;;  %v7462_v54 = vmul.f32 %v17268_v23, %v18859_v5  ;;  %v7465_v5 = vmul.f32 %v17282_v8, %v18862_v45  ;;  %v18866_v8 = vld [vmem:[#allocation34_spill] sm:$0xff] }
 0x486   :  { %8614 = vrot.lane.b32.xlu0 %v17544_v31, %s12456_s4  ;;  %12282 = vtanh.f32 %v17566_v53 }
 0x487   :  { %v7925_v55 = vpop.permute.xlu1 %7924  ;;  %12284 = vtanh.f32 %v17568_v29 }
 0x488   :  { %v7927_v48 = vpop.permute.xlu0 %7926  ;;  %v17578_v26 = vadd.f32 %v7925_v55, %v7461_v0  ;;  %v18861_v0 = vld [vmem:[#allocation36_spill] sm:$0xff] }
 0x489   :  { %8616 = vrot.lane.b32.xlu1 %v17542_v46, %s12456_s4  ;;  %v17592_v55 = vadd.f32 %v7927_v48, %v7462_v54  ;;  %v7464_v18 = vmul.f32 %v17278_v41, %v18861_v0  ;;  %v7467_v0 = vmul.f32 %v17292_v10, %v18864_v42  ;;  %v18868_v10 = vld [vmem:[#allocation41_spill] sm:$0xff] }
 0x48a   :  { %8618 = vrot.lane.b32.xlu0 %v17556_v7, %s12456_s4  ;;  %12286 = vtanh.f32 %v17578_v26 }
 0x48b   :  { %v7929_v24 = vpop.permute.xlu1 %7928  ;;  %12288 = vtanh.f32 %v17580_v57 }
 0x48c   :  { %v7931_v6 = vpop.permute.xlu0 %7930  ;;  %v17590_v4 = vadd.f32 %v7929_v24, %v7463_v43  ;;  %v18863_v43 = vld [vmem:[#allocation33_spill] sm:$0xff] }
 0x48d   :  { %8620 = vrot.lane.b32.xlu1 %v17554_v51, %s12456_s4  ;;  %v17604_v24 = vadd.f32 %v7931_v6, %v7464_v18  ;;  %v7466_v23 = vmul.f32 %v17288_v40, %v18863_v43  ;;  %v7468_v43 = vmul.f32 %v17300_v44, %v18866_v8  ;;  %v18871_v44 = vld [vmem:[#allocation9_spill] sm:$0xff] }
 0x48e   :  { %8622 = vrot.lane.b32.xlu0 %v17568_v29, %s12456_s4  ;;  %12290 = vtanh.f32 %v17590_v4 }
 0x48f   :  { %v7933_v62 = vpop.permute.xlu1 %7932 }
 0x490   :  { %v7935_v58 = vpop.permute.xlu0 %7934  ;;  %v17602_v11 = vadd.f32 %v7933_v62, %v7465_v5  ;;  %v18865_v5 = vld [vmem:[#allocation35_spill] sm:$0xff] }
 0x491   :  { %8624 = vrot.lane.b32.xlu1 %v17566_v53, %s12456_s4  ;;  %v17616_v62 = vadd.f32 %v7935_v58, %v7466_v23  ;;  %v7469_v41 = vmul.f32 %v17295_v47, %v18865_v5  ;;  %v18869_v5 = vld [vmem:[#allocation103_spill] sm:$0xff] }
 0x492   :  { %8626 = vrot.lane.b32.xlu0 %v17580_v57, %s12456_s4  ;;  %v7470_v47 = vmul.f32 %v18869_v5, %v18868_v10 }
 0x493   :  { %v7937_v15 = vpop.permute.xlu1 %7936 }
 0x494   :  { %v7939_v3 = vpop.permute.xlu0 %7938  ;;  %v17614_v45 = vadd.f32 %v7937_v15, %v7467_v0  ;;  %v18867_v0 = vld [vmem:[#allocation37_spill] sm:$0xff] }
 0x495   :  { %8628 = vrot.lane.b32.xlu1 %v17578_v26, %s12456_s4  ;;  %v17628_v15 = vadd.f32 %v7939_v3, %v7468_v43  ;;  %v7471_v40 = vmul.f32 %v17305_v22, %v18867_v0  ;;  %v18870_v43 = vld [vmem:[#allocation42_spill] sm:$0xff]  ;;  %v18873_v0 = vld [vmem:[#allocation104_spill] sm:$0xff] }
 0x496   :  { %8630 = vrot.lane.b32.xlu0 %v17592_v55, %s12456_s4  ;;  %v7473_v25 = vmul.f32 %v18871_v44, %v18870_v43  ;;  %v7472_v22 = vmul.f32 %v18873_v0, %v18872_v63  ;;  %v7474_v43 = vmul.f32 %v17328_v30, %v18875_v32  ;;  %v18877_v44 = vld [vmem:[#allocation52_spill] sm:$0xff] }
 0x497   :  { %v7941_v2 = vpop.permute.xlu1 %7940 }
 0x498   :  { %v7943_v48 = vpop.permute.xlu0 %7942  ;;  %v17626_v42 = vadd.f32 %v7941_v2, %v7469_v41 }
 0x499   :  { %8632 = vrot.lane.b32.xlu1 %v17590_v4, %s12456_s4  ;;  %v17640_v41 = vadd.f32 %v7943_v48, %v7470_v47  ;;  %v18874_v48 = vld [vmem:[#allocation45_spill] sm:$0xff] }
 0x49a   :  { %8634 = vrot.lane.b32.xlu0 %v17604_v24, %s12456_s4  ;;  %v7475_v5 = vmul.f32 %v17332_v19, %v18874_v48  ;;  %v7476_v48 = vmul.f32 %v17338_v12, %v18877_v44  ;;  %v18879_v19 = vld [vmem:[#allocation53_spill] sm:$0xff] }
 0x49b   :  { %v7945_v54 = vpop.permute.xlu1 %7944 }
 0x49c   :  { %v7947_v6 = vpop.permute.xlu0 %7946  ;;  %v17638_v8 = vadd.f32 %v7945_v54, %v7471_v40 }
 0x49d   :  { %8636 = vrot.lane.b32.xlu1 %v17602_v11, %s12456_s4  ;;  %v17652_v40 = vadd.f32 %v7947_v6, %v7472_v22  ;;  %v18876_v6 = vld [vmem:[#allocation51_spill] sm:$0xff] }
 0x49e   :  { %8638 = vrot.lane.b32.xlu0 %v17616_v62, %s12456_s4  ;;  %v7477_v0 = vmul.f32 %v17342_v28, %v18876_v6  ;;  %v7478_v6 = vmul.f32 %v17348_v13, %v18879_v19  ;;  %v18881_v28 = vld [vmem:[#allocation55_spill] sm:$0xff] }
 0x49f   :  { %v7949_v18 = vpop.permute.xlu1 %7948 }
 0x4a0   :  { %v7951_v58 = vpop.permute.xlu0 %7950  ;;  %v17650_v10 = vadd.f32 %v7949_v18, %v7473_v25 }
 0x4a1   :  { %8640 = vrot.lane.b32.xlu1 %v17614_v45, %s12456_s4  ;;  %v17664_v25 = vadd.f32 %v7951_v58, %v7474_v43  ;;  %v18878_v43 = vld [vmem:[#allocation49_spill] sm:$0xff] }
 0x4a2   :  { %8642 = vrot.lane.b32.xlu0 %v17628_v15, %s12456_s4  ;;  %v7479_v30 = vmul.f32 %v17352_v1, %v18878_v43  ;;  %v7480_v43 = vmul.f32 %v17358_v39, %v18881_v28  ;;  %v18884_v1 = vld [vmem:[#allocation56_spill] sm:$0xff] }
 0x4a3   :  { %v7953_v23 = vpop.permute.xlu1 %7952 }
 0x4a4   :  { %v7955_v3 = vpop.permute.xlu0 %7954  ;;  %v17662_v63 = vadd.f32 %v7953_v23, %v7475_v5 }
 0x4a5   :  { %8644 = vrot.lane.b32.xlu1 %v17626_v42, %s12456_s4  ;;  %v17676_v23 = vadd.f32 %v7955_v3, %v7476_v48  ;;  %v18880_v48 = vld [vmem:[#allocation54_spill] sm:$0xff] }
 0x4a6   :  { %8646 = vrot.lane.b32.xlu0 %v17640_v41, %s12456_s4  ;;  %v7481_v12 = vmul.f32 %v17362_v14, %v18880_v48  ;;  %v7482_v48 = vmul.f32 %v17368_v33, %v18884_v1  ;;  %v18887_v14 = vld [vmem:[#allocation58_spill] sm:$0xff]  ;;  %v18889_v33 = vld [vmem:[#allocation115_spill] sm:$0xff] }
 0x4a7   :  { %v7957_v2 = vpop.permute.xlu1 %7956 }
 0x4a8   :  { %v7959_v54 = vpop.permute.xlu0 %7958  ;;  %v17674_v32 = vadd.f32 %v7957_v2, %v7477_v0 }
 0x4a9   :  { %8648 = vrot.lane.b32.xlu1 %v17638_v8, %s12456_s4  ;;  %v17688_v2 = vadd.f32 %v7959_v54, %v7478_v6  ;;  %v18883_v6 = vld [vmem:[#allocation44_spill] sm:$0xff] }
 0x4aa   :  { %8650 = vrot.lane.b32.xlu0 %v17652_v40, %s12456_s4  ;;  %v7483_v13 = vmul.f32 %v17372_v61, %v18883_v6  ;;  %v7484_v6 = vmul.f32 %v17378_v60, %v18887_v14 }
 0x4ab   :  { %v7961_v47 = vpop.permute.xlu1 %7960 }
 0x4ac   :  { %v7963_v18 = vpop.permute.xlu0 %7962  ;;  %v17686_v44 = vadd.f32 %v7961_v47, %v7479_v30 }
 0x4ad   :  { %8652 = vrot.lane.b32.xlu1 %v17650_v10, %s12456_s4  ;;  %v17700_v30 = vadd.f32 %v7963_v18, %v7480_v43  ;;  %v18886_v43 = vld [vmem:[#allocation57_spill] sm:$0xff] }
 0x4ae   :  { %8654 = vrot.lane.b32.xlu0 %v17664_v25, %s12456_s4  ;;  %v7485_v39 = vmul.f32 %v17382_v52, %v18886_v43  ;;  %v18891_v43 = vld [vmem:[#allocation114_spill] sm:$0xff] }
 0x4af   :  { %v7965_v22 = vpop.permute.xlu1 %7964  ;;  %18882 = vst [vmem:[#allocation40_spill] sm:$0xff] %v17700_v30 }
 0x4b0   :  { %v7967_v5 = vpop.permute.xlu0 %7966  ;;  %v17698_v19 = vadd.f32 %v7965_v22, %v7481_v12 }
 0x4b1   :  { %8656 = vrot.lane.b32.xlu1 %v17662_v63, %s12456_s4  ;;  %v17712_v12 = vadd.f32 %v7967_v5, %v7482_v48  ;;  %v18888_v48 = vld [vmem:[#allocation59_spill] sm:$0xff] }
 0x4b2   :  { %8658 = vrot.lane.b32.xlu0 %v17676_v23, %s12456_s4  ;;  %v7487_v61 = vmul.f32 %v18889_v33, %v18888_v48  ;;  %v18899_v33 = vld [vmem:[#allocation64_spill] sm:$0xff] }
 0x4b3   :  { %v7969_v58 = vpop.permute.xlu1 %7968  ;;  %18885 = vst [vmem:[#allocation47_spill] sm:$0xff] %v17712_v12 }
 0x4b4   :  { %v7971_v0 = vpop.permute.xlu0 %7970  ;;  %v17710_v28 = vadd.f32 %v7969_v58, %v7483_v13 }
 0x4b5   :  { %8660 = vrot.lane.b32.xlu1 %v17674_v32, %s12456_s4  ;;  %v17724_v13 = vadd.f32 %v7971_v0, %v7484_v6  ;;  %v18894_v6 = vld [vmem:[#allocation61_spill] sm:$0xff] }
 0x4b6   :  { %8662 = vrot.lane.b32.xlu0 %v17688_v2, %s12456_s4  ;;  %v7489_v60 = vmul.f32 %v17402_v21, %v18894_v6  ;;  %v18900_v6 = vld [vmem:[#allocation38_spill] sm:$0xff] }
 0x4b7   :  { %v7973_v3 = vpop.permute.xlu1 %7972  ;;  %v7490_v21 = vmul.f32 %v18900_v6, %v18899_v33  ;;  %v18908_v6 = vld [vmem:[#allocation121_spill] sm:$0xff] }
 0x4b8   :  { %v7975_v54 = vpop.permute.xlu0 %7974  ;;  %v17722_v1 = vadd.f32 %v7973_v3, %v7485_v39 }
 0x4b9   :  { %8664 = vrot.lane.b32.xlu1 %v17686_v44, %s12456_s4 }
 0x4ba   :  { %8666 = vrot.lane.b32.xlu0 %v17700_v30, %s12456_s4  ;;  %v18890_v30 = vld [vmem:[#allocation60_spill] sm:$0xff] }
 0x4bb   :  { %v7977_v47 = vpop.permute.xlu1 %7976  ;;  %v7486_v52 = vmul.f32 %v18891_v43, %v18890_v30 }
 0x4bc   :  { %v7979_v18 = vpop.permute.xlu0 %7978  ;;  %v17734_v14 = vadd.f32 %v7977_v47, %v7487_v61 }
 0x4bd   :  { %8668 = vrot.lane.b32.xlu1 %v17698_v19, %s12456_s4  ;;  %v17736_v39 = vadd.f32 %v7975_v54, %v7486_v52  ;;  %v18898_v54 = vld [vmem:[#allocation63_spill] sm:$0xff] }
 0x4be   :  { %8670 = vrot.lane.b32.xlu0 %v17712_v12, %s12456_s4  ;;  %18892 = vst [vmem:[#allocation39_spill] sm:$0xff] %v17734_v14  ;;  %v18895_v12 = vld [vmem:[#allocation62_spill] sm:$0xff]  ;;  %v7491_v43 = vmul.f32 %v17412_v20, %v18898_v54 }
 0x4bf   :  { %v7981_v22 = vpop.permute.xlu1 %7980  ;;  %18893 = vst [vmem:[#allocation46_spill] sm:$0xff] %v17736_v39  ;;  %v7488_v48 = vmul.f32 %v17398_v37, %v18895_v12  ;;  %v18903_v37 = vld [vmem:[#allocation119_spill] sm:$0xff]  ;;  %v18905_v54 = vld [vmem:[#allocation118_spill] sm:$0xff] }
 0x4c0   :  { %v7983_v5 = vpop.permute.xlu0 %7982  ;;  %v17746_v30 = vadd.f32 %v7981_v22, %v7489_v60 }
 0x4c1   :  { %8672 = vrot.lane.b32.xlu1 %v17710_v28, %s12456_s4  ;;  %v17748_v61 = vadd.f32 %v7979_v18, %v7488_v48  ;;  %v17760_v60 = vadd.f32 %v7983_v5, %v7490_v21  ;;  %v18902_v48 = vld [vmem:[#allocation65_spill] sm:$0xff] }
 0x4c2   :  { %8674 = vrot.lane.b32.xlu0 %v17724_v13, %s12456_s4  ;;  %18896 = vst [vmem:[#allocation11_spill] sm:$0xff] %v17746_v30 }
 0x4c3   :  { %v7985_v58 = vpop.permute.xlu1 %7984  ;;  %18897 = vst [vmem:[#allocation8_spill] sm:$0xff] %v17748_v61  ;;  %18901 = vst [vmem:[#allocation16_spill] sm:$0xff] %v17760_v60 }
 0x4c4   :  { %v7987_v0 = vpop.permute.xlu0 %7986  ;;  %v17758_v12 = vadd.f32 %v7985_v58, %v7491_v43  ;;  %v18907_v43 = vld [vmem:[#allocation67_spill] sm:$0xff] }
 0x4c5   :  { %8676 = vrot.lane.b32.xlu1 %v17722_v1, %s12456_s4 }
 0x4c6   :  { %8678 = vrot.lane.b32.xlu0 %v17736_v39, %s12456_s4  ;;  %v7493_v39 = vmul.f32 %v18903_v37, %v18902_v48  ;;  %v18910_v48 = vld [vmem:[#allocation120_spill] sm:$0xff] }
 0x4c7   :  { %v7989_v3 = vpop.permute.xlu1 %7988 }
 0x4c8   :  { %v7991_v47 = vpop.permute.xlu0 %7990  ;;  %v17770_v33 = vadd.f32 %v7989_v3, %v7493_v39 }
 0x4c9   :  { %8680 = vrot.lane.b32.xlu1 %v17734_v14, %s12456_s4  ;;  %v18904_v14 = vld [vmem:[#allocation66_spill] sm:$0xff] }
 0x4ca   :  { %8682 = vrot.lane.b32.xlu0 %v17748_v61, %s12456_s4  ;;  %v7492_v20 = vmul.f32 %v18905_v54, %v18904_v14  ;;  %v7495_v61 = vmul.f32 %v18908_v6, %v18907_v43  ;;  %v18913_v43 = vld [vmem:[#allocation122_spill] sm:$0xff] }
 0x4cb   :  { %v7993_v52 = vpop.permute.xlu1 %7992 }
 0x4cc   :  { %v7995_v18 = vpop.permute.xlu0 %7994  ;;  %v17772_v58 = vadd.f32 %v7987_v0, %v7492_v20  ;;  %v17782_v14 = vadd.f32 %v7993_v52, %v7495_v61  ;;  %v18911_v0 = vld [vmem:[#allocation69_spill] sm:$0xff] }
 0x4cd   :  { %8684 = vrot.lane.b32.xlu1 %v17746_v30, %s12456_s4  ;;  %v18909_v30 = vld [vmem:[#allocation68_spill] sm:$0xff]  ;;  %v7497_v54 = vmul.f32 %v17436_v27, %v18911_v0  ;;  %v18921_v27 = vld [vmem:[#allocation74_spill] sm:$0xff] }
 0x4ce   :  { %8686 = vrot.lane.b32.xlu0 %v17760_v60, %s12456_s4  ;;  %18906 = vst [vmem:[#allocation15_spill] sm:$0xff] %v17772_v58  ;;  %v7494_v37 = vmul.f32 %v18910_v48, %v18909_v30  ;;  %v18912_v60 = vld [vmem:[#allocation70_spill] sm:$0xff] }
 0x4cf   :  { %v7997_v22 = vpop.permute.xlu1 %7996  ;;  %v7496_v6 = vmul.f32 %v18913_v43, %v18912_v60 }
 0x4d0   :  { %v7999_v5 = vpop.permute.xlu0 %7998  ;;  %v17784_v39 = vadd.f32 %v7991_v47, %v7494_v37  ;;  %v17794_v30 = vadd.f32 %v7997_v22, %v7497_v54  ;;  %v18916_v47 = vld [vmem:[#allocation71_spill] sm:$0xff]  ;;  %v18920_v54 = vld [vmem:[#allocation73_spill] sm:$0xff] }
 0x4d1   :  { %8688 = vrot.lane.b32.xlu1 %v17758_v12, %s12456_s4  ;;  %v17796_v61 = vadd.f32 %v7995_v18, %v7496_v6  ;;  %v7499_v48 = vmul.f32 %v17444_v59, %v18916_v47  ;;  %v7501_v43 = vmul.f32 %v17452_v36, %v18920_v54  ;;  %v18922_v47 = vld [vmem:[#allocation126_spill] sm:$0xff]  ;;  %v18926_v54 = vld [vmem:[#allocation128_spill] sm:$0xff] }
 0x4d2   :  { %8690 = vrot.lane.b32.xlu0 %v17772_v58, %s12456_s4  ;;  %18914 = vst [vmem:[#allocation22_spill] sm:$0xff] %v17794_v30  ;;  %v18917_v58 = vld [vmem:[#allocation72_spill] sm:$0xff]  ;;  %v7500_v59 = vmul.f32 %v18922_v47, %v18921_v27  ;;  %v18928_v47 = vld [vmem:[#allocation131_spill] sm:$0xff] }
 0x4d3   :  { %v8001_v21 = vpop.permute.xlu1 %8000  ;;  %18915 = vst [vmem:[#allocation20_spill] sm:$0xff] %v17796_v61  ;;  %v7498_v0 = vmul.f32 %v17440_v16, %v18917_v58  ;;  %v18924_v16 = vld [vmem:[#allocation129_spill] sm:$0xff] }
 0x4d4   :  { %v8003_v3 = vpop.permute.xlu0 %8002  ;;  %v17806_v60 = vadd.f32 %v8001_v21, %v7499_v48 }
 0x4d5   :  { %8692 = vrot.lane.b32.xlu1 %v17770_v33, %s12456_s4  ;;  %v17808_v22 = vadd.f32 %v7999_v5, %v7498_v0  ;;  %v17820_v21 = vadd.f32 %v8003_v3, %v7500_v59  ;;  %v18923_v0 = vld [vmem:[#allocation14_spill] sm:$0xff] }
 0x4d6   :  { %8694 = vrot.lane.b32.xlu0 %v17784_v39, %s12456_s4  ;;  %18918 = vst [vmem:[#allocation24_spill] sm:$0xff] %v17806_v60 }
 0x4d7   :  { %v8005_v20 = vpop.permute.xlu1 %8004  ;;  %18919 = vst [vmem:[#allocation23_spill] sm:$0xff] %v17808_v22 }
 0x4d8   :  { %v8007_v52 = vpop.permute.xlu0 %8006  ;;  %v17818_v58 = vadd.f32 %v8005_v20, %v7501_v43  ;;  %v18927_v43 = vld [vmem:[#allocation17_spill] sm:$0xff] }
 0x4d9   :  { %8696 = vrot.lane.b32.xlu1 %v17782_v14, %s12456_s4 }
 0x4da   :  { %8698 = vrot.lane.b32.xlu0 %v17796_v61, %s12456_s4  ;;  %v7503_v61 = vmul.f32 %v18924_v16, %v18923_v0  ;;  %v18930_v0 = vld [vmem:[#allocation130_spill] sm:$0xff] }
 0x4db   :  { %v8009_v37 = vpop.permute.xlu1 %8008 }
 0x4dc   :  { %v8011_v18 = vpop.permute.xlu0 %8010  ;;  %v17830_v27 = vadd.f32 %v8009_v37, %v7503_v61 }
 0x4dd   :  { %8700 = vrot.lane.b32.xlu1 %v17794_v30, %s12456_s4  ;;  %v18925_v30 = vld [vmem:[#allocation75_spill] sm:$0xff] }
 0x4de   :  { %8702 = vrot.lane.b32.xlu0 %v17808_v22, %s12456_s4  ;;  %v7502_v36 = vmul.f32 %v18926_v54, %v18925_v30  ;;  %v7505_v22 = vmul.f32 %v18928_v47, %v18927_v43  ;;  %v18934_v47 = vld [vmem:[#allocation132_spill] sm:$0xff] }
 0x4df   :  { %v8013_v6 = vpop.permute.xlu1 %8012 }
 0x4e0   :  { %v8015_v48 = vpop.permute.xlu0 %8014  ;;  %v17832_v20 = vadd.f32 %v8007_v52, %v7502_v36  ;;  %v17844_v36 = vadd.f32 %v8013_v6, %v7505_v22  ;;  %v18931_v52 = vld [vmem:[#allocation18_spill] sm:$0xff]  ;;  %v18935_v6 = vld [vmem:[#allocation19_spill] sm:$0xff] }
 0x4e1   :  { %8704 = vrot.lane.b32.xlu1 %v17806_v60, %s12456_s4  ;;  %v18929_v60 = vld [vmem:[#allocation76_spill] sm:$0xff] }
 0x4e2   :  { %8706 = vrot.lane.b32.xlu0 %v17820_v21, %s12456_s4  ;;  %v7504_v16 = vmul.f32 %v18930_v0, %v18929_v60  ;;  %v18932_v60 = vld [vmem:[#allocation133_spill] sm:$0xff] }
 0x4e3   :  { %v8017_v5 = vpop.permute.xlu1 %8016  ;;  %v7507_v43 = vmul.f32 %v18932_v60, %v18931_v52  ;;  %v18933_v0 = vld [vmem:[#allocation77_spill] sm:$0xff] }
 0x4e4   :  { %v8019_v3 = vpop.permute.xlu0 %8018  ;;  %v17846_v30 = vadd.f32 %v8011_v18, %v7504_v16  ;;  %v7506_v54 = vmul.f32 %v18934_v47, %v18933_v0  ;;  %v18936_v18 = vld [vmem:[#allocation135_spill] sm:$0xff] }
 0x4e5   :  { %8708 = vrot.lane.b32.xlu1 %v17818_v58, %s12456_s4  ;;  %v17860_v16 = vadd.f32 %v8017_v5, %v7507_v43  ;;  %v7509_v0 = vmul.f32 %v18936_v18, %v18935_v6 }
 0x4e6   :  { %8710 = vrot.lane.b32.xlu0 %v17832_v20, %s12456_s4  ;;  %v17862_v35 = vadd.f32 %v8015_v48, %v7506_v54 }
 0x4e7   :  { %v8021_v59 = vpop.permute.xlu1 %8020 }
 0x4e8   :  { %v8599_v37 = vpop.permute.xlu0 %8598  ;;  %v17876_v34 = vadd.f32 %v8021_v59, %v7509_v0  ;;  %v12261_v59 = vpop.eup %12260  ;;  %12292 = vtanh.f32 %v17592_v55 }
 0x4e9   :  { %8712 = vrot.lane.b32.xlu1 %v17830_v27, %s12456_s4  ;;  %8791 = vst.msk [vmem:[#allocation4] sm:$0xff] %vm8790_vm2, %v8599_v37  ;;  %v18938_v37 = vld [vmem:[#allocation134_spill] sm:$0xff] }
 0x4ea   :  { %8714 = vrot.lane.b32.xlu0 %v17846_v30, %s12456_s4 }
 0x4eb   :  { %v8601_v61 = vpop.permute.xlu1 %8600 }
 0x4ec   :  { %8792 = vst.msk [vmem:[#allocation4 + $0x8] sm:$0xff] %vm8790_vm2, %v8601_v61  ;;  %v8603_v22 = vpop.permute.xlu0 %8602  ;;  %v18937_v61 = vld [vmem:[#allocation78_spill] sm:$0xff] }
 0x4ed   :  { %8716 = vrot.lane.b32.xlu1 %v17844_v36, %s12456_s4  ;;  %8793 = vst.msk [vmem:[#allocation4 + $0x10] sm:$0xff] %vm8790_vm2, %v8603_v22  ;;  %v7508_v52 = vmul.f32 %v18938_v37, %v18937_v61 }
 0x4ee   :  { %8718 = vrot.lane.b32.xlu0 %v17862_v35, %s12456_s4 }
 0x4ef   :  { %v8605_v9 = vpop.permute.xlu1 %8604  ;;  %v17878_v38 = vadd.f32 %v8019_v3, %v7508_v52  ;;  %v12263_v3 = vpop.eup %12262  ;;  %12294 = vtanh.f32 %v17602_v11 }
 0x4f0   :  { %8794 = vst.msk [vmem:[#allocation4 + $0x18] sm:$0xff] %vm8790_vm2, %v8605_v9  ;;  %v8607_v48 = vpop.permute.xlu0 %8606  ;;  %v12265_v9 = vpop.eup %12264  ;;  %12296 = vtanh.f32 %v17604_v24 }
 0x4f1   :  { %8720 = vrot.lane.b32.xlu1 %v17860_v16, %s12456_s4  ;;  %8795 = vst.msk [vmem:[#allocation4 + $0x20] sm:$0xff] %vm8790_vm2, %v8607_v48  ;;  %v12267_v50 = vpop.eup %12266  ;;  %12298 = vtanh.f32 %v17614_v45 }
 0x4f2   :  { %8722 = vrot.lane.b32.xlu0 %v17878_v38, %s12456_s4  ;;  %v12269_v6 = vpop.eup %12268  ;;  %12300 = vtanh.f32 %v17616_v62 }
 0x4f3   :  { %v8609_v5 = vpop.permute.xlu1 %8608  ;;  %v12271_v31 = vpop.eup %12270  ;;  %12302 = vtanh.f32 %v17626_v42 }
 0x4f4   :  { %8796 = vst.msk [vmem:[#allocation4 + $0x28] sm:$0xff] %vm8790_vm2, %v8609_v5  ;;  %v8611_v54 = vpop.permute.xlu0 %8610  ;;  %v12273_v61 = vpop.eup %12272  ;;  %12304 = vtanh.f32 %v17628_v15 }
 0x4f5   :  { %8724 = vrot.lane.b32.xlu1 %v17876_v34, %s12456_s4  ;;  %8797 = vst.msk [vmem:[#allocation4 + $0x30] sm:$0xff] %vm8790_vm2, %v8611_v54  ;;  %v12275_v7 = vpop.eup %12274  ;;  %12306 = vtanh.f32 %v17638_v8 }
 0x4f6   :  { %8278 = vrot.lane.b32.xlu0 %v12261_v59, %s12455_s3  ;;  %v12277_v5 = vpop.eup %12276  ;;  %12308 = vtanh.f32 %v17640_v41 }
 0x4f7   :  { %v8613_v49 = vpop.permute.xlu1 %8612  ;;  %v12279_v29 = vpop.eup %12278  ;;  %12310 = vtanh.f32 %v17650_v10 }
 0x4f8   :  { %8798 = vst.msk [vmem:[#allocation4 + $0x38] sm:$0xff] %vm8790_vm2, %v8613_v49  ;;  %v8615_v43 = vpop.permute.xlu0 %8614 }
 0x4f9   :  { %8280 = vrot.lane.b32.xlu1 %v12259_v56, %s12455_s3  ;;  %8799 = vst.msk [vmem:[#allocation4 + $0x40] sm:$0xff] %vm8790_vm2, %v8615_v43  ;;  %v12281_v56 = vpop.eup %12280  ;;  %12312 = vtanh.f32 %v17652_v40 }
 0x4fa   :  { %8282 = vrot.lane.b32.xlu0 %v12265_v9, %s12455_s3  ;;  %v12283_v57 = vpop.eup %12282  ;;  %12314 = vtanh.f32 %v17662_v63 }
 0x4fb   :  { %v8617_v17 = vpop.permute.xlu1 %8616  ;;  %v12285_v54 = vpop.eup %12284  ;;  %12316 = vtanh.f32 %v17664_v25 }
 0x4fc   :  { %8800 = vst.msk [vmem:[#allocation4 + $0x48] sm:$0xff] %vm8790_vm2, %v8617_v17  ;;  %v8619_v22 = vpop.permute.xlu0 %8618  ;;  %v12287_v55 = vpop.eup %12286  ;;  %12318 = vtanh.f32 %v17674_v32 }
 0x4fd   :  { %8284 = vrot.lane.b32.xlu1 %v12263_v3, %s12455_s3  ;;  %8801 = vst.msk [vmem:[#allocation4 + $0x50] sm:$0xff] %vm8790_vm2, %v8619_v22  ;;  %v12289_v3 = vpop.eup %12288  ;;  %12320 = vtanh.f32 %v17676_v23 }
 0x4fe   :  { %8286 = vrot.lane.b32.xlu0 %v12269_v6, %s12455_s3  ;;  %v12291_v24 = vpop.eup %12290  ;;  %12322 = vtanh.f32 %v17686_v44 }
 0x4ff   :  { %v8621_v46 = vpop.permute.xlu1 %8620  ;;  %v12293_v43 = vpop.eup %12292  ;;  %12324 = vtanh.f32 %v17688_v2 }
 0x500   :  { %8802 = vst.msk [vmem:[#allocation4 + $0x58] sm:$0xff] %vm8790_vm2, %v8621_v46  ;;  %v8623_v0 = vpop.permute.xlu0 %8622  ;;  %v12295_v62 = vpop.eup %12294  ;;  %12326 = vtanh.f32 %v17698_v19 }
 0x501   :  { %8288 = vrot.lane.b32.xlu1 %v12267_v50, %s12455_s3  ;;  %8803 = vst.msk [vmem:[#allocation4 + $0x60] sm:$0xff] %vm8790_vm2, %v8623_v0  ;;  %v12297_v50 = vpop.eup %12296 }
 0x502   :  { %8290 = vrot.lane.b32.xlu0 %v12273_v61, %s12455_s3  ;;  %v12299_v15 = vpop.eup %12298 }
 0x503   :  { %v8625_v51 = vpop.permute.xlu1 %8624  ;;  %v12301_v22 = vpop.eup %12300 }
 0x504   :  { %8804 = vst.msk [vmem:[#allocation4 + $0x68] sm:$0xff] %vm8790_vm2, %v8625_v51  ;;  %v8627_v52 = vpop.permute.xlu0 %8626  ;;  %v12303_v41 = vpop.eup %12302 }
 0x505   :  { %8292 = vrot.lane.b32.xlu1 %v12271_v31, %s12455_s3  ;;  %8805 = vst.msk [vmem:[#allocation4 + $0x70] sm:$0xff] %vm8790_vm2, %v8627_v52  ;;  %v12305_v31 = vpop.eup %12304 }
 0x506   :  { %8294 = vrot.lane.b32.xlu0 %v12277_v5, %s12455_s3  ;;  %v12307_v40 = vpop.eup %12306 }
 0x507   :  { %v8629_v53 = vpop.permute.xlu1 %8628  ;;  %v12309_v0 = vpop.eup %12308 }
 0x508   :  { %8806 = vst.msk [vmem:[#allocation4 + $0x78] sm:$0xff] %vm8790_vm2, %v8629_v53  ;;  %v8631_v48 = vpop.permute.xlu0 %8630  ;;  %v12311_v25 = vpop.eup %12310  ;;  %v18939_v53 = vld [vmem:[#allocation40_spill] sm:$0xff] }
 0x509   :  { %8296 = vrot.lane.b32.xlu1 %v12275_v7, %s12455_s3  ;;  %8807 = vst.msk [vmem:[#allocation4 + $0x80] sm:$0xff] %vm8790_vm2, %v8631_v48  ;;  %v12313_v7 = vpop.eup %12312  ;;  %12328 = vtanh.f32 %v18939_v53 }
 0x50a   :  { %8298 = vrot.lane.b32.xlu0 %v12281_v56, %s12455_s3  ;;  %v12315_v23 = vpop.eup %12314  ;;  %12330 = vtanh.f32 %v17710_v28 }
 0x50b   :  { %v8633_v26 = vpop.permute.xlu1 %8632  ;;  %v12317_v5 = vpop.eup %12316 }
 0x50c   :  { %8808 = vst.msk [vmem:[#allocation4 + $0x88] sm:$0xff] %vm8790_vm2, %v8633_v26  ;;  %v8635_v49 = vpop.permute.xlu0 %8634  ;;  %v12319_v2 = vpop.eup %12318 }
 0x50d   :  { %8300 = vrot.lane.b32.xlu1 %v12279_v29, %s12455_s3  ;;  %8809 = vst.msk [vmem:[#allocation4 + $0x90] sm:$0xff] %vm8790_vm2, %v8635_v49  ;;  %v18940_v29 = vld [vmem:[#allocation47_spill] sm:$0xff]  ;;  %v12321_v48 = vpop.eup %12320 }
 0x50e   :  { %8302 = vrot.lane.b32.xlu0 %v12285_v54, %s12455_s3  ;;  %12332 = vtanh.f32 %v18940_v29  ;;  %v12323_v56 = vpop.eup %12322  ;;  %v18941_v49 = vld [vmem:[#allocation39_spill] sm:$0xff] }
 0x50f   :  { %v8637_v4 = vpop.permute.xlu1 %8636  ;;  %12334 = vtanh.f32 %v17722_v1 }
 0x510   :  { %8810 = vst.msk [vmem:[#allocation4 + $0x98] sm:$0xff] %vm8790_vm2, %v8637_v4  ;;  %v8639_v59 = vpop.permute.xlu0 %8638  ;;  %12336 = vtanh.f32 %v17724_v13  ;;  %v12325_v4 = vpop.eup %12324  ;;  %v18943_v13 = vld [vmem:[#allocation11_spill] sm:$0xff] }
 0x511   :  { %8304 = vrot.lane.b32.xlu1 %v12283_v57, %s12455_s3  ;;  %8811 = vst.msk [vmem:[#allocation4 + $0xa0] sm:$0xff] %vm8790_vm2, %v8639_v59  ;;  %12338 = vtanh.f32 %v18941_v49  ;;  %v12327_v54 = vpop.eup %12326 }
 0x512   :  { %8306 = vrot.lane.b32.xlu0 %v12289_v3, %s12455_s3 }
 0x513   :  { %v8641_v11 = vpop.permute.xlu1 %8640 }
 0x514   :  { %8812 = vst.msk [vmem:[#allocation4 + $0xa8] sm:$0xff] %vm8790_vm2, %v8641_v11  ;;  %v8643_v17 = vpop.permute.xlu0 %8642 }
 0x515   :  { %8308 = vrot.lane.b32.xlu1 %v12287_v55, %s12455_s3  ;;  %8813 = vst.msk [vmem:[#allocation4 + $0xb0] sm:$0xff] %vm8790_vm2, %v8643_v17  ;;  %v18942_v55 = vld [vmem:[#allocation46_spill] sm:$0xff] }
 0x516   :  { %8310 = vrot.lane.b32.xlu0 %v12293_v43, %s12455_s3  ;;  %12340 = vtanh.f32 %v18942_v55  ;;  %v12329_v59 = vpop.eup %12328 }
 0x517   :  { %v8645_v45 = vpop.permute.xlu1 %8644  ;;  %12342 = vtanh.f32 %v18943_v13  ;;  %v12331_v3 = vpop.eup %12330 }
 0x518   :  { %8814 = vst.msk [vmem:[#allocation4 + $0xb8] sm:$0xff] %vm8790_vm2, %v8645_v45  ;;  %v8647_v9 = vpop.permute.xlu0 %8646 }
 0x519   :  { %8312 = vrot.lane.b32.xlu1 %v12291_v24, %s12455_s3  ;;  %8815 = vst.msk [vmem:[#allocation4 + $0xc0] sm:$0xff] %vm8790_vm2, %v8647_v9  ;;  %v18944_v24 = vld [vmem:[#allocation8_spill] sm:$0xff] }
 0x51a   :  { %8314 = vrot.lane.b32.xlu0 %v12297_v50, %s12455_s3  ;;  %12344 = vtanh.f32 %v18944_v24 }
 0x51b   :  { %v8649_v42 = vpop.permute.xlu1 %8648  ;;  %v12333_v43 = vpop.eup %12332  ;;  %12346 = vtanh.f32 %v17758_v12 }
 0x51c   :  { %8816 = vst.msk [vmem:[#allocation4 + $0xc8] sm:$0xff] %vm8790_vm2, %v8649_v42  ;;  %v8651_v46 = vpop.permute.xlu0 %8650  ;;  %v18945_v42 = vld [vmem:[#allocation16_spill] sm:$0xff] }
 0x51d   :  { %8316 = vrot.lane.b32.xlu1 %v12295_v62, %s12455_s3  ;;  %8817 = vst.msk [vmem:[#allocation4 + $0xd0] sm:$0xff] %vm8790_vm2, %v8651_v46  ;;  %v12335_v62 = vpop.eup %12334  ;;  %12348 = vtanh.f32 %v18945_v42  ;;  %v18946_v46 = vld [vmem:[#allocation15_spill] sm:$0xff] }
 0x51e   :  { %8318 = vrot.lane.b32.xlu0 %v12301_v22, %s12455_s3  ;;  %12350 = vtanh.f32 %v17770_v33 }
 0x51f   :  { %v8653_v8 = vpop.permute.xlu1 %8652  ;;  %12352 = vtanh.f32 %v18946_v46  ;;  %v18954_v46 = vld [vmem:[#allocation50_spill] sm:$0xff] }
 0x520   :  { %8818 = vst.msk [vmem:[#allocation4 + $0xd8] sm:$0xff] %vm8790_vm2, %v8653_v8  ;;  %v8655_v6 = vpop.permute.xlu0 %8654  ;;  %12354 = vtanh.f32 %v17782_v14 }
 0x521   :  { %8320 = vrot.lane.b32.xlu1 %v12299_v15, %s12455_s3  ;;  %8819 = vst.msk [vmem:[#allocation4 + $0xe0] sm:$0xff] %vm8790_vm2, %v8655_v6  ;;  %v12337_v15 = vpop.eup %12336  ;;  %12356 = vtanh.f32 %v17784_v39  ;;  %v18949_v39 = vld [vmem:[#allocation24_spill] sm:$0xff] }
 0x522   :  { %8322 = vrot.lane.b32.xlu0 %v12305_v31, %s12455_s3  ;;  %v12339_v8 = vpop.eup %12338 }
 0x523   :  { %v8657_v10 = vpop.permute.xlu1 %8656 }
 0x524   :  { %8820 = vst.msk [vmem:[#allocation4 + $0xe8] sm:$0xff] %vm8790_vm2, %v8657_v10  ;;  %v8659_v51 = vpop.permute.xlu0 %8658 }
 0x525   :  { %8324 = vrot.lane.b32.xlu1 %v12303_v41, %s12455_s3  ;;  %8821 = vst.msk [vmem:[#allocation4 + $0xf0] sm:$0xff] %vm8790_vm2, %v8659_v51  ;;  %v12341_v41 = vpop.eup %12340  ;;  %v18948_v51 = vld [vmem:[#allocation20_spill] sm:$0xff] }
 0x526   :  { %8326 = vrot.lane.b32.xlu0 %v12309_v0, %s12455_s3  ;;  %v12343_v10 = vpop.eup %12342 }
 0x527   :  { %v8661_v63 = vpop.permute.xlu1 %8660  ;;  %v12345_v31 = vpop.eup %12344 }
 0x528   :  { %8822 = vst.msk [vmem:[#allocation4 + $0xf8] sm:$0xff] %vm8790_vm2, %v8661_v63  ;;  %v8663_v61 = vpop.permute.xlu0 %8662  ;;  %v12347_v63 = vpop.eup %12346 }
 0x529   :  { %8328 = vrot.lane.b32.xlu1 %v12307_v40, %s12455_s3  ;;  %8823 = vst.msk [vmem:[#allocation4 + $0x100] sm:$0xff] %vm8790_vm2, %v8663_v61  ;;  %v18947_v40 = vld [vmem:[#allocation22_spill] sm:$0xff]  ;;  %v18950_v61 = vld [vmem:[#allocation23_spill] sm:$0xff] }
 0x52a   :  { %8330 = vrot.lane.b32.xlu0 %v12313_v7, %s12455_s3  ;;  %12358 = vtanh.f32 %v18947_v40 }
 0x52b   :  { %v8665_v32 = vpop.permute.xlu1 %8664  ;;  %12360 = vtanh.f32 %v18948_v51  ;;  %v18957_v51 = vld [vmem:[#allocation85_spill] sm:$0xff] }
 0x52c   :  { %8824 = vst.msk [vmem:[#allocation4 + $0x108] sm:$0xff] %vm8790_vm2, %v8665_v32  ;;  %v8667_v52 = vpop.permute.xlu0 %8666  ;;  %12362 = vtanh.f32 %v18949_v39 }
 0x52d   :  { %8332 = vrot.lane.b32.xlu1 %v12311_v25, %s12455_s3  ;;  %8825 = vst.msk [vmem:[#allocation4 + $0x110] sm:$0xff] %vm8790_vm2, %v8667_v52  ;;  %v12349_v25 = vpop.eup %12348  ;;  %12364 = vtanh.f32 %v18950_v61  ;;  %v18959_v61 = vld [vmem:[#allocation87_spill] sm:$0xff] }
 0x52e   :  { %8334 = vrot.lane.b32.xlu0 %v12317_v5, %s12455_s3  ;;  %v12351_v32 = vpop.eup %12350  ;;  %12366 = vtanh.f32 %v17818_v58 }
 0x52f   :  { %v8669_v44 = vpop.permute.xlu1 %8668  ;;  %v12353_v53 = vpop.eup %12352  ;;  %12368 = vtanh.f32 %v17820_v21 }
 0x530   :  { %8826 = vst.msk [vmem:[#allocation4 + $0x118] sm:$0xff] %vm8790_vm2, %v8669_v44  ;;  %v8671_v26 = vpop.permute.xlu0 %8670  ;;  %v12355_v44 = vpop.eup %12354  ;;  %12370 = vtanh.f32 %v17830_v27 }
 0x531   :  { %8336 = vrot.lane.b32.xlu1 %v12315_v23, %s12455_s3  ;;  %8827 = vst.msk [vmem:[#allocation4 + $0x120] sm:$0xff] %vm8790_vm2, %v8671_v26  ;;  %12372 = vtanh.f32 %v17832_v20 }
 0x532   :  { %8338 = vrot.lane.b32.xlu0 %v12321_v48, %s12455_s3  ;;  %12374 = vtanh.f32 %v17844_v36 }
 0x533   :  { %v8673_v19 = vpop.permute.xlu1 %8672  ;;  %12376 = vtanh.f32 %v17846_v30 }
 0x534   :  { %8828 = vst.msk [vmem:[#allocation4 + $0x128] sm:$0xff] %vm8790_vm2, %v8673_v19  ;;  %v8675_v57 = vpop.permute.xlu0 %8674  ;;  %12378 = vtanh.f32 %v17860_v16 }
 0x535   :  { %8340 = vrot.lane.b32.xlu1 %v12319_v2, %s12455_s3  ;;  %8829 = vst.msk [vmem:[#allocation4 + $0x130] sm:$0xff] %vm8790_vm2, %v8675_v57  ;;  %v12357_v2 = vpop.eup %12356  ;;  %12380 = vtanh.f32 %v17862_v35 }
 0x536   :  { %8342 = vrot.lane.b32.xlu0 %v12325_v4, %s12455_s3  ;;  %12382 = vtanh.f32 %v17876_v34 }
 0x537   :  { %v8677_v28 = vpop.permute.xlu1 %8676  ;;  %v12359_v29 = vpop.eup %12358  ;;  %12384 = vtanh.f32 %v17878_v38 }
 0x538   :  { %8830 = vst.msk [vmem:[#allocation4 + $0x138] sm:$0xff] %vm8790_vm2, %v8677_v28  ;;  %v8679_v11 = vpop.permute.xlu0 %8678  ;;  %v12361_v26 = vpop.eup %12360 }
 0x539   :  { %8344 = vrot.lane.b32.xlu1 %v12323_v56, %s12455_s3  ;;  %8831 = vst.msk [vmem:[#allocation4 + $0x140] sm:$0xff] %vm8790_vm2, %v8679_v11  ;;  %v12363_v21 = vpop.eup %12362 }
 0x53a   :  { %8346 = vrot.lane.b32.xlu0 %v12329_v59, %s12455_s3  ;;  %v12365_v56 = vpop.eup %12364 }
 0x53b   :  { %v8681_v1 = vpop.permute.xlu1 %8680  ;;  %v12367_v20 = vpop.eup %12366 }
 0x53c   :  { %8832 = vst.msk [vmem:[#allocation4 + $0x148] sm:$0xff] %vm8790_vm2, %v8681_v1  ;;  %v8683_v17 = vpop.permute.xlu0 %8682  ;;  %v12369_v57 = vpop.eup %12368 }
 0x53d   :  { %8348 = vrot.lane.b32.xlu1 %v12327_v54, %s12455_s3  ;;  %8833 = vst.msk [vmem:[#allocation4 + $0x150] sm:$0xff] %vm8790_vm2, %v8683_v17  ;;  %v12371_v30 = vpop.eup %12370  ;;  %v18951_v17 = vld [vmem:[#allocation80_spill] sm:$0xff] }
 0x53e   :  { %8350 = vrot.lane.b32.xlu0 %v12333_v43, %s12455_s3  ;;  %v12373_v49 = vpop.eup %12372 }
 0x53f   :  { %v8685_v45 = vpop.permute.xlu1 %8684  ;;  %v12375_v35 = vpop.eup %12374 }
 0x540   :  { %8834 = vst.msk [vmem:[#allocation4 + $0x158] sm:$0xff] %vm8790_vm2, %v8685_v45  ;;  %v8687_v50 = vpop.permute.xlu0 %8686  ;;  %v12377_v1 = vpop.eup %12376 }
 0x541   :  { %8352 = vrot.lane.b32.xlu1 %v12331_v3, %s12455_s3  ;;  %8835 = vst.msk [vmem:[#allocation4 + $0x160] sm:$0xff] %vm8790_vm2, %v8687_v50  ;;  %v12379_v34 = vpop.eup %12378 }
 0x542   :  { %8354 = vrot.lane.b32.xlu0 %v12337_v15, %s12455_s3  ;;  %v12381_v59 = vpop.eup %12380  ;;  %v18953_v15 = vld [vmem:[#allocation81_spill] sm:$0xff] }
 0x543   :  { %v8689_v9 = vpop.permute.xlu1 %8688  ;;  %v12383_v13 = vpop.eup %12382 }
 0x544   :  { %8836 = vst.msk [vmem:[#allocation4 + $0x168] sm:$0xff] %vm8790_vm2, %v8689_v9  ;;  %v8691_v22 = vpop.permute.xlu0 %8690  ;;  %v12385_v45 = vpop.eup %12384 }
 0x545   :  { %8356 = vrot.lane.b32.xlu1 %v12335_v62, %s12455_s3  ;;  %8837 = vst.msk [vmem:[#allocation4 + $0x170] sm:$0xff] %vm8790_vm2, %v8691_v22  ;;  %v18952_v62 = vld [vmem:[#allocation79_spill] sm:$0xff] }
 0x546   :  { %8358 = vrot.lane.b32.xlu0 %v12341_v41, %s12455_s3 }
 0x547   :  { %v8693_v12 = vpop.permute.xlu1 %8692 }
 0x548   :  { %8838 = vst.msk [vmem:[#allocation4 + $0x178] sm:$0xff] %vm8790_vm2, %v8693_v12  ;;  %v8695_v6 = vpop.permute.xlu0 %8694 }
 0x549   :  { %8360 = vrot.lane.b32.xlu1 %v12339_v8, %s12455_s3  ;;  %8839 = vst.msk [vmem:[#allocation4 + $0x180] sm:$0xff] %vm8790_vm2, %v8695_v6  ;;  %v18956_v6 = vld [vmem:[#allocation82_spill] sm:$0xff] }
 0x54a   :  { %8362 = vrot.lane.b32.xlu0 %v12345_v31, %s12455_s3 }
 0x54b   :  { %v8697_v33 = vpop.permute.xlu1 %8696 }
 0x54c   :  { %8840 = vst.msk [vmem:[#allocation4 + $0x188] sm:$0xff] %vm8790_vm2, %v8697_v33  ;;  %v8699_v0 = vpop.permute.xlu0 %8698 }
 0x54d   :  { %8364 = vrot.lane.b32.xlu1 %v12343_v10, %s12455_s3  ;;  %8841 = vst.msk [vmem:[#allocation4 + $0x190] sm:$0xff] %vm8790_vm2, %v8699_v0  ;;  %v18955_v10 = vld [vmem:[#allocation83_spill] sm:$0xff]  ;;  %v18958_v0 = vld [vmem:[#allocation84_spill] sm:$0xff] }
 0x54e   :  { %8366 = vrot.lane.b32.xlu0 %v12349_v25, %s12455_s3 }
 0x54f   :  { %v8701_v14 = vpop.permute.xlu1 %8700 }
 0x550   :  { %8842 = vst.msk [vmem:[#allocation4 + $0x198] sm:$0xff] %vm8790_vm2, %v8701_v14  ;;  %v8703_v23 = vpop.permute.xlu0 %8702 }
 0x551   :  { %8368 = vrot.lane.b32.xlu1 %v12347_v63, %s12455_s3  ;;  %8843 = vst.msk [vmem:[#allocation4 + $0x1a0] sm:$0xff] %vm8790_vm2, %v8703_v23  ;;  %v18960_v23 = vld [vmem:[#allocation86_spill] sm:$0xff] }
 0x552   :  { %8370 = vrot.lane.b32.xlu0 %v12353_v53, %s12455_s3 }
 0x553   :  { %v8705_v7 = vpop.permute.xlu1 %8704 }
 0x554   :  { %8844 = vst.msk [vmem:[#allocation4 + $0x1a8] sm:$0xff] %vm8790_vm2, %v8705_v7  ;;  %v8707_v5 = vpop.permute.xlu0 %8706 }
 0x555   :  { %8372 = vrot.lane.b32.xlu1 %v12351_v32, %s12455_s3  ;;  %8845 = vst.msk [vmem:[#allocation4 + $0x1b0] sm:$0xff] %vm8790_vm2, %v8707_v5  ;;  %v18961_v5 = vld [vmem:[#allocation89_spill] sm:$0xff] }
 0x556   :  { %8374 = vrot.lane.b32.xlu0 %v12357_v2, %s12455_s3 }
 0x557   :  { %v8709_v52 = vpop.permute.xlu1 %8708 }
 0x558   :  { %8846 = vst.msk [vmem:[#allocation4 + $0x1b8] sm:$0xff] %vm8790_vm2, %v8709_v52  ;;  %v8711_v19 = vpop.permute.xlu0 %8710 }
 0x559   :  { %8376 = vrot.lane.b32.xlu1 %v12355_v44, %s12455_s3  ;;  %8847 = vst.msk [vmem:[#allocation4 + $0x1c0] sm:$0xff] %vm8790_vm2, %v8711_v19 }
 0x55a   :  { %8378 = vrot.lane.b32.xlu0 %v12361_v26, %s12455_s3 }
 0x55b   :  { %v8713_v58 = vpop.permute.xlu1 %8712 }
 0x55c   :  { %8848 = vst.msk [vmem:[#allocation4 + $0x1c8] sm:$0xff] %vm8790_vm2, %v8713_v58  ;;  %v8715_v48 = vpop.permute.xlu0 %8714 }
 0x55d   :  { %8380 = vrot.lane.b32.xlu1 %v12359_v29, %s12455_s3  ;;  %8849 = vst.msk [vmem:[#allocation4 + $0x1d0] sm:$0xff] %vm8790_vm2, %v8715_v48  ;;  %v18962_v29 = vld [vmem:[#allocation88_spill] sm:$0xff]  ;;  %v18964_v48 = vld [vmem:[#allocation90_spill] sm:$0xff] }
 0x55e   :  { %8382 = vrot.lane.b32.xlu0 %v12365_v56, %s12455_s3 }
 0x55f   :  { %v8717_v27 = vpop.permute.xlu1 %8716 }
 0x560   :  { %8850 = vst.msk [vmem:[#allocation4 + $0x1d8] sm:$0xff] %vm8790_vm2, %v8717_v27  ;;  %v8719_v28 = vpop.permute.xlu0 %8718 }
 0x561   :  { %8384 = vrot.lane.b32.xlu1 %v12363_v21, %s12455_s3  ;;  %8851 = vst.msk [vmem:[#allocation4 + $0x1e0] sm:$0xff] %vm8790_vm2, %v8719_v28  ;;  %v18963_v21 = vld [vmem:[#allocation91_spill] sm:$0xff]  ;;  %v18965_v28 = vld [vmem:[#allocation93_spill] sm:$0xff] }
 0x562   :  { %8386 = vrot.lane.b32.xlu0 %v12369_v57, %s12455_s3 }
 0x563   :  { %v8721_v36 = vpop.permute.xlu1 %8720 }
 0x564   :  { %8852 = vst.msk [vmem:[#allocation4 + $0x1e8] sm:$0xff] %vm8790_vm2, %v8721_v36  ;;  %v8723_v4 = vpop.permute.xlu0 %8722 }
 0x565   :  { %8388 = vrot.lane.b32.xlu1 %v12367_v20, %s12455_s3  ;;  %8853 = vst.msk [vmem:[#allocation4 + $0x1f0] sm:$0xff] %vm8790_vm2, %v8723_v4 }
 0x566   :  { %8390 = vrot.lane.b32.xlu0 %v12373_v49, %s12455_s3 }
 0x567   :  { %v8725_v16 = vpop.permute.xlu1 %8724 }
 0x568   :  { %8854 = vst.msk [vmem:[#allocation4 + $0x1f8] sm:$0xff] %vm8790_vm2, %v8725_v16  ;;  %v8279_v55 = vpop.permute.xlu0 %8278 }
 0x569   :  { %8392 = vrot.lane.b32.xlu1 %v12371_v30, %s12455_s3  ;;  %v8470_v42 = vmul.f32 %v18952_v62, %v8279_v55  ;;  %v18966_v30 = vld [vmem:[#allocation92_spill] sm:$0xff]  ;;  %v18968_v55 = vld [vmem:[#allocation94_spill] sm:$0xff] }
 0x56a   :  { %8394 = vrot.lane.b32.xlu0 %v12377_v1, %s12455_s3  ;;  %v18972_v62 = vld [vmem:[#allocation98_spill] sm:$0xff] }
 0x56b   :  { %v8281_v54 = vpop.permute.xlu1 %8280 }
 0x56c   :  { %v8283_v11 = vpop.permute.xlu0 %8282  ;;  %v8471_v43 = vmul.f32 %v18951_v17, %v8281_v54  ;;  %v18971_v17 = vld [vmem:[#allocation99_spill] sm:$0xff] }
 0x56d   :  { %8396 = vrot.lane.b32.xlu1 %v12375_v35, %s12455_s3  ;;  %v8472_v12 = vmul.f32 %v18954_v46, %v8283_v11  ;;  %v18967_v35 = vld [vmem:[#allocation95_spill] sm:$0xff]  ;;  %v18969_v11 = vld [vmem:[#allocation97_spill] sm:$0xff] }
 0x56e   :  { %8398 = vrot.lane.b32.xlu0 %v12381_v59, %s12455_s3  ;;  %v18974_v46 = vld [vmem:[#allocation101_spill] sm:$0xff] }
 0x56f   :  { %v8285_v38 = vpop.permute.xlu1 %8284 }
 0x570   :  { %v8287_v24 = vpop.permute.xlu0 %8286  ;;  %v8473_v8 = vmul.f32 %v18953_v15, %v8285_v38  ;;  %v18973_v15 = vld [vmem:[#allocation100_spill] sm:$0xff] }
 0x571   :  { %8400 = vrot.lane.b32.xlu1 %v12379_v34, %s12455_s3  ;;  %v8474_v31 = vmul.f32 %v18956_v6, %v8287_v24  ;;  %v18976_v6 = vld [vmem:[#allocation103_spill] sm:$0xff] }
 0x572   :  { %8402 = vrot.lane.b32.xlu0 %v12385_v45, %s12455_s3 }
 0x573   :  { %v8289_v3 = vpop.permute.xlu1 %8288 }
 0x574   :  { %v8291_v50 = vpop.permute.xlu0 %8290  ;;  %v8475_v33 = vmul.f32 %v18955_v10, %v8289_v3  ;;  %v18975_v10 = vld [vmem:[#allocation102_spill] sm:$0xff] }
 0x575   :  { %8404 = vrot.lane.b32.xlu1 %v12383_v13, %s12455_s3  ;;  %v8476_v25 = vmul.f32 %v18958_v0, %v8291_v50  ;;  %v18970_v13 = vld [vmem:[#allocation96_spill] sm:$0xff] }
 0x576   :  { %8919 = vrot.lane.b32.xlu0 %v8470_v42, %s12454_s20  ;;  %v18978_v0 = vld [vmem:[#allocation104_spill] sm:$0xff] }
 0x577   :  { %v8293_v9 = vpop.permute.xlu1 %8292 }
 0x578   :  { %v8295_v41 = vpop.permute.xlu0 %8294  ;;  %v8477_v14 = vmul.f32 %v18957_v51, %v8293_v9  ;;  %v18977_v51 = vld [vmem:[#allocation9_spill] sm:$0xff] }
 0x579   :  { %8921 = vrot.lane.b32.xlu1 %v8471_v43, %s12454_s20  ;;  %v8478_v53 = vmul.f32 %v18960_v23, %v8295_v41  ;;  %v18980_v23 = vld [vmem:[#allocation10_spill] sm:$0xff] }
 0x57a   :  { %8923 = vrot.lane.b32.xlu0 %v8472_v12, %s12454_s20 }
 0x57b   :  { %v8297_v22 = vpop.permute.xlu1 %8296 }
 0x57c   :  { %v8299_v63 = vpop.permute.xlu0 %8298  ;;  %v8479_v7 = vmul.f32 %v18959_v61, %v8297_v22  ;;  %v18979_v61 = vld [vmem:[#allocation105_spill] sm:$0xff] }
 0x57d   :  { %8925 = vrot.lane.b32.xlu1 %v8473_v8, %s12454_s20  ;;  %v8480_v58 = vmul.f32 %v18962_v29, %v8299_v63  ;;  %v18982_v29 = vld [vmem:[#allocation12_spill] sm:$0xff] }
 0x57e   :  { %8927 = vrot.lane.b32.xlu0 %v8474_v31, %s12454_s20 }
 0x57f   :  { %v8301_v40 = vpop.permute.xlu1 %8300 }
 0x580   :  { %v8303_v32 = vpop.permute.xlu0 %8302  ;;  %v8481_v2 = vmul.f32 %v18961_v5, %v8301_v40  ;;  %v18981_v5 = vld [vmem:[#allocation13_spill] sm:$0xff] }
 0x581   :  { %8929 = vrot.lane.b32.xlu1 %v8475_v33, %s12454_s20  ;;  %v8482_v56 = vmul.f32 %v18964_v48, %v8303_v32  ;;  %v18984_v48 = vld [vmem:[#allocation106_spill] sm:$0xff] }
 0x582   :  { %8931 = vrot.lane.b32.xlu0 %v8476_v25, %s12454_s20 }
 0x583   :  { %v8305_v39 = vpop.permute.xlu1 %8304 }
 0x584   :  { %v8307_v52 = vpop.permute.xlu0 %8306  ;;  %v8483_v27 = vmul.f32 %v18963_v21, %v8305_v39  ;;  %v18983_v21 = vld [vmem:[#allocation107_spill] sm:$0xff] }
 0x585   :  { %8933 = vrot.lane.b32.xlu1 %v8477_v14, %s12454_s20  ;;  %v8484_v16 = vmul.f32 %v18966_v30, %v8307_v52  ;;  %v18986_v30 = vld [vmem:[#allocation108_spill] sm:$0xff] }
 0x586   :  { %8935 = vrot.lane.b32.xlu0 %v8478_v53, %s12454_s20 }
 0x587   :  { %v8309_v44 = vpop.permute.xlu1 %8308 }
 0x588   :  { %v8311_v26 = vpop.permute.xlu0 %8310  ;;  %v8485_v57 = vmul.f32 %v18965_v28, %v8309_v44  ;;  %v18985_v28 = vld [vmem:[#allocation109_spill] sm:$0xff] }
 0x589   :  { %8937 = vrot.lane.b32.xlu1 %v8479_v7, %s12454_s20  ;;  %v8486_v1 = vmul.f32 %v18968_v55, %v8311_v26  ;;  %v18988_v55 = vld [vmem:[#allocation110_spill] sm:$0xff] }
 0x58a   :  { %8939 = vrot.lane.b32.xlu0 %v8480_v58, %s12454_s20 }
 0x58b   :  { %v8313_v19 = vpop.permute.xlu1 %8312 }
 0x58c   :  { %v8315_v36 = vpop.permute.xlu0 %8314  ;;  %v8487_v54 = vmul.f32 %v18967_v35, %v8313_v19  ;;  %v18987_v35 = vld [vmem:[#allocation111_spill] sm:$0xff] }
 0x58d   :  { %8941 = vrot.lane.b32.xlu1 %v8481_v2, %s12454_s20  ;;  %v8488_v3 = vmul.f32 %v18970_v13, %v8315_v36  ;;  %v18990_v13 = vld [vmem:[#allocation112_spill] sm:$0xff] }
 0x58e   :  { %8943 = vrot.lane.b32.xlu0 %v8482_v56, %s12454_s20 }
 0x58f   :  { %v8317_v20 = vpop.permute.xlu1 %8316 }
 0x590   :  { %v8319_v49 = vpop.permute.xlu0 %8318  ;;  %v8489_v59 = vmul.f32 %v18969_v11, %v8317_v20  ;;  %v18989_v11 = vld [vmem:[#allocation113_spill] sm:$0xff] }
 0x591   :  { %8945 = vrot.lane.b32.xlu1 %v8483_v27, %s12454_s20  ;;  %v8490_v42 = vmul.f32 %v18972_v62, %v8319_v49  ;;  %v18992_v62 = vld [vmem:[#allocation114_spill] sm:$0xff] }
 0x592   :  { %8947 = vrot.lane.b32.xlu0 %v8484_v16, %s12454_s20 }
 0x593   :  { %v8321_v4 = vpop.permute.xlu1 %8320 }
 0x594   :  { %v8323_v38 = vpop.permute.xlu0 %8322  ;;  %v8491_v43 = vmul.f32 %v18971_v17, %v8321_v4  ;;  %v18991_v17 = vld [vmem:[#allocation115_spill] sm:$0xff] }
 0x595   :  { %8949 = vrot.lane.b32.xlu1 %v8485_v57, %s12454_s20  ;;  %v8492_v12 = vmul.f32 %v18974_v46, %v8323_v38  ;;  %v18994_v46 = vld [vmem:[#allocation116_spill] sm:$0xff] }
 0x596   :  { %8951 = vrot.lane.b32.xlu0 %v8486_v1, %s12454_s20 }
 0x597   :  { %v8325_v34 = vpop.permute.xlu1 %8324 }
 0x598   :  { %v8327_v45 = vpop.permute.xlu0 %8326  ;;  %v8493_v8 = vmul.f32 %v18973_v15, %v8325_v34  ;;  %v18993_v15 = vld [vmem:[#allocation117_spill] sm:$0xff] }
 0x599   :  { %8953 = vrot.lane.b32.xlu1 %v8487_v54, %s12454_s20  ;;  %v8494_v31 = vmul.f32 %v18976_v6, %v8327_v45  ;;  %v18996_v6 = vld [vmem:[#allocation38_spill] sm:$0xff] }
 0x59a   :  { %8955 = vrot.lane.b32.xlu0 %v8488_v3, %s12454_s20 }
 0x59b   :  { %v8329_v24 = vpop.permute.xlu1 %8328 }
 0x59c   :  { %v8331_v50 = vpop.permute.xlu0 %8330  ;;  %v8495_v33 = vmul.f32 %v18975_v10, %v8329_v24  ;;  %v18995_v10 = vld [vmem:[#allocation21_spill] sm:$0xff] }
 0x59d   :  { %8957 = vrot.lane.b32.xlu1 %v8489_v59, %s12454_s20  ;;  %v8496_v25 = vmul.f32 %v18978_v0, %v8331_v50  ;;  %v18998_v0 = vld [vmem:[#allocation118_spill] sm:$0xff] }
 0x59e   :  { %8959 = vrot.lane.b32.xlu0 %v8490_v42, %s12454_s20 }
 0x59f   :  { %v8333_v9 = vpop.permute.xlu1 %8332 }
 0x5a0   :  { %v8335_v41 = vpop.permute.xlu0 %8334  ;;  %v8497_v14 = vmul.f32 %v18977_v51, %v8333_v9  ;;  %v18997_v51 = vld [vmem:[#allocation119_spill] sm:$0xff] }
 0x5a1   :  { %8961 = vrot.lane.b32.xlu1 %v8491_v43, %s12454_s20  ;;  %v8498_v53 = vmul.f32 %v18980_v23, %v8335_v41  ;;  %v19000_v23 = vld [vmem:[#allocation120_spill] sm:$0xff] }
 0x5a2   :  { %8963 = vrot.lane.b32.xlu0 %v8492_v12, %s12454_s20 }
 0x5a3   :  { %v8337_v22 = vpop.permute.xlu1 %8336 }
 0x5a4   :  { %v8339_v63 = vpop.permute.xlu0 %8338  ;;  %v8499_v7 = vmul.f32 %v18979_v61, %v8337_v22  ;;  %v18999_v61 = vld [vmem:[#allocation121_spill] sm:$0xff] }
 0x5a5   :  { %8965 = vrot.lane.b32.xlu1 %v8493_v8, %s12454_s20  ;;  %v8500_v58 = vmul.f32 %v18982_v29, %v8339_v63  ;;  %v19002_v29 = vld [vmem:[#allocation122_spill] sm:$0xff] }
 0x5a6   :  { %8967 = vrot.lane.b32.xlu0 %v8494_v31, %s12454_s20 }
 0x5a7   :  { %v8341_v40 = vpop.permute.xlu1 %8340 }
 0x5a8   :  { %v8343_v32 = vpop.permute.xlu0 %8342  ;;  %v8501_v2 = vmul.f32 %v18981_v5, %v8341_v40  ;;  %v19001_v5 = vld [vmem:[#allocation123_spill] sm:$0xff] }
 0x5a9   :  { %8969 = vrot.lane.b32.xlu1 %v8495_v33, %s12454_s20  ;;  %v8502_v56 = vmul.f32 %v18984_v48, %v8343_v32  ;;  %v19004_v48 = vld [vmem:[#allocation124_spill] sm:$0xff] }
 0x5aa   :  { %8971 = vrot.lane.b32.xlu0 %v8496_v25, %s12454_s20 }
 0x5ab   :  { %v8345_v39 = vpop.permute.xlu1 %8344 }
 0x5ac   :  { %v8347_v52 = vpop.permute.xlu0 %8346  ;;  %v8503_v27 = vmul.f32 %v18983_v21, %v8345_v39  ;;  %v19003_v21 = vld [vmem:[#allocation125_spill] sm:$0xff] }
 0x5ad   :  { %8973 = vrot.lane.b32.xlu1 %v8497_v14, %s12454_s20  ;;  %v8504_v16 = vmul.f32 %v18986_v30, %v8347_v52  ;;  %v19006_v30 = vld [vmem:[#allocation126_spill] sm:$0xff] }
 0x5ae   :  { %8975 = vrot.lane.b32.xlu0 %v8498_v53, %s12454_s20 }
 0x5af   :  { %v8349_v44 = vpop.permute.xlu1 %8348 }
 0x5b0   :  { %v8351_v26 = vpop.permute.xlu0 %8350  ;;  %v8505_v57 = vmul.f32 %v18985_v28, %v8349_v44  ;;  %v19005_v28 = vld [vmem:[#allocation127_spill] sm:$0xff] }
 0x5b1   :  { %8977 = vrot.lane.b32.xlu1 %v8499_v7, %s12454_s20  ;;  %v8506_v1 = vmul.f32 %v18988_v55, %v8351_v26  ;;  %v19008_v55 = vld [vmem:[#allocation128_spill] sm:$0xff] }
 0x5b2   :  { %8979 = vrot.lane.b32.xlu0 %v8500_v58, %s12454_s20 }
 0x5b3   :  { %v8353_v19 = vpop.permute.xlu1 %8352 }
 0x5b4   :  { %v8355_v36 = vpop.permute.xlu0 %8354  ;;  %v8507_v54 = vmul.f32 %v18987_v35, %v8353_v19  ;;  %v19007_v35 = vld [vmem:[#allocation129_spill] sm:$0xff] }
 0x5b5   :  { %8981 = vrot.lane.b32.xlu1 %v8501_v2, %s12454_s20  ;;  %v8508_v3 = vmul.f32 %v18990_v13, %v8355_v36  ;;  %v19010_v13 = vld [vmem:[#allocation130_spill] sm:$0xff] }
 0x5b6   :  { %8983 = vrot.lane.b32.xlu0 %v8502_v56, %s12454_s20 }
 0x5b7   :  { %v8357_v20 = vpop.permute.xlu1 %8356 }
 0x5b8   :  { %v8359_v49 = vpop.permute.xlu0 %8358  ;;  %v8509_v59 = vmul.f32 %v18989_v11, %v8357_v20  ;;  %v19009_v11 = vld [vmem:[#allocation131_spill] sm:$0xff] }
 0x5b9   :  { %8985 = vrot.lane.b32.xlu1 %v8503_v27, %s12454_s20  ;;  %v8510_v42 = vmul.f32 %v18992_v62, %v8359_v49 }
 0x5ba   :  { %8987 = vrot.lane.b32.xlu0 %v8504_v16, %s12454_s20 }
 0x5bb   :  { %v8361_v4 = vpop.permute.xlu1 %8360 }
 0x5bc   :  { %v8363_v38 = vpop.permute.xlu0 %8362  ;;  %v8511_v43 = vmul.f32 %v18991_v17, %v8361_v4 }
 0x5bd   :  { %8989 = vrot.lane.b32.xlu1 %v8505_v57, %s12454_s20  ;;  %v8512_v12 = vmul.f32 %v18994_v46, %v8363_v38 }
 0x5be   :  { %8991 = vrot.lane.b32.xlu0 %v8506_v1, %s12454_s20 }
 0x5bf   :  { %v8365_v34 = vpop.permute.xlu1 %8364 }
 0x5c0   :  { %v8367_v45 = vpop.permute.xlu0 %8366  ;;  %v8513_v8 = vmul.f32 %v18993_v15, %v8365_v34 }
 0x5c1   :  { %8993 = vrot.lane.b32.xlu1 %v8507_v54, %s12454_s20  ;;  %v8514_v31 = vmul.f32 %v18996_v6, %v8367_v45 }
 0x5c2   :  { %8995 = vrot.lane.b32.xlu0 %v8508_v3, %s12454_s20 }
 0x5c3   :  { %v8369_v24 = vpop.permute.xlu1 %8368 }
 0x5c4   :  { %v8371_v50 = vpop.permute.xlu0 %8370  ;;  %v8515_v33 = vmul.f32 %v18995_v10, %v8369_v24 }
 0x5c5   :  { %8997 = vrot.lane.b32.xlu1 %v8509_v59, %s12454_s20  ;;  %v8516_v25 = vmul.f32 %v18998_v0, %v8371_v50 }
 0x5c6   :  { %8999 = vrot.lane.b32.xlu0 %v8510_v42, %s12454_s20 }
 0x5c7   :  { %v8373_v9 = vpop.permute.xlu1 %8372 }
 0x5c8   :  { %v8375_v41 = vpop.permute.xlu0 %8374  ;;  %v8517_v14 = vmul.f32 %v18997_v51, %v8373_v9 }
 0x5c9   :  { %9001 = vrot.lane.b32.xlu1 %v8511_v43, %s12454_s20  ;;  %v8518_v53 = vmul.f32 %v19000_v23, %v8375_v41 }
 0x5ca   :  { %9003 = vrot.lane.b32.xlu0 %v8512_v12, %s12454_s20 }
 0x5cb   :  { %v8377_v22 = vpop.permute.xlu1 %8376 }
 0x5cc   :  { %v8379_v63 = vpop.permute.xlu0 %8378  ;;  %v8519_v7 = vmul.f32 %v18999_v61, %v8377_v22 }
 0x5cd   :  { %9005 = vrot.lane.b32.xlu1 %v8513_v8, %s12454_s20  ;;  %v8520_v58 = vmul.f32 %v19002_v29, %v8379_v63 }
 0x5ce   :  { %9007 = vrot.lane.b32.xlu0 %v8514_v31, %s12454_s20 }
 0x5cf   :  { %v8381_v40 = vpop.permute.xlu1 %8380 }
 0x5d0   :  { %v8383_v32 = vpop.permute.xlu0 %8382  ;;  %v8521_v2 = vmul.f32 %v19001_v5, %v8381_v40 }
 0x5d1   :  { %9009 = vrot.lane.b32.xlu1 %v8515_v33, %s12454_s20  ;;  %v8522_v56 = vmul.f32 %v19004_v48, %v8383_v32 }
 0x5d2   :  { %9011 = vrot.lane.b32.xlu0 %v8516_v25, %s12454_s20 }
 0x5d3   :  { %v8385_v39 = vpop.permute.xlu1 %8384 }
 0x5d4   :  { %v8387_v52 = vpop.permute.xlu0 %8386  ;;  %v8523_v27 = vmul.f32 %v19003_v21, %v8385_v39 }
 0x5d5   :  { %9013 = vrot.lane.b32.xlu1 %v8517_v14, %s12454_s20  ;;  %v8524_v16 = vmul.f32 %v19006_v30, %v8387_v52 }
 0x5d6   :  { %9015 = vrot.lane.b32.xlu0 %v8518_v53, %s12454_s20 }
 0x5d7   :  { %v8389_v44 = vpop.permute.xlu1 %8388 }
 0x5d8   :  { %v8391_v26 = vpop.permute.xlu0 %8390  ;;  %v8525_v57 = vmul.f32 %v19005_v28, %v8389_v44 }
 0x5d9   :  { %9017 = vrot.lane.b32.xlu1 %v8519_v7, %s12454_s20  ;;  %v8526_v1 = vmul.f32 %v19008_v55, %v8391_v26 }
 0x5da   :  { %9019 = vrot.lane.b32.xlu0 %v8520_v58, %s12454_s20 }
 0x5db   :  { %v8393_v19 = vpop.permute.xlu1 %8392 }
 0x5dc   :  { %v8395_v36 = vpop.permute.xlu0 %8394  ;;  %v8527_v54 = vmul.f32 %v19007_v35, %v8393_v19 }
 0x5dd   :  { %9021 = vrot.lane.b32.xlu1 %v8521_v2, %s12454_s20  ;;  %v8528_v3 = vmul.f32 %v19010_v13, %v8395_v36 }
 0x5de   :  { %9023 = vrot.lane.b32.xlu0 %v8522_v56, %s12454_s20 }
 0x5df   :  { %v8397_v20 = vpop.permute.xlu1 %8396 }
 0x5e0   :  { %v8399_v49 = vpop.permute.xlu0 %8398  ;;  %v8529_v59 = vmul.f32 %v19009_v11, %v8397_v20 }
 0x5e1   :  { %9025 = vrot.lane.b32.xlu1 %v8523_v27, %s12454_s20 }
 0x5e2   :  { %9027 = vrot.lane.b32.xlu0 %v8524_v16, %s12454_s20 }
 0x5e3   :  { %v8401_v4 = vpop.permute.xlu1 %8400 }
 0x5e4   :  { %v8403_v38 = vpop.permute.xlu0 %8402 }
 0x5e5   :  { %9029 = vrot.lane.b32.xlu1 %v8525_v57, %s12454_s20 }
 0x5e6   :  { %9031 = vrot.lane.b32.xlu0 %v8526_v1, %s12454_s20 }
 0x5e7   :  { %v8405_v34 = vpop.permute.xlu1 %8404 }
 0x5e8   :  { %v8920_v45 = vpop.permute.xlu0 %8919 }
 0x5e9   :  { %9033 = vrot.lane.b32.xlu1 %v8527_v54, %s12454_s20  ;;  %9111 = vst.msk [vmem:[#allocation2] sm:$0xff] %vm8790_vm2, %v8920_v45 }
 0x5ea   :  { %9035 = vrot.lane.b32.xlu0 %v8528_v3, %s12454_s20 }
 0x5eb   :  { %v8922_v24 = vpop.permute.xlu1 %8921 }
 0x5ec   :  { %9112 = vst.msk [vmem:[#allocation2 + $0x8] sm:$0xff] %vm8790_vm2, %v8922_v24 }
 0x5ed   :  { %9037 = vrot.lane.b32.xlu1 %v8529_v59, %s12454_s20 }
 0x5ee   :  { %12421 = shalt.err (!%p12418_p4)
}
 0x5ef   :  { %s12458_s27 = smov 128   ;;  %s12459_s28 = smov 8   ;;  %v8531_v17 = vmul.f32 %v18932_v60, %v8401_v4  ;;  %v8530_v43 = vmul.f32 %v18934_v47, %v8399_v49  ;;  %v8926_v62 = vpop.permute.xlu1 %8925  ;;  %v8924_v42 = vpop.permute.xlu0 %8923  ;;  %v8533_v9 = vmul.f32 %v18936_v18, %v8405_v34  ;;  %v8532_v50 = vmul.f32 %v18938_v37, %v8403_v38 }
 0x5f0   :  { %9198 = dma.vmem_to_hbm [thread:$0]  %s9193_s25, 8192, %s18276_s6, [#allocation5], %s12458_s27, %s12458_s27, %s12459_s28   ;;  %9114 = vst.msk [vmem:[#allocation2 + $0x18] sm:$0xff] %vm8790_vm2, %v8926_v62  ;;  %9113 = vst.msk [vmem:[#allocation2 + $0x10] sm:$0xff] %vm8790_vm2, %v8924_v42 }
 0x5f1   :  { %9041 = vrot.lane.b32.xlu1 %v8531_v17, %s12454_s20  ;;  %9039 = vrot.lane.b32.xlu0 %v8530_v43, %s12454_s20  ;;  %s12460_s6 = smov [#allocation2]  }
 0x5f3   :  { %v8930_v15 = vpop.permute.xlu1 %8929  ;;  %v8928_v8 = vpop.permute.xlu0 %8927 }
 0x5f4   :  { %9116 = vst.msk [vmem:[#allocation2 + $0x28] sm:$0xff] %vm8790_vm2, %v8930_v15  ;;  %9115 = vst.msk [vmem:[#allocation2 + $0x20] sm:$0xff] %vm8790_vm2, %v8928_v8 }
 0x5f5   :  { %9045 = vrot.lane.b32.xlu1 %v8533_v9, %s12454_s20  ;;  %9043 = vrot.lane.b32.xlu0 %v8532_v50, %s12454_s20  ;;  %s9180_s20 = sshll.u32 %s12460_s6, 4  ;;  %s9181_s20 = int_to_ptr.vmem [resolvable:$true] %s9180_s20 }
 0x5f6   :  { %s12430_s7 = scalar_lea.vmem %s9181_s20, 8192  ;;  %p12435_p6 = scmp.lt.s32.totalorder %s9181_s20, %s9181_s20 }
 0x5f7   :  { %v8934_v47 = vpop.permute.xlu1 %8933  ;;  %v8932_v60 = vpop.permute.xlu0 %8931  ;;  %p12431_p5 = scmp.ne.s32.totalorder %s9181_s20, %s12430_s7  ;;  %p12436_p7 = scmp.lt.s32.totalorder %s12430_s7, %s12430_s7 }
 0x5f8   :  { %9118 = vst.msk [vmem:[#allocation2 + $0x38] sm:$0xff] %vm8790_vm2, %v8934_v47  ;;  %9117 = vst.msk [vmem:[#allocation2 + $0x30] sm:$0xff] %vm8790_vm2, %v8932_v60 }
 0x5f9   :  { %p12437_p8 = por %p12436_p7, %p12435_p6 }
 0x5fb   :  { %v8938_v46 = vpop.permute.xlu1 %8937  ;;  %v8936_v18 = vpop.permute.xlu0 %8935  ;;  %p12438_p9 = pnand %p12437_p8, %p12431_p5 }
 0x5fc   :  { %9120 = vst.msk [vmem:[#allocation2 + $0x48] sm:$0xff] %vm8790_vm2, %v8938_v46  ;;  %9119 = vst.msk [vmem:[#allocation2 + $0x40] sm:$0xff] %vm8790_vm2, %v8936_v18 }
 0x5ff   :  { %v8942_v37 = vpop.permute.xlu1 %8941  ;;  %v8940_v12 = vpop.permute.xlu0 %8939 }
 0x600   :  { %9122 = vst.msk [vmem:[#allocation2 + $0x58] sm:$0xff] %vm8790_vm2, %v8942_v37  ;;  %9121 = vst.msk [vmem:[#allocation2 + $0x50] sm:$0xff] %vm8790_vm2, %v8940_v12 }
 0x603   :  { %v8946_v22 = vpop.permute.xlu1 %8945  ;;  %v8944_v41 = vpop.permute.xlu0 %8943 }
 0x604   :  { %9124 = vst.msk [vmem:[#allocation2 + $0x68] sm:$0xff] %vm8790_vm2, %v8946_v22  ;;  %9123 = vst.msk [vmem:[#allocation2 + $0x60] sm:$0xff] %vm8790_vm2, %v8944_v41 }
 0x607   :  { %v8950_v10 = vpop.permute.xlu1 %8949  ;;  %v8948_v33 = vpop.permute.xlu0 %8947 }
 0x608   :  { %9126 = vst.msk [vmem:[#allocation2 + $0x78] sm:$0xff] %vm8790_vm2, %v8950_v10  ;;  %9125 = vst.msk [vmem:[#allocation2 + $0x70] sm:$0xff] %vm8790_vm2, %v8948_v33 }
 0x60b   :  { %v8954_v6 = vpop.permute.xlu1 %8953  ;;  %v8952_v31 = vpop.permute.xlu0 %8951 }
 0x60c   :  { %9128 = vst.msk [vmem:[#allocation2 + $0x88] sm:$0xff] %vm8790_vm2, %v8954_v6  ;;  %9127 = vst.msk [vmem:[#allocation2 + $0x80] sm:$0xff] %vm8790_vm2, %v8952_v31 }
 0x60f   :  { %v8958_v40 = vpop.permute.xlu1 %8957  ;;  %v8956_v63 = vpop.permute.xlu0 %8955 }
 0x610   :  { %9130 = vst.msk [vmem:[#allocation2 + $0x98] sm:$0xff] %vm8790_vm2, %v8958_v40  ;;  %9129 = vst.msk [vmem:[#allocation2 + $0x90] sm:$0xff] %vm8790_vm2, %v8956_v63 }
 0x613   :  { %v8962_v51 = vpop.permute.xlu1 %8961  ;;  %v8960_v14 = vpop.permute.xlu0 %8959 }
 0x614   :  { %9132 = vst.msk [vmem:[#allocation2 + $0xa8] sm:$0xff] %vm8790_vm2, %v8962_v51  ;;  %9131 = vst.msk [vmem:[#allocation2 + $0xa0] sm:$0xff] %vm8790_vm2, %v8960_v14 }
 0x617   :  { %v8966_v0 = vpop.permute.xlu1 %8965  ;;  %v8964_v25 = vpop.permute.xlu0 %8963 }
 0x618   :  { %9134 = vst.msk [vmem:[#allocation2 + $0xb8] sm:$0xff] %vm8790_vm2, %v8966_v0  ;;  %9133 = vst.msk [vmem:[#allocation2 + $0xb0] sm:$0xff] %vm8790_vm2, %v8964_v25 }
 0x61b   :  { %v8970_v39 = vpop.permute.xlu1 %8969  ;;  %v8968_v32 = vpop.permute.xlu0 %8967 }
 0x61c   :  { %9136 = vst.msk [vmem:[#allocation2 + $0xc8] sm:$0xff] %vm8790_vm2, %v8970_v39  ;;  %9135 = vst.msk [vmem:[#allocation2 + $0xc0] sm:$0xff] %vm8790_vm2, %v8968_v32 }
 0x61f   :  { %v8974_v61 = vpop.permute.xlu1 %8973  ;;  %v8972_v7 = vpop.permute.xlu0 %8971 }
 0x620   :  { %9138 = vst.msk [vmem:[#allocation2 + $0xd8] sm:$0xff] %vm8790_vm2, %v8974_v61  ;;  %9137 = vst.msk [vmem:[#allocation2 + $0xd0] sm:$0xff] %vm8790_vm2, %v8972_v7 }
 0x623   :  { %v8978_v23 = vpop.permute.xlu1 %8977  ;;  %v8976_v53 = vpop.permute.xlu0 %8975 }
 0x624   :  { %9140 = vst.msk [vmem:[#allocation2 + $0xe8] sm:$0xff] %vm8790_vm2, %v8978_v23  ;;  %9139 = vst.msk [vmem:[#allocation2 + $0xe0] sm:$0xff] %vm8790_vm2, %v8976_v53 }
 0x627   :  { %v8982_v44 = vpop.permute.xlu1 %8981  ;;  %v8980_v52 = vpop.permute.xlu0 %8979 }
 0x628   :  { %9142 = vst.msk [vmem:[#allocation2 + $0xf8] sm:$0xff] %vm8790_vm2, %v8982_v44  ;;  %9141 = vst.msk [vmem:[#allocation2 + $0xf0] sm:$0xff] %vm8790_vm2, %v8980_v52 }
 0x62b   :  { %v8986_v5 = vpop.permute.xlu1 %8985  ;;  %v8984_v2 = vpop.permute.xlu0 %8983 }
 0x62c   :  { %9144 = vst.msk [vmem:[#allocation2 + $0x108] sm:$0xff] %vm8790_vm2, %v8986_v5  ;;  %9143 = vst.msk [vmem:[#allocation2 + $0x100] sm:$0xff] %vm8790_vm2, %v8984_v2 }
 0x62f   :  { %v8990_v29 = vpop.permute.xlu1 %8989  ;;  %v8988_v58 = vpop.permute.xlu0 %8987 }
 0x630   :  { %9146 = vst.msk [vmem:[#allocation2 + $0x118] sm:$0xff] %vm8790_vm2, %v8990_v29  ;;  %9145 = vst.msk [vmem:[#allocation2 + $0x110] sm:$0xff] %vm8790_vm2, %v8988_v58 }
 0x633   :  { %v8994_v19 = vpop.permute.xlu1 %8993  ;;  %v8992_v26 = vpop.permute.xlu0 %8991 }
 0x634   :  { %9148 = vst.msk [vmem:[#allocation2 + $0x128] sm:$0xff] %vm8790_vm2, %v8994_v19  ;;  %9147 = vst.msk [vmem:[#allocation2 + $0x120] sm:$0xff] %vm8790_vm2, %v8992_v26 }
 0x637   :  { %v8998_v21 = vpop.permute.xlu1 %8997  ;;  %v8996_v27 = vpop.permute.xlu0 %8995 }
 0x638   :  { %9150 = vst.msk [vmem:[#allocation2 + $0x138] sm:$0xff] %vm8790_vm2, %v8998_v21  ;;  %9149 = vst.msk [vmem:[#allocation2 + $0x130] sm:$0xff] %vm8790_vm2, %v8996_v27 }
 0x63b   :  { %v9002_v48 = vpop.permute.xlu1 %9001  ;;  %v9000_v56 = vpop.permute.xlu0 %8999 }
 0x63c   :  { %9152 = vst.msk [vmem:[#allocation2 + $0x148] sm:$0xff] %vm8790_vm2, %v9002_v48  ;;  %9151 = vst.msk [vmem:[#allocation2 + $0x140] sm:$0xff] %vm8790_vm2, %v9000_v56 }
 0x63f   :  { %v9006_v20 = vpop.permute.xlu1 %9005  ;;  %v9004_v36 = vpop.permute.xlu0 %9003 }
 0x640   :  { %9154 = vst.msk [vmem:[#allocation2 + $0x158] sm:$0xff] %vm8790_vm2, %v9006_v20  ;;  %9153 = vst.msk [vmem:[#allocation2 + $0x150] sm:$0xff] %vm8790_vm2, %v9004_v36 }
 0x643   :  { %v9010_v28 = vpop.permute.xlu1 %9009  ;;  %v9008_v57 = vpop.permute.xlu0 %9007 }
 0x644   :  { %9156 = vst.msk [vmem:[#allocation2 + $0x168] sm:$0xff] %vm8790_vm2, %v9010_v28  ;;  %9155 = vst.msk [vmem:[#allocation2 + $0x160] sm:$0xff] %vm8790_vm2, %v9008_v57 }
 0x647   :  { %v9014_v30 = vpop.permute.xlu1 %9013  ;;  %v9012_v16 = vpop.permute.xlu0 %9011 }
 0x648   :  { %9158 = vst.msk [vmem:[#allocation2 + $0x178] sm:$0xff] %vm8790_vm2, %v9014_v30  ;;  %9157 = vst.msk [vmem:[#allocation2 + $0x170] sm:$0xff] %vm8790_vm2, %v9012_v16 }
 0x64b   :  { %v9018_v4 = vpop.permute.xlu1 %9017  ;;  %v9016_v49 = vpop.permute.xlu0 %9015 }
 0x64c   :  { %9160 = vst.msk [vmem:[#allocation2 + $0x188] sm:$0xff] %vm8790_vm2, %v9018_v4  ;;  %9159 = vst.msk [vmem:[#allocation2 + $0x180] sm:$0xff] %vm8790_vm2, %v9016_v49 }
 0x64f   :  { %v9022_v35 = vpop.permute.xlu1 %9021  ;;  %v9020_v54 = vpop.permute.xlu0 %9019 }
 0x650   :  { %9162 = vst.msk [vmem:[#allocation2 + $0x198] sm:$0xff] %vm8790_vm2, %v9022_v35  ;;  %9161 = vst.msk [vmem:[#allocation2 + $0x190] sm:$0xff] %vm8790_vm2, %v9020_v54 }
 0x653   :  { %v9026_v55 = vpop.permute.xlu1 %9025  ;;  %v9024_v1 = vpop.permute.xlu0 %9023 }
 0x654   :  { %9164 = vst.msk [vmem:[#allocation2 + $0x1a8] sm:$0xff] %vm8790_vm2, %v9026_v55  ;;  %9163 = vst.msk [vmem:[#allocation2 + $0x1a0] sm:$0xff] %vm8790_vm2, %v9024_v1 }
 0x657   :  { %v9030_v34 = vpop.permute.xlu1 %9029  ;;  %v9028_v38 = vpop.permute.xlu0 %9027 }
 0x658   :  { %9166 = vst.msk [vmem:[#allocation2 + $0x1b8] sm:$0xff] %vm8790_vm2, %v9030_v34  ;;  %9165 = vst.msk [vmem:[#allocation2 + $0x1b0] sm:$0xff] %vm8790_vm2, %v9028_v38 }
 0x65b   :  { %v9034_v11 = vpop.permute.xlu1 %9033  ;;  %v9032_v59 = vpop.permute.xlu0 %9031 }
 0x65c   :  { %9168 = vst.msk [vmem:[#allocation2 + $0x1c8] sm:$0xff] %vm8790_vm2, %v9034_v11  ;;  %9167 = vst.msk [vmem:[#allocation2 + $0x1c0] sm:$0xff] %vm8790_vm2, %v9032_v59 }
 0x65f   :  { %v9038_v13 = vpop.permute.xlu1 %9037  ;;  %v9036_v3 = vpop.permute.xlu0 %9035 }
 0x660   :  { %9170 = vst.msk [vmem:[#allocation2 + $0x1d8] sm:$0xff] %vm8790_vm2, %v9038_v13  ;;  %9169 = vst.msk [vmem:[#allocation2 + $0x1d0] sm:$0xff] %vm8790_vm2, %v9036_v3 }
 0x663   :  { %v9042_v24 = vpop.permute.xlu1 %9041  ;;  %v9040_v45 = vpop.permute.xlu0 %9039 }
 0x664   :  { %9172 = vst.msk [vmem:[#allocation2 + $0x1e8] sm:$0xff] %vm8790_vm2, %v9042_v24  ;;  %9171 = vst.msk [vmem:[#allocation2 + $0x1e0] sm:$0xff] %vm8790_vm2, %v9040_v45 }
 0x667   :  { %v9046_v17 = vpop.permute.xlu1 %9045  ;;  %v9044_v43 = vpop.permute.xlu0 %9043 }
 0x668   :  { %9174 = vst.msk [vmem:[#allocation2 + $0x1f8] sm:$0xff] %vm8790_vm2, %v9046_v17  ;;  %9173 = vst.msk [vmem:[#allocation2 + $0x1f0] sm:$0xff] %vm8790_vm2, %v9044_v43 }
 0x669   :  { %12441 = shalt.err (!%p12438_p9)
}
 0x66a   :  { %9186 = dma.vmem_to_hbm [thread:$0]  %s9181_s20, 8192, %s18275_s5, [#allocation3], %s12458_s27, %s12458_s27, %s12459_s28  }
 0x66b   :  { %12450 = dma.done.wait [#allocation3], 8192  }
 0x66c   :  { %12451 = vsyncadd [#allocation3], 4294959104 }
 0x66d   :  { %12452 = dma.done.wait [#allocation5], 8192  }
 0x66e   :  { %12453 = vsyncadd [#allocation5], 4294959104 }
 0x66f   :  { %9205 = vsyncpa [#allocation3], 1 }
 0x670   :  { %9206 = vsyncpa [#allocation5], 1 }

</bundles_post_ra>
